<compile_context>
chip_gen: v7x
topology: tpu7x:2x2x1
jax: 0.10.0
libtpu: 0.0.40
codegen_flags: <defaults>
</compile_context>

<pallas_src>
import math

import jax
import jax.numpy as jnp
from jax.experimental import pallas as pl
from jax.experimental.pallas import tpu as pltpu

EXPANSION = 4
BN_EPS = 1e-5
LANE = 128

TM_MAX = 512
TN_MAX = 512
TK_SINGLE_MAX = 2048          # single K block (no accumulator revisits) up to this size
TK_MULTI = 512

VMEM_SOFT_LIMIT = 32 * 1024 * 1024


def _round_up(n, m):
    return ((n + m - 1) // m) * m


def _cdiv(a, b):
    return (a + b - 1) // b


def _pick_div_tile(dim, cap):
    """Largest lane-aligned tile <= cap dividing dim (dim is a multiple of 128)."""
    for t in (512, 384, 256, 128):
        if t <= cap and dim % t == 0:
            return t
    return 128


def _m_tile(M):
    """Big 8-aligned M tile; when a single tile would cover everything and M is
    large enough, split in two so v7x's two TensorCores both get a parallel block."""
    m8 = _round_up(M, 8)
    if m8 <= TM_MAX:
        return m8 if m8 < 256 else _round_up(_cdiv(m8, 2), 8)
    return TM_MAX


def _vmem_limit(nbytes):
    # Explicit scoped-VMEM budget; clamp so it also fits v7x's 64 MiB/TC.
    return int(min(64 * 1024 * 1024, max(VMEM_SOFT_LIMIT, 2 * nbytes)))


# ---------------------------------------------------------------------------
# Fused matmul kernel:  out_bf16 = epilogue(x @ w + bias [+ residual])
#   x, w, residual: bf16   bias: f32   accumulation: f32 on the MXU
# ---------------------------------------------------------------------------
def _make_matmul_kernel(single_k, has_residual, relu, n_relu_tiles):
    """Epilogue = ReLU on all columns (relu=True) or only on the first
    `n_relu_tiles` N-tiles (fused conv1 + downsample heads)."""

    def epilogue_write(y, out_ref):
        if n_relu_tiles is not None:
            j = pl.program_id(1)

            @pl.when(j < n_relu_tiles)
            def _():
                out_ref[...] = jnp.maximum(y, 0.0).astype(out_ref.dtype)

            @pl.when(j >= n_relu_tiles)
            def _():
                out_ref[...] = y.astype(out_ref.dtype)
        else:
            out_ref[...] = (jnp.maximum(y, 0.0) if relu else y).astype(out_ref.dtype)

    if single_k:
        # Single K block: no accumulator scratch, no zero-init -- direct write.
        def kernel(x_ref, w_ref, b_ref, *rest):
            if has_residual:
                res_ref, out_ref = rest
            else:
                (out_ref,) = rest
            y = jnp.dot(x_ref[...], w_ref[...], preferred_element_type=jnp.float32)
            y = y + b_ref[...]
            if has_residual:
                y = y + res_ref[...].astype(jnp.float32)
            epilogue_write(y, out_ref)

        return kernel

    # General multi-K-block path (not exercised by the shapes in this script).
    def kernel(x_ref, w_ref, b_ref, *rest):
        if has_residual:
            res_ref, out_ref, acc_ref = rest
        else:
            out_ref, acc_ref = rest

        @pl.when(pl.program_id(2) == 0)
        def _():
            acc_ref[...] = jnp.zeros_like(acc_ref)

        acc_ref[...] += jnp.dot(x_ref[...], w_ref[...],
                                preferred_element_type=jnp.float32)

        @pl.when(pl.program_id(2) == pl.num_programs(2) - 1)
        def _():
            y = acc_ref[...] + b_ref[...]
            if has_residual:
                y = y + res_ref[...].astype(jnp.float32)
            epilogue_write(y, out_ref)

    return kernel


def fused_matmul(x, w, bias, *, residual=None, relu=False, n_relu_cols=None):
    """out(M,Np) = epilogue(x(M,K) @ w(K,Np) + bias [+ residual]) in one pallas_call.

    K and Np are multiples of 128 (channels padded once at pack time), so no per-call
    activation/weight padding is needed and the output is lane-dense.  When
    `n_relu_cols` is given, ReLU is applied only to the first n_relu_cols columns
    (the conv1 head of a fused conv1+downsample call); `relu` is ignored then.
    """
    M, K = x.shape
    Kw, Np = w.shape
    assert K == Kw and K % LANE == 0 and Np % LANE == 0
    x = x.astype(jnp.bfloat16)

    tm = _m_tile(M)
    gm = _cdiv(M, tm)

    if n_relu_cols is None:
        tn = _pick_div_tile(Np, TN_MAX)
        n_relu_tiles = None
    else:
        tn = _pick_div_tile(math.gcd(n_relu_cols, Np - n_relu_cols) or Np, TN_MAX)
        n_relu_tiles = n_relu_cols // tn
    gn = Np // tn

    single_k = K <= TK_SINGLE_MAX
    tk = K if single_k else _pick_div_tile(K, TK_MULTI)
    gk = K // tk

    inputs = [x, w, bias]
    in_specs = [
        pl.BlockSpec((tm, tk), lambda i, j, k: (i, k)),
        pl.BlockSpec((tk, tn), lambda i, j, k: (k, j)),
        pl.BlockSpec((1, tn), lambda i, j, k: (0, j)),
    ]
    if residual is not None:
        inputs.append(residual.astype(jnp.bfloat16))
        in_specs.append(pl.BlockSpec((tm, tn), lambda i, j, k: (i, j)))

    scratch = [] if single_k else [pltpu.VMEM((tm, tn), jnp.float32)]

    est = 2 * (tm * tk * 2 + tk * tn * 2 + tn * 4 + tm * tn * 2) + tm * tn * 4
    if residual is not None:
        est += 2 * tm * tn * 2

    return pl.pallas_call(
        _make_matmul_kernel(single_k, residual is not None, relu, n_relu_tiles),
        out_shape=jax.ShapeDtypeStruct((M, Np), jnp.bfloat16),
        grid_spec=pltpu.PrefetchScalarGridSpec(
            num_scalar_prefetch=0,
            grid=(gm, gn, gk),
            in_specs=in_specs,
            out_specs=pl.BlockSpec((tm, tn), lambda i, j, k: (i, j)),
            scratch_shapes=scratch,
        ),
        compiler_params=pltpu.CompilerParams(
            dimension_semantics=("parallel", "parallel", "arbitrary"),
            vmem_limit_bytes=_vmem_limit(est)),
    )(*inputs)


# ---------------------------------------------------------------------------
# Fully fused stride-1 3x3 conv + folded BN + ReLU (no HBM im2col patch tensor)
# ---------------------------------------------------------------------------
def _make_conv3x3_kernel(ho, wo, c, tn, relu):
    def kernel(x_ref, w_ref, b_ref, o_ref):
        # x_ref: (1, ho+2, wo+2, c)  w_ref: (9*c, tn)  b_ref: (1, tn)  o_ref: (1, ho*wo, tn)
        acc = jnp.zeros((ho * wo, tn), jnp.float32)
        for ki in range(3):
            for kj in range(3):
                t = ki * 3 + kj
                xs = x_ref[0, ki:ki + ho, kj:kj + wo, :].reshape(ho * wo, c)
                acc = acc + jnp.dot(xs, w_ref[t * c:(t + 1) * c, :],
                                    preferred_element_type=jnp.float32)
        y = acc + b_ref[...]
        if relu:
            y = jnp.maximum(y, 0.0)
        o_ref[...] = y[None].astype(o_ref.dtype)

    return kernel


def _im2col(x, kh, kw, stride, pad):
    """x NHWC bf16 -> (N*Ho*Wo, kh*kw*C) patch matrix (fallback path only)."""
    if pad:
        x = jnp.pad(x, ((0, 0), (pad, pad), (pad, pad), (0, 0)))
    n, h, w, c = x.shape
    ho = (h - kh) // stride + 1
    wo = (w - kw) // stride + 1
    if kh == 1 and kw == 1:
        patches = x[:, ::stride, ::stride, :]
        return patches.reshape(n * ho * wo, c), ho, wo
    cols = []
    for i in range(kh):
        for j in range(kw):
            cols.append(x[:, i:i + stride * ho:stride, j:j + stride * wo:stride, :])
    patches = jnp.concatenate(cols, axis=-1)
    return patches.reshape(n * ho * wo, kh * kw * c), ho, wo


def conv3x3_bn(x, packed, stride, relu=True):
    """3x3 conv + folded BN (+ ReLU).  stride==1 runs the fused shifted-window
    kernel; stride>1 falls back to im2col + one fused matmul."""
    n, h, w, c = x.shape
    cout_p = packed["cout_p"]
    assert packed["kh"] == 3 and packed["kw"] == 3 and c == packed["cin_p"]

    ho = (h + 2 * 1 - 3) // stride + 1
    wo = (w + 2 * 1 - 3) // stride + 1

    fused_ok = (stride == 1 and wo % 8 == 0 and
                (h + 2) * (w + 2) * c * 2 + ho * wo * cout_p * 8 < 8 * 1024 * 1024)
    if not fused_ok:
        # TODO(synk): strided / very large 3x3 convs still materialize an HBM im2col.
        patches, ho2, wo2 = _im2col(x, 3, 3, stride, 1)
        out = fused_matmul(patches, packed["w"], packed["b"], relu=relu)
        return out.reshape(n, ho2, wo2, cout_p)

    xp = jnp.pad(x.astype(jnp.bfloat16), ((0, 0), (1, 1), (1, 1), (0, 0)))
    hp, wp = h + 2, w + 2
    tn = _pick_div_tile(cout_p, TN_MAX)

    est = 2 * (hp * wp * c * 2 + 9 * c * tn * 2 + ho * wo * tn * 2) + ho * wo * tn * 4
    out = pl.pallas_call(
        _make_conv3x3_kernel(ho, wo, c, tn, relu),
        out_shape=jax.ShapeDtypeStruct((n, ho * wo, cout_p), jnp.bfloat16),
        grid_spec=pltpu.PrefetchScalarGridSpec(
            num_scalar_prefetch=0,
            grid=(n, cout_p // tn),
            in_specs=[
                pl.BlockSpec((1, hp, wp, c), lambda b, j: (b, 0, 0, 0)),
                pl.BlockSpec((9 * c, tn), lambda b, j: (0, j)),
                pl.BlockSpec((1, tn), lambda b, j: (0, j)),
            ],
            out_specs=pl.BlockSpec((1, ho * wo, tn), lambda b, j: (b, 0, j)),
        ),
        compiler_params=pltpu.CompilerParams(
            dimension_semantics=("parallel", "parallel"),
            vmem_limit_bytes=_vmem_limit(est)),
    )(xp, packed["w"], packed["b"])
    return out.reshape(n, ho, wo, cout_p)


def conv1x1_bn(x, packed, stride, relu, residual=None):
    """1x1 conv + folded BN (+ residual) (+ ReLU) as one fused Pallas matmul."""
    assert packed["kh"] == 1 and packed["kw"] == 1
    if stride != 1:
        x = x[:, ::stride, ::stride, :]
    n, h, w, c = x.shape
    res = residual.reshape(n * h * w, -1) if residual is not None else None
    out = fused_matmul(x.reshape(n * h * w, c), packed["w"], packed["b"],
                       residual=res, relu=relu)
    return out.reshape(n, h, w, packed["cout_p"])


# ---------------------------------------------------------------------------
# Parameter initialization (mirrors the PyTorch __init__) + one-time packing
# ---------------------------------------------------------------------------
def init_conv(key, cout, cin, kh, kw):
    n = kh * kw * cout  # kaiming_normal_ fan_out, as in the reference repo
    return jax.random.normal(key, (cout, cin, kh, kw), jnp.float32) * math.sqrt(2.0 / n)


def init_bn(c):
    # (gamma, beta, running_mean, running_var) -- freshly initialized, eval mode
    return (jnp.ones((c,), jnp.float32), jnp.zeros((c,), jnp.float32),
            jnp.zeros((c,), jnp.float32), jnp.ones((c,), jnp.float32))


def init_bottleneck(key, inplanes, planes, stride=1, groups=1, base_width=64):
    # TODO(synk): grouped convolution (ResNeXt cardinality > 1) is not lowered.
    assert groups == 1
    width = int(planes * (base_width / 64.0)) * groups
    k1, k2, k3, k4 = jax.random.split(key, 4)
    raw = {
        "conv1": (init_conv(k1, width, inplanes, 1, 1), init_bn(width)),
        "conv2": (init_conv(k2, width, width, 3, 3), init_bn(width)),
        "conv3": (init_conv(k3, planes * EXPANSION, width, 1, 1),
                  init_bn(planes * EXPANSION)),
        "stride": stride,
    }
    if stride != 1 or inplanes != planes * EXPANSION:
        raw["down"] = (init_conv(k4, planes * EXPANSION, inplanes, 1, 1),
                       init_bn(planes * EXPANSION))
    return raw


def pack_conv_bn(w_oihw, bn):
    """One-time pack: fold inference-mode BN into the weights, pad cin/cout to a
    multiple of 128, relayout OIHW -> (kh*kw*cin_p, cout_p), cast bf16.
    NOTE: real checkpoints must be re-packed after loading their BN running stats."""
    cout, cin, kh, kw = w_oihw.shape
    gamma, beta, mean, var = bn
    scale = gamma / jnp.sqrt(var + BN_EPS)
    bias = beta - mean * scale
    cin_p, cout_p = _round_up(cin, LANE), _round_up(cout, LANE)
    w = w_oihw * scale[:, None, None, None]
    w = jnp.pad(w, ((0, cout_p - cout), (0, cin_p - cin), (0, 0), (0, 0)))
    wmat = jnp.transpose(w, (2, 3, 1, 0)).reshape(kh * kw * cin_p, cout_p)
    b = jnp.pad(bias, (0, cout_p - cout)).reshape(1, cout_p)
    return {"w": wmat.astype(jnp.bfloat16), "b": b.astype(jnp.float32),
            "kh": kh, "kw": kw, "cin": cin, "cout": cout,
            "cin_p": cin_p, "cout_p": cout_p}


def pack_bottleneck(raw):
    blk = {"stride": raw["stride"]}
    for name in ("conv1", "conv2", "conv3", "down"):
        if name in raw:
            blk[name] = pack_conv_bn(*raw[name])
    # conv1 and a stride-1 downsample read the same rows of x: fuse into one matmul
    # by concatenating their weight matrices along N (ReLU only on the conv1 tiles).
    if "down" in blk and blk["stride"] == 1:
        c1, dn = blk["conv1"], blk["down"]
        blk["conv1_down"] = {
            "w": jnp.concatenate([c1["w"], dn["w"]], axis=1),
            "b": jnp.concatenate([c1["b"], dn["b"]], axis=1),
            "n1": c1["cout_p"], "n2": dn["cout_p"],
        }
    return blk


# ---------------------------------------------------------------------------
# Forward pass (mirrors Bottleneck.forward)
# ---------------------------------------------------------------------------
def bottleneck_forward(x, blk):
    """One Bottleneck block; x is NHWC bf16 with channels already padded to 128."""
    stride = blk["stride"]
    assert x.shape[-1] == blk["conv1"]["cin_p"]

    if "conv1_down" in blk:
        cd = blk["conv1_down"]
        n, h, w, c = x.shape
        both = fused_matmul(x.reshape(n * h * w, c), cd["w"], cd["b"],
                            n_relu_cols=cd["n1"])
        out = both[:, :cd["n1"]].reshape(n, h, w, cd["n1"])
        identity = both[:, cd["n1"]:].reshape(n, h, w, cd["n2"])
    else:
        out = conv1x1_bn(x, blk["conv1"], 1, relu=True)
        if "down" in blk:
            identity = conv1x1_bn(x, blk["down"], stride, relu=False)
        else:
            identity = x

    out = conv3x3_bn(out, blk["conv2"], stride, relu=True)

    # conv3 + bn3 + residual add + final ReLU fused into one kernel call
    n, h, w, c = out.shape
    c3 = blk["conv3"]
    y = fused_matmul(out.reshape(n * h * w, c), c3["w"], c3["b"],
                     residual=identity.reshape(n * h * w, c3["cout_p"]),
                     relu=True)
    return y.reshape(n, h, w, c3["cout_p"])


def bottleneck_forward_nchw(blocks, x_nchw):
    """PyTorch-layout entry point: NCHW in/out; internally NHWC bf16 with channels
    padded to 128 once at entry and sliced back once at exit."""
    if isinstance(blocks, dict):
        blocks = [blocks]
    cin = x_nchw.shape[1]
    cin_p = blocks[0]["conv1"]["cin_p"]
    x = jnp.transpose(x_nchw, (0, 2, 3, 1)).astype(jnp.bfloat16)
    if cin_p != cin:
        x = jnp.pad(x, ((0, 0), (0, 0), (0, 0), (0, cin_p - cin)))
    for blk in blocks:
        x = bottleneck_forward(x, blk)
    cout = blocks[-1]["conv3"]["cout"]
    return jnp.transpose(x[..., :cout], (0, 3, 1, 2))


# ---------------------------------------------------------------------------
# Pure-XLA reference (independent path: lax.conv in f32 with the same folded
# bf16 weights and bf16 activation I/O between layers)
# ---------------------------------------------------------------------------
def _ref_conv_bn(x, packed, stride, pad, relu, residual=None):
    w = packed["w"].astype(jnp.float32).reshape(
        packed["kh"], packed["kw"], packed["cin_p"], packed["cout_p"])
    y = jax.lax.conv_general_dilated(
        x, w, window_strides=(stride, stride),
        padding=[(pad, pad), (pad, pad)],
        dimension_numbers=("NHWC", "HWIO", "NHWC"),
        precision=jax.lax.Precision.HIGHEST)
    y = y + packed["b"].reshape(-1)[None, None, None, :]
    if residual is not None:
        y = y + residual
    if relu:
        y = jnp.maximum(y, 0.0)
    return y.astype(jnp.bfloat16).astype(jnp.float32)  # mimic bf16 activation I/O


def _ref_block(x, blk):
    out = _ref_conv_bn(x, blk["conv1"], 1, 0, True)
    out = _ref_conv_bn(out, blk["conv2"], blk["stride"], 1, True)
    if "down" in blk:
        identity = _ref_conv_bn(x, blk["down"], blk["stride"], 0, False)
    else:
        identity = x
    return _ref_conv_bn(out, blk["conv3"], 1, 0, True, residual=identity)


def reference_forward_nchw(blocks, x_nchw):
    if isinstance(blocks, dict):
        blocks = [blocks]
    cin = x_nchw.shape[1]
    cin_p = blocks[0]["conv1"]["cin_p"]
    x = jnp.transpose(x_nchw, (0, 2, 3, 1))
    if cin_p != cin:
        x = jnp.pad(x, ((0, 0), (0, 0), (0, 0), (0, cin_p - cin)))
    x = x.astype(jnp.bfloat16).astype(jnp.float32)
    for blk in blocks:
        x = _ref_block(x, blk)
    cout = blocks[-1]["conv3"]["cout"]
    return jnp.transpose(x[..., :cout], (0, 3, 1, 2))


if __name__ == "__main__":
    key = jax.random.PRNGKey(0)
    kx, k1, k2, k3 = jax.random.split(key, 4)

    B, Cin, H, W = 2, 32, 16, 16
    planes = 16                                   # width = 16, block output = 64 channels

    x = jax.random.normal(kx, (B, Cin, H, W), jnp.float32)

    # block 1: stride-1 projection block -> fused conv1+downsample, fused 3x3 kernel
    # block 2: stride-2 projection block -> strided downsample, im2col fallback for 3x3
    # block 3: stride-1 identity block   -> identity residual, fused 3x3 kernel
    raw1 = init_bottleneck(k1, Cin, planes, stride=1)
    raw2 = init_bottleneck(k2, planes * EXPANSION, planes, stride=2)
    raw3 = init_bottleneck(k3, planes * EXPANSION, planes, stride=1)
    blocks = [pack_bottleneck(r) for r in (raw1, raw2, raw3)]   # one-time packing

    fwd = jax.jit(lambda inp: bottleneck_forward_nchw(blocks, inp))
    out = jax.block_until_ready(fwd(x))

    assert out.shape == (B, planes * EXPANSION, H // 2, W // 2), out.shape
    out_f32 = out.astype(jnp.float32)
    assert bool(jnp.all(jnp.isfinite(out_f32)))

    ref = jax.block_until_ready(reference_forward_nchw(blocks, x).astype(jnp.float32))
    err = float(jnp.max(jnp.abs(out_f32 - ref)))
    tol = 5e-2 * (1.0 + float(jnp.max(jnp.abs(ref))))
    assert err <= tol, (err, tol)

    print("KERNEL_OK")
</pallas_src>

<mosaic_0001>
module attributes {stable_mosaic.version = 11 : i64} {
  func.func @kernel(%arg0: i32, %arg1: i32, %arg2: i32, %arg3: memref<256x128xbf16, #tpu.memory_space<vmem>>, %arg4: memref<128x128xbf16, #tpu.memory_space<vmem>>, %arg5: memref<1x128xf32, #tpu.memory_space<vmem>>, %arg6: memref<256x128xbf16, #tpu.memory_space<vmem>>) attributes {dimension_semantics = [#tpu.dimension_semantics<parallel>, #tpu.dimension_semantics<parallel>, #tpu.dimension_semantics<arbitrary>], iteration_bounds = array<i64: 2, 2, 1>, scalar_prefetch = 0 : i64, scratch_operands = 0 : i64, tpu.core_type = #tpu.core_type<tc>, window_params = [{transform_indices = @transform_0, window_bounds = array<i64: 256, 128>}, {transform_indices = @transform_1, window_bounds = array<i64: 128, 128>}, {transform_indices = @transform_2, window_bounds = array<i64: 1, 128>}, {transform_indices = @transform_3, window_bounds = array<i64: 256, 128>}]} {
    %c0 = arith.constant 0 : index
    %c0_0 = arith.constant 0 : index
    %0 = vector.load %arg3[%c0, %c0_0] : memref<256x128xbf16, #tpu.memory_space<vmem>>, vector<256x128xbf16>
    %c0_1 = arith.constant 0 : index
    %c0_2 = arith.constant 0 : index
    %1 = vector.load %arg4[%c0_1, %c0_2] : memref<128x128xbf16, #tpu.memory_space<vmem>>, vector<128x128xbf16>
    %cst = arith.constant dense<0.000000e+00> : vector<256x128xf32>
    %2 = tpu.matmul %0, %1, %cst {dimension_numbers = #tpu.dot_dimension_numbers<[1], [0], [0], [1], [0, 0, 1, 1], [], []>} : vector<256x128xbf16>, vector<128x128xbf16>, vector<256x128xf32> -> vector<256x128xf32>
    %c0_3 = arith.constant 0 : index
    %c0_4 = arith.constant 0 : index
    %3 = vector.load %arg5[%c0_3, %c0_4] : memref<1x128xf32, #tpu.memory_space<vmem>>, vector<1x128xf32>
    %4 = vector.broadcast %3 : vector<1x128xf32> to vector<256x128xf32>
    %5 = arith.addf %2, %4 : vector<256x128xf32>
    %c1_i32 = arith.constant 1 : i32
    %6 = arith.cmpi slt, %arg1, %c1_i32 : i32
    %7 = arith.extui %6 : i1 to i32
    %c0_i32 = arith.constant 0 : i32
    %8 = arith.cmpi ne, %7, %c0_i32 : i32
    scf.if %8 {
      %cst_7 = arith.constant 0.000000e+00 : f32
      %12 = vector.broadcast %cst_7 : f32 to vector<256x128xf32>
      %13 = arith.maximumf %5, %12 : vector<256x128xf32>
      %14 = arith.truncf %13 : vector<256x128xf32> to vector<256x128xbf16>
      %c0_8 = arith.constant 0 : index
      %c0_9 = arith.constant 0 : index
      %15 = vector.load %arg6[%c0_8, %c0_9] : memref<256x128xbf16, #tpu.memory_space<vmem>>, vector<256x128xbf16>
      tpu.vector_store %arg6[%c0_8, %c0_9], %14 {strides = array<i32>} : memref<256x128xbf16, #tpu.memory_space<vmem>>, vector<256x128xbf16>,
    } else {
    }
    %c1_i32_5 = arith.constant 1 : i32
    %9 = arith.cmpi sge, %arg1, %c1_i32_5 : i32
    %10 = arith.extui %9 : i1 to i32
    %c0_i32_6 = arith.constant 0 : i32
    %11 = arith.cmpi ne, %10, %c0_i32_6 : i32
    scf.if %11 {
      %12 = arith.truncf %5 : vector<256x128xf32> to vector<256x128xbf16>
      %c0_7 = arith.constant 0 : index
      %c0_8 = arith.constant 0 : index
      %13 = vector.load %arg6[%c0_7, %c0_8] : memref<256x128xbf16, #tpu.memory_space<vmem>>, vector<256x128xbf16>
      tpu.vector_store %arg6[%c0_7, %c0_8], %12 {strides = array<i32>} : memref<256x128xbf16, #tpu.memory_space<vmem>>, vector<256x128xbf16>,
    } else {
    }
    return
  }
  func.func @transform_0(%arg0: i32, %arg1: i32, %arg2: i32) -> (i32, i32) {
    %c0_i32 = arith.constant 0 : i32
    return %arg0, %arg2 : i32, i32
  }
  func.func @transform_1(%arg0: i32, %arg1: i32, %arg2: i32) -> (i32, i32) {
    %c0_i32 = arith.constant 0 : i32
    return %arg2, %arg1 : i32, i32
  }
  func.func @transform_2(%arg0: i32, %arg1: i32, %arg2: i32) -> (i32, i32) {
    %c0_i32 = arith.constant 0 : i32
    %c0_i32_0 = arith.constant 0 : i32
    return %c0_i32, %arg1 : i32, i32
  }
  func.func @transform_3(%arg0: i32, %arg1: i32, %arg2: i32) -> (i32, i32) {
    %c0_i32 = arith.constant 0 : i32
    return %arg0, %arg1 : i32, i32
  }
}

module attributes {stable_mosaic.version = 11 : i64} {
  func.func @kernel(%arg0: i32, %arg1: i32, %arg2: memref<1x18x18x128xbf16, #tpu.memory_space<vmem>>, %arg3: memref<1152x128xbf16, #tpu.memory_space<vmem>>, %arg4: memref<1x128xf32, #tpu.memory_space<vmem>>, %arg5: memref<1x256x128xbf16, #tpu.memory_space<vmem>>) attributes {dimension_semantics = [#tpu.dimension_semantics<parallel>, #tpu.dimension_semantics<parallel>], iteration_bounds = array<i64: 2, 1>, scalar_prefetch = 0 : i64, scratch_operands = 0 : i64, tpu.core_type = #tpu.core_type<tc>, window_params = [{transform_indices = @transform_0, window_bounds = array<i64: 1, 18, 18, 128>}, {transform_indices = @transform_1, window_bounds = array<i64: 1152, 128>}, {transform_indices = @transform_2, window_bounds = array<i64: 1, 128>}, {transform_indices = @transform_3, window_bounds = array<i64: 1, 256, 128>}]} {
    %cst = arith.constant 0.000000e+00 : f32
    %0 = vector.broadcast %cst : f32 to vector<256x128xf32>
    %c0 = arith.constant 0 : index
    %c0_0 = arith.constant 0 : index
    %c0_1 = arith.constant 0 : index
    %c0_2 = arith.constant 0 : index
    %1 = vector.load %arg2[%c0, %c0_0, %c0_1, %c0_2] : memref<1x18x18x128xbf16, #tpu.memory_space<vmem>>, vector<1x16x16x128xbf16>
    %2 = vector.shape_cast %1 : vector<1x16x16x128xbf16> to vector<16x16x128xbf16>
    %3 = vector.shape_cast %2 : vector<16x16x128xbf16> to vector<256x128xbf16>
    %c0_3 = arith.constant 0 : index
    %c0_4 = arith.constant 0 : index
    %4 = vector.load %arg3[%c0_3, %c0_4] : memref<1152x128xbf16, #tpu.memory_space<vmem>>, vector<128x128xbf16>
    %cst_5 = arith.constant dense<0.000000e+00> : vector<256x128xf32>
    %5 = tpu.matmul %3, %4, %cst_5 {dimension_numbers = #tpu.dot_dimension_numbers<[1], [0], [0], [1], [0, 0, 1, 1], [], []>} : vector<256x128xbf16>, vector<128x128xbf16>, vector<256x128xf32> -> vector<256x128xf32>
    %6 = arith.addf %0, %5 : vector<256x128xf32>
    %c0_6 = arith.constant 0 : index
    %c0_7 = arith.constant 0 : index
    %c1 = arith.constant 1 : index
    %c0_8 = arith.constant 0 : index
    %7 = vector.load %arg2[%c0_6, %c0_7, %c1, %c0_8] : memref<1x18x18x128xbf16, #tpu.memory_space<vmem>>, vector<1x16x16x128xbf16>
    %8 = vector.shape_cast %7 : vector<1x16x16x128xbf16> to vector<16x16x128xbf16>
    %9 = vector.shape_cast %8 : vector<16x16x128xbf16> to vector<256x128xbf16>
    %c128 = arith.constant 128 : index
    %c0_9 = arith.constant 0 : index
    %10 = vector.load %arg3[%c128, %c0_9] : memref<1152x128xbf16, #tpu.memory_space<vmem>>, vector<128x128xbf16>
    %cst_10 = arith.constant dense<0.000000e+00> : vector<256x128xf32>
    %11 = tpu.matmul %9, %10, %cst_10 {dimension_numbers = #tpu.dot_dimension_numbers<[1], [0], [0], [1], [0, 0, 1, 1], [], []>} : vector<256x128xbf16>, vector<128x128xbf16>, vector<256x128xf32> -> vector<256x128xf32>
    %12 = arith.addf %6, %11 : vector<256x128xf32>
    %c0_11 = arith.constant 0 : index
    %c0_12 = arith.constant 0 : index
    %c2 = arith.constant 2 : index
    %c0_13 = arith.constant 0 : index
    %13 = vector.load %arg2[%c0_11, %c0_12, %c2, %c0_13] : memref<1x18x18x128xbf16, #tpu.memory_space<vmem>>, vector<1x16x16x128xbf16>
    %14 = vector.shape_cast %13 : vector<1x16x16x128xbf16> to vector<16x16x128xbf16>
    %15 = vector.shape_cast %14 : vector<16x16x128xbf16> to vector<256x128xbf16>
    %c256 = arith.constant 256 : index
    %c0_14 = arith.constant 0 : index
    %16 = vector.load %arg3[%c256, %c0_14] : memref<1152x128xbf16, #tpu.memory_space<vmem>>, vector<128x128xbf16>
    %cst_15 = arith.constant dense<0.000000e+00> : vector<256x128xf32>
    %17 = tpu.matmul %15, %16, %cst_15 {dimension_numbers = #tpu.dot_dimension_numbers<[1], [0], [0], [1], [0, 0, 1, 1], [], []>} : vector<256x128xbf16>, vector<128x128xbf16>, vector<256x128xf32> -> vector<256x128xf32>
    %18 = arith.addf %12, %17 : vector<256x128xf32>
    %c0_16 = arith.constant 0 : index
    %c1_17 = arith.constant 1 : index
    %c0_18 = arith.constant 0 : index
    %c0_19 = arith.constant 0 : index
    %19 = vector.load %arg2[%c0_16, %c1_17, %c0_18, %c0_19] : memref<1x18x18x128xbf16, #tpu.memory_space<vmem>>, vector<1x16x16x128xbf16>
    %20 = vector.shape_cast %19 : vector<1x16x16x128xbf16> to vector<16x16x128xbf16>
    %21 = vector.shape_cast %20 : vector<16x16x128xbf16> to vector<256x128xbf16>
    %c384 = arith.constant 384 : index
    %c0_20 = arith.constant 0 : index
    %22 = vector.load %arg3[%c384, %c0_20] : memref<1152x128xbf16, #tpu.memory_space<vmem>>, vector<128x128xbf16>
    %cst_21 = arith.constant dense<0.000000e+00> : vector<256x128xf32>
    %23 = tpu.matmul %21, %22, %cst_21 {dimension_numbers = #tpu.dot_dimension_numbers<[1], [0], [0], [1], [0, 0, 1, 1], [], []>} : vector<256x128xbf16>, vector<128x128xbf16>, vector<256x128xf32> -> vector<256x128xf32>
    %24 = arith.addf %18, %23 : vector<256x128xf32>
    %c0_22 = arith.constant 0 : index
    %c1_23 = arith.constant 1 : index
    %c1_24 = arith.constant 1 : index
    %c0_25 = arith.constant 0 : index
    %25 = vector.load %arg2[%c0_22, %c1_23, %c1_24, %c0_25] : memref<1x18x18x128xbf16, #tpu.memory_space<vmem>>, vector<1x16x16x128xbf16>
    %26 = vector.shape_cast %25 : vector<1x16x16x128xbf16> to vector<16x16x128xbf16>
    %27 = vector.shape_cast %26 : vector<16x16x128xbf16> to vector<256x128xbf16>
    %c512 = arith.constant 512 : index
    %c0_26 = arith.constant 0 : index
    %28 = vector.load %arg3[%c512, %c0_26] : memref<1152x128xbf16, #tpu.memory_space<vmem>>, vector<128x128xbf16>
    %cst_27 = arith.constant dense<0.000000e+00> : vector<256x128xf32>
    %29 = tpu.matmul %27, %28, %cst_27 {dimension_numbers = #tpu.dot_dimension_numbers<[1], [0], [0], [1], [0, 0, 1, 1], [], []>} : vector<256x128xbf16>, vector<128x128xbf16>, vector<256x128xf32> -> vector<256x128xf32>
    %30 = arith.addf %24, %29 : vector<256x128xf32>
    %c0_28 = arith.constant 0 : index
    %c1_29 = arith.constant 1 : index
    %c2_30 = arith.constant 2 : index
    %c0_31 = arith.constant 0 : index
    %31 = vector.load %arg2[%c0_28, %c1_29, %c2_30, %c0_31] : memref<1x18x18x128xbf16, #tpu.memory_space<vmem>>, vector<1x16x16x128xbf16>
    %32 = vector.shape_cast %31 : vector<1x16x16x128xbf16> to vector<16x16x128xbf16>
    %33 = vector.shape_cast %32 : vector<16x16x128xbf16> to vector<256x128xbf16>
    %c640 = arith.constant 640 : index
    %c0_32 = arith.constant 0 : index
    %34 = vector.load %arg3[%c640, %c0_32] : memref<1152x128xbf16, #tpu.memory_space<vmem>>, vector<128x128xbf16>
    %cst_33 = arith.constant dense<0.000000e+00> : vector<256x128xf32>
    %35 = tpu.matmul %33, %34, %cst_33 {dimension_numbers = #tpu.dot_dimension_numbers<[1], [0], [0], [1], [0, 0, 1, 1], [], []>} : vector<256x128xbf16>, vector<128x128xbf16>, vector<256x128xf32> -> vector<256x128xf32>
    %36 = arith.addf %30, %35 : vector<256x128xf32>
    %c0_34 = arith.constant 0 : index
    %c2_35 = arith.constant 2 : index
    %c0_36 = arith.constant 0 : index
    %c0_37 = arith.constant 0 : index
    %37 = vector.load %arg2[%c0_34, %c2_35, %c0_36, %c0_37] : memref<1x18x18x128xbf16, #tpu.memory_space<vmem>>, vector<1x16x16x128xbf16>
    %38 = vector.shape_cast %37 : vector<1x16x16x128xbf16> to vector<16x16x128xbf16>
    %39 = vector.shape_cast %38 : vector<16x16x128xbf16> to vector<256x128xbf16>
    %c768 = arith.constant 768 : index
    %c0_38 = arith.constant 0 : index
    %40 = vector.load %arg3[%c768, %c0_38] : memref<1152x128xbf16, #tpu.memory_space<vmem>>, vector<128x128xbf16>
    %cst_39 = arith.constant dense<0.000000e+00> : vector<256x128xf32>
    %41 = tpu.matmul %39, %40, %cst_39 {dimension_numbers = #tpu.dot_dimension_numbers<[1], [0], [0], [1], [0, 0, 1, 1], [], []>} : vector<256x128xbf16>, vector<128x128xbf16>, vector<256x128xf32> -> vector<256x128xf32>
    %42 = arith.addf %36, %41 : vector<256x128xf32>
    %c0_40 = arith.constant 0 : index
    %c2_41 = arith.constant 2 : index
    %c1_42 = arith.constant 1 : index
    %c0_43 = arith.constant 0 : index
    %43 = vector.load %arg2[%c0_40, %c2_41, %c1_42, %c0_43] : memref<1x18x18x128xbf16, #tpu.memory_space<vmem>>, vector<1x16x16x128xbf16>
    %44 = vector.shape_cast %43 : vector<1x16x16x128xbf16> to vector<16x16x128xbf16>
    %45 = vector.shape_cast %44 : vector<16x16x128xbf16> to vector<256x128xbf16>
    %c896 = arith.constant 896 : index
    %c0_44 = arith.constant 0 : index
    %46 = vector.load %arg3[%c896, %c0_44] : memref<1152x128xbf16, #tpu.memory_space<vmem>>, vector<128x128xbf16>
    %cst_45 = arith.constant dense<0.000000e+00> : vector<256x128xf32>
    %47 = tpu.matmul %45, %46, %cst_45 {dimension_numbers = #tpu.dot_dimension_numbers<[1], [0], [0], [1], [0, 0, 1, 1], [], []>} : vector<256x128xbf16>, vector<128x128xbf16>, vector<256x128xf32> -> vector<256x128xf32>
    %48 = arith.addf %42, %47 : vector<256x128xf32>
    %c0_46 = arith.constant 0 : index
    %c2_47 = arith.constant 2 : index
    %c2_48 = arith.constant 2 : index
    %c0_49 = arith.constant 0 : index
    %49 = vector.load %arg2[%c0_46, %c2_47, %c2_48, %c0_49] : memref<1x18x18x128xbf16, #tpu.memory_space<vmem>>, vector<1x16x16x128xbf16>
    %50 = vector.shape_cast %49 : vector<1x16x16x128xbf16> to vector<16x16x128xbf16>
    %51 = vector.shape_cast %50 : vector<16x16x128xbf16> to vector<256x128xbf16>
    %c1024 = arith.constant 1024 : index
    %c0_50 = arith.constant 0 : index
    %52 = vector.load %arg3[%c1024, %c0_50] : memref<1152x128xbf16, #tpu.memory_space<vmem>>, vector<128x128xbf16>
    %cst_51 = arith.constant dense<0.000000e+00> : vector<256x128xf32>
    %53 = tpu.matmul %51, %52, %cst_51 {dimension_numbers = #tpu.dot_dimension_numbers<[1], [0], [0], [1], [0, 0, 1, 1], [], []>} : vector<256x128xbf16>, vector<128x128xbf16>, vector<256x128xf32> -> vector<256x128xf32>
    %54 = arith.addf %48, %53 : vector<256x128xf32>
    %c0_52 = arith.constant 0 : index
    %c0_53 = arith.constant 0 : index
    %55 = vector.load %arg4[%c0_52, %c0_53] : memref<1x128xf32, #tpu.memory_space<vmem>>, vector<1x128xf32>
    %56 = vector.broadcast %55 : vector<1x128xf32> to vector<256x128xf32>
    %57 = arith.addf %54, %56 : vector<256x128xf32>
    %cst_54 = arith.constant 0.000000e+00 : f32
    %58 = vector.broadcast %cst_54 : f32 to vector<256x128xf32>
    %59 = arith.maximumf %57, %58 : vector<256x128xf32>
    %60 = vector.shape_cast %59 : vector<256x128xf32> to vector<1x256x128xf32>
    %61 = arith.truncf %60 : vector<1x256x128xf32> to vector<1x256x128xbf16>
    %c0_55 = arith.constant 0 : index
    %c0_56 = arith.constant 0 : index
    %c0_57 = arith.constant 0 : index
    %62 = vector.load %arg5[%c0_55, %c0_56, %c0_57] : memref<1x256x128xbf16, #tpu.memory_space<vmem>>, vector<1x256x128xbf16>
    tpu.vector_store %arg5[%c0_55, %c0_56, %c0_57], %61 {strides = array<i32>} : memref<1x256x128xbf16, #tpu.memory_space<vmem>>, vector<1x256x128xbf16>,
    return
  }
  func.func @transform_0(%arg0: i32, %arg1: i32) -> (i32, i32, i32, i32) {
    %c0_i32 = arith.constant 0 : i32
    %c0_i32_0 = arith.constant 0 : i32
    %c0_i32_1 = arith.constant 0 : i32
    %c0_i32_2 = arith.constant 0 : i32
    return %arg0, %c0_i32, %c0_i32_0, %c0_i32_1 : i32, i32, i32, i32
  }
  func.func @transform_1(%arg0: i32, %arg1: i32) -> (i32, i32) {
    %c0_i32 = arith.constant 0 : i32
    %c0_i32_0 = arith.constant 0 : i32
    return %c0_i32, %arg1 : i32, i32
  }
  func.func @transform_2(%arg0: i32, %arg1: i32) -> (i32, i32) {
    %c0_i32 = arith.constant 0 : i32
    %c0_i32_0 = arith.constant 0 : i32
    return %c0_i32, %arg1 : i32, i32
  }
  func.func @transform_3(%arg0: i32, %arg1: i32) -> (i32, i32, i32) {
    %c0_i32 = arith.constant 0 : i32
    %c0_i32_0 = arith.constant 0 : i32
    return %arg0, %c0_i32, %arg1 : i32, i32, i32
  }
}

module attributes {stable_mosaic.version = 11 : i64} {
  func.func @kernel(%arg0: i32, %arg1: i32, %arg2: i32, %arg3: memref<256x128xbf16, #tpu.memory_space<vmem>>, %arg4: memref<128x128xbf16, #tpu.memory_space<vmem>>, %arg5: memref<1x128xf32, #tpu.memory_space<vmem>>, %arg6: memref<256x128xbf16, #tpu.memory_space<vmem>>, %arg7: memref<256x128xbf16, #tpu.memory_space<vmem>>) attributes {dimension_semantics = [#tpu.dimension_semantics<parallel>, #tpu.dimension_semantics<parallel>, #tpu.dimension_semantics<arbitrary>], iteration_bounds = array<i64: 2, 1, 1>, scalar_prefetch = 0 : i64, scratch_operands = 0 : i64, tpu.core_type = #tpu.core_type<tc>, window_params = [{transform_indices = @transform_0, window_bounds = array<i64: 256, 128>}, {transform_indices = @transform_1, window_bounds = array<i64: 128, 128>}, {transform_indices = @transform_2, window_bounds = array<i64: 1, 128>}, {transform_indices = @transform_3, window_bounds = array<i64: 256, 128>}, {transform_indices = @transform_4, window_bounds = array<i64: 256, 128>}]} {
    %c0 = arith.constant 0 : index
    %c0_0 = arith.constant 0 : index
    %0 = vector.load %arg3[%c0, %c0_0] : memref<256x128xbf16, #tpu.memory_space<vmem>>, vector<256x128xbf16>
    %c0_1 = arith.constant 0 : index
    %c0_2 = arith.constant 0 : index
    %1 = vector.load %arg4[%c0_1, %c0_2] : memref<128x128xbf16, #tpu.memory_space<vmem>>, vector<128x128xbf16>
    %cst = arith.constant dense<0.000000e+00> : vector<256x128xf32>
    %2 = tpu.matmul %0, %1, %cst {dimension_numbers = #tpu.dot_dimension_numbers<[1], [0], [0], [1], [0, 0, 1, 1], [], []>} : vector<256x128xbf16>, vector<128x128xbf16>, vector<256x128xf32> -> vector<256x128xf32>
    %c0_3 = arith.constant 0 : index
    %c0_4 = arith.constant 0 : index
    %3 = vector.load %arg5[%c0_3, %c0_4] : memref<1x128xf32, #tpu.memory_space<vmem>>, vector<1x128xf32>
    %4 = vector.broadcast %3 : vector<1x128xf32> to vector<256x128xf32>
    %5 = arith.addf %2, %4 : vector<256x128xf32>
    %c0_5 = arith.constant 0 : index
    %c0_6 = arith.constant 0 : index
    %6 = vector.load %arg6[%c0_5, %c0_6] : memref<256x128xbf16, #tpu.memory_space<vmem>>, vector<256x128xbf16>
    %7 = arith.extf %6 : vector<256x128xbf16> to vector<256x128xf32>
    %8 = arith.addf %5, %7 : vector<256x128xf32>
    %cst_7 = arith.constant 0.000000e+00 : f32
    %9 = vector.broadcast %cst_7 : f32 to vector<256x128xf32>
    %10 = arith.maximumf %8, %9 : vector<256x128xf32>
    %11 = arith.truncf %10 : vector<256x128xf32> to vector<256x128xbf16>
    %c0_8 = arith.constant 0 : index
    %c0_9 = arith.constant 0 : index
    %12 = vector.load %arg7[%c0_8, %c0_9] : memref<256x128xbf16, #tpu.memory_space<vmem>>, vector<256x128xbf16>
    tpu.vector_store %arg7[%c0_8, %c0_9], %11 {strides = array<i32>} : memref<256x128xbf16, #tpu.memory_space<vmem>>, vector<256x128xbf16>,
    return
  }
  func.func @transform_0(%arg0: i32, %arg1: i32, %arg2: i32) -> (i32, i32) {
    %c0_i32 = arith.constant 0 : i32
    return %arg0, %arg2 : i32, i32
  }
  func.func @transform_1(%arg0: i32, %arg1: i32, %arg2: i32) -> (i32, i32) {
    %c0_i32 = arith.constant 0 : i32
    return %arg2, %arg1 : i32, i32
  }
  func.func @transform_2(%arg0: i32, %arg1: i32, %arg2: i32) -> (i32, i32) {
    %c0_i32 = arith.constant 0 : i32
    %c0_i32_0 = arith.constant 0 : i32
    return %c0_i32, %arg1 : i32, i32
  }
  func.func @transform_3(%arg0: i32, %arg1: i32, %arg2: i32) -> (i32, i32) {
    %c0_i32 = arith.constant 0 : i32
    return %arg0, %arg1 : i32, i32
  }
  func.func @transform_4(%arg0: i32, %arg1: i32, %arg2: i32) -> (i32, i32) {
    %c0_i32 = arith.constant 0 : i32
    return %arg0, %arg1 : i32, i32
  }
}

module attributes {stable_mosaic.version = 11 : i64} {
  func.func @kernel(%arg0: i32, %arg1: i32, %arg2: i32, %arg3: memref<128x128xbf16, #tpu.memory_space<vmem>>, %arg4: memref<128x128xbf16, #tpu.memory_space<vmem>>, %arg5: memref<1x128xf32, #tpu.memory_space<vmem>>, %arg6: memref<128x128xbf16, #tpu.memory_space<vmem>>) attributes {dimension_semantics = [#tpu.dimension_semantics<parallel>, #tpu.dimension_semantics<parallel>, #tpu.dimension_semantics<arbitrary>], iteration_bounds = array<i64: 1, 1, 1>, scalar_prefetch = 0 : i64, scratch_operands = 0 : i64, tpu.core_type = #tpu.core_type<tc>, window_params = [{transform_indices = @transform_0, window_bounds = array<i64: 128, 128>}, {transform_indices = @transform_1, window_bounds = array<i64: 128, 128>}, {transform_indices = @transform_2, window_bounds = array<i64: 1, 128>}, {transform_indices = @transform_3, window_bounds = array<i64: 128, 128>}]} {
    %c0 = arith.constant 0 : index
    %c0_0 = arith.constant 0 : index
    %0 = vector.load %arg3[%c0, %c0_0] : memref<128x128xbf16, #tpu.memory_space<vmem>>, vector<128x128xbf16>
    %c0_1 = arith.constant 0 : index
    %c0_2 = arith.constant 0 : index
    %1 = vector.load %arg4[%c0_1, %c0_2] : memref<128x128xbf16, #tpu.memory_space<vmem>>, vector<128x128xbf16>
    %cst = arith.constant dense<0.000000e+00> : vector<128x128xf32>
    %2 = tpu.matmul %0, %1, %cst {dimension_numbers = #tpu.dot_dimension_numbers<[1], [0], [0], [1], [0, 0, 1, 1], [], []>} : vector<128x128xbf16>, vector<128x128xbf16>, vector<128x128xf32> -> vector<128x128xf32>
    %c0_3 = arith.constant 0 : index
    %c0_4 = arith.constant 0 : index
    %3 = vector.load %arg5[%c0_3, %c0_4] : memref<1x128xf32, #tpu.memory_space<vmem>>, vector<1x128xf32>
    %4 = vector.broadcast %3 : vector<1x128xf32> to vector<128x128xf32>
    %5 = arith.addf %2, %4 : vector<128x128xf32>
    %6 = arith.truncf %5 : vector<128x128xf32> to vector<128x128xbf16>
    %c0_5 = arith.constant 0 : index
    %c0_6 = arith.constant 0 : index
    %7 = vector.load %arg6[%c0_5, %c0_6] : memref<128x128xbf16, #tpu.memory_space<vmem>>, vector<128x128xbf16>
    tpu.vector_store %arg6[%c0_5, %c0_6], %6 {strides = array<i32>} : memref<128x128xbf16, #tpu.memory_space<vmem>>, vector<128x128xbf16>,
    return
  }
  func.func @transform_0(%arg0: i32, %arg1: i32, %arg2: i32) -> (i32, i32) {
    %c0_i32 = arith.constant 0 : i32
    return %arg0, %arg2 : i32, i32
  }
  func.func @transform_1(%arg0: i32, %arg1: i32, %arg2: i32) -> (i32, i32) {
    %c0_i32 = arith.constant 0 : i32
    return %arg2, %arg1 : i32, i32
  }
  func.func @transform_2(%arg0: i32, %arg1: i32, %arg2: i32) -> (i32, i32) {
    %c0_i32 = arith.constant 0 : i32
    %c0_i32_0 = arith.constant 0 : i32
    return %c0_i32, %arg1 : i32, i32
  }
  func.func @transform_3(%arg0: i32, %arg1: i32, %arg2: i32) -> (i32, i32) {
    %c0_i32 = arith.constant 0 : i32
    return %arg0, %arg1 : i32, i32
  }
}

module attributes {stable_mosaic.version = 11 : i64} {
  func.func @kernel(%arg0: i32, %arg1: i32, %arg2: i32, %arg3: memref<256x128xbf16, #tpu.memory_space<vmem>>, %arg4: memref<128x128xbf16, #tpu.memory_space<vmem>>, %arg5: memref<1x128xf32, #tpu.memory_space<vmem>>, %arg6: memref<256x128xbf16, #tpu.memory_space<vmem>>) attributes {dimension_semantics = [#tpu.dimension_semantics<parallel>, #tpu.dimension_semantics<parallel>, #tpu.dimension_semantics<arbitrary>], iteration_bounds = array<i64: 2, 1, 1>, scalar_prefetch = 0 : i64, scratch_operands = 0 : i64, tpu.core_type = #tpu.core_type<tc>, window_params = [{transform_indices = @transform_0, window_bounds = array<i64: 256, 128>}, {transform_indices = @transform_1, window_bounds = array<i64: 128, 128>}, {transform_indices = @transform_2, window_bounds = array<i64: 1, 128>}, {transform_indices = @transform_3, window_bounds = array<i64: 256, 128>}]} {
    %c0 = arith.constant 0 : index
    %c0_0 = arith.constant 0 : index
    %0 = vector.load %arg3[%c0, %c0_0] : memref<256x128xbf16, #tpu.memory_space<vmem>>, vector<256x128xbf16>
    %c0_1 = arith.constant 0 : index
    %c0_2 = arith.constant 0 : index
    %1 = vector.load %arg4[%c0_1, %c0_2] : memref<128x128xbf16, #tpu.memory_space<vmem>>, vector<128x128xbf16>
    %cst = arith.constant dense<0.000000e+00> : vector<256x128xf32>
    %2 = tpu.matmul %0, %1, %cst {dimension_numbers = #tpu.dot_dimension_numbers<[1], [0], [0], [1], [0, 0, 1, 1], [], []>} : vector<256x128xbf16>, vector<128x128xbf16>, vector<256x128xf32> -> vector<256x128xf32>
    %c0_3 = arith.constant 0 : index
    %c0_4 = arith.constant 0 : index
    %3 = vector.load %arg5[%c0_3, %c0_4] : memref<1x128xf32, #tpu.memory_space<vmem>>, vector<1x128xf32>
    %4 = vector.broadcast %3 : vector<1x128xf32> to vector<256x128xf32>
    %5 = arith.addf %2, %4 : vector<256x128xf32>
    %cst_5 = arith.constant 0.000000e+00 : f32
    %6 = vector.broadcast %cst_5 : f32 to vector<256x128xf32>
    %7 = arith.maximumf %5, %6 : vector<256x128xf32>
    %8 = arith.truncf %7 : vector<256x128xf32> to vector<256x128xbf16>
    %c0_6 = arith.constant 0 : index
    %c0_7 = arith.constant 0 : index
    %9 = vector.load %arg6[%c0_6, %c0_7] : memref<256x128xbf16, #tpu.memory_space<vmem>>, vector<256x128xbf16>
    tpu.vector_store %arg6[%c0_6, %c0_7], %8 {strides = array<i32>} : memref<256x128xbf16, #tpu.memory_space<vmem>>, vector<256x128xbf16>,
    return
  }
  func.func @transform_0(%arg0: i32, %arg1: i32, %arg2: i32) -> (i32, i32) {
    %c0_i32 = arith.constant 0 : i32
    return %arg0, %arg2 : i32, i32
  }
  func.func @transform_1(%arg0: i32, %arg1: i32, %arg2: i32) -> (i32, i32) {
    %c0_i32 = arith.constant 0 : i32
    return %arg2, %arg1 : i32, i32
  }
  func.func @transform_2(%arg0: i32, %arg1: i32, %arg2: i32) -> (i32, i32) {
    %c0_i32 = arith.constant 0 : i32
    %c0_i32_0 = arith.constant 0 : i32
    return %c0_i32, %arg1 : i32, i32
  }
  func.func @transform_3(%arg0: i32, %arg1: i32, %arg2: i32) -> (i32, i32) {
    %c0_i32 = arith.constant 0 : i32
    return %arg0, %arg1 : i32, i32
  }
}

module attributes {stable_mosaic.version = 11 : i64} {
  func.func @kernel(%arg0: i32, %arg1: i32, %arg2: i32, %arg3: memref<128x1152xbf16, #tpu.memory_space<vmem>>, %arg4: memref<1152x128xbf16, #tpu.memory_space<vmem>>, %arg5: memref<1x128xf32, #tpu.memory_space<vmem>>, %arg6: memref<128x128xbf16, #tpu.memory_space<vmem>>) attributes {dimension_semantics = [#tpu.dimension_semantics<parallel>, #tpu.dimension_semantics<parallel>, #tpu.dimension_semantics<arbitrary>], iteration_bounds = array<i64: 1, 1, 1>, scalar_prefetch = 0 : i64, scratch_operands = 0 : i64, tpu.core_type = #tpu.core_type<tc>, window_params = [{transform_indices = @transform_0, window_bounds = array<i64: 128, 1152>}, {transform_indices = @transform_1, window_bounds = array<i64: 1152, 128>}, {transform_indices = @transform_2, window_bounds = array<i64: 1, 128>}, {transform_indices = @transform_3, window_bounds = array<i64: 128, 128>}]} {
    %c0 = arith.constant 0 : index
    %c0_0 = arith.constant 0 : index
    %0 = vector.load %arg3[%c0, %c0_0] : memref<128x1152xbf16, #tpu.memory_space<vmem>>, vector<128x1152xbf16>
    %c0_1 = arith.constant 0 : index
    %c0_2 = arith.constant 0 : index
    %1 = vector.load %arg4[%c0_1, %c0_2] : memref<1152x128xbf16, #tpu.memory_space<vmem>>, vector<1152x128xbf16>
    %cst = arith.constant dense<0.000000e+00> : vector<128x128xf32>
    %2 = tpu.matmul %0, %1, %cst {dimension_numbers = #tpu.dot_dimension_numbers<[1], [0], [0], [1], [0, 0, 1, 1], [], []>} : vector<128x1152xbf16>, vector<1152x128xbf16>, vector<128x128xf32> -> vector<128x128xf32>
    %c0_3 = arith.constant 0 : index
    %c0_4 = arith.constant 0 : index
    %3 = vector.load %arg5[%c0_3, %c0_4] : memref<1x128xf32, #tpu.memory_space<vmem>>, vector<1x128xf32>
    %4 = vector.broadcast %3 : vector<1x128xf32> to vector<128x128xf32>
    %5 = arith.addf %2, %4 : vector<128x128xf32>
    %cst_5 = arith.constant 0.000000e+00 : f32
    %6 = vector.broadcast %cst_5 : f32 to vector<128x128xf32>
    %7 = arith.maximumf %5, %6 : vector<128x128xf32>
    %8 = arith.truncf %7 : vector<128x128xf32> to vector<128x128xbf16>
    %c0_6 = arith.constant 0 : index
    %c0_7 = arith.constant 0 : index
    %9 = vector.load %arg6[%c0_6, %c0_7] : memref<128x128xbf16, #tpu.memory_space<vmem>>, vector<128x128xbf16>
    tpu.vector_store %arg6[%c0_6, %c0_7], %8 {strides = array<i32>} : memref<128x128xbf16, #tpu.memory_space<vmem>>, vector<128x128xbf16>,
    return
  }
  func.func @transform_0(%arg0: i32, %arg1: i32, %arg2: i32) -> (i32, i32) {
    %c0_i32 = arith.constant 0 : i32
    return %arg0, %arg2 : i32, i32
  }
  func.func @transform_1(%arg0: i32, %arg1: i32, %arg2: i32) -> (i32, i32) {
    %c0_i32 = arith.constant 0 : i32
    return %arg2, %arg1 : i32, i32
  }
  func.func @transform_2(%arg0: i32, %arg1: i32, %arg2: i32) -> (i32, i32) {
    %c0_i32 = arith.constant 0 : i32
    %c0_i32_0 = arith.constant 0 : i32
    return %c0_i32, %arg1 : i32, i32
  }
  func.func @transform_3(%arg0: i32, %arg1: i32, %arg2: i32) -> (i32, i32) {
    %c0_i32 = arith.constant 0 : i32
    return %arg0, %arg1 : i32, i32
  }
}

module attributes {stable_mosaic.version = 11 : i64} {
  func.func @kernel(%arg0: i32, %arg1: i32, %arg2: i32, %arg3: memref<128x128xbf16, #tpu.memory_space<vmem>>, %arg4: memref<128x128xbf16, #tpu.memory_space<vmem>>, %arg5: memref<1x128xf32, #tpu.memory_space<vmem>>, %arg6: memref<128x128xbf16, #tpu.memory_space<vmem>>, %arg7: memref<128x128xbf16, #tpu.memory_space<vmem>>) attributes {dimension_semantics = [#tpu.dimension_semantics<parallel>, #tpu.dimension_semantics<parallel>, #tpu.dimension_semantics<arbitrary>], iteration_bounds = array<i64: 1, 1, 1>, scalar_prefetch = 0 : i64, scratch_operands = 0 : i64, tpu.core_type = #tpu.core_type<tc>, window_params = [{transform_indices = @transform_0, window_bounds = array<i64: 128, 128>}, {transform_indices = @transform_1, window_bounds = array<i64: 128, 128>}, {transform_indices = @transform_2, window_bounds = array<i64: 1, 128>}, {transform_indices = @transform_3, window_bounds = array<i64: 128, 128>}, {transform_indices = @transform_4, window_bounds = array<i64: 128, 128>}]} {
    %c0 = arith.constant 0 : index
    %c0_0 = arith.constant 0 : index
    %0 = vector.load %arg3[%c0, %c0_0] : memref<128x128xbf16, #tpu.memory_space<vmem>>, vector<128x128xbf16>
    %c0_1 = arith.constant 0 : index
    %c0_2 = arith.constant 0 : index
    %1 = vector.load %arg4[%c0_1, %c0_2] : memref<128x128xbf16, #tpu.memory_space<vmem>>, vector<128x128xbf16>
    %cst = arith.constant dense<0.000000e+00> : vector<128x128xf32>
    %2 = tpu.matmul %0, %1, %cst {dimension_numbers = #tpu.dot_dimension_numbers<[1], [0], [0], [1], [0, 0, 1, 1], [], []>} : vector<128x128xbf16>, vector<128x128xbf16>, vector<128x128xf32> -> vector<128x128xf32>
    %c0_3 = arith.constant 0 : index
    %c0_4 = arith.constant 0 : index
    %3 = vector.load %arg5[%c0_3, %c0_4] : memref<1x128xf32, #tpu.memory_space<vmem>>, vector<1x128xf32>
    %4 = vector.broadcast %3 : vector<1x128xf32> to vector<128x128xf32>
    %5 = arith.addf %2, %4 : vector<128x128xf32>
    %c0_5 = arith.constant 0 : index
    %c0_6 = arith.constant 0 : index
    %6 = vector.load %arg6[%c0_5, %c0_6] : memref<128x128xbf16, #tpu.memory_space<vmem>>, vector<128x128xbf16>
    %7 = arith.extf %6 : vector<128x128xbf16> to vector<128x128xf32>
    %8 = arith.addf %5, %7 : vector<128x128xf32>
    %cst_7 = arith.constant 0.000000e+00 : f32
    %9 = vector.broadcast %cst_7 : f32 to vector<128x128xf32>
    %10 = arith.maximumf %8, %9 : vector<128x128xf32>
    %11 = arith.truncf %10 : vector<128x128xf32> to vector<128x128xbf16>
    %c0_8 = arith.constant 0 : index
    %c0_9 = arith.constant 0 : index
    %12 = vector.load %arg7[%c0_8, %c0_9] : memref<128x128xbf16, #tpu.memory_space<vmem>>, vector<128x128xbf16>
    tpu.vector_store %arg7[%c0_8, %c0_9], %11 {strides = array<i32>} : memref<128x128xbf16, #tpu.memory_space<vmem>>, vector<128x128xbf16>,
    return
  }
  func.func @transform_0(%arg0: i32, %arg1: i32, %arg2: i32) -> (i32, i32) {
    %c0_i32 = arith.constant 0 : i32
    return %arg0, %arg2 : i32, i32
  }
  func.func @transform_1(%arg0: i32, %arg1: i32, %arg2: i32) -> (i32, i32) {
    %c0_i32 = arith.constant 0 : i32
    return %arg2, %arg1 : i32, i32
  }
  func.func @transform_2(%arg0: i32, %arg1: i32, %arg2: i32) -> (i32, i32) {
    %c0_i32 = arith.constant 0 : i32
    %c0_i32_0 = arith.constant 0 : i32
    return %c0_i32, %arg1 : i32, i32
  }
  func.func @transform_3(%arg0: i32, %arg1: i32, %arg2: i32) -> (i32, i32) {
    %c0_i32 = arith.constant 0 : i32
    return %arg0, %arg1 : i32, i32
  }
  func.func @transform_4(%arg0: i32, %arg1: i32, %arg2: i32) -> (i32, i32) {
    %c0_i32 = arith.constant 0 : i32
    return %arg0, %arg1 : i32, i32
  }
}

module attributes {stable_mosaic.version = 11 : i64} {
  func.func @kernel(%arg0: i32, %arg1: i32, %arg2: i32, %arg3: memref<128x128xbf16, #tpu.memory_space<vmem>>, %arg4: memref<128x128xbf16, #tpu.memory_space<vmem>>, %arg5: memref<1x128xf32, #tpu.memory_space<vmem>>, %arg6: memref<128x128xbf16, #tpu.memory_space<vmem>>) attributes {dimension_semantics = [#tpu.dimension_semantics<parallel>, #tpu.dimension_semantics<parallel>, #tpu.dimension_semantics<arbitrary>], iteration_bounds = array<i64: 1, 1, 1>, scalar_prefetch = 0 : i64, scratch_operands = 0 : i64, tpu.core_type = #tpu.core_type<tc>, window_params = [{transform_indices = @transform_0, window_bounds = array<i64: 128, 128>}, {transform_indices = @transform_1, window_bounds = array<i64: 128, 128>}, {transform_indices = @transform_2, window_bounds = array<i64: 1, 128>}, {transform_indices = @transform_3, window_bounds = array<i64: 128, 128>}]} {
    %c0 = arith.constant 0 : index
    %c0_0 = arith.constant 0 : index
    %0 = vector.load %arg3[%c0, %c0_0] : memref<128x128xbf16, #tpu.memory_space<vmem>>, vector<128x128xbf16>
    %c0_1 = arith.constant 0 : index
    %c0_2 = arith.constant 0 : index
    %1 = vector.load %arg4[%c0_1, %c0_2] : memref<128x128xbf16, #tpu.memory_space<vmem>>, vector<128x128xbf16>
    %cst = arith.constant dense<0.000000e+00> : vector<128x128xf32>
    %2 = tpu.matmul %0, %1, %cst {dimension_numbers = #tpu.dot_dimension_numbers<[1], [0], [0], [1], [0, 0, 1, 1], [], []>} : vector<128x128xbf16>, vector<128x128xbf16>, vector<128x128xf32> -> vector<128x128xf32>
    %c0_3 = arith.constant 0 : index
    %c0_4 = arith.constant 0 : index
    %3 = vector.load %arg5[%c0_3, %c0_4] : memref<1x128xf32, #tpu.memory_space<vmem>>, vector<1x128xf32>
    %4 = vector.broadcast %3 : vector<1x128xf32> to vector<128x128xf32>
    %5 = arith.addf %2, %4 : vector<128x128xf32>
    %cst_5 = arith.constant 0.000000e+00 : f32
    %6 = vector.broadcast %cst_5 : f32 to vector<128x128xf32>
    %7 = arith.maximumf %5, %6 : vector<128x128xf32>
    %8 = arith.truncf %7 : vector<128x128xf32> to vector<128x128xbf16>
    %c0_6 = arith.constant 0 : index
    %c0_7 = arith.constant 0 : index
    %9 = vector.load %arg6[%c0_6, %c0_7] : memref<128x128xbf16, #tpu.memory_space<vmem>>, vector<128x128xbf16>
    tpu.vector_store %arg6[%c0_6, %c0_7], %8 {strides = array<i32>} : memref<128x128xbf16, #tpu.memory_space<vmem>>, vector<128x128xbf16>,
    return
  }
  func.func @transform_0(%arg0: i32, %arg1: i32, %arg2: i32) -> (i32, i32) {
    %c0_i32 = arith.constant 0 : i32
    return %arg0, %arg2 : i32, i32
  }
  func.func @transform_1(%arg0: i32, %arg1: i32, %arg2: i32) -> (i32, i32) {
    %c0_i32 = arith.constant 0 : i32
    return %arg2, %arg1 : i32, i32
  }
  func.func @transform_2(%arg0: i32, %arg1: i32, %arg2: i32) -> (i32, i32) {
    %c0_i32 = arith.constant 0 : i32
    %c0_i32_0 = arith.constant 0 : i32
    return %c0_i32, %arg1 : i32, i32
  }
  func.func @transform_3(%arg0: i32, %arg1: i32, %arg2: i32) -> (i32, i32) {
    %c0_i32 = arith.constant 0 : i32
    return %arg0, %arg1 : i32, i32
  }
}

module attributes {stable_mosaic.version = 11 : i64} {
  func.func @kernel(%arg0: i32, %arg1: i32, %arg2: memref<1x10x10x128xbf16, #tpu.memory_space<vmem>>, %arg3: memref<1152x128xbf16, #tpu.memory_space<vmem>>, %arg4: memref<1x128xf32, #tpu.memory_space<vmem>>, %arg5: memref<1x64x128xbf16, #tpu.memory_space<vmem>>) attributes {dimension_semantics = [#tpu.dimension_semantics<parallel>, #tpu.dimension_semantics<parallel>], iteration_bounds = array<i64: 2, 1>, scalar_prefetch = 0 : i64, scratch_operands = 0 : i64, tpu.core_type = #tpu.core_type<tc>, window_params = [{transform_indices = @transform_0, window_bounds = array<i64: 1, 10, 10, 128>}, {transform_indices = @transform_1, window_bounds = array<i64: 1152, 128>}, {transform_indices = @transform_2, window_bounds = array<i64: 1, 128>}, {transform_indices = @transform_3, window_bounds = array<i64: 1, 64, 128>}]} {
    %cst = arith.constant 0.000000e+00 : f32
    %0 = vector.broadcast %cst : f32 to vector<64x128xf32>
    %c0 = arith.constant 0 : index
    %c0_0 = arith.constant 0 : index
    %c0_1 = arith.constant 0 : index
    %c0_2 = arith.constant 0 : index
    %1 = vector.load %arg2[%c0, %c0_0, %c0_1, %c0_2] : memref<1x10x10x128xbf16, #tpu.memory_space<vmem>>, vector<1x8x8x128xbf16>
    %2 = vector.shape_cast %1 : vector<1x8x8x128xbf16> to vector<8x8x128xbf16>
    %3 = vector.shape_cast %2 : vector<8x8x128xbf16> to vector<64x128xbf16>
    %c0_3 = arith.constant 0 : index
    %c0_4 = arith.constant 0 : index
    %4 = vector.load %arg3[%c0_3, %c0_4] : memref<1152x128xbf16, #tpu.memory_space<vmem>>, vector<128x128xbf16>
    %cst_5 = arith.constant dense<0.000000e+00> : vector<64x128xf32>
    %5 = tpu.matmul %3, %4, %cst_5 {dimension_numbers = #tpu.dot_dimension_numbers<[1], [0], [0], [1], [0, 0, 1, 1], [], []>} : vector<64x128xbf16>, vector<128x128xbf16>, vector<64x128xf32> -> vector<64x128xf32>
    %6 = arith.addf %0, %5 : vector<64x128xf32>
    %c0_6 = arith.constant 0 : index
    %c0_7 = arith.constant 0 : index
    %c1 = arith.constant 1 : index
    %c0_8 = arith.constant 0 : index
    %7 = vector.load %arg2[%c0_6, %c0_7, %c1, %c0_8] : memref<1x10x10x128xbf16, #tpu.memory_space<vmem>>, vector<1x8x8x128xbf16>
    %8 = vector.shape_cast %7 : vector<1x8x8x128xbf16> to vector<8x8x128xbf16>
    %9 = vector.shape_cast %8 : vector<8x8x128xbf16> to vector<64x128xbf16>
    %c128 = arith.constant 128 : index
    %c0_9 = arith.constant 0 : index
    %10 = vector.load %arg3[%c128, %c0_9] : memref<1152x128xbf16, #tpu.memory_space<vmem>>, vector<128x128xbf16>
    %cst_10 = arith.constant dense<0.000000e+00> : vector<64x128xf32>
    %11 = tpu.matmul %9, %10, %cst_10 {dimension_numbers = #tpu.dot_dimension_numbers<[1], [0], [0], [1], [0, 0, 1, 1], [], []>} : vector<64x128xbf16>, vector<128x128xbf16>, vector<64x128xf32> -> vector<64x128xf32>
    %12 = arith.addf %6, %11 : vector<64x128xf32>
    %c0_11 = arith.constant 0 : index
    %c0_12 = arith.constant 0 : index
    %c2 = arith.constant 2 : index
    %c0_13 = arith.constant 0 : index
    %13 = vector.load %arg2[%c0_11, %c0_12, %c2, %c0_13] : memref<1x10x10x128xbf16, #tpu.memory_space<vmem>>, vector<1x8x8x128xbf16>
    %14 = vector.shape_cast %13 : vector<1x8x8x128xbf16> to vector<8x8x128xbf16>
    %15 = vector.shape_cast %14 : vector<8x8x128xbf16> to vector<64x128xbf16>
    %c256 = arith.constant 256 : index
    %c0_14 = arith.constant 0 : index
    %16 = vector.load %arg3[%c256, %c0_14] : memref<1152x128xbf16, #tpu.memory_space<vmem>>, vector<128x128xbf16>
    %cst_15 = arith.constant dense<0.000000e+00> : vector<64x128xf32>
    %17 = tpu.matmul %15, %16, %cst_15 {dimension_numbers = #tpu.dot_dimension_numbers<[1], [0], [0], [1], [0, 0, 1, 1], [], []>} : vector<64x128xbf16>, vector<128x128xbf16>, vector<64x128xf32> -> vector<64x128xf32>
    %18 = arith.addf %12, %17 : vector<64x128xf32>
    %c0_16 = arith.constant 0 : index
    %c1_17 = arith.constant 1 : index
    %c0_18 = arith.constant 0 : index
    %c0_19 = arith.constant 0 : index
    %19 = vector.load %arg2[%c0_16, %c1_17, %c0_18, %c0_19] : memref<1x10x10x128xbf16, #tpu.memory_space<vmem>>, vector<1x8x8x128xbf16>
    %20 = vector.shape_cast %19 : vector<1x8x8x128xbf16> to vector<8x8x128xbf16>
    %21 = vector.shape_cast %20 : vector<8x8x128xbf16> to vector<64x128xbf16>
    %c384 = arith.constant 384 : index
    %c0_20 = arith.constant 0 : index
    %22 = vector.load %arg3[%c384, %c0_20] : memref<1152x128xbf16, #tpu.memory_space<vmem>>, vector<128x128xbf16>
    %cst_21 = arith.constant dense<0.000000e+00> : vector<64x128xf32>
    %23 = tpu.matmul %21, %22, %cst_21 {dimension_numbers = #tpu.dot_dimension_numbers<[1], [0], [0], [1], [0, 0, 1, 1], [], []>} : vector<64x128xbf16>, vector<128x128xbf16>, vector<64x128xf32> -> vector<64x128xf32>
    %24 = arith.addf %18, %23 : vector<64x128xf32>
    %c0_22 = arith.constant 0 : index
    %c1_23 = arith.constant 1 : index
    %c1_24 = arith.constant 1 : index
    %c0_25 = arith.constant 0 : index
    %25 = vector.load %arg2[%c0_22, %c1_23, %c1_24, %c0_25] : memref<1x10x10x128xbf16, #tpu.memory_space<vmem>>, vector<1x8x8x128xbf16>
    %26 = vector.shape_cast %25 : vector<1x8x8x128xbf16> to vector<8x8x128xbf16>
    %27 = vector.shape_cast %26 : vector<8x8x128xbf16> to vector<64x128xbf16>
    %c512 = arith.constant 512 : index
    %c0_26 = arith.constant 0 : index
    %28 = vector.load %arg3[%c512, %c0_26] : memref<1152x128xbf16, #tpu.memory_space<vmem>>, vector<128x128xbf16>
    %cst_27 = arith.constant dense<0.000000e+00> : vector<64x128xf32>
    %29 = tpu.matmul %27, %28, %cst_27 {dimension_numbers = #tpu.dot_dimension_numbers<[1], [0], [0], [1], [0, 0, 1, 1], [], []>} : vector<64x128xbf16>, vector<128x128xbf16>, vector<64x128xf32> -> vector<64x128xf32>
    %30 = arith.addf %24, %29 : vector<64x128xf32>
    %c0_28 = arith.constant 0 : index
    %c1_29 = arith.constant 1 : index
    %c2_30 = arith.constant 2 : index
    %c0_31 = arith.constant 0 : index
    %31 = vector.load %arg2[%c0_28, %c1_29, %c2_30, %c0_31] : memref<1x10x10x128xbf16, #tpu.memory_space<vmem>>, vector<1x8x8x128xbf16>
    %32 = vector.shape_cast %31 : vector<1x8x8x128xbf16> to vector<8x8x128xbf16>
    %33 = vector.shape_cast %32 : vector<8x8x128xbf16> to vector<64x128xbf16>
    %c640 = arith.constant 640 : index
    %c0_32 = arith.constant 0 : index
    %34 = vector.load %arg3[%c640, %c0_32] : memref<1152x128xbf16, #tpu.memory_space<vmem>>, vector<128x128xbf16>
    %cst_33 = arith.constant dense<0.000000e+00> : vector<64x128xf32>
    %35 = tpu.matmul %33, %34, %cst_33 {dimension_numbers = #tpu.dot_dimension_numbers<[1], [0], [0], [1], [0, 0, 1, 1], [], []>} : vector<64x128xbf16>, vector<128x128xbf16>, vector<64x128xf32> -> vector<64x128xf32>
    %36 = arith.addf %30, %35 : vector<64x128xf32>
    %c0_34 = arith.constant 0 : index
    %c2_35 = arith.constant 2 : index
    %c0_36 = arith.constant 0 : index
    %c0_37 = arith.constant 0 : index
    %37 = vector.load %arg2[%c0_34, %c2_35, %c0_36, %c0_37] : memref<1x10x10x128xbf16, #tpu.memory_space<vmem>>, vector<1x8x8x128xbf16>
    %38 = vector.shape_cast %37 : vector<1x8x8x128xbf16> to vector<8x8x128xbf16>
    %39 = vector.shape_cast %38 : vector<8x8x128xbf16> to vector<64x128xbf16>
    %c768 = arith.constant 768 : index
    %c0_38 = arith.constant 0 : index
    %40 = vector.load %arg3[%c768, %c0_38] : memref<1152x128xbf16, #tpu.memory_space<vmem>>, vector<128x128xbf16>
    %cst_39 = arith.constant dense<0.000000e+00> : vector<64x128xf32>
    %41 = tpu.matmul %39, %40, %cst_39 {dimension_numbers = #tpu.dot_dimension_numbers<[1], [0], [0], [1], [0, 0, 1, 1], [], []>} : vector<64x128xbf16>, vector<128x128xbf16>, vector<64x128xf32> -> vector<64x128xf32>
    %42 = arith.addf %36, %41 : vector<64x128xf32>
    %c0_40 = arith.constant 0 : index
    %c2_41 = arith.constant 2 : index
    %c1_42 = arith.constant 1 : index
    %c0_43 = arith.constant 0 : index
    %43 = vector.load %arg2[%c0_40, %c2_41, %c1_42, %c0_43] : memref<1x10x10x128xbf16, #tpu.memory_space<vmem>>, vector<1x8x8x128xbf16>
    %44 = vector.shape_cast %43 : vector<1x8x8x128xbf16> to vector<8x8x128xbf16>
    %45 = vector.shape_cast %44 : vector<8x8x128xbf16> to vector<64x128xbf16>
    %c896 = arith.constant 896 : index
    %c0_44 = arith.constant 0 : index
    %46 = vector.load %arg3[%c896, %c0_44] : memref<1152x128xbf16, #tpu.memory_space<vmem>>, vector<128x128xbf16>
    %cst_45 = arith.constant dense<0.000000e+00> : vector<64x128xf32>
    %47 = tpu.matmul %45, %46, %cst_45 {dimension_numbers = #tpu.dot_dimension_numbers<[1], [0], [0], [1], [0, 0, 1, 1], [], []>} : vector<64x128xbf16>, vector<128x128xbf16>, vector<64x128xf32> -> vector<64x128xf32>
    %48 = arith.addf %42, %47 : vector<64x128xf32>
    %c0_46 = arith.constant 0 : index
    %c2_47 = arith.constant 2 : index
    %c2_48 = arith.constant 2 : index
    %c0_49 = arith.constant 0 : index
    %49 = vector.load %arg2[%c0_46, %c2_47, %c2_48, %c0_49] : memref<1x10x10x128xbf16, #tpu.memory_space<vmem>>, vector<1x8x8x128xbf16>
    %50 = vector.shape_cast %49 : vector<1x8x8x128xbf16> to vector<8x8x128xbf16>
    %51 = vector.shape_cast %50 : vector<8x8x128xbf16> to vector<64x128xbf16>
    %c1024 = arith.constant 1024 : index
    %c0_50 = arith.constant 0 : index
    %52 = vector.load %arg3[%c1024, %c0_50] : memref<1152x128xbf16, #tpu.memory_space<vmem>>, vector<128x128xbf16>
    %cst_51 = arith.constant dense<0.000000e+00> : vector<64x128xf32>
    %53 = tpu.matmul %51, %52, %cst_51 {dimension_numbers = #tpu.dot_dimension_numbers<[1], [0], [0], [1], [0, 0, 1, 1], [], []>} : vector<64x128xbf16>, vector<128x128xbf16>, vector<64x128xf32> -> vector<64x128xf32>
    %54 = arith.addf %48, %53 : vector<64x128xf32>
    %c0_52 = arith.constant 0 : index
    %c0_53 = arith.constant 0 : index
    %55 = vector.load %arg4[%c0_52, %c0_53] : memref<1x128xf32, #tpu.memory_space<vmem>>, vector<1x128xf32>
    %56 = vector.broadcast %55 : vector<1x128xf32> to vector<64x128xf32>
    %57 = arith.addf %54, %56 : vector<64x128xf32>
    %cst_54 = arith.constant 0.000000e+00 : f32
    %58 = vector.broadcast %cst_54 : f32 to vector<64x128xf32>
    %59 = arith.maximumf %57, %58 : vector<64x128xf32>
    %60 = vector.shape_cast %59 : vector<64x128xf32> to vector<1x64x128xf32>
    %61 = arith.truncf %60 : vector<1x64x128xf32> to vector<1x64x128xbf16>
    %c0_55 = arith.constant 0 : index
    %c0_56 = arith.constant 0 : index
    %c0_57 = arith.constant 0 : index
    %62 = vector.load %arg5[%c0_55, %c0_56, %c0_57] : memref<1x64x128xbf16, #tpu.memory_space<vmem>>, vector<1x64x128xbf16>
    tpu.vector_store %arg5[%c0_55, %c0_56, %c0_57], %61 {strides = array<i32>} : memref<1x64x128xbf16, #tpu.memory_space<vmem>>, vector<1x64x128xbf16>,
    return
  }
  func.func @transform_0(%arg0: i32, %arg1: i32) -> (i32, i32, i32, i32) {
    %c0_i32 = arith.constant 0 : i32
    %c0_i32_0 = arith.constant 0 : i32
    %c0_i32_1 = arith.constant 0 : i32
    %c0_i32_2 = arith.constant 0 : i32
    return %arg0, %c0_i32, %c0_i32_0, %c0_i32_1 : i32, i32, i32, i32
  }
  func.func @transform_1(%arg0: i32, %arg1: i32) -> (i32, i32) {
    %c0_i32 = arith.constant 0 : i32
    %c0_i32_0 = arith.constant 0 : i32
    return %c0_i32, %arg1 : i32, i32
  }
  func.func @transform_2(%arg0: i32, %arg1: i32) -> (i32, i32) {
    %c0_i32 = arith.constant 0 : i32
    %c0_i32_0 = arith.constant 0 : i32
    return %c0_i32, %arg1 : i32, i32
  }
  func.func @transform_3(%arg0: i32, %arg1: i32) -> (i32, i32, i32) {
    %c0_i32 = arith.constant 0 : i32
    %c0_i32_0 = arith.constant 0 : i32
    return %arg0, %c0_i32, %arg1 : i32, i32, i32
  }
}

</mosaic_0001>

<bundles_post_ra>
// kernel: _lambda_.12
= control target key start
LH: loop header
LB: loop body
LE: loop exit
PB: predicated region body
PF: predicated region fallthrough
CT: control target
= control target key end

     0   :  { %s1557_s15 = smov 0   ;;  %s1559_s16 = smov 0   ;;  %s1801_s0 = inlined_call_operand.vmem [shape: bf16[512,128], index: 0, kind: input, shape index: {}]   ;;  %s1802_s1 = inlined_call_operand.vmem [shape: bf16[128,128], index: 1, kind: input, shape index: {}]   ;;  %s1803_s2 = inlined_call_operand.vmem [shape: f32[1,128], index: 2, kind: input, shape index: {}]   ;;  %s1804_s3 = inlined_call_operand.vmem [shape: bf16[512,128], index: 3, kind: input, shape index: {}]   ;;  %s1805_s4 = inlined_call_operand.vmem [shape: bf16[512,128], index: 4, kind: output, shape index: {}]  }
   0x1   :  { %s1561_s17 = smov 0  }
   0x2 LB: > { %s33_s18 = sadd.s32 1, %s1526_s16  ;;  %p1100_p0 = scmp.ge.s32.totalorder %s1530_s17, 1  ;;  %s1530_s17 = sphi %s1561_s17, %s14_s17   ;;  %s1526_s16 = sphi %s1559_s16, %s1807_s16   ;;  %s1522_s15 = sphi %s1557_s15, %s1806_s15  }
   0x3   : > { %p35_p1 = scmp.ge.s32.totalorder %s33_s18, 2  ;;  %p229_p2 = scmp.lt.s32.totalorder %s1530_s17, 3 }
   0x5   : > { %s1809_s18 = smov (%p35_p1, %s33_s18), 0  ;;  %p230_p3 = pnand %p1100_p0, %p229_p2 }
   0x6   : > { %v1484_v0 = vld [vmem:[%s1802_s1] sm:$0xff] (!%p230_p3)   ;;  %s1101_s21 = sshll.u32 (!%p230_p3), %s1522_s15, 5  ;;  %v1485_v1 = vld [vmem:[%s1802_s1 + $0x8] sm:$0xff] (!%p230_p3)   ;;  %v1486_v2 = vld [vmem:[%s1802_s1 + $0x10] sm:$0xff] (!%p230_p3)  }
   0x7   : > { %233 = sbr.rel (%p230_p3) target bundleno = 288 (0x120), region = 36  ;;  %p281_p4 = scmp.lt.s32.totalorder (!%p230_p3), %s1101_s21, 63  ;;  %1396 = vmatprep.subr.bf16.mxu0 (!%p230_p3), %v1484_v0  ;;  %1444 = vmatprep.subr.bf16.mxu1 (!%p230_p3), %v1484_v0  ;;  %v1487_v3 = vld [vmem:[%s1802_s1 + $0x18] sm:$0xff] (!%p230_p3)   ;;  %v1488_v6 = vld [vmem:[%s1802_s1 + $0x20] sm:$0xff] (!%p230_p3)   ;;  %v1489_v7 = vld [vmem:[%s1802_s1 + $0x28] sm:$0xff] (!%p230_p3)  }
   0x8   : > { %1397 = vmatpush3.bf16.msra.mxu0 (!%p230_p3), %v1484_v0  ;;  %1452 = vmatpush3.bf16.msra.mxu1 (!%p230_p3), %v1484_v0  ;;  %v1490_v8 = vld [vmem:[%s1802_s1 + $0x30] sm:$0xff] (!%p230_p3)   ;;  %v1491_v9 = vld [vmem:[%s1802_s1 + $0x38] sm:$0xff] (!%p230_p3)   ;;  %v1648_v36 = vld [vmem:[%s1803_s2] ss:$0 sm:$0xff] (!%p230_p3) }
   0x9   : > { %1398 = vmatprep.subr.bf16.mxu0 (!%p230_p3), %v1485_v1  ;;  %1445 = vmatprep.subr.bf16.mxu1 (!%p230_p3), %v1485_v1 }
   0xc   : > { %1399 = vmatpush3.bf16.msra.mxu0 (!%p230_p3), %v1485_v1  ;;  %1453 = vmatpush3.bf16.msra.mxu1 (!%p230_p3), %v1485_v1 }
   0xd   : > { %1400 = vmatprep.subr.bf16.mxu0 (!%p230_p3), %v1486_v2  ;;  %1446 = vmatprep.subr.bf16.mxu1 (!%p230_p3), %v1486_v2 }
   0xe   : > { %s1811_s21 = smov (!%p281_p4, %s1101_s21), 63 }
   0xf   : > { %s1584_s26 = sshll.u32 %s1811_s21, 2 }
  0x10   : > { %s1590_s29 = scalar_lea.vmem %s1801_s0, %s1584_s26  ;;  %1401 = vmatpush3.bf16.msra.mxu0 %v1486_v2  ;;  %1454 = vmatpush3.bf16.msra.mxu1 %v1486_v2  ;;  %s1627_s19 = scalar_lea.vmem %s1804_s3, %s1584_s26 }
  0x11   : > { %v1492_v4 = vld [vmem:[%s1590_s29] sm:$0xff]   ;;  %1402 = vmatprep.subr.bf16.mxu0 %v1487_v3  ;;  %1447 = vmatprep.subr.bf16.mxu1 %v1487_v3  ;;  %v1494_v10 = vld [vmem:[%s1590_s29 + $0x8] sm:$0xff]   ;;  %v1496_v12 = vld [vmem:[%s1590_s29 + $0x10] sm:$0xff]   ;;  %s1690_s24 = scalar_lea.vmem %s1805_s4, %s1584_s26 }
  0x12   : > { %v1493_v5 = vld [vmem:[%s1590_s29 + $0x40] sm:$0xff]   ;;  %1412 = vmatprep.mubr.bf16.mxu0 %v1492_v4  ;;  %v1495_v11 = vld [vmem:[%s1590_s29 + $0x48] sm:$0xff]   ;;  %v1497_v13 = vld [vmem:[%s1590_s29 + $0x50] sm:$0xff]  }
  0x13   : > { %1428 = vmatprep.mubr.bf16.mxu1 %v1493_v5  ;;  %v1498_v14 = vld [vmem:[%s1590_s29 + $0x18] sm:$0xff]   ;;  %v1500_v16 = vld [vmem:[%s1590_s29 + $0x20] sm:$0xff]   ;;  %v1502_v18 = vld [vmem:[%s1590_s29 + $0x28] sm:$0xff]  }
  0x14   : > { %1403 = vmatpush3.bf16.msra.mxu0 %v1487_v3  ;;  %1455 = vmatpush3.bf16.msra.mxu1 %v1487_v3  ;;  %v1499_v15 = vld [vmem:[%s1590_s29 + $0x58] sm:$0xff]   ;;  %v1501_v17 = vld [vmem:[%s1590_s29 + $0x60] sm:$0xff]   ;;  %v1503_v19 = vld [vmem:[%s1590_s29 + $0x68] sm:$0xff]  }
  0x15   : > { %1404 = vmatprep.subr.bf16.mxu0 %v1488_v6  ;;  %1448 = vmatprep.subr.bf16.mxu1 %v1488_v6  ;;  %v1504_v20 = vld [vmem:[%s1590_s29 + $0x30] sm:$0xff]   ;;  %v1506_v22 = vld [vmem:[%s1590_s29 + $0x38] sm:$0xff]   ;;  %v1342_v24 = vld [vmem:[%s1627_s19 + $0x8] sm:$0xff]  }
  0x16   : > { %v1505_v21 = vld [vmem:[%s1590_s29 + $0x70] sm:$0xff]   ;;  %v1507_v23 = vld [vmem:[%s1590_s29 + $0x78] sm:$0xff]   ;;  %v1350_v25 = vld [vmem:[%s1627_s19 + $0x48] sm:$0xff]   ;;  %v1204_v32 = vunpack.c.l.bf16 %v1342_v24  ;;  %v1205_v37 = vunpack.c.h.bf16 %v1342_v24 }
  0x17   : > { %v1199_v26 = vld [vmem:[%s1627_s19] sm:$0xff]   ;;  %v1634_v28 = vld [vmem:[%s1627_s19 + $0x18] sm:$0xff]   ;;  %v1640_v30 = vld [vmem:[%s1627_s19 + $0x10] sm:$0xff]   ;;  %v1236_v33 = vunpack.c.l.bf16 %v1350_v25  ;;  %v1237_v38 = vunpack.c.h.bf16 %v1350_v25 }
  0x18   : > { %1405 = vmatpush3.bf16.msra.mxu0 %v1488_v6  ;;  %1456 = vmatpush3.bf16.msra.mxu1 %v1488_v6  ;;  %v1349_v27 = vld [vmem:[%s1627_s19 + $0x40] sm:$0xff]   ;;  %v1637_v29 = vld [vmem:[%s1627_s19 + $0x58] sm:$0xff]   ;;  %v1643_v31 = vld [vmem:[%s1627_s19 + $0x50] sm:$0xff]   ;;  %v1200_v34 = vunpack.c.l.bf16 %v1199_v26  ;;  %v1201_v39 = vunpack.c.h.bf16 %v1199_v26  ;;  %v1212_v43 = vunpack.c.l.bf16 %v1634_v28  ;;  %v1208_v45 = vunpack.c.l.bf16 %v1640_v30 }
  0x19   : > { %1406 = vmatprep.subr.bf16.mxu0 %v1489_v7  ;;  %1449 = vmatprep.subr.bf16.mxu1 %v1489_v7  ;;  %v1232_v35 = vunpack.c.l.bf16 %v1349_v27  ;;  %v1233_v40 = vunpack.c.h.bf16 %v1349_v27  ;;  %v1651_v41 = vld [vmem:[%s1627_s19 + $0x28] sm:$0xff]   ;;  %v1244_v44 = vunpack.c.l.bf16 %v1637_v29  ;;  %v1240_v46 = vunpack.c.l.bf16 %v1643_v31  ;;  %v1661_v47 = vld [vmem:[%s1627_s19 + $0x20] sm:$0xff]  }
  0x1a   : > { %v1654_v42 = vld [vmem:[%s1627_s19 + $0x68] sm:$0xff]   ;;  %v1664_v48 = vld [vmem:[%s1627_s19 + $0x60] sm:$0xff]   ;;  %v1213_v51 = vunpack.c.h.bf16 %v1634_v28  ;;  %v1245_v52 = vunpack.c.h.bf16 %v1637_v29  ;;  %v1209_v53 = vunpack.c.h.bf16 %v1640_v30  ;;  %v1241_v54 = vunpack.c.h.bf16 %v1643_v31 }
  0x1b   : > { %v1220_v59 = vunpack.c.l.bf16 %v1651_v41  ;;  %v1252_v60 = vunpack.c.l.bf16 %v1654_v42  ;;  %v1216_v1 = vunpack.c.l.bf16 %v1661_v47  ;;  %v1248_v2 = vunpack.c.l.bf16 %v1664_v48 }
  0x1c   : > { %1407 = vmatpush3.bf16.msra.mxu0 %v1489_v7  ;;  %1457 = vmatpush3.bf16.msra.mxu1 %v1489_v7 }
  0x1d   : > { %1408 = vmatprep.subr.bf16.mxu0 %v1490_v8  ;;  %1450 = vmatprep.subr.bf16.mxu1 %v1490_v8 }
  0x20   : > { %1409 = vmatpush3.bf16.msra.mxu0 %v1490_v8  ;;  %1458 = vmatpush3.bf16.msra.mxu1 %v1490_v8 }
  0x21   : > { %1410 = vmatprep.subr.bf16.mxu0 %v1491_v9  ;;  %1451 = vmatprep.subr.bf16.mxu1 %v1491_v9 }
  0x24   : > { %1411 = vmatpush3.bf16.msra.mxu0 %v1491_v9  ;;  %1459 = vmatpush3.bf16.msra.mxu1 %v1491_v9 }
  0x27   : > { %1413 = vmatmul.mubr.bf16.vlgmr.msra.gmra.mrb[0].mxu0 %v1494_v10  ;;  %1429 = vmatmul.mubr.bf16.vlgmr.msra.gmra.mrb[0].mxu1 %v1495_v11 }
  0x28   : > { %1416 = vmatprep.mubr.bf16.mxu0 %v1496_v12  ;;  %1432 = vmatprep.mubr.bf16.mxu1 %v1497_v13 }
  0x2f   : > { %1417 = vmatmul.mubr.bf16.gmra.mrb[4].mxu0 %v1498_v14  ;;  %1433 = vmatmul.mubr.bf16.gmra.mrb[4].mxu1 %v1499_v15  ;;  %v1221_v15 = vunpack.c.h.bf16 %v1651_v41 }
  0x30   : > { %1420 = vmatprep.mubr.bf16.mxu0 %v1500_v16  ;;  %1436 = vmatprep.mubr.bf16.mxu1 %v1501_v17  ;;  %v1253_v16 = vunpack.c.h.bf16 %v1654_v42 }
  0x37   : > { %1421 = vmatmul.mubr.bf16.gmra.mrb[8].mxu0 %v1502_v18  ;;  %1437 = vmatmul.mubr.bf16.gmra.mrb[8].mxu1 %v1503_v19  ;;  %v1217_v19 = vunpack.c.h.bf16 %v1661_v47 }
  0x38   : > { %1424 = vmatprep.mubr.bf16.mxu0 %v1504_v20  ;;  %1440 = vmatprep.mubr.bf16.mxu1 %v1505_v21  ;;  %v1249_v20 = vunpack.c.h.bf16 %v1664_v48 }
  0x3f   : > { %1425 = vmatmul.mubr.bf16.gmra.mrb[12].mxu0 %v1506_v22  ;;  %1441 = vmatmul.mubr.bf16.gmra.mrb[12].mxu1 %v1507_v23 }
  0xfa   : > { %v1414_v49 = vpop.f32.mrb[0].mxu0  ;;  %v1430_v50 = vpop.f32.mrb[0].mxu1 }
  0xfb   : > { %v562_v55 = vadd.f32 %v1414_v49, %v1648_v36  ;;  %v626_v56 = vadd.f32 %v1430_v50, %v1648_v36  ;;  %v553_v57 = vpop.f32.mrb[1].mxu0  ;;  %v617_v58 = vpop.f32.mrb[1].mxu1 }
  0xfc   : > { %v554_v61 = vadd.f32 %v1648_v36, %v553_v57  ;;  %v618_v62 = vadd.f32 %v1648_v36, %v617_v58  ;;  %v1415_v63 = vpop.f32.mrb[2].mxu0  ;;  %v1431_v0 = vpop.f32.mrb[2].mxu1 }
  0xfd   : > { %v746_v3 = vadd.f32 %v1204_v32, %v562_v55  ;;  %v762_v4 = vadd.f32 %v1236_v33, %v626_v56  ;;  %v565_v5 = vadd.f32 %v1415_v63, %v1648_v36  ;;  %v629_v6 = vadd.f32 %v1431_v0, %v1648_v36  ;;  %v556_v7 = vpop.f32.mrb[3].mxu0  ;;  %v620_v8 = vpop.f32.mrb[3].mxu1  ;;  %v1700_v63 = vld [vmem:[%s1627_s19 + $0x78] sm:$0xff]  }
  0xfe   : > { %v744_v9 = vadd.f32 %v1200_v34, %v554_v61  ;;  %v760_v10 = vadd.f32 %v1232_v35, %v618_v62  ;;  %v557_v11 = vadd.f32 %v1648_v36, %v556_v7  ;;  %v621_v12 = vadd.f32 %v1648_v36, %v620_v8  ;;  %v1697_v62 = vld [vmem:[%s1627_s19 + $0x38] sm:$0xff]   ;;  %v1711_v8 = vld [vmem:[%s1627_s19 + $0x30] sm:$0xff]  }
  0xff   : > { %v747_v13 = vadd.f32 %v1205_v37, %v565_v5  ;;  %v763_v14 = vadd.f32 %v1237_v38, %v629_v6  ;;  %v778_v21 = vmax.f32 %v746_v3, 0.0  ;;  %v794_v22 = vmax.f32 %v762_v4, 0.0 }
 0x100   : > { %v745_v17 = vadd.f32 %v1201_v39, %v557_v11  ;;  %v761_v18 = vadd.f32 %v1233_v40, %v621_v12  ;;  %v776_v25 = vmax.f32 %v744_v9, 0.0  ;;  %v792_v26 = vmax.f32 %v760_v10, 0.0  ;;  %v1714_v9 = vld [vmem:[%s1627_s19 + $0x70] sm:$0xff]  }
 0x101   : > { %v779_v23 = vmax.f32 %v747_v13, 0.0  ;;  %v795_v24 = vmax.f32 %v763_v14, 0.0  ;;  %v1228_v14 = vunpack.c.l.bf16 %v1697_v62 }
 0x102   : > { %v777_v27 = vmax.f32 %v745_v17, 0.0  ;;  %v793_v32 = vmax.f32 %v761_v18, 0.0  ;;  %v1418_v33 = vpop.f32.mrb[4].mxu0  ;;  %v1434_v34 = vpop.f32.mrb[4].mxu1  ;;  %v1260_v17 = vunpack.c.l.bf16 %v1700_v63  ;;  %v1224_v18 = vunpack.c.l.bf16 %v1711_v8 }
 0x103   : > { %v1270_v35 = vpack.c.bf16 %v779_v23, %v778_v21  ;;  %v1310_v37 = vpack.c.bf16 %v795_v24, %v794_v22  ;;  %v578_v38 = vadd.f32 %v1418_v33, %v1648_v36  ;;  %v642_v39 = vadd.f32 %v1434_v34, %v1648_v36  ;;  %v569_v40 = vpop.f32.mrb[5].mxu0  ;;  %v633_v49 = vpop.f32.mrb[5].mxu1 }
 0x104   : > { %v1265_v50 = vpack.c.bf16 %v777_v27, %v776_v25  ;;  %v1305_v55 = vpack.c.bf16 %v793_v32, %v792_v26  ;;  %v570_v56 = vadd.f32 %v1648_v36, %v569_v40  ;;  %v634_v57 = vadd.f32 %v1648_v36, %v633_v49  ;;  %v1419_v58 = vpop.f32.mrb[6].mxu0  ;;  %v1435_v61 = vpop.f32.mrb[6].mxu1 }
 0x105   : > { %1357 = vst [vmem:[%s1690_s24 + $0x8] sm:$0xff] %v1270_v35   ;;  %1365 = vst [vmem:[%s1690_s24 + $0x48] sm:$0xff] %v1310_v37   ;;  %v750_v0 = vadd.f32 %v1212_v43, %v578_v38  ;;  %v766_v3 = vadd.f32 %v1244_v44, %v642_v39  ;;  %v581_v4 = vadd.f32 %v1419_v58, %v1648_v36  ;;  %v572_v6 = vpop.f32.mrb[7].mxu0  ;;  %v636_v7 = vpop.f32.mrb[7].mxu1  ;;  %v1256_v21 = vunpack.c.l.bf16 %v1714_v9 }
 0x106   : > { %v645_v5 = vadd.f32 %v1435_v61, %v1648_v36  ;;  %1266 = vst [vmem:[%s1690_s24] sm:$0xff] %v1265_v50   ;;  %1364 = vst [vmem:[%s1690_s24 + $0x40] sm:$0xff] %v1305_v55   ;;  %v748_v10 = vadd.f32 %v1208_v45, %v570_v56  ;;  %v764_v43 = vadd.f32 %v1240_v46, %v634_v57 }
 0x107   : > { %v573_v44 = vadd.f32 %v1648_v36, %v572_v6  ;;  %v637_v11 = vadd.f32 %v1648_v36, %v636_v7  ;;  %v751_v12 = vadd.f32 %v1213_v51, %v581_v4  ;;  %v782_v22 = vmax.f32 %v750_v0, 0.0 }
 0x108   : > { %v767_v13 = vadd.f32 %v1245_v52, %v645_v5  ;;  %v798_v28 = vmax.f32 %v766_v3, 0.0  ;;  %v780_v29 = vmax.f32 %v748_v10, 0.0  ;;  %v796_v52 = vmax.f32 %v764_v43, 0.0 }
 0x109   : > { %v749_v45 = vadd.f32 %v1209_v53, %v573_v44  ;;  %v765_v46 = vadd.f32 %v1241_v54, %v637_v11  ;;  %v783_v51 = vmax.f32 %v751_v12, 0.0  ;;  %v1229_v5 = vunpack.c.h.bf16 %v1697_v62 }
 0x10a   : > { %v799_v23 = vmax.f32 %v767_v13, 0.0  ;;  %v1422_v26 = vpop.f32.mrb[8].mxu0  ;;  %v1438_v30 = vpop.f32.mrb[8].mxu1  ;;  %v1261_v6 = vunpack.c.h.bf16 %v1700_v63  ;;  %v1225_v7 = vunpack.c.h.bf16 %v1711_v8  ;;  %v1257_v10 = vunpack.c.h.bf16 %v1714_v9 }
 0x10b   : > { %v781_v24 = vmax.f32 %v749_v45, 0.0  ;;  %v797_v25 = vmax.f32 %v765_v46, 0.0  ;;  %v1280_v53 = vpack.c.bf16 %v783_v51, %v782_v22  ;;  %v594_v31 = vadd.f32 %v1422_v26, %v1648_v36  ;;  %v585_v32 = vpop.f32.mrb[9].mxu0  ;;  %v649_v33 = vpop.f32.mrb[9].mxu1 }
 0x10c   : > { %v1320_v27 = vpack.c.bf16 %v799_v23, %v798_v28  ;;  %v658_v54 = vadd.f32 %v1438_v30, %v1648_v36  ;;  %v586_v37 = vadd.f32 %v1648_v36, %v585_v32  ;;  %v650_v38 = vadd.f32 %v1648_v36, %v649_v33  ;;  %v1423_v39 = vpop.f32.mrb[10].mxu0  ;;  %v1439_v40 = vpop.f32.mrb[10].mxu1 }
 0x10d   : > { %v1275_v34 = vpack.c.bf16 %v781_v24, %v780_v29  ;;  %v1315_v35 = vpack.c.bf16 %v797_v25, %v796_v52  ;;  %1359 = vst [vmem:[%s1690_s24 + $0x18] sm:$0xff] %v1280_v53   ;;  %v754_v49 = vadd.f32 %v1220_v59, %v594_v31  ;;  %v597_v55 = vadd.f32 %v1423_v39, %v1648_v36  ;;  %v588_v57 = vpop.f32.mrb[11].mxu0  ;;  %v652_v58 = vpop.f32.mrb[11].mxu1 }
 0x10e   : > { %1367 = vst [vmem:[%s1690_s24 + $0x58] sm:$0xff] %v1320_v27   ;;  %v770_v50 = vadd.f32 %v1252_v60, %v658_v54  ;;  %v661_v56 = vadd.f32 %v1439_v40, %v1648_v36  ;;  %v752_v61 = vadd.f32 %v1216_v1, %v586_v37  ;;  %v768_v0 = vadd.f32 %v1248_v2, %v650_v38 }
 0x10f   : > { %1358 = vst [vmem:[%s1690_s24 + $0x10] sm:$0xff] %v1275_v34   ;;  %1366 = vst [vmem:[%s1690_s24 + $0x50] sm:$0xff] %v1315_v35   ;;  %v589_v3 = vadd.f32 %v1648_v36, %v588_v57  ;;  %v653_v59 = vadd.f32 %v1648_v36, %v652_v58  ;;  %v755_v60 = vadd.f32 %v1221_v15, %v597_v55  ;;  %v786_v43 = vmax.f32 %v754_v49, 0.0 }
 0x110   : > { %v771_v4 = vadd.f32 %v1253_v16, %v661_v56  ;;  %v802_v41 = vmax.f32 %v770_v50, 0.0  ;;  %v784_v42 = vmax.f32 %v752_v61, 0.0  ;;  %v800_v16 = vmax.f32 %v768_v0, 0.0 }
 0x111   : > { %v753_v1 = vadd.f32 %v1217_v19, %v589_v3  ;;  %v769_v2 = vadd.f32 %v1249_v20, %v653_v59  ;;  %v787_v15 = vmax.f32 %v755_v60, 0.0 }
 0x112   : > { %v803_v44 = vmax.f32 %v771_v4, 0.0  ;;  %v1426_v13 = vpop.f32.mrb[12].mxu0  ;;  %v1442_v47 = vpop.f32.mrb[12].mxu1 }
 0x113   : > { %v785_v11 = vmax.f32 %v753_v1, 0.0  ;;  %v801_v12 = vmax.f32 %v769_v2, 0.0  ;;  %v1290_v19 = vpack.c.bf16 %v787_v15, %v786_v43  ;;  %v610_v48 = vadd.f32 %v1426_v13, %v1648_v36  ;;  %v601_v46 = vpop.f32.mrb[13].mxu0  ;;  %v665_v22 = vpop.f32.mrb[13].mxu1 }
 0x114   : > { %v1330_v45 = vpack.c.bf16 %v803_v44, %v802_v41  ;;  %v674_v20 = vadd.f32 %v1442_v47, %v1648_v36  ;;  %v602_v23 = vadd.f32 %v1648_v36, %v601_v46  ;;  %v666_v29 = vadd.f32 %v1648_v36, %v665_v22  ;;  %v1427_v52 = vpop.f32.mrb[14].mxu0  ;;  %v1443_v24 = vpop.f32.mrb[14].mxu1 }
 0x115   : > { %v1285_v28 = vpack.c.bf16 %v785_v11, %v784_v42  ;;  %v1325_v51 = vpack.c.bf16 %v801_v12, %v800_v16  ;;  %1361 = vst [vmem:[%s1690_s24 + $0x28] sm:$0xff] %v1290_v19   ;;  %v758_v25 = vadd.f32 %v1228_v14, %v610_v48  ;;  %v613_v30 = vadd.f32 %v1427_v52, %v1648_v36  ;;  %v604_v27 = vpop.f32.mrb[15].mxu0  ;;  %v668_v31 = vpop.f32.mrb[15].mxu1 }
 0x116   : > { %1369 = vst [vmem:[%s1690_s24 + $0x68] sm:$0xff] %v1330_v45   ;;  %v774_v26 = vadd.f32 %v1260_v17, %v674_v20  ;;  %v677_v53 = vadd.f32 %v1443_v24, %v1648_v36  ;;  %v756_v54 = vadd.f32 %v1224_v18, %v602_v23  ;;  %v772_v32 = vadd.f32 %v1256_v21, %v666_v29 }
 0x117   : > { %1360 = vst [vmem:[%s1690_s24 + $0x20] sm:$0xff] %v1285_v28   ;;  %1368 = vst [vmem:[%s1690_s24 + $0x60] sm:$0xff] %v1325_v51   ;;  %v605_v62 = vadd.f32 %v1648_v36, %v604_v27  ;;  %v669_v14 = vadd.f32 %v1648_v36, %v668_v31  ;;  %v759_v63 = vadd.f32 %v1229_v5, %v613_v30  ;;  %v790_v35 = vmax.f32 %v758_v25, 0.0 }
 0x118   : > { %v775_v17 = vadd.f32 %v1261_v6, %v677_v53  ;;  %v806_v37 = vmax.f32 %v774_v26, 0.0  ;;  %v788_v18 = vmax.f32 %v756_v54, 0.0  ;;  %v804_v39 = vmax.f32 %v772_v32, 0.0 }
 0x119   : > { %v757_v33 = vadd.f32 %v1225_v7, %v605_v62  ;;  %v773_v34 = vadd.f32 %v1257_v10, %v669_v14  ;;  %v791_v38 = vmax.f32 %v759_v63, 0.0 }
 0x11a   : > { %v807_v8 = vmax.f32 %v775_v17, 0.0 }
 0x11b   : > { %v789_v9 = vmax.f32 %v757_v33, 0.0  ;;  %v805_v21 = vmax.f32 %v773_v34, 0.0  ;;  %v1300_v40 = vpack.c.bf16 %v791_v38, %v790_v35 }
 0x11c   : > { %v1340_v49 = vpack.c.bf16 %v807_v8, %v806_v37 }
 0x11d   : > { %v1295_v50 = vpack.c.bf16 %v789_v9, %v788_v18  ;;  %v1335_v36 = vpack.c.bf16 %v805_v21, %v804_v39  ;;  %1363 = vst [vmem:[%s1690_s24 + $0x38] sm:$0xff] %v1300_v40  }
 0x11e   : > { %1371 = vst [vmem:[%s1690_s24 + $0x78] sm:$0xff] %v1340_v49  }
 0x11f   : > { %1362 = vst [vmem:[%s1690_s24 + $0x30] sm:$0xff] %v1295_v50   ;;  %1370 = vst [vmem:[%s1690_s24 + $0x70] sm:$0xff] %v1335_v36  }
 0x120 PF: > { %s14_s17 = sadd.s32 1, %s1530_s17   ;;  %s1806_s15 = smov %s1526_s16 }
 0x121   : > { %p11_p5 = scmp.ge.s32.totalorder %s14_s17, 4   ;;  %s1807_s16 = smov %s1809_s18 }
 0x123   :  { %13 = sbr.rel (!%p11_p5) target bundleno = 2 (0x2), region = 75 }

// kernel: _lambda_.10
= control target key start
LH: loop header
LB: loop body
LE: loop exit
PB: predicated region body
PF: predicated region fallthrough
CT: control target
= control target key end

     0   :  { %s1975_s12 = smov 0   ;;  %s1977_s13 = smov 0   ;;  %s2418_s0 = inlined_call_operand.vmem [shape: bf16[512,128], index: 0, kind: input, shape index: {}]   ;;  %s2419_s1 = inlined_call_operand.vmem [shape: bf16[128,256], index: 1, kind: input, shape index: {}]   ;;  %s2420_s2 = inlined_call_operand.vmem [shape: f32[1,256], index: 2, kind: input, shape index: {}]   ;;  %s2421_s3 = inlined_call_operand.vmem [shape: bf16[512,256], index: 3, kind: output, shape index: {}]  }
   0x1   :  { %s1979_s14 = smov 0   ;;  %s1981_s15 = smov 0  }
   0x2   :  { %s1983_s16 = smov 0   ;;  %s1985_s17 = smov 0  }
   0x3   :  { %s1987_s18 = smov 0   ;;  %s1989_s19 = smov 0  }
   0x4   :  { %s1991_s20 = smov 0  }
   0x5 LB: > { %s1336_s21 = sadd.s32 4294967295, %s1953_s20   ;;  %s28_s22 = sadd.s32 1, %s1945_s18  ;;  %s1953_s20 = sphi %s1991_s20, %s13_s20   ;;  %s1949_s19 = sphi %s1989_s19, %s2430_s19   ;;  %s1945_s18 = sphi %s1987_s18, %s2429_s18   ;;  %s1941_s17 = sphi %s1985_s17, %s2428_s17   ;;  %s1937_s16 = sphi %s1983_s16, %s2427_s16   ;;  %s1933_s15 = sphi %s1981_s15, %s2426_s15   ;;  %s1929_s14 = sphi %s1979_s14, %s2425_s14   ;;  %s1925_s13 = sphi %s1977_s13, %s2424_s13   ;;  %s1921_s12 = sphi %s1975_s12, %s2423_s12  }
   0x6   : > { %p30_p0 = scmp.ge.s32.totalorder %s28_s22, 2  ;;  %s32_s23 = sadd.s32 1, %s1949_s19 }
   0x7   : > { %s69_s24 = sadd.s32 1, %s1933_s15  ;;  %p76_p1 = scmp.ne.s32.totalorder %s1933_s15, %s1929_s14 }
   0x8   : > { %s2432_s22 = smov (%p30_p0, %s28_s22), 0  ;;  %s2434_s23 = smov (!%p30_p0, %s32_s23), %s1949_s19 }
   0x9   : > { %s65_s25 = ssub.s32 %s1945_s18, %s2432_s22  ;;  %p77_p2 = scmp.eq.s32.totalorder %s1953_s20, 0 }
   0xa   : > { %p34_p3 = scmp.ge.s32.totalorder %s2434_s23, 2  ;;  %p67_p4 = scmp.eq.s32.totalorder %s65_s25, 0 }
   0xb   : > { %p78_p5 = por %p77_p2, %p76_p1  ;;  %s123_s26 = sadd.s32 1, %s1925_s13 }
   0xc   : > { %s2436_s23 = smov (%p34_p3, %s2434_s23), 0  ;;  %p133_p6 = scmp.ne.s32.totalorder %s1925_s13, %s1921_s12 }
   0xd   : > { %s2036_s27 = scalar_select %p67_p4, %s1933_s15, %s69_s24  }
   0xe   : > { %s118_s28 = ssub.s32 %s1949_s19, %s2436_s23  ;;  %p134_p7 = scmp.eq.s32.totalorder %s1336_s21, 3 }
   0xf   : > { %s120_s29 = sor.u32 %s118_s28, %s65_s25  ;;  %p1339_p10 = scmp.ge.s32.totalorder %s1953_s20, 4 }
  0x10   : > { %p121_p8 = scmp.eq.s32.totalorder %s120_s29, 0  ;;  %p2042_p9 = por %p134_p7, %p133_p6 }
  0x11   : > { %156 = sbr.rel (%p1339_p10) target bundleno = 38 (0x26), region = 16 }
  0x12   : > { %s2047_s4 = scalar_select %p121_p8, %s1925_s13, %s123_s26  }
  0x18   : > { %171 = sbr.rel (!%p78_p5) target bundleno = 38 (0x26), region = 24  ;;  %s173_s5 = sand.u32 (%p78_p5), 1, %s1933_s15  }
  0x19   : > { %s1341_s6 = sshll.u32 (%p78_p5), %s1945_s18, 2  ;;  %s1340_s7 = sshll.u32 (%p78_p5), %s173_s5, 6 }
  0x1a   : > { %s2055_s10 = scalar_lea.vmem (%p78_p5), %s2419_s1, %s1341_s6  ;;  %s175_s11 = scalar_lea.vmem (%p78_p5), [#allocation2], %s1340_s7 }
  0x1b   : > { %v196_v0 = vld [vmem:[%s2055_s10] sm:$0xf] (%p78_p5)  ;;  %v198_v1 = vld [vmem:[%s2055_s10 + $0x8] sm:$0xf] (%p78_p5)  ;;  %v200_v2 = vld [vmem:[%s2055_s10 + $0x10] sm:$0xf] (%p78_p5) }
  0x1c   : > { %197 = vst [vmem:[%s175_s11] sm:$0xf] (%p78_p5), %v196_v0  ;;  %199 = vst [vmem:[%s175_s11 + $0x4] sm:$0xf] (%p78_p5), %v198_v1  ;;  %v202_v3 = vld [vmem:[%s2055_s10 + $0x18] sm:$0xf] (%p78_p5) }
  0x1d   : > { %v204_v4 = vld [vmem:[%s2055_s10 + $0x20] sm:$0xf] (%p78_p5)  ;;  %201 = vst [vmem:[%s175_s11 + $0x8] sm:$0xf] (%p78_p5), %v200_v2  ;;  %203 = vst [vmem:[%s175_s11 + $0xc] sm:$0xf] (%p78_p5), %v202_v3 }
  0x1e   : > { %205 = vst [vmem:[%s175_s11 + $0x10] sm:$0xf] (%p78_p5), %v204_v4  ;;  %v206_v5 = vld [vmem:[%s2055_s10 + $0x28] sm:$0xf] (%p78_p5)  ;;  %v208_v6 = vld [vmem:[%s2055_s10 + $0x30] sm:$0xf] (%p78_p5) }
  0x1f   : > { %v210_v7 = vld [vmem:[%s2055_s10 + $0x38] sm:$0xf]  ;;  %207 = vst [vmem:[%s175_s11 + $0x14] sm:$0xf] %v206_v5  ;;  %209 = vst [vmem:[%s175_s11 + $0x18] sm:$0xf] %v208_v6 }
  0x20   : > { %211 = vst [vmem:[%s175_s11 + $0x1c] sm:$0xf] %v210_v7  ;;  %v212_v8 = vld [vmem:[%s2055_s10 + $0x40] sm:$0xf]  ;;  %v214_v9 = vld [vmem:[%s2055_s10 + $0x48] sm:$0xf] }
  0x21   : > { %v216_v10 = vld [vmem:[%s2055_s10 + $0x50] sm:$0xf]  ;;  %213 = vst [vmem:[%s175_s11 + $0x20] sm:$0xf] %v212_v8  ;;  %215 = vst [vmem:[%s175_s11 + $0x24] sm:$0xf] %v214_v9 }
  0x22   : > { %217 = vst [vmem:[%s175_s11 + $0x28] sm:$0xf] %v216_v10  ;;  %v218_v11 = vld [vmem:[%s2055_s10 + $0x58] sm:$0xf]  ;;  %v220_v12 = vld [vmem:[%s2055_s10 + $0x60] sm:$0xf] }
  0x23   : > { %v222_v13 = vld [vmem:[%s2055_s10 + $0x68] sm:$0xf]  ;;  %219 = vst [vmem:[%s175_s11 + $0x2c] sm:$0xf] %v218_v11  ;;  %221 = vst [vmem:[%s175_s11 + $0x30] sm:$0xf] %v220_v12 }
  0x24   : > { %223 = vst [vmem:[%s175_s11 + $0x34] sm:$0xf] %v222_v13  ;;  %v224_v14 = vld [vmem:[%s2055_s10 + $0x70] sm:$0xf]  ;;  %v226_v15 = vld [vmem:[%s2055_s10 + $0x78] sm:$0xf] }
  0x25   : > { %225 = vst [vmem:[%s175_s11 + $0x38] sm:$0xf] %v224_v14  ;;  %227 = vst [vmem:[%s175_s11 + $0x3c] sm:$0xf] %v226_v15 }
  0x26 PF: > { %p1342_p11 = scmp.ge.s32.totalorder %s1953_s20, 1  ;;  %p287_p12 = scmp.lt.s32.totalorder %s1953_s20, 5 }
  0x28   : > { %p288_p13 = pnand %p1342_p11, %p287_p12 }
  0x29   : > { %s294_s21 = sand.u32 (!%p288_p13), 1, %s1929_s14   ;;  %s324_s24 = sand.u32 (!%p288_p13), 1, %s1921_s12  }
  0x2a   : > { %291 = sbr.rel (%p288_p13) target bundleno = 359 (0x167), region = 69  ;;  %s1343_s25 = sshll.u32 (!%p288_p13), %s294_s21, 6 }
  0x2b   : > { %s2077_s26 = sshll.u32 (!%p288_p13), %s324_s24, 7  ;;  %s2079_s28 = scalar_lea.vmem (!%p288_p13), [#allocation2], %s1343_s25 }
  0x2c   : > { %v1859_v16 = vld [vmem:[%s2079_s28] sm:$0xff] (!%p288_p13)   ;;  %s1345_s29 = sshll.u32 (!%p288_p13), %s1941_s17, 5  ;;  %v1860_v17 = vld [vmem:[%s2079_s28 + $0x8] sm:$0xff] (!%p288_p13)   ;;  %v1861_v18 = vld [vmem:[%s2079_s28 + $0x10] sm:$0xff] (!%p288_p13)   ;;  %p337_p1 = scmp.lt.s32.totalorder (!%p288_p13), %s1937_s16, 1 }
  0x2d   : > { %p328_p0 = scmp.lt.s32.totalorder (!%p288_p13), %s1345_s29, 63  ;;  %1723 = vmatprep.subr.bf16.mxu0 (!%p288_p13), %v1859_v16  ;;  %1771 = vmatprep.subr.bf16.mxu1 (!%p288_p13), %v1859_v16  ;;  %v1862_v19 = vld [vmem:[%s2079_s28 + $0x18] sm:$0xff] (!%p288_p13)   ;;  %v1863_v22 = vld [vmem:[%s2079_s28 + $0x20] sm:$0xff] (!%p288_p13)   ;;  %v1864_v23 = vld [vmem:[%s2079_s28 + $0x28] sm:$0xff] (!%p288_p13)   ;;  %s2217_s11 = scalar_lea.vmem (!%p288_p13), [#allocation3], %s2077_s26 }
  0x2e   : > { %1724 = vmatpush3.bf16.msra.mxu0 (!%p288_p13), %v1859_v16  ;;  %1779 = vmatpush3.bf16.msra.mxu1 (!%p288_p13), %v1859_v16  ;;  %v1865_v24 = vld [vmem:[%s2079_s28 + $0x30] sm:$0xff] (!%p288_p13)   ;;  %v1866_v25 = vld [vmem:[%s2079_s28 + $0x38] sm:$0xff] (!%p288_p13)   ;;  %p1372_p2 = scmp.ge.s32.totalorder (!%p288_p13), %s1937_s16, 1 }
  0x2f   : > { %1725 = vmatprep.subr.bf16.mxu0 (!%p288_p13), %v1860_v17  ;;  %1772 = vmatprep.subr.bf16.mxu1 (!%p288_p13), %v1860_v17 }
  0x31   : > { %s2438_s29 = smov (!%p328_p0, %s1345_s29), 63 }
  0x32   : > { %s1346_s12 = sshll.u32 %s2438_s29, 2  ;;  %1726 = vmatpush3.bf16.msra.mxu0 %v1860_v17  ;;  %1780 = vmatpush3.bf16.msra.mxu1 %v1860_v17 }
  0x33   : > { %s2088_s6 = scalar_lea.vmem %s2418_s0, %s1346_s12  ;;  %1727 = vmatprep.subr.bf16.mxu0 %v1861_v18  ;;  %1773 = vmatprep.subr.bf16.mxu1 %v1861_v18 }
  0x34   : > { %v1867_v20 = vld [vmem:[%s2088_s6] sm:$0xff]   ;;  %v1869_v26 = vld [vmem:[%s2088_s6 + $0x8] sm:$0xff]   ;;  %v1871_v28 = vld [vmem:[%s2088_s6 + $0x10] sm:$0xff]   ;;  %s338_s7 = scalar_select %p337_p1, %s1937_s16, 1 }
  0x35   : > { %v1868_v21 = vld [vmem:[%s2088_s6 + $0x40] sm:$0xff]   ;;  %1739 = vmatprep.mubr.bf16.mxu0 %v1867_v20  ;;  %v1870_v27 = vld [vmem:[%s2088_s6 + $0x48] sm:$0xff]   ;;  %v1872_v29 = vld [vmem:[%s2088_s6 + $0x50] sm:$0xff]  }
  0x36   : > { %1728 = vmatpush3.bf16.msra.mxu0 %v1861_v18  ;;  %1781 = vmatpush3.bf16.msra.mxu1 %v1861_v18  ;;  %v1873_v30 = vld [vmem:[%s2088_s6 + $0x18] sm:$0xff]   ;;  %v1875_v32 = vld [vmem:[%s2088_s6 + $0x20] sm:$0xff]   ;;  %v1877_v34 = vld [vmem:[%s2088_s6 + $0x28] sm:$0xff]   ;;  %s339_s10 = scalar_lea.vmem %s2420_s2, %s338_s7 }
  0x37   : > { %1729 = vmatprep.subr.bf16.mxu0 %v1862_v19  ;;  %1774 = vmatprep.subr.bf16.mxu1 %v1862_v19  ;;  %v1874_v31 = vld [vmem:[%s2088_s6 + $0x58] sm:$0xff]   ;;  %v1876_v33 = vld [vmem:[%s2088_s6 + $0x60] sm:$0xff]   ;;  %v1878_v35 = vld [vmem:[%s2088_s6 + $0x68] sm:$0xff]  }
  0x38   : > { %1755 = vmatprep.mubr.bf16.mxu1 %v1868_v21  ;;  %v1879_v36 = vld [vmem:[%s2088_s6 + $0x30] sm:$0xff]   ;;  %v1881_v38 = vld [vmem:[%s2088_s6 + $0x38] sm:$0xff]   ;;  %v2118_v40 = vld [vmem:[%s339_s10] ss:$0 sm:$0xff] }
  0x39   : > { %v1880_v37 = vld [vmem:[%s2088_s6 + $0x70] sm:$0xff]   ;;  %v1882_v39 = vld [vmem:[%s2088_s6 + $0x78] sm:$0xff]  }
  0x3a   : > { %1730 = vmatpush3.bf16.msra.mxu0 %v1862_v19  ;;  %1782 = vmatpush3.bf16.msra.mxu1 %v1862_v19 }
  0x3b   : > { %1731 = vmatprep.subr.bf16.mxu0 %v1863_v22  ;;  %1775 = vmatprep.subr.bf16.mxu1 %v1863_v22 }
  0x3e   : > { %1732 = vmatpush3.bf16.msra.mxu0 %v1863_v22  ;;  %1783 = vmatpush3.bf16.msra.mxu1 %v1863_v22 }
  0x3f   : > { %1733 = vmatprep.subr.bf16.mxu0 %v1864_v23  ;;  %1776 = vmatprep.subr.bf16.mxu1 %v1864_v23 }
  0x42   : > { %1734 = vmatpush3.bf16.msra.mxu0 %v1864_v23  ;;  %1784 = vmatpush3.bf16.msra.mxu1 %v1864_v23 }
  0x43   : > { %1735 = vmatprep.subr.bf16.mxu0 %v1865_v24  ;;  %1777 = vmatprep.subr.bf16.mxu1 %v1865_v24 }
  0x46   : > { %1736 = vmatpush3.bf16.msra.mxu0 %v1865_v24  ;;  %1785 = vmatpush3.bf16.msra.mxu1 %v1865_v24 }
  0x47   : > { %1737 = vmatprep.subr.bf16.mxu0 %v1866_v25  ;;  %1778 = vmatprep.subr.bf16.mxu1 %v1866_v25 }
  0x4a   : > { %1738 = vmatpush3.bf16.msra.mxu0 %v1866_v25  ;;  %1786 = vmatpush3.bf16.msra.mxu1 %v1866_v25 }
  0x4d   : > { %1740 = vmatmul.mubr.bf16.vlgmr.msra.gmra.mrb[0].mxu0 %v1869_v26  ;;  %1756 = vmatmul.mubr.bf16.vlgmr.msra.gmra.mrb[0].mxu1 %v1870_v27 }
  0x4e   : > { %1743 = vmatprep.mubr.bf16.mxu0 %v1871_v28  ;;  %1759 = vmatprep.mubr.bf16.mxu1 %v1872_v29 }
  0x55   : > { %1744 = vmatmul.mubr.bf16.gmra.mrb[4].mxu0 %v1873_v30  ;;  %1760 = vmatmul.mubr.bf16.gmra.mrb[4].mxu1 %v1874_v31 }
  0x56   : > { %1747 = vmatprep.mubr.bf16.mxu0 %v1875_v32  ;;  %1763 = vmatprep.mubr.bf16.mxu1 %v1876_v33 }
  0x5d   : > { %1748 = vmatmul.mubr.bf16.gmra.mrb[8].mxu0 %v1877_v34  ;;  %1764 = vmatmul.mubr.bf16.gmra.mrb[8].mxu1 %v1878_v35 }
  0x5e   : > { %1751 = vmatprep.mubr.bf16.mxu0 %v1879_v36  ;;  %1767 = vmatprep.mubr.bf16.mxu1 %v1880_v37 }
  0x65   : > { %1752 = vmatmul.mubr.bf16.gmra.mrb[12].mxu0 %v1881_v38  ;;  %1768 = vmatmul.mubr.bf16.gmra.mrb[12].mxu1 %v1882_v39 }
 0x120   : > { %v1741_v41 = vpop.f32.mrb[0].mxu0  ;;  %v1757_v42 = vpop.f32.mrb[0].mxu1 }
 0x121   : > { %v2121_v43 = vadd.f32 %v1741_v41, %v2118_v40  ;;  %v2124_v44 = vadd.f32 %v1757_v42, %v2118_v40  ;;  %v575_v45 = vpop.f32.mrb[1].mxu0  ;;  %v639_v46 = vpop.f32.mrb[1].mxu1 }
 0x122   : > { %v2127_v47 = vadd.f32 %v2118_v40, %v575_v45  ;;  %v2130_v48 = vadd.f32 %v2118_v40, %v639_v46  ;;  %v1742_v49 = vpop.f32.mrb[2].mxu0  ;;  %v1758_v50 = vpop.f32.mrb[2].mxu1 }
 0x123   : > { %v2133_v51 = vadd.f32 %v1742_v49, %v2118_v40  ;;  %v2136_v52 = vadd.f32 %v1758_v50, %v2118_v40  ;;  %v578_v53 = vpop.f32.mrb[3].mxu0  ;;  %v642_v54 = vpop.f32.mrb[3].mxu1  ;;  %v708_v46 = vmax.f32 (!%p1372_p2), %v2121_v43, 0.0 }
 0x124   : > { %v2139_v55 = vadd.f32 %v2118_v40, %v578_v53  ;;  %v2142_v56 = vadd.f32 %v2118_v40, %v642_v54  ;;  %v706_v42 = vmax.f32 (!%p1372_p2), %v2127_v47, 0.0 }
 0x125   : > { %v709_v49 = vmax.f32 (!%p1372_p2), %v2133_v51, 0.0 }
 0x126   : > { %v707_v45 = vmax.f32 (!%p1372_p2), %v2139_v55, 0.0 }
 0x128   : > { %v1745_v57 = vpop.f32.mrb[4].mxu0  ;;  %v1761_v58 = vpop.f32.mrb[4].mxu1 }
 0x129   : > { %v2145_v59 = vadd.f32 %v1745_v57, %v2118_v40  ;;  %v2148_v60 = vadd.f32 %v1761_v58, %v2118_v40  ;;  %v591_v61 = vpop.f32.mrb[5].mxu0  ;;  %v655_v62 = vpop.f32.mrb[5].mxu1  ;;  %v1512_v57 = vpack.c.bf16 (!%p1372_p2), %v707_v45, %v706_v42  ;;  %v1517_v58 = vpack.c.bf16 (!%p1372_p2), %v709_v49, %v708_v46 }
 0x12a   : > { %v2151_v63 = vadd.f32 %v2118_v40, %v591_v61  ;;  %v2154_v0 = vadd.f32 %v2118_v40, %v655_v62  ;;  %v1746_v1 = vpop.f32.mrb[6].mxu0  ;;  %v1762_v2 = vpop.f32.mrb[6].mxu1 }
 0x12b   : > { %v2157_v3 = vadd.f32 %v1746_v1, %v2118_v40  ;;  %v2160_v4 = vadd.f32 %v1762_v2, %v2118_v40  ;;  %v594_v5 = vpop.f32.mrb[7].mxu0  ;;  %v658_v6 = vpop.f32.mrb[7].mxu1  ;;  %v712_v53 = vmax.f32 (!%p1372_p2), %v2145_v59, 0.0  ;;  %1513 = vst [vmem:[%s2217_s11] sm:$0xff] (!%p1372_p2), %v1512_v57   ;;  %1669 = vst [vmem:[%s2217_s11 + $0x8] sm:$0xff] (!%p1372_p2), %v1517_v58  }
 0x12c   : > { %v2163_v7 = vadd.f32 %v2118_v40, %v594_v5  ;;  %v2166_v8 = vadd.f32 %v2118_v40, %v658_v6  ;;  %v710_v50 = vmax.f32 (!%p1372_p2), %v2151_v63, 0.0 }
 0x12d   : > { %v713_v54 = vmax.f32 (!%p1372_p2), %v2157_v3, 0.0  ;;  %v729_v45 = vmax.f32 (!%p1372_p2), %v2160_v4, 0.0 }
 0x12f   : > { %v1527_v2 = vpack.c.bf16 (!%p1372_p2), %v713_v54, %v712_v53 }
 0x130   : > { %v1749_v9 = vpop.f32.mrb[8].mxu0  ;;  %v1765_v10 = vpop.f32.mrb[8].mxu1 }
 0x131   : > { %v2169_v11 = vadd.f32 %v1749_v9, %v2118_v40  ;;  %v2172_v12 = vadd.f32 %v1765_v10, %v2118_v40  ;;  %v607_v13 = vpop.f32.mrb[9].mxu0  ;;  %v671_v14 = vpop.f32.mrb[9].mxu1  ;;  %1671 = vst [vmem:[%s2217_s11 + $0x18] sm:$0xff] (!%p1372_p2), %v1527_v2  }
 0x132   : > { %v2175_v15 = vadd.f32 %v2118_v40, %v607_v13  ;;  %v2178_v16 = vadd.f32 %v2118_v40, %v671_v14  ;;  %v1750_v17 = vpop.f32.mrb[10].mxu0  ;;  %v1766_v18 = vpop.f32.mrb[10].mxu1 }
 0x133   : > { %v2181_v19 = vadd.f32 %v1750_v17, %v2118_v40  ;;  %v2184_v20 = vadd.f32 %v1766_v18, %v2118_v40  ;;  %v610_v21 = vpop.f32.mrb[11].mxu0  ;;  %v674_v22 = vpop.f32.mrb[11].mxu1  ;;  %v716_v5 = vmax.f32 (!%p1372_p2), %v2169_v11, 0.0 }
 0x134   : > { %v2187_v23 = vadd.f32 %v2118_v40, %v610_v21  ;;  %v2190_v24 = vadd.f32 %v2118_v40, %v674_v22  ;;  %v714_v61 = vmax.f32 (!%p1372_p2), %v2175_v15, 0.0  ;;  %v722_v21 = vmax.f32 (!%p1372_p2), %v2130_v48, 0.0 }
 0x135   : > { %v717_v6 = vmax.f32 (!%p1372_p2), %v2181_v19, 0.0  ;;  %v723_v22 = vmax.f32 (!%p1372_p2), %v2142_v56, 0.0  ;;  %v730_v46 = vmax.f32 (!%p1372_p2), %v2178_v16, 0.0  ;;  %v733_v53 = vmax.f32 (!%p1372_p2), %v2184_v20, 0.0 }
 0x136   : > { %705 = sbr.rel (%p1372_p2) target bundleno = 325 (0x145), region = 77  ;;  %v715_v62 = vmax.f32 (!%p1372_p2), %v2187_v23, 0.0  ;;  %v731_v49 = vmax.f32 (!%p1372_p2), %v2190_v24, 0.0 }
 0x137   : > { %v1537_v17 = vpack.c.bf16 (!%p1372_p2), %v717_v6, %v716_v5 }
 0x138   : > { %v1753_v25 = vpop.f32.mrb[12].mxu0  ;;  %v1769_v26 = vpop.f32.mrb[12].mxu1  ;;  %v1532_v9 = vpack.c.bf16 (!%p1372_p2), %v715_v62, %v714_v61  ;;  %v1572_v58 = vpack.c.bf16 (!%p1372_p2), %v731_v49, %v730_v46 }
 0x139   : > { %v2193_v27 = vadd.f32 %v1753_v25, %v2118_v40  ;;  %v2196_v28 = vadd.f32 %v1769_v26, %v2118_v40  ;;  %v623_v29 = vpop.f32.mrb[13].mxu0  ;;  %v687_v30 = vpop.f32.mrb[13].mxu1  ;;  %v724_v26 = vmax.f32 (!%p1372_p2), %v2124_v44, 0.0  ;;  %1673 = vst [vmem:[%s2217_s11 + $0x28] sm:$0xff] (!%p1372_p2), %v1537_v17  }
 0x13a   : > { %v2199_v31 = vadd.f32 %v2118_v40, %v623_v29  ;;  %v2202_v32 = vadd.f32 %v2118_v40, %v687_v30  ;;  %v1754_v33 = vpop.f32.mrb[14].mxu0  ;;  %v1770_v34 = vpop.f32.mrb[14].mxu1  ;;  %1672 = vst [vmem:[%s2217_s11 + $0x20] sm:$0xff] (!%p1372_p2), %v1532_v9   ;;  %v725_v29 = vmax.f32 (!%p1372_p2), %v2136_v52, 0.0  ;;  %v726_v30 = vmax.f32 (!%p1372_p2), %v2154_v0, 0.0  ;;  %1680 = vst [vmem:[%s2217_s11 + $0x60] sm:$0xff] (!%p1372_p2), %v1572_v58  }
 0x13b   : > { %v2205_v35 = vadd.f32 %v1754_v33, %v2118_v40  ;;  %v2208_v36 = vadd.f32 %v1770_v34, %v2118_v40  ;;  %v626_v37 = vpop.f32.mrb[15].mxu0  ;;  %v690_v38 = vpop.f32.mrb[15].mxu1  ;;  %v720_v14 = vmax.f32 (!%p1372_p2), %v2193_v27, 0.0  ;;  %v1552_v34 = vpack.c.bf16 (!%p1372_p2), %v723_v22, %v722_v21 }
 0x13c   : > { %v2211_v39 = vadd.f32 %v2118_v40, %v626_v37  ;;  %v2214_v41 = vadd.f32 %v2118_v40, %v690_v38  ;;  %v711_v40 = vmax.f32 (!%p1372_p2), %v2163_v7, 0.0  ;;  %v718_v10 = vmax.f32 (!%p1372_p2), %v2199_v31, 0.0 }
 0x13d   : > { %v721_v18 = vmax.f32 %v2205_v35, 0.0  ;;  %v727_v37 = vmax.f32 %v2166_v8, 0.0  ;;  %v728_v38 = vmax.f32 %v2148_v60, 0.0  ;;  %v1557_v42 = vpack.c.bf16 %v725_v29, %v724_v26  ;;  %1676 = vst [vmem:[%s2217_s11 + $0x40] sm:$0xff] %v1552_v34  }
 0x13e   : > { %v1522_v1 = vpack.c.bf16 %v711_v40, %v710_v50  ;;  %v719_v13 = vmax.f32 %v2211_v39, 0.0  ;;  %v732_v40 = vmax.f32 %v2172_v12, 0.0  ;;  %v734_v54 = vmax.f32 %v2202_v32, 0.0 }
 0x13f   : > { %v1547_v33 = vpack.c.bf16 %v721_v18, %v720_v14  ;;  %v1562_v50 = vpack.c.bf16 %v727_v37, %v726_v30  ;;  %1677 = vst [vmem:[%s2217_s11 + $0x48] sm:$0xff] %v1557_v42   ;;  %v1567_v57 = vpack.c.bf16 %v729_v45, %v728_v38  ;;  %v735_v61 = vmax.f32 %v2214_v41, 0.0 }
 0x140   : > { %1670 = vst [vmem:[%s2217_s11 + $0x10] sm:$0xff] %v1522_v1   ;;  %v1542_v25 = vpack.c.bf16 %v719_v13, %v718_v10  ;;  %v736_v62 = vmax.f32 %v2196_v28, 0.0  ;;  %v1577_v1 = vpack.c.bf16 %v733_v53, %v732_v40  ;;  %v737_v2 = vmax.f32 %v2208_v36, 0.0 }
 0x141   : > { %1675 = vst [vmem:[%s2217_s11 + $0x38] sm:$0xff] %v1547_v33   ;;  %1678 = vst [vmem:[%s2217_s11 + $0x50] sm:$0xff] %v1562_v50   ;;  %v1582_v5 = vpack.c.bf16 %v735_v61, %v734_v54 }
 0x142   : > { %1674 = vst [vmem:[%s2217_s11 + $0x30] sm:$0xff] %v1542_v25   ;;  %1679 = vst [vmem:[%s2217_s11 + $0x58] sm:$0xff] %v1567_v57   ;;  %v1587_v6 = vpack.c.bf16 %v737_v2, %v736_v62 }
 0x143   : > { %1681 = vst [vmem:[%s2217_s11 + $0x68] sm:$0xff] %v1577_v1   ;;  %1682 = vst [vmem:[%s2217_s11 + $0x70] sm:$0xff] %v1582_v5  }
 0x144   : > { %1683 = vst [vmem:[%s2217_s11 + $0x78] sm:$0xff] %v1587_v6  }
 0x145 PF: > { %901 = sbr.rel (%p337_p1) target bundleno = 335 (0x14f), region = 81  ;;  %v1592_v9 = vpack.c.bf16 (!%p337_p1), %v2139_v55, %v2127_v47  ;;  %v1597_v10 = vpack.c.bf16 (!%p337_p1), %v2133_v51, %v2121_v43  ;;  %v1602_v13 = vpack.c.bf16 (!%p337_p1), %v2163_v7, %v2151_v63  ;;  %v1607_v14 = vpack.c.bf16 (!%p337_p1), %v2157_v3, %v2145_v59 }
 0x146   : > { %v1612_v17 = vpack.c.bf16 (!%p337_p1), %v2187_v23, %v2175_v15  ;;  %v1617_v18 = vpack.c.bf16 (!%p337_p1), %v2181_v19, %v2169_v11  ;;  %v1622_v47 = vpack.c.bf16 (!%p337_p1), %v2211_v39, %v2199_v31  ;;  %v1627_v43 = vpack.c.bf16 (!%p337_p1), %v2205_v35, %v2193_v27 }
 0x147   : > { %1593 = vst [vmem:[%s2217_s11] sm:$0xff] (!%p337_p1), %v1592_v9   ;;  %1684 = vst [vmem:[%s2217_s11 + $0x8] sm:$0xff] (!%p337_p1), %v1597_v10   ;;  %v1632_v51 = vpack.c.bf16 (!%p337_p1), %v2142_v56, %v2130_v48  ;;  %v1637_v55 = vpack.c.bf16 (!%p337_p1), %v2136_v52, %v2124_v44  ;;  %v1642_v59 = vpack.c.bf16 (!%p337_p1), %v2166_v8, %v2154_v0 }
 0x148   : > { %1685 = vst [vmem:[%s2217_s11 + $0x10] sm:$0xff] (!%p337_p1), %v1602_v13   ;;  %1686 = vst [vmem:[%s2217_s11 + $0x18] sm:$0xff] (!%p337_p1), %v1607_v14   ;;  %v1647_v63 = vpack.c.bf16 (!%p337_p1), %v2160_v4, %v2148_v60  ;;  %v1652_v48 = vpack.c.bf16 (!%p337_p1), %v2190_v24, %v2178_v16  ;;  %v1657_v56 = vpack.c.bf16 (!%p337_p1), %v2184_v20, %v2172_v12 }
 0x149   : > { %1687 = vst [vmem:[%s2217_s11 + $0x20] sm:$0xff] (!%p337_p1), %v1612_v17   ;;  %1688 = vst [vmem:[%s2217_s11 + $0x28] sm:$0xff] (!%p337_p1), %v1617_v18   ;;  %v1662_v44 = vpack.c.bf16 (!%p337_p1), %v2214_v41, %v2202_v32  ;;  %v1667_v52 = vpack.c.bf16 (!%p337_p1), %v2208_v36, %v2196_v28 }
 0x14a   : > { %1689 = vst [vmem:[%s2217_s11 + $0x30] sm:$0xff] (!%p337_p1), %v1622_v47   ;;  %1690 = vst [vmem:[%s2217_s11 + $0x38] sm:$0xff] (!%p337_p1), %v1627_v43  }
 0x14b   : > { %1691 = vst [vmem:[%s2217_s11 + $0x40] sm:$0xff] (!%p337_p1), %v1632_v51   ;;  %1692 = vst [vmem:[%s2217_s11 + $0x48] sm:$0xff] (!%p337_p1), %v1637_v55  }
 0x14c   : > { %1693 = vst [vmem:[%s2217_s11 + $0x50] sm:$0xff] %v1642_v59   ;;  %1694 = vst [vmem:[%s2217_s11 + $0x58] sm:$0xff] %v1647_v63  }
 0x14d   : > { %1695 = vst [vmem:[%s2217_s11 + $0x60] sm:$0xff] %v1652_v48   ;;  %1696 = vst [vmem:[%s2217_s11 + $0x68] sm:$0xff] %v1657_v56  }
 0x14e   : > { %1697 = vst [vmem:[%s2217_s11 + $0x70] sm:$0xff] %v1662_v44   ;;  %1698 = vst [vmem:[%s2217_s11 + $0x78] sm:$0xff] %v1667_v52  }
 0x14f PF: > { %1068 = sbr.rel (!%p2042_p9) target bundleno = 359 (0x167), region = 85  ;;  %s1508_s21 = sshll.u32 (%p2042_p9), %s1941_s17, 6 }
 0x150   : > { %s1071_s24 = sadd.s32 (%p2042_p9), %s1937_s16, %s1508_s21 }
 0x151   : > { %v1089_v60 = vld [vmem:[%s2217_s11] sm:$0xf] (%p2042_p9)  ;;  %v1091_v0 = vld [vmem:[%s2217_s11 + $0x4] sm:$0xf] (%p2042_p9)  ;;  %v1093_v3 = vld [vmem:[%s2217_s11 + $0x8] sm:$0xf] (%p2042_p9) }
 0x152   : > { %v1095_v4 = vld [vmem:[%s2217_s11 + $0xc] sm:$0xf] (%p2042_p9)  ;;  %v1097_v7 = vld [vmem:[%s2217_s11 + $0x10] sm:$0xf] (%p2042_p9)  ;;  %s1441_s30 = sshll.u32 (%p2042_p9), %s1071_s24, 2 }
 0x153   : > { %v1099_v8 = vld [vmem:[%s2217_s11 + $0x14] sm:$0xf] (%p2042_p9)  ;;  %v1101_v11 = vld [vmem:[%s2217_s11 + $0x18] sm:$0xf] (%p2042_p9)  ;;  %s2332_s28 = scalar_lea.vmem (%p2042_p9), %s2421_s3, %s1441_s30  ;;  %v1103_v12 = vld [vmem:[%s2217_s11 + $0x1c] sm:$0xf] (%p2042_p9) }
 0x154   : > { %v1105_v15 = vld [vmem:[%s2217_s11 + $0x20] sm:$0xf] (%p2042_p9)  ;;  %v1107_v16 = vld [vmem:[%s2217_s11 + $0x24] sm:$0xf] (%p2042_p9)  ;;  %1090 = vst [vmem:[%s2332_s28] sm:$0xf] (%p2042_p9), %v1089_v60 }
 0x155   : > { %1092 = vst [vmem:[%s2332_s28 + $0x8] sm:$0xf] (%p2042_p9), %v1091_v0  ;;  %1094 = vst [vmem:[%s2332_s28 + $0x10] sm:$0xf] (%p2042_p9), %v1093_v3  ;;  %v1109_v19 = vld [vmem:[%s2217_s11 + $0x28] sm:$0xf] (%p2042_p9) }
 0x156   : > { %1096 = vst [vmem:[%s2332_s28 + $0x18] sm:$0xf] %v1095_v4  ;;  %1098 = vst [vmem:[%s2332_s28 + $0x20] sm:$0xf] %v1097_v7  ;;  %v1111_v20 = vld [vmem:[%s2217_s11 + $0x2c] sm:$0xf] }
 0x157   : > { %1100 = vst [vmem:[%s2332_s28 + $0x28] sm:$0xf] %v1099_v8  ;;  %1102 = vst [vmem:[%s2332_s28 + $0x30] sm:$0xf] %v1101_v11  ;;  %v1113_v23 = vld [vmem:[%s2217_s11 + $0x30] sm:$0xf] }
 0x158   : > { %1104 = vst [vmem:[%s2332_s28 + $0x38] sm:$0xf] %v1103_v12  ;;  %1106 = vst [vmem:[%s2332_s28 + $0x40] sm:$0xf] %v1105_v15  ;;  %v1115_v24 = vld [vmem:[%s2217_s11 + $0x34] sm:$0xf] }
 0x159   : > { %1108 = vst [vmem:[%s2332_s28 + $0x48] sm:$0xf] %v1107_v16  ;;  %1110 = vst [vmem:[%s2332_s28 + $0x50] sm:$0xf] %v1109_v19  ;;  %v1117_v27 = vld [vmem:[%s2217_s11 + $0x38] sm:$0xf] }
 0x15a   : > { %1112 = vst [vmem:[%s2332_s28 + $0x58] sm:$0xf] %v1111_v20  ;;  %1114 = vst [vmem:[%s2332_s28 + $0x60] sm:$0xf] %v1113_v23  ;;  %v1119_v28 = vld [vmem:[%s2217_s11 + $0x3c] sm:$0xf] }
 0x15b   : > { %1116 = vst [vmem:[%s2332_s28 + $0x68] sm:$0xf] %v1115_v24  ;;  %1118 = vst [vmem:[%s2332_s28 + $0x70] sm:$0xf] %v1117_v27  ;;  %v1121_v31 = vld [vmem:[%s2217_s11 + $0x40] sm:$0xf] }
 0x15c   : > { %1120 = vst [vmem:[%s2332_s28 + $0x78] sm:$0xf] %v1119_v28  ;;  %v1123_v32 = vld [vmem:[%s2217_s11 + $0x44] sm:$0xf]  ;;  %v1125_v35 = vld [vmem:[%s2217_s11 + $0x48] sm:$0xf] }
 0x15d   : > { %1122 = vst [vmem:[%s2332_s28 + $0x80] sm:$0xf] %v1121_v31  ;;  %1124 = vst [vmem:[%s2332_s28 + $0x88] sm:$0xf] %v1123_v32  ;;  %v1127_v36 = vld [vmem:[%s2217_s11 + $0x4c] sm:$0xf] }
 0x15e   : > { %1126 = vst [vmem:[%s2332_s28 + $0x90] sm:$0xf] %v1125_v35  ;;  %v1129_v39 = vld [vmem:[%s2217_s11 + $0x50] sm:$0xf]  ;;  %v1131_v41 = vld [vmem:[%s2217_s11 + $0x54] sm:$0xf] }
 0x15f   : > { %1128 = vst [vmem:[%s2332_s28 + $0x98] sm:$0xf] %v1127_v36  ;;  %1130 = vst [vmem:[%s2332_s28 + $0xa0] sm:$0xf] %v1129_v39  ;;  %v1133_v21 = vld [vmem:[%s2217_s11 + $0x58] sm:$0xf] }
 0x160   : > { %1132 = vst [vmem:[%s2332_s28 + $0xa8] sm:$0xf] %v1131_v41  ;;  %v1135_v22 = vld [vmem:[%s2217_s11 + $0x5c] sm:$0xf]  ;;  %v1137_v25 = vld [vmem:[%s2217_s11 + $0x60] sm:$0xf] }
 0x161   : > { %1134 = vst [vmem:[%s2332_s28 + $0xb0] sm:$0xf] %v1133_v21  ;;  %1136 = vst [vmem:[%s2332_s28 + $0xb8] sm:$0xf] %v1135_v22  ;;  %v1139_v26 = vld [vmem:[%s2217_s11 + $0x64] sm:$0xf] }
 0x162   : > { %1138 = vst [vmem:[%s2332_s28 + $0xc0] sm:$0xf] %v1137_v25  ;;  %v1141_v29 = vld [vmem:[%s2217_s11 + $0x68] sm:$0xf]  ;;  %v1143_v30 = vld [vmem:[%s2217_s11 + $0x6c] sm:$0xf] }
 0x163   : > { %1140 = vst [vmem:[%s2332_s28 + $0xc8] sm:$0xf] %v1139_v26  ;;  %1142 = vst [vmem:[%s2332_s28 + $0xd0] sm:$0xf] %v1141_v29  ;;  %v1145_v33 = vld [vmem:[%s2217_s11 + $0x70] sm:$0xf] }
 0x164   : > { %1144 = vst [vmem:[%s2332_s28 + $0xd8] sm:$0xf] %v1143_v30  ;;  %v1147_v34 = vld [vmem:[%s2217_s11 + $0x74] sm:$0xf]  ;;  %v1149_v37 = vld [vmem:[%s2217_s11 + $0x78] sm:$0xf] }
 0x165   : > { %1146 = vst [vmem:[%s2332_s28 + $0xe0] sm:$0xf] %v1145_v33  ;;  %1148 = vst [vmem:[%s2332_s28 + $0xe8] sm:$0xf] %v1147_v34  ;;  %v1151_v38 = vld [vmem:[%s2217_s11 + $0x7c] sm:$0xf] }
 0x166   : > { %1150 = vst [vmem:[%s2332_s28 + $0xf0] sm:$0xf] %v1149_v37  ;;  %1152 = vst [vmem:[%s2332_s28 + $0xf8] sm:$0xf] %v1151_v38 }
 0x167 PF: > { %s13_s20 = sadd.s32 1, %s1953_s20   ;;  %s2423_s12 = smov %s1925_s13 }
 0x168   : > { %p10_p3 = scmp.ge.s32.totalorder %s13_s20, 6   ;;  %s2424_s13 = smov %s2047_s4 }
 0x169   : > { %s2425_s14 = smov %s1933_s15  ;;  %s2426_s15 = smov %s2036_s27 }
 0x16a   : > { %s2427_s16 = smov %s1945_s18  ;;  %s2428_s17 = smov %s1949_s19 }
 0x16b   : > { %s2429_s18 = smov %s2432_s22  ;;  %s2430_s19 = smov %s2436_s23 }
 0x16c   :  { %12 = sbr.rel (!%p10_p3) target bundleno = 5 (0x5), region = 163 }

// kernel: _lambda_.14
= control target key start
LH: loop header
LB: loop body
LE: loop exit
PB: predicated region body
PF: predicated region fallthrough
CT: control target
= control target key end

     0   :  { %s602_s1 = inlined_call_operand.vmem [shape: bf16[128,128], index: 1, kind: input, shape index: {}]   ;;  %s603_s0 = inlined_call_operand.vmem [shape: bf16[128,128], index: 0, kind: input, shape index: {}]   ;;  %s604_s2 = inlined_call_operand.vmem [shape: f32[1,128], index: 2, kind: input, shape index: {}]   ;;  %s605_s3 = inlined_call_operand.vmem [shape: bf16[128,128], index: 3, kind: output, shape index: {}]  }
   0x1   :  { %v491_v0 = vld [vmem:[%s602_s1] sm:$0xff]   ;;  %v492_v1 = vld [vmem:[%s602_s1 + $0x8] sm:$0xff]   ;;  %v493_v2 = vld [vmem:[%s602_s1 + $0x10] sm:$0xff]  }
   0x2   :  { %443 = vmatprep.subr.bf16.mxu0 %v491_v0  ;;  %475 = vmatprep.subr.bf16.mxu1 %v491_v0  ;;  %v494_v3 = vld [vmem:[%s602_s1 + $0x18] sm:$0xff]   ;;  %v499_v4 = vld [vmem:[%s603_s0] sm:$0xff]   ;;  %v496_v7 = vld [vmem:[%s602_s1 + $0x28] sm:$0xff]  }
   0x3   :  { %444 = vmatpush3.bf16.msra.mxu0 %v491_v0  ;;  %483 = vmatpush3.bf16.msra.mxu1 %v491_v0  ;;  %v500_v5 = vld [vmem:[%s603_s0 + $0x20] sm:$0xff]   ;;  %v497_v8 = vld [vmem:[%s602_s1 + $0x30] sm:$0xff]   ;;  %v498_v9 = vld [vmem:[%s602_s1 + $0x38] sm:$0xff]  }
   0x4   :  { %445 = vmatprep.subr.bf16.mxu0 %v492_v1  ;;  %476 = vmatprep.subr.bf16.mxu1 %v492_v1  ;;  %v495_v6 = vld [vmem:[%s602_s1 + $0x20] sm:$0xff]   ;;  %v501_v10 = vld [vmem:[%s603_s0 + $0x8] sm:$0xff]   ;;  %v503_v12 = vld [vmem:[%s603_s0 + $0x10] sm:$0xff]  }
   0x5   :  { %459 = vmatprep.mubr.bf16.mxu0 %v499_v4  ;;  %467 = vmatprep.mubr.bf16.mxu1 %v500_v5  ;;  %v502_v11 = vld [vmem:[%s603_s0 + $0x28] sm:$0xff]   ;;  %v504_v13 = vld [vmem:[%s603_s0 + $0x30] sm:$0xff]   ;;  %v505_v14 = vld [vmem:[%s603_s0 + $0x18] sm:$0xff]  }
   0x6   :  { %v506_v15 = vld [vmem:[%s603_s0 + $0x38] sm:$0xff]   ;;  %v331_v17 = vld [vmem:[%s604_s2] ss:$0 sm:$0xff] }
   0x7   :  { %446 = vmatpush3.bf16.msra.mxu0 %v492_v1  ;;  %484 = vmatpush3.bf16.msra.mxu1 %v492_v1 }
   0x8   :  { %447 = vmatprep.subr.bf16.mxu0 %v493_v2  ;;  %477 = vmatprep.subr.bf16.mxu1 %v493_v2 }
   0xb   :  { %448 = vmatpush3.bf16.msra.mxu0 %v493_v2  ;;  %485 = vmatpush3.bf16.msra.mxu1 %v493_v2 }
   0xc   :  { %449 = vmatprep.subr.bf16.mxu0 %v494_v3  ;;  %478 = vmatprep.subr.bf16.mxu1 %v494_v3 }
   0xf   :  { %450 = vmatpush3.bf16.msra.mxu0 %v494_v3  ;;  %486 = vmatpush3.bf16.msra.mxu1 %v494_v3 }
  0x10   :  { %451 = vmatprep.subr.bf16.mxu0 %v495_v6  ;;  %479 = vmatprep.subr.bf16.mxu1 %v495_v6 }
  0x13   :  { %452 = vmatpush3.bf16.msra.mxu0 %v495_v6  ;;  %487 = vmatpush3.bf16.msra.mxu1 %v495_v6 }
  0x14   :  { %453 = vmatprep.subr.bf16.mxu0 %v496_v7  ;;  %480 = vmatprep.subr.bf16.mxu1 %v496_v7 }
  0x17   :  { %454 = vmatpush3.bf16.msra.mxu0 %v496_v7  ;;  %488 = vmatpush3.bf16.msra.mxu1 %v496_v7 }
  0x18   :  { %455 = vmatprep.subr.bf16.mxu0 %v497_v8  ;;  %481 = vmatprep.subr.bf16.mxu1 %v497_v8 }
  0x1b   :  { %456 = vmatpush3.bf16.msra.mxu0 %v497_v8  ;;  %489 = vmatpush3.bf16.msra.mxu1 %v497_v8 }
  0x1c   :  { %457 = vmatprep.subr.bf16.mxu0 %v498_v9  ;;  %482 = vmatprep.subr.bf16.mxu1 %v498_v9 }
  0x1f   :  { %458 = vmatpush3.bf16.msra.mxu0 %v498_v9  ;;  %490 = vmatpush3.bf16.msra.mxu1 %v498_v9 }
  0x22   :  { %460 = vmatmul.mubr.bf16.vlgmr.msra.gmra.mrb[0].mxu0 %v501_v10  ;;  %468 = vmatmul.mubr.bf16.vlgmr.msra.gmra.mrb[0].mxu1 %v502_v11 }
  0x23   :  { %463 = vmatprep.mubr.bf16.mxu0 %v503_v12  ;;  %471 = vmatprep.mubr.bf16.mxu1 %v504_v13 }
  0x2a   :  { %464 = vmatmul.mubr.bf16.gmra.mrb[4].mxu0 %v505_v14  ;;  %472 = vmatmul.mubr.bf16.gmra.mrb[4].mxu1 %v506_v15 }
  0xf5   :  { %v461_v16 = vpop.f32.mrb[0].mxu0  ;;  %v469_v18 = vpop.f32.mrb[0].mxu1 }
  0xf6   :  { %v184_v19 = vpop.f32.mrb[1].mxu0  ;;  %v216_v20 = vpop.f32.mrb[1].mxu1  ;;  %v193_v23 = vadd.f32 %v461_v16, %v331_v17  ;;  %v225_v24 = vadd.f32 %v469_v18, %v331_v17 }
  0xf7   :  { %v462_v21 = vpop.f32.mrb[2].mxu0  ;;  %v470_v22 = vpop.f32.mrb[2].mxu1  ;;  %v185_v29 = vadd.f32 %v331_v17, %v184_v19  ;;  %v217_v30 = vadd.f32 %v331_v17, %v216_v20 }
  0xf8   :  { %v196_v25 = vadd.f32 %v462_v21, %v331_v17  ;;  %v228_v26 = vadd.f32 %v470_v22, %v331_v17  ;;  %v187_v27 = vpop.f32.mrb[3].mxu0  ;;  %v219_v28 = vpop.f32.mrb[3].mxu1 }
  0xf9   :  { %v188_v31 = vadd.f32 %v331_v17, %v187_v27  ;;  %v220_v32 = vadd.f32 %v331_v17, %v219_v28 }
  0xfa   :  { %v388_v33 = vpack.c.bf16 %v196_v25, %v193_v23  ;;  %v408_v34 = vpack.c.bf16 %v228_v26, %v225_v24 }
  0xfb   :  { %v383_v35 = vpack.c.bf16 %v188_v31, %v185_v29  ;;  %v403_v36 = vpack.c.bf16 %v220_v32, %v217_v30 }
  0xfc   :  { %420 = vst [vmem:[%s605_s3 + $0x8] sm:$0xff] %v388_v33   ;;  %424 = vst [vmem:[%s605_s3 + $0x28] sm:$0xff] %v408_v34  }
  0xfd   :  { %384 = vst [vmem:[%s605_s3] sm:$0xff] %v383_v35   ;;  %423 = vst [vmem:[%s605_s3 + $0x20] sm:$0xff] %v403_v36   ;;  %v465_v37 = vpop.f32.mrb[4].mxu0  ;;  %v473_v38 = vpop.f32.mrb[4].mxu1 }
  0xfe   :  { %v200_v39 = vpop.f32.mrb[5].mxu0  ;;  %v232_v40 = vpop.f32.mrb[5].mxu1  ;;  %v209_v43 = vadd.f32 %v465_v37, %v331_v17  ;;  %v241_v44 = vadd.f32 %v473_v38, %v331_v17 }
  0xff   :  { %v466_v41 = vpop.f32.mrb[6].mxu0  ;;  %v474_v42 = vpop.f32.mrb[6].mxu1  ;;  %v201_v49 = vadd.f32 %v331_v17, %v200_v39  ;;  %v233_v50 = vadd.f32 %v331_v17, %v232_v40 }
 0x100   :  { %v212_v45 = vadd.f32 %v466_v41, %v331_v17  ;;  %v244_v46 = vadd.f32 %v474_v42, %v331_v17  ;;  %v203_v47 = vpop.f32.mrb[7].mxu0  ;;  %v235_v48 = vpop.f32.mrb[7].mxu1 }
 0x101   :  { %v204_v51 = vadd.f32 %v331_v17, %v203_v47  ;;  %v236_v52 = vadd.f32 %v331_v17, %v235_v48 }
 0x102   :  { %v398_v53 = vpack.c.bf16 %v212_v45, %v209_v43  ;;  %v418_v54 = vpack.c.bf16 %v244_v46, %v241_v44 }
 0x103   :  { %v393_v55 = vpack.c.bf16 %v204_v51, %v201_v49  ;;  %v413_v56 = vpack.c.bf16 %v236_v52, %v233_v50 }
 0x104   :  { %422 = vst [vmem:[%s605_s3 + $0x18] sm:$0xff] %v398_v53   ;;  %426 = vst [vmem:[%s605_s3 + $0x38] sm:$0xff] %v418_v54  }
 0x105   :  { %421 = vst [vmem:[%s605_s3 + $0x10] sm:$0xff] %v393_v55   ;;  %425 = vst [vmem:[%s605_s3 + $0x30] sm:$0xff] %v413_v56  }

// kernel: _lambda_.13
= control target key start
LH: loop header
LB: loop body
LE: loop exit
PB: predicated region body
PF: predicated region fallthrough
CT: control target
= control target key end

     0   :  { %s1300_s12 = smov 0   ;;  %s1302_s13 = smov 0   ;;  %s1437_s0 = inlined_call_operand.vmem [shape: bf16[512,128], index: 0, kind: input, shape index: {}]   ;;  %s1438_s1 = inlined_call_operand.vmem [shape: bf16[128,128], index: 1, kind: input, shape index: {}]   ;;  %s1439_s2 = inlined_call_operand.vmem [shape: f32[1,128], index: 2, kind: input, shape index: {}]   ;;  %s1440_s3 = inlined_call_operand.vmem [shape: bf16[512,128], index: 3, kind: output, shape index: {}]  }
   0x1   :  { %s1304_s14 = smov 0  }
   0x2 LB: > { %s32_s15 = sadd.s32 1, %s1274_s13  ;;  %p929_p0 = scmp.ge.s32.totalorder %s1278_s14, 1  ;;  %s1278_s14 = sphi %s1304_s14, %s13_s14   ;;  %s1274_s13 = sphi %s1302_s13, %s1442_s13   ;;  %s1270_s12 = sphi %s1300_s12, %s1441_s12  }
   0x3   : > { %p34_p1 = scmp.ge.s32.totalorder %s32_s15, 2  ;;  %p188_p2 = scmp.lt.s32.totalorder %s1278_s14, 3 }
   0x5   : > { %s1444_s15 = smov (%p34_p1, %s32_s15), 0  ;;  %p189_p3 = pnand %p929_p0, %p188_p2 }
   0x6   : > { %v1232_v0 = vld [vmem:[%s1438_s1] sm:$0xff] (!%p189_p3)   ;;  %s930_s18 = sshll.u32 (!%p189_p3), %s1270_s12, 5  ;;  %v1233_v1 = vld [vmem:[%s1438_s1 + $0x8] sm:$0xff] (!%p189_p3)   ;;  %v1234_v2 = vld [vmem:[%s1438_s1 + $0x10] sm:$0xff] (!%p189_p3)  }
   0x7   : > { %192 = sbr.rel (%p189_p3) target bundleno = 285 (0x11d), region = 32  ;;  %p230_p4 = scmp.lt.s32.totalorder (!%p189_p3), %s930_s18, 63  ;;  %1144 = vmatprep.subr.bf16.mxu0 (!%p189_p3), %v1232_v0  ;;  %1192 = vmatprep.subr.bf16.mxu1 (!%p189_p3), %v1232_v0  ;;  %v1235_v3 = vld [vmem:[%s1438_s1 + $0x18] sm:$0xff] (!%p189_p3)   ;;  %v1236_v6 = vld [vmem:[%s1438_s1 + $0x20] sm:$0xff] (!%p189_p3)   ;;  %v1237_v7 = vld [vmem:[%s1438_s1 + $0x28] sm:$0xff] (!%p189_p3)  }
   0x8   : > { %1145 = vmatpush3.bf16.msra.mxu0 (!%p189_p3), %v1232_v0  ;;  %1200 = vmatpush3.bf16.msra.mxu1 (!%p189_p3), %v1232_v0  ;;  %v1238_v8 = vld [vmem:[%s1438_s1 + $0x30] sm:$0xff] (!%p189_p3)   ;;  %v1239_v9 = vld [vmem:[%s1438_s1 + $0x38] sm:$0xff] (!%p189_p3)   ;;  %v1371_v24 = vld [vmem:[%s1439_s2] ss:$0 sm:$0xff] (!%p189_p3) }
   0x9   : > { %1146 = vmatprep.subr.bf16.mxu0 (!%p189_p3), %v1233_v1  ;;  %1193 = vmatprep.subr.bf16.mxu1 (!%p189_p3), %v1233_v1 }
   0xc   : > { %1147 = vmatpush3.bf16.msra.mxu0 (!%p189_p3), %v1233_v1  ;;  %1201 = vmatpush3.bf16.msra.mxu1 (!%p189_p3), %v1233_v1 }
   0xd   : > { %1148 = vmatprep.subr.bf16.mxu0 (!%p189_p3), %v1234_v2  ;;  %1194 = vmatprep.subr.bf16.mxu1 (!%p189_p3), %v1234_v2 }
   0xe   : > { %s1446_s18 = smov (!%p230_p4, %s930_s18), 63 }
   0xf   : > { %s931_s23 = sshll.u32 %s1446_s18, 2 }
  0x10   : > { %s1335_s26 = scalar_lea.vmem %s1437_s0, %s931_s23  ;;  %1149 = vmatpush3.bf16.msra.mxu0 %v1234_v2  ;;  %1202 = vmatpush3.bf16.msra.mxu1 %v1234_v2  ;;  %s1386_s17 = scalar_lea.vmem %s1440_s3, %s931_s23 }
  0x11   : > { %v1240_v4 = vld [vmem:[%s1335_s26] sm:$0xff]   ;;  %1150 = vmatprep.subr.bf16.mxu0 %v1235_v3  ;;  %1195 = vmatprep.subr.bf16.mxu1 %v1235_v3  ;;  %v1242_v10 = vld [vmem:[%s1335_s26 + $0x8] sm:$0xff]   ;;  %v1244_v12 = vld [vmem:[%s1335_s26 + $0x10] sm:$0xff]  }
  0x12   : > { %v1241_v5 = vld [vmem:[%s1335_s26 + $0x40] sm:$0xff]   ;;  %1160 = vmatprep.mubr.bf16.mxu0 %v1240_v4  ;;  %v1243_v11 = vld [vmem:[%s1335_s26 + $0x48] sm:$0xff]   ;;  %v1245_v13 = vld [vmem:[%s1335_s26 + $0x50] sm:$0xff]  }
  0x13   : > { %1176 = vmatprep.mubr.bf16.mxu1 %v1241_v5  ;;  %v1246_v14 = vld [vmem:[%s1335_s26 + $0x18] sm:$0xff]   ;;  %v1248_v16 = vld [vmem:[%s1335_s26 + $0x20] sm:$0xff]   ;;  %v1250_v18 = vld [vmem:[%s1335_s26 + $0x28] sm:$0xff]  }
  0x14   : > { %1151 = vmatpush3.bf16.msra.mxu0 %v1235_v3  ;;  %1203 = vmatpush3.bf16.msra.mxu1 %v1235_v3  ;;  %v1247_v15 = vld [vmem:[%s1335_s26 + $0x58] sm:$0xff]   ;;  %v1249_v17 = vld [vmem:[%s1335_s26 + $0x60] sm:$0xff]   ;;  %v1251_v19 = vld [vmem:[%s1335_s26 + $0x68] sm:$0xff]  }
  0x15   : > { %1152 = vmatprep.subr.bf16.mxu0 %v1236_v6  ;;  %1196 = vmatprep.subr.bf16.mxu1 %v1236_v6  ;;  %v1252_v20 = vld [vmem:[%s1335_s26 + $0x30] sm:$0xff]   ;;  %v1254_v22 = vld [vmem:[%s1335_s26 + $0x38] sm:$0xff]  }
  0x16   : > { %v1253_v21 = vld [vmem:[%s1335_s26 + $0x70] sm:$0xff]   ;;  %v1255_v23 = vld [vmem:[%s1335_s26 + $0x78] sm:$0xff]  }
  0x18   : > { %1153 = vmatpush3.bf16.msra.mxu0 %v1236_v6  ;;  %1204 = vmatpush3.bf16.msra.mxu1 %v1236_v6 }
  0x19   : > { %1154 = vmatprep.subr.bf16.mxu0 %v1237_v7  ;;  %1197 = vmatprep.subr.bf16.mxu1 %v1237_v7 }
  0x1c   : > { %1155 = vmatpush3.bf16.msra.mxu0 %v1237_v7  ;;  %1205 = vmatpush3.bf16.msra.mxu1 %v1237_v7 }
  0x1d   : > { %1156 = vmatprep.subr.bf16.mxu0 %v1238_v8  ;;  %1198 = vmatprep.subr.bf16.mxu1 %v1238_v8 }
  0x20   : > { %1157 = vmatpush3.bf16.msra.mxu0 %v1238_v8  ;;  %1206 = vmatpush3.bf16.msra.mxu1 %v1238_v8 }
  0x21   : > { %1158 = vmatprep.subr.bf16.mxu0 %v1239_v9  ;;  %1199 = vmatprep.subr.bf16.mxu1 %v1239_v9 }
  0x24   : > { %1159 = vmatpush3.bf16.msra.mxu0 %v1239_v9  ;;  %1207 = vmatpush3.bf16.msra.mxu1 %v1239_v9 }
  0x27   : > { %1161 = vmatmul.mubr.bf16.vlgmr.msra.gmra.mrb[0].mxu0 %v1242_v10  ;;  %1177 = vmatmul.mubr.bf16.vlgmr.msra.gmra.mrb[0].mxu1 %v1243_v11 }
  0x28   : > { %1164 = vmatprep.mubr.bf16.mxu0 %v1244_v12  ;;  %1180 = vmatprep.mubr.bf16.mxu1 %v1245_v13 }
  0x2f   : > { %1165 = vmatmul.mubr.bf16.gmra.mrb[4].mxu0 %v1246_v14  ;;  %1181 = vmatmul.mubr.bf16.gmra.mrb[4].mxu1 %v1247_v15 }
  0x30   : > { %1168 = vmatprep.mubr.bf16.mxu0 %v1248_v16  ;;  %1184 = vmatprep.mubr.bf16.mxu1 %v1249_v17 }
  0x37   : > { %1169 = vmatmul.mubr.bf16.gmra.mrb[8].mxu0 %v1250_v18  ;;  %1185 = vmatmul.mubr.bf16.gmra.mrb[8].mxu1 %v1251_v19 }
  0x38   : > { %1172 = vmatprep.mubr.bf16.mxu0 %v1252_v20  ;;  %1188 = vmatprep.mubr.bf16.mxu1 %v1253_v21 }
  0x3f   : > { %1173 = vmatmul.mubr.bf16.gmra.mrb[12].mxu0 %v1254_v22  ;;  %1189 = vmatmul.mubr.bf16.gmra.mrb[12].mxu1 %v1255_v23 }
  0xfa   : > { %v1162_v25 = vpop.f32.mrb[0].mxu0  ;;  %v1178_v26 = vpop.f32.mrb[0].mxu1 }
  0xfb   : > { %v502_v27 = vadd.f32 %v1162_v25, %v1371_v24  ;;  %v566_v28 = vadd.f32 %v1178_v26, %v1371_v24  ;;  %v493_v29 = vpop.f32.mrb[1].mxu0  ;;  %v557_v30 = vpop.f32.mrb[1].mxu1 }
  0xfc   : > { %v494_v31 = vadd.f32 %v1371_v24, %v493_v29  ;;  %v558_v32 = vadd.f32 %v1371_v24, %v557_v30  ;;  %v1163_v33 = vpop.f32.mrb[2].mxu0  ;;  %v1179_v34 = vpop.f32.mrb[2].mxu1 }
  0xfd   : > { %v505_v35 = vadd.f32 %v1163_v33, %v1371_v24  ;;  %v569_v36 = vadd.f32 %v1179_v34, %v1371_v24  ;;  %v496_v37 = vpop.f32.mrb[3].mxu0  ;;  %v560_v38 = vpop.f32.mrb[3].mxu1  ;;  %v622_v41 = vmax.f32 %v502_v27, 0.0  ;;  %v638_v42 = vmax.f32 %v566_v28, 0.0 }
  0xfe   : > { %v497_v39 = vadd.f32 %v1371_v24, %v496_v37  ;;  %v561_v40 = vadd.f32 %v1371_v24, %v560_v38  ;;  %v620_v45 = vmax.f32 %v494_v31, 0.0  ;;  %v636_v46 = vmax.f32 %v558_v32, 0.0 }
  0xff   : > { %v623_v43 = vmax.f32 %v505_v35, 0.0  ;;  %v639_v44 = vmax.f32 %v569_v36, 0.0 }
 0x100   : > { %v621_v47 = vmax.f32 %v497_v39, 0.0  ;;  %v637_v48 = vmax.f32 %v561_v40, 0.0 }
 0x101   : > { %v1033_v49 = vpack.c.bf16 %v623_v43, %v622_v41  ;;  %v1073_v50 = vpack.c.bf16 %v639_v44, %v638_v42 }
 0x102   : > { %v1028_v51 = vpack.c.bf16 %v621_v47, %v620_v45  ;;  %v1068_v52 = vpack.c.bf16 %v637_v48, %v636_v46  ;;  %v1166_v53 = vpop.f32.mrb[4].mxu0  ;;  %v1182_v54 = vpop.f32.mrb[4].mxu1 }
 0x103   : > { %1105 = vst [vmem:[%s1386_s17 + $0x8] sm:$0xff] %v1033_v49   ;;  %1113 = vst [vmem:[%s1386_s17 + $0x48] sm:$0xff] %v1073_v50   ;;  %v518_v55 = vadd.f32 %v1166_v53, %v1371_v24  ;;  %v582_v56 = vadd.f32 %v1182_v54, %v1371_v24  ;;  %v509_v57 = vpop.f32.mrb[5].mxu0  ;;  %v573_v58 = vpop.f32.mrb[5].mxu1 }
 0x104   : > { %1029 = vst [vmem:[%s1386_s17] sm:$0xff] %v1028_v51   ;;  %1112 = vst [vmem:[%s1386_s17 + $0x40] sm:$0xff] %v1068_v52   ;;  %v510_v59 = vadd.f32 %v1371_v24, %v509_v57  ;;  %v574_v60 = vadd.f32 %v1371_v24, %v573_v58  ;;  %v1167_v61 = vpop.f32.mrb[6].mxu0  ;;  %v1183_v62 = vpop.f32.mrb[6].mxu1 }
 0x105   : > { %v521_v63 = vadd.f32 %v1167_v61, %v1371_v24  ;;  %v585_v0 = vadd.f32 %v1183_v62, %v1371_v24  ;;  %v512_v1 = vpop.f32.mrb[7].mxu0  ;;  %v576_v2 = vpop.f32.mrb[7].mxu1  ;;  %v626_v5 = vmax.f32 %v518_v55, 0.0  ;;  %v642_v6 = vmax.f32 %v582_v56, 0.0 }
 0x106   : > { %v513_v3 = vadd.f32 %v1371_v24, %v512_v1  ;;  %v577_v4 = vadd.f32 %v1371_v24, %v576_v2  ;;  %v624_v9 = vmax.f32 %v510_v59, 0.0  ;;  %v640_v10 = vmax.f32 %v574_v60, 0.0 }
 0x107   : > { %v627_v7 = vmax.f32 %v521_v63, 0.0  ;;  %v643_v8 = vmax.f32 %v585_v0, 0.0 }
 0x108   : > { %v625_v11 = vmax.f32 %v513_v3, 0.0  ;;  %v641_v12 = vmax.f32 %v577_v4, 0.0 }
 0x109   : > { %v1043_v13 = vpack.c.bf16 %v627_v7, %v626_v5  ;;  %v1083_v14 = vpack.c.bf16 %v643_v8, %v642_v6 }
 0x10a   : > { %v1038_v15 = vpack.c.bf16 %v625_v11, %v624_v9  ;;  %v1078_v16 = vpack.c.bf16 %v641_v12, %v640_v10  ;;  %v1170_v17 = vpop.f32.mrb[8].mxu0  ;;  %v1186_v18 = vpop.f32.mrb[8].mxu1 }
 0x10b   : > { %1107 = vst [vmem:[%s1386_s17 + $0x18] sm:$0xff] %v1043_v13   ;;  %1115 = vst [vmem:[%s1386_s17 + $0x58] sm:$0xff] %v1083_v14   ;;  %v534_v19 = vadd.f32 %v1170_v17, %v1371_v24  ;;  %v598_v20 = vadd.f32 %v1186_v18, %v1371_v24  ;;  %v525_v21 = vpop.f32.mrb[9].mxu0  ;;  %v589_v22 = vpop.f32.mrb[9].mxu1 }
 0x10c   : > { %1106 = vst [vmem:[%s1386_s17 + $0x10] sm:$0xff] %v1038_v15   ;;  %1114 = vst [vmem:[%s1386_s17 + $0x50] sm:$0xff] %v1078_v16   ;;  %v526_v23 = vadd.f32 %v1371_v24, %v525_v21  ;;  %v590_v25 = vadd.f32 %v1371_v24, %v589_v22  ;;  %v1171_v26 = vpop.f32.mrb[10].mxu0  ;;  %v1187_v27 = vpop.f32.mrb[10].mxu1 }
 0x10d   : > { %v537_v28 = vadd.f32 %v1171_v26, %v1371_v24  ;;  %v601_v29 = vadd.f32 %v1187_v27, %v1371_v24  ;;  %v528_v30 = vpop.f32.mrb[11].mxu0  ;;  %v592_v31 = vpop.f32.mrb[11].mxu1  ;;  %v630_v34 = vmax.f32 %v534_v19, 0.0  ;;  %v646_v35 = vmax.f32 %v598_v20, 0.0 }
 0x10e   : > { %v529_v32 = vadd.f32 %v1371_v24, %v528_v30  ;;  %v593_v33 = vadd.f32 %v1371_v24, %v592_v31  ;;  %v628_v38 = vmax.f32 %v526_v23, 0.0  ;;  %v644_v39 = vmax.f32 %v590_v25, 0.0 }
 0x10f   : > { %v631_v36 = vmax.f32 %v537_v28, 0.0  ;;  %v647_v37 = vmax.f32 %v601_v29, 0.0 }
 0x110   : > { %v629_v40 = vmax.f32 %v529_v32, 0.0  ;;  %v645_v41 = vmax.f32 %v593_v33, 0.0 }
 0x111   : > { %v1053_v42 = vpack.c.bf16 %v631_v36, %v630_v34  ;;  %v1093_v43 = vpack.c.bf16 %v647_v37, %v646_v35 }
 0x112   : > { %v1048_v44 = vpack.c.bf16 %v629_v40, %v628_v38  ;;  %v1088_v45 = vpack.c.bf16 %v645_v41, %v644_v39  ;;  %v1174_v46 = vpop.f32.mrb[12].mxu0  ;;  %v1190_v47 = vpop.f32.mrb[12].mxu1 }
 0x113   : > { %1109 = vst [vmem:[%s1386_s17 + $0x28] sm:$0xff] %v1053_v42   ;;  %1117 = vst [vmem:[%s1386_s17 + $0x68] sm:$0xff] %v1093_v43   ;;  %v550_v48 = vadd.f32 %v1174_v46, %v1371_v24  ;;  %v614_v49 = vadd.f32 %v1190_v47, %v1371_v24  ;;  %v541_v50 = vpop.f32.mrb[13].mxu0  ;;  %v605_v51 = vpop.f32.mrb[13].mxu1 }
 0x114   : > { %1108 = vst [vmem:[%s1386_s17 + $0x20] sm:$0xff] %v1048_v44   ;;  %1116 = vst [vmem:[%s1386_s17 + $0x60] sm:$0xff] %v1088_v45   ;;  %v542_v52 = vadd.f32 %v1371_v24, %v541_v50  ;;  %v606_v53 = vadd.f32 %v1371_v24, %v605_v51  ;;  %v1175_v54 = vpop.f32.mrb[14].mxu0  ;;  %v1191_v55 = vpop.f32.mrb[14].mxu1 }
 0x115   : > { %v553_v56 = vadd.f32 %v1175_v54, %v1371_v24  ;;  %v617_v57 = vadd.f32 %v1191_v55, %v1371_v24  ;;  %v544_v58 = vpop.f32.mrb[15].mxu0  ;;  %v608_v59 = vpop.f32.mrb[15].mxu1  ;;  %v634_v62 = vmax.f32 %v550_v48, 0.0  ;;  %v650_v63 = vmax.f32 %v614_v49, 0.0 }
 0x116   : > { %v545_v60 = vadd.f32 %v1371_v24, %v544_v58  ;;  %v609_v61 = vadd.f32 %v1371_v24, %v608_v59  ;;  %v632_v2 = vmax.f32 %v542_v52, 0.0  ;;  %v648_v3 = vmax.f32 %v606_v53, 0.0 }
 0x117   : > { %v635_v0 = vmax.f32 %v553_v56, 0.0  ;;  %v651_v1 = vmax.f32 %v617_v57, 0.0 }
 0x118   : > { %v633_v4 = vmax.f32 %v545_v60, 0.0  ;;  %v649_v5 = vmax.f32 %v609_v61, 0.0 }
 0x119   : > { %v1063_v6 = vpack.c.bf16 %v635_v0, %v634_v62  ;;  %v1103_v7 = vpack.c.bf16 %v651_v1, %v650_v63 }
 0x11a   : > { %v1058_v8 = vpack.c.bf16 %v633_v4, %v632_v2  ;;  %v1098_v9 = vpack.c.bf16 %v649_v5, %v648_v3 }
 0x11b   : > { %1111 = vst [vmem:[%s1386_s17 + $0x38] sm:$0xff] %v1063_v6   ;;  %1119 = vst [vmem:[%s1386_s17 + $0x78] sm:$0xff] %v1103_v7  }
 0x11c   : > { %1110 = vst [vmem:[%s1386_s17 + $0x30] sm:$0xff] %v1058_v8   ;;  %1118 = vst [vmem:[%s1386_s17 + $0x70] sm:$0xff] %v1098_v9  }
 0x11d PF: > { %s13_s14 = sadd.s32 1, %s1278_s14   ;;  %s1441_s12 = smov %s1274_s13 }
 0x11e   : > { %p10_p5 = scmp.ge.s32.totalorder %s13_s14, 4   ;;  %s1442_s13 = smov %s1444_s15 }
 0x120   :  { %12 = sbr.rel (!%p10_p5) target bundleno = 2 (0x2), region = 68 }

// kernel: _lambda_.16
= control target key start
LH: loop header
LB: loop body
LE: loop exit
PB: predicated region body
PF: predicated region fallthrough
CT: control target
= control target key end

     0   :  { %s771_s1 = inlined_call_operand.vmem [shape: bf16[128,128], index: 1, kind: input, shape index: {}]   ;;  %s772_s0 = inlined_call_operand.vmem [shape: bf16[128,128], index: 0, kind: input, shape index: {}]   ;;  %s773_s3 = inlined_call_operand.vmem [shape: bf16[128,128], index: 3, kind: input, shape index: {}]   ;;  %s774_s2 = inlined_call_operand.vmem [shape: f32[1,128], index: 2, kind: input, shape index: {}]   ;;  %s775_s4 = inlined_call_operand.vmem [shape: bf16[128,128], index: 4, kind: output, shape index: {}]  }
   0x1   :  { %v597_v0 = vld [vmem:[%s771_s1] sm:$0xff]   ;;  %v598_v1 = vld [vmem:[%s771_s1 + $0x8] sm:$0xff]   ;;  %v599_v2 = vld [vmem:[%s771_s1 + $0x10] sm:$0xff]  }
   0x2   :  { %549 = vmatprep.subr.bf16.mxu0 %v597_v0  ;;  %581 = vmatprep.subr.bf16.mxu1 %v597_v0  ;;  %v600_v3 = vld [vmem:[%s771_s1 + $0x18] sm:$0xff]   ;;  %v605_v4 = vld [vmem:[%s772_s0] sm:$0xff]   ;;  %v602_v7 = vld [vmem:[%s771_s1 + $0x28] sm:$0xff]  }
   0x3   :  { %550 = vmatpush3.bf16.msra.mxu0 %v597_v0  ;;  %589 = vmatpush3.bf16.msra.mxu1 %v597_v0  ;;  %v606_v5 = vld [vmem:[%s772_s0 + $0x20] sm:$0xff]   ;;  %v603_v8 = vld [vmem:[%s771_s1 + $0x30] sm:$0xff]   ;;  %v604_v9 = vld [vmem:[%s771_s1 + $0x38] sm:$0xff]  }
   0x4   :  { %551 = vmatprep.subr.bf16.mxu0 %v598_v1  ;;  %582 = vmatprep.subr.bf16.mxu1 %v598_v1  ;;  %v601_v6 = vld [vmem:[%s771_s1 + $0x20] sm:$0xff]   ;;  %v607_v10 = vld [vmem:[%s772_s0 + $0x8] sm:$0xff]   ;;  %v609_v12 = vld [vmem:[%s772_s0 + $0x10] sm:$0xff]  }
   0x5   :  { %565 = vmatprep.mubr.bf16.mxu0 %v605_v4  ;;  %573 = vmatprep.mubr.bf16.mxu1 %v606_v5  ;;  %v608_v11 = vld [vmem:[%s772_s0 + $0x28] sm:$0xff]   ;;  %v610_v13 = vld [vmem:[%s772_s0 + $0x30] sm:$0xff]   ;;  %v611_v14 = vld [vmem:[%s772_s0 + $0x18] sm:$0xff]  }
   0x6   :  { %v612_v15 = vld [vmem:[%s772_s0 + $0x38] sm:$0xff]   ;;  %v519_v16 = vld [vmem:[%s773_s3 + $0x8] sm:$0xff]   ;;  %v448_v18 = vld [vmem:[%s773_s3] sm:$0xff]  }
   0x7   :  { %552 = vmatpush3.bf16.msra.mxu0 %v598_v1  ;;  %590 = vmatpush3.bf16.msra.mxu1 %v598_v1  ;;  %v523_v17 = vld [vmem:[%s773_s3 + $0x28] sm:$0xff]   ;;  %v522_v19 = vld [vmem:[%s773_s3 + $0x20] sm:$0xff]   ;;  %v706_v21 = vld [vmem:[%s773_s3 + $0x18] sm:$0xff]   ;;  %v453_v23 = vunpack.c.l.bf16 %v519_v16  ;;  %v449_v25 = vunpack.c.l.bf16 %v448_v18  ;;  %v454_v31 = vunpack.c.h.bf16 %v519_v16  ;;  %v450_v33 = vunpack.c.h.bf16 %v448_v18 }
   0x8   :  { %553 = vmatprep.subr.bf16.mxu0 %v599_v2  ;;  %583 = vmatprep.subr.bf16.mxu1 %v599_v2  ;;  %v701_v20 = vld [vmem:[%s774_s2] ss:$0 sm:$0xff]  ;;  %v711_v22 = vld [vmem:[%s773_s3 + $0x38] sm:$0xff]   ;;  %v469_v24 = vunpack.c.l.bf16 %v523_v17  ;;  %v465_v26 = vunpack.c.l.bf16 %v522_v19  ;;  %v716_v27 = vld [vmem:[%s773_s3 + $0x10] sm:$0xff]   ;;  %v470_v32 = vunpack.c.h.bf16 %v523_v17  ;;  %v466_v34 = vunpack.c.h.bf16 %v522_v19 }
   0x9   :  { %v721_v28 = vld [vmem:[%s773_s3 + $0x30] sm:$0xff]   ;;  %v461_v39 = vunpack.c.l.bf16 %v706_v21  ;;  %v477_v40 = vunpack.c.l.bf16 %v711_v22  ;;  %v457_v45 = vunpack.c.l.bf16 %v716_v27  ;;  %v462_v59 = vunpack.c.h.bf16 %v706_v21 }
   0xa   :  { %v473_v46 = vunpack.c.l.bf16 %v721_v28  ;;  %v478_v60 = vunpack.c.h.bf16 %v711_v22  ;;  %v458_v63 = vunpack.c.h.bf16 %v716_v27  ;;  %v474_v0 = vunpack.c.h.bf16 %v721_v28 }
   0xb   :  { %554 = vmatpush3.bf16.msra.mxu0 %v599_v2  ;;  %591 = vmatpush3.bf16.msra.mxu1 %v599_v2 }
   0xc   :  { %555 = vmatprep.subr.bf16.mxu0 %v600_v3  ;;  %584 = vmatprep.subr.bf16.mxu1 %v600_v3 }
   0xf   :  { %556 = vmatpush3.bf16.msra.mxu0 %v600_v3  ;;  %592 = vmatpush3.bf16.msra.mxu1 %v600_v3 }
  0x10   :  { %557 = vmatprep.subr.bf16.mxu0 %v601_v6  ;;  %585 = vmatprep.subr.bf16.mxu1 %v601_v6 }
  0x13   :  { %558 = vmatpush3.bf16.msra.mxu0 %v601_v6  ;;  %593 = vmatpush3.bf16.msra.mxu1 %v601_v6 }
  0x14   :  { %559 = vmatprep.subr.bf16.mxu0 %v602_v7  ;;  %586 = vmatprep.subr.bf16.mxu1 %v602_v7 }
  0x17   :  { %560 = vmatpush3.bf16.msra.mxu0 %v602_v7  ;;  %594 = vmatpush3.bf16.msra.mxu1 %v602_v7 }
  0x18   :  { %561 = vmatprep.subr.bf16.mxu0 %v603_v8  ;;  %587 = vmatprep.subr.bf16.mxu1 %v603_v8 }
  0x1b   :  { %562 = vmatpush3.bf16.msra.mxu0 %v603_v8  ;;  %595 = vmatpush3.bf16.msra.mxu1 %v603_v8 }
  0x1c   :  { %563 = vmatprep.subr.bf16.mxu0 %v604_v9  ;;  %588 = vmatprep.subr.bf16.mxu1 %v604_v9 }
  0x1f   :  { %564 = vmatpush3.bf16.msra.mxu0 %v604_v9  ;;  %596 = vmatpush3.bf16.msra.mxu1 %v604_v9 }
  0x22   :  { %566 = vmatmul.mubr.bf16.vlgmr.msra.gmra.mrb[0].mxu0 %v607_v10  ;;  %574 = vmatmul.mubr.bf16.vlgmr.msra.gmra.mrb[0].mxu1 %v608_v11 }
  0x23   :  { %569 = vmatprep.mubr.bf16.mxu0 %v609_v12  ;;  %577 = vmatprep.mubr.bf16.mxu1 %v610_v13 }
  0x2a   :  { %570 = vmatmul.mubr.bf16.gmra.mrb[4].mxu0 %v611_v14  ;;  %578 = vmatmul.mubr.bf16.gmra.mrb[4].mxu1 %v612_v15 }
  0xf5   :  { %v567_v29 = vpop.f32.mrb[0].mxu0  ;;  %v575_v30 = vpop.f32.mrb[0].mxu1 }
  0xf6   :  { %v196_v35 = vadd.f32 %v567_v29, %v701_v20  ;;  %v228_v36 = vadd.f32 %v575_v30, %v701_v20  ;;  %v187_v37 = vpop.f32.mrb[1].mxu0  ;;  %v219_v38 = vpop.f32.mrb[1].mxu1 }
  0xf7   :  { %v188_v41 = vadd.f32 %v701_v20, %v187_v37  ;;  %v220_v42 = vadd.f32 %v701_v20, %v219_v38  ;;  %v568_v43 = vpop.f32.mrb[2].mxu0  ;;  %v576_v44 = vpop.f32.mrb[2].mxu1 }
  0xf8   :  { %v284_v47 = vadd.f32 %v453_v23, %v196_v35  ;;  %v292_v48 = vadd.f32 %v469_v24, %v228_v36  ;;  %v199_v49 = vadd.f32 %v568_v43, %v701_v20  ;;  %v231_v50 = vadd.f32 %v576_v44, %v701_v20  ;;  %v190_v51 = vpop.f32.mrb[3].mxu0  ;;  %v222_v52 = vpop.f32.mrb[3].mxu1 }
  0xf9   :  { %v282_v53 = vadd.f32 %v449_v25, %v188_v41  ;;  %v290_v54 = vadd.f32 %v465_v26, %v220_v42  ;;  %v191_v55 = vadd.f32 %v701_v20, %v190_v51  ;;  %v223_v56 = vadd.f32 %v701_v20, %v222_v52 }
  0xfa   :  { %v285_v57 = vadd.f32 %v454_v31, %v199_v49  ;;  %v293_v58 = vadd.f32 %v470_v32, %v231_v50  ;;  %v300_v1 = vmax.f32 %v284_v47, 0.0  ;;  %v308_v2 = vmax.f32 %v292_v48, 0.0 }
  0xfb   :  { %v283_v61 = vadd.f32 %v450_v33, %v191_v55  ;;  %v291_v62 = vadd.f32 %v466_v34, %v223_v56  ;;  %v298_v5 = vmax.f32 %v282_v53, 0.0  ;;  %v306_v6 = vmax.f32 %v290_v54, 0.0 }
  0xfc   :  { %v301_v3 = vmax.f32 %v285_v57, 0.0  ;;  %v309_v4 = vmax.f32 %v293_v58, 0.0 }
  0xfd   :  { %v299_v7 = vmax.f32 %v283_v61, 0.0  ;;  %v307_v8 = vmax.f32 %v291_v62, 0.0  ;;  %v571_v9 = vpop.f32.mrb[4].mxu0  ;;  %v579_v10 = vpop.f32.mrb[4].mxu1 }
  0xfe   :  { %v487_v11 = vpack.c.bf16 %v301_v3, %v300_v1  ;;  %v507_v12 = vpack.c.bf16 %v309_v4, %v308_v2  ;;  %v212_v13 = vadd.f32 %v571_v9, %v701_v20  ;;  %v244_v14 = vadd.f32 %v579_v10, %v701_v20  ;;  %v203_v15 = vpop.f32.mrb[5].mxu0  ;;  %v235_v16 = vpop.f32.mrb[5].mxu1 }
  0xff   :  { %v482_v17 = vpack.c.bf16 %v299_v7, %v298_v5  ;;  %v502_v18 = vpack.c.bf16 %v307_v8, %v306_v6  ;;  %v204_v19 = vadd.f32 %v701_v20, %v203_v15  ;;  %v236_v21 = vadd.f32 %v701_v20, %v235_v16  ;;  %v572_v22 = vpop.f32.mrb[6].mxu0  ;;  %v580_v23 = vpop.f32.mrb[6].mxu1 }
 0x100   :  { %526 = vst [vmem:[%s775_s4 + $0x8] sm:$0xff] %v487_v11   ;;  %530 = vst [vmem:[%s775_s4 + $0x28] sm:$0xff] %v507_v12   ;;  %v288_v24 = vadd.f32 %v461_v39, %v212_v13  ;;  %v296_v25 = vadd.f32 %v477_v40, %v244_v14  ;;  %v215_v26 = vadd.f32 %v572_v22, %v701_v20  ;;  %v206_v28 = vpop.f32.mrb[7].mxu0  ;;  %v238_v29 = vpop.f32.mrb[7].mxu1 }
 0x101   :  { %v247_v27 = vadd.f32 %v580_v23, %v701_v20  ;;  %483 = vst [vmem:[%s775_s4] sm:$0xff] %v482_v17   ;;  %529 = vst [vmem:[%s775_s4 + $0x20] sm:$0xff] %v502_v18   ;;  %v286_v30 = vadd.f32 %v457_v45, %v204_v19  ;;  %v294_v31 = vadd.f32 %v473_v46, %v236_v21 }
 0x102   :  { %v207_v32 = vadd.f32 %v701_v20, %v206_v28  ;;  %v239_v33 = vadd.f32 %v701_v20, %v238_v29  ;;  %v289_v34 = vadd.f32 %v462_v59, %v215_v26  ;;  %v304_v38 = vmax.f32 %v288_v24, 0.0 }
 0x103   :  { %v297_v35 = vadd.f32 %v478_v60, %v247_v27  ;;  %v312_v39 = vmax.f32 %v296_v25, 0.0  ;;  %v302_v42 = vmax.f32 %v286_v30, 0.0  ;;  %v310_v43 = vmax.f32 %v294_v31, 0.0 }
 0x104   :  { %v287_v36 = vadd.f32 %v458_v63, %v207_v32  ;;  %v295_v37 = vadd.f32 %v474_v0, %v239_v33  ;;  %v305_v40 = vmax.f32 %v289_v34, 0.0 }
 0x105   :  { %v313_v41 = vmax.f32 %v297_v35, 0.0 }
 0x106   :  { %v303_v44 = vmax.f32 %v287_v36, 0.0  ;;  %v311_v47 = vmax.f32 %v295_v37, 0.0  ;;  %v497_v48 = vpack.c.bf16 %v305_v40, %v304_v38 }
 0x107   :  { %v517_v49 = vpack.c.bf16 %v313_v41, %v312_v39 }
 0x108   :  { %v492_v45 = vpack.c.bf16 %v303_v44, %v302_v42  ;;  %v512_v46 = vpack.c.bf16 %v311_v47, %v310_v43  ;;  %528 = vst [vmem:[%s775_s4 + $0x18] sm:$0xff] %v497_v48  }
 0x109   :  { %532 = vst [vmem:[%s775_s4 + $0x38] sm:$0xff] %v517_v49  }
 0x10a   :  { %527 = vst [vmem:[%s775_s4 + $0x10] sm:$0xff] %v492_v45   ;;  %531 = vst [vmem:[%s775_s4 + $0x30] sm:$0xff] %v512_v46  }

// kernel: _lambda_.17
= control target key start
LH: loop header
LB: loop body
LE: loop exit
PB: predicated region body
PF: predicated region fallthrough
CT: control target
= control target key end

     0   :  { %s618_s1 = inlined_call_operand.vmem [shape: bf16[128,128], index: 1, kind: input, shape index: {}]   ;;  %s619_s0 = inlined_call_operand.vmem [shape: bf16[128,128], index: 0, kind: input, shape index: {}]   ;;  %s620_s2 = inlined_call_operand.vmem [shape: f32[1,128], index: 2, kind: input, shape index: {}]   ;;  %s621_s3 = inlined_call_operand.vmem [shape: bf16[128,128], index: 3, kind: output, shape index: {}]  }
   0x1   :  { %v507_v0 = vld [vmem:[%s618_s1] sm:$0xff]   ;;  %v508_v1 = vld [vmem:[%s618_s1 + $0x8] sm:$0xff]   ;;  %v509_v2 = vld [vmem:[%s618_s1 + $0x10] sm:$0xff]  }
   0x2   :  { %459 = vmatprep.subr.bf16.mxu0 %v507_v0  ;;  %491 = vmatprep.subr.bf16.mxu1 %v507_v0  ;;  %v510_v3 = vld [vmem:[%s618_s1 + $0x18] sm:$0xff]   ;;  %v515_v4 = vld [vmem:[%s619_s0] sm:$0xff]   ;;  %v512_v7 = vld [vmem:[%s618_s1 + $0x28] sm:$0xff]  }
   0x3   :  { %460 = vmatpush3.bf16.msra.mxu0 %v507_v0  ;;  %499 = vmatpush3.bf16.msra.mxu1 %v507_v0  ;;  %v516_v5 = vld [vmem:[%s619_s0 + $0x20] sm:$0xff]   ;;  %v513_v8 = vld [vmem:[%s618_s1 + $0x30] sm:$0xff]   ;;  %v514_v9 = vld [vmem:[%s618_s1 + $0x38] sm:$0xff]  }
   0x4   :  { %461 = vmatprep.subr.bf16.mxu0 %v508_v1  ;;  %492 = vmatprep.subr.bf16.mxu1 %v508_v1  ;;  %v511_v6 = vld [vmem:[%s618_s1 + $0x20] sm:$0xff]   ;;  %v517_v10 = vld [vmem:[%s619_s0 + $0x8] sm:$0xff]   ;;  %v519_v12 = vld [vmem:[%s619_s0 + $0x10] sm:$0xff]  }
   0x5   :  { %475 = vmatprep.mubr.bf16.mxu0 %v515_v4  ;;  %483 = vmatprep.mubr.bf16.mxu1 %v516_v5  ;;  %v518_v11 = vld [vmem:[%s619_s0 + $0x28] sm:$0xff]   ;;  %v520_v13 = vld [vmem:[%s619_s0 + $0x30] sm:$0xff]   ;;  %v521_v14 = vld [vmem:[%s619_s0 + $0x18] sm:$0xff]  }
   0x6   :  { %v522_v15 = vld [vmem:[%s619_s0 + $0x38] sm:$0xff]   ;;  %v347_v16 = vld [vmem:[%s620_s2] ss:$0 sm:$0xff] }
   0x7   :  { %462 = vmatpush3.bf16.msra.mxu0 %v508_v1  ;;  %500 = vmatpush3.bf16.msra.mxu1 %v508_v1 }
   0x8   :  { %463 = vmatprep.subr.bf16.mxu0 %v509_v2  ;;  %493 = vmatprep.subr.bf16.mxu1 %v509_v2 }
   0xb   :  { %464 = vmatpush3.bf16.msra.mxu0 %v509_v2  ;;  %501 = vmatpush3.bf16.msra.mxu1 %v509_v2 }
   0xc   :  { %465 = vmatprep.subr.bf16.mxu0 %v510_v3  ;;  %494 = vmatprep.subr.bf16.mxu1 %v510_v3 }
   0xf   :  { %466 = vmatpush3.bf16.msra.mxu0 %v510_v3  ;;  %502 = vmatpush3.bf16.msra.mxu1 %v510_v3 }
  0x10   :  { %467 = vmatprep.subr.bf16.mxu0 %v511_v6  ;;  %495 = vmatprep.subr.bf16.mxu1 %v511_v6 }
  0x13   :  { %468 = vmatpush3.bf16.msra.mxu0 %v511_v6  ;;  %503 = vmatpush3.bf16.msra.mxu1 %v511_v6 }
  0x14   :  { %469 = vmatprep.subr.bf16.mxu0 %v512_v7  ;;  %496 = vmatprep.subr.bf16.mxu1 %v512_v7 }
  0x17   :  { %470 = vmatpush3.bf16.msra.mxu0 %v512_v7  ;;  %504 = vmatpush3.bf16.msra.mxu1 %v512_v7 }
  0x18   :  { %471 = vmatprep.subr.bf16.mxu0 %v513_v8  ;;  %497 = vmatprep.subr.bf16.mxu1 %v513_v8 }
  0x1b   :  { %472 = vmatpush3.bf16.msra.mxu0 %v513_v8  ;;  %505 = vmatpush3.bf16.msra.mxu1 %v513_v8 }
  0x1c   :  { %473 = vmatprep.subr.bf16.mxu0 %v514_v9  ;;  %498 = vmatprep.subr.bf16.mxu1 %v514_v9 }
  0x1f   :  { %474 = vmatpush3.bf16.msra.mxu0 %v514_v9  ;;  %506 = vmatpush3.bf16.msra.mxu1 %v514_v9 }
  0x22   :  { %476 = vmatmul.mubr.bf16.vlgmr.msra.gmra.mrb[0].mxu0 %v517_v10  ;;  %484 = vmatmul.mubr.bf16.vlgmr.msra.gmra.mrb[0].mxu1 %v518_v11 }
  0x23   :  { %479 = vmatprep.mubr.bf16.mxu0 %v519_v12  ;;  %487 = vmatprep.mubr.bf16.mxu1 %v520_v13 }
  0x2a   :  { %480 = vmatmul.mubr.bf16.gmra.mrb[4].mxu0 %v521_v14  ;;  %488 = vmatmul.mubr.bf16.gmra.mrb[4].mxu1 %v522_v15 }
  0xf5   :  { %v477_v17 = vpop.f32.mrb[0].mxu0  ;;  %v485_v18 = vpop.f32.mrb[0].mxu1 }
  0xf6   :  { %v193_v19 = vadd.f32 %v477_v17, %v347_v16  ;;  %v225_v20 = vadd.f32 %v485_v18, %v347_v16  ;;  %v184_v21 = vpop.f32.mrb[1].mxu0  ;;  %v216_v22 = vpop.f32.mrb[1].mxu1 }
  0xf7   :  { %v185_v23 = vadd.f32 %v347_v16, %v184_v21  ;;  %v217_v24 = vadd.f32 %v347_v16, %v216_v22  ;;  %v478_v25 = vpop.f32.mrb[2].mxu0  ;;  %v486_v26 = vpop.f32.mrb[2].mxu1 }
  0xf8   :  { %v196_v27 = vadd.f32 %v478_v25, %v347_v16  ;;  %v228_v28 = vadd.f32 %v486_v26, %v347_v16  ;;  %v187_v29 = vpop.f32.mrb[3].mxu0  ;;  %v219_v30 = vpop.f32.mrb[3].mxu1  ;;  %v249_v33 = vmax.f32 %v193_v19, 0.0  ;;  %v257_v34 = vmax.f32 %v225_v20, 0.0 }
  0xf9   :  { %v188_v31 = vadd.f32 %v347_v16, %v187_v29  ;;  %v220_v32 = vadd.f32 %v347_v16, %v219_v30  ;;  %v247_v37 = vmax.f32 %v185_v23, 0.0  ;;  %v255_v38 = vmax.f32 %v217_v24, 0.0 }
  0xfa   :  { %v250_v35 = vmax.f32 %v196_v27, 0.0  ;;  %v258_v36 = vmax.f32 %v228_v28, 0.0 }
  0xfb   :  { %v248_v39 = vmax.f32 %v188_v31, 0.0  ;;  %v256_v40 = vmax.f32 %v220_v32, 0.0 }
  0xfc   :  { %v404_v41 = vpack.c.bf16 %v250_v35, %v249_v33  ;;  %v424_v42 = vpack.c.bf16 %v258_v36, %v257_v34 }
  0xfd   :  { %v399_v43 = vpack.c.bf16 %v248_v39, %v247_v37  ;;  %v419_v44 = vpack.c.bf16 %v256_v40, %v255_v38  ;;  %v481_v45 = vpop.f32.mrb[4].mxu0  ;;  %v489_v46 = vpop.f32.mrb[4].mxu1 }
  0xfe   :  { %436 = vst [vmem:[%s621_s3 + $0x8] sm:$0xff] %v404_v41   ;;  %440 = vst [vmem:[%s621_s3 + $0x28] sm:$0xff] %v424_v42   ;;  %v209_v47 = vadd.f32 %v481_v45, %v347_v16  ;;  %v241_v48 = vadd.f32 %v489_v46, %v347_v16  ;;  %v200_v49 = vpop.f32.mrb[5].mxu0  ;;  %v232_v50 = vpop.f32.mrb[5].mxu1 }
  0xff   :  { %400 = vst [vmem:[%s621_s3] sm:$0xff] %v399_v43   ;;  %439 = vst [vmem:[%s621_s3 + $0x20] sm:$0xff] %v419_v44   ;;  %v201_v51 = vadd.f32 %v347_v16, %v200_v49  ;;  %v233_v52 = vadd.f32 %v347_v16, %v232_v50  ;;  %v482_v53 = vpop.f32.mrb[6].mxu0  ;;  %v490_v54 = vpop.f32.mrb[6].mxu1 }
 0x100   :  { %v212_v55 = vadd.f32 %v482_v53, %v347_v16  ;;  %v244_v56 = vadd.f32 %v490_v54, %v347_v16  ;;  %v203_v57 = vpop.f32.mrb[7].mxu0  ;;  %v235_v58 = vpop.f32.mrb[7].mxu1  ;;  %v253_v61 = vmax.f32 %v209_v47, 0.0  ;;  %v261_v62 = vmax.f32 %v241_v48, 0.0 }
 0x101   :  { %v204_v59 = vadd.f32 %v347_v16, %v203_v57  ;;  %v236_v60 = vadd.f32 %v347_v16, %v235_v58  ;;  %v251_v1 = vmax.f32 %v201_v51, 0.0  ;;  %v259_v2 = vmax.f32 %v233_v52, 0.0 }
 0x102   :  { %v254_v63 = vmax.f32 %v212_v55, 0.0  ;;  %v262_v0 = vmax.f32 %v244_v56, 0.0 }
 0x103   :  { %v252_v3 = vmax.f32 %v204_v59, 0.0  ;;  %v260_v4 = vmax.f32 %v236_v60, 0.0 }
 0x104   :  { %v414_v5 = vpack.c.bf16 %v254_v63, %v253_v61  ;;  %v434_v6 = vpack.c.bf16 %v262_v0, %v261_v62 }
 0x105   :  { %v409_v7 = vpack.c.bf16 %v252_v3, %v251_v1  ;;  %v429_v8 = vpack.c.bf16 %v260_v4, %v259_v2 }
 0x106   :  { %438 = vst [vmem:[%s621_s3 + $0x18] sm:$0xff] %v414_v5   ;;  %442 = vst [vmem:[%s621_s3 + $0x38] sm:$0xff] %v434_v6  }
 0x107   :  { %437 = vst [vmem:[%s621_s3 + $0x10] sm:$0xff] %v409_v7   ;;  %441 = vst [vmem:[%s621_s3 + $0x30] sm:$0xff] %v429_v8  }

// kernel: _lambda_.11
= control target key start
LH: loop header
LB: loop body
LE: loop exit
PB: predicated region body
PF: predicated region fallthrough
CT: control target
= control target key end

     0   :  { %s7168_s12 = smov 0   ;;  %s7170_s13 = smov 0   ;;  %s9030_s0 = inlined_call_operand.vmem [shape: bf16[2,18,18,128], index: 0, kind: input, shape index: {}]   ;;  %s9031_s1 = inlined_call_operand.vmem [shape: bf16[1152,128], index: 1, kind: input, shape index: {}]   ;;  %s9032_s2 = inlined_call_operand.vmem [shape: f32[1,128], index: 2, kind: input, shape index: {}]   ;;  %s9033_s3 = inlined_call_operand.vmem [shape: bf16[2,256,128], index: 3, kind: output, shape index: {}]  }
   0x1   :  { %s7172_s14 = smov 0  }
   0x2 LB: > { %s25_s15 = sadd.s32 1, %s7142_s13  ;;  %p5366_p0 = scmp.ge.s32.totalorder %s7146_s14, 1  ;;  %s7146_s14 = sphi %s7172_s14, %s13_s14   ;;  %s7142_s13 = sphi %s7170_s13, %s9101_s13   ;;  %s7138_s12 = sphi %s7168_s12, %s9100_s12  }
   0x3   : > { %p27_p1 = scmp.ge.s32.totalorder %s25_s15, 2  ;;  %p168_p2 = scmp.lt.s32.totalorder %s7146_s14, 3 }
   0x5   : > { %s9103_s15 = smov (%p27_p1, %s25_s15), 0  ;;  %p169_p3 = pnand %p5366_p0, %p168_p2 }
   0x7   : > { %172 = sbr.rel (%p169_p3) target bundleno = 590 (0x24e), region = 32 }
   0xe   : > { %v6934_v0 = vld [vmem:[%s9031_s1 + $0x40] sm:$0xff]   ;;  %p202_p4 = scmp.lt.s32.totalorder %s7138_s12, 1  ;;  %v6936_v2 = vld [vmem:[%s9031_s1 + $0x48] sm:$0xff]   ;;  %v6938_v4 = vld [vmem:[%s9031_s1 + $0x50] sm:$0xff]   ;;  %vm287_vm0 = vsmask.f32 3328 }
   0xf   : > { %v6935_v1 = vld [vmem:[%s9031_s1 + $0x100] sm:$0xff]   ;;  %6205 = vmatprep.subr.bf16.mxu1 %v6934_v0  ;;  %v6937_v3 = vld [vmem:[%s9031_s1 + $0x108] sm:$0xff]   ;;  %v6939_v5 = vld [vmem:[%s9031_s1 + $0x110] sm:$0xff]   ;;  %vm288_vm1 = vsmask.f32 7440  ;;  %vm1316_vm3 = vcmask 1042432  }
  0x10   : > { %6397 = vmatprep.subr.bf16.mxu0 %v6935_v1  ;;  %6206 = vmatpush3.bf16.msra.mxu1 %v6934_v0  ;;  %s9105_s12 = smov (!%p202_p4, %s7138_s12), 1  ;;  %v6940_v6 = vld [vmem:[%s9031_s1 + $0x58] sm:$0xff]   ;;  %v6942_v8 = vld [vmem:[%s9031_s1 + $0x60] sm:$0xff]   ;;  %v6944_v10 = vld [vmem:[%s9031_s1 + $0x68] sm:$0xff]   ;;  %vm1317_vm4 = vcmask 1046532  }
  0x11   : > { %6398 = vmatpush3.bf16.msra.mxu0 %v6935_v1  ;;  %6207 = vmatprep.subr.bf16.mxu1 %v6936_v2  ;;  %v6941_v7 = vld [vmem:[%s9031_s1 + $0x118] sm:$0xff]   ;;  %s6909_s5 = smul.u32 216, %s9105_s12  ;;  %v6943_v9 = vld [vmem:[%s9031_s1 + $0x120] sm:$0xff]   ;;  %v6945_v11 = vld [vmem:[%s9031_s1 + $0x128] sm:$0xff]   ;;  %s5861_s26 = sshll.u32 %s9105_s12, 7 }
  0x12   : > { %6399 = vmatprep.subr.bf16.mxu0 %v6937_v3  ;;  %v6946_v25 = vld [vmem:[%s9031_s1 + $0x70] sm:$0xff]   ;;  %v6948_v36 = vld [vmem:[%s9031_s1 + $0x78] sm:$0xff]   ;;  %vm7254_vm2 = vmor %vm287_vm0, %vm288_vm1  ;;  %s8971_s29 = scalar_lea.vmem %s9033_s3, %s5861_s26 }
  0x13   : > { %s7222_s16 = scalar_lea.vmem %s9030_s0, %s6909_s5  ;;  %v6947_v30 = vld [vmem:[%s9031_s1 + $0x130] sm:$0xff]   ;;  %v6949_v51 = vld [vmem:[%s9031_s1 + $0x138] sm:$0xff]   ;;  %vm7500_vm5 = vmor %vm1316_vm3, %vm1317_vm4 }
  0x14   : > { %6208 = vmatpush3.bf16.msra.mxu1 %v6936_v2  ;;  %v223_v12 = vld [vmem:[%s7222_s16] sm:$0xf]  ;;  %v224_v13 = vld [vmem:[%s7222_s16 + $0x4] sm:$0xf]  ;;  %v271_v14 = vld [vmem:[%s7222_s16 + $0x8] sm:$0x1] }
  0x15   : > { %6400 = vmatpush3.bf16.msra.mxu0 %v6937_v3  ;;  %6209 = vmatprep.subr.bf16.mxu1 %v6938_v4  ;;  %v291_v15 = vshrl.u32 %v223_v12, 16  ;;  %v294_v16 = vshll.u32 %v223_v12, 16  ;;  %v300_v17 = vshll.u32 %v224_v13, 16  ;;  %v304_v18 = vshrl.u32 %v224_v13, 16  ;;  %v5514_v20 = vld [vmem:[%s7222_s16 + $0xc] sm:$0xf] }
  0x16   : > { %6401 = vmatprep.subr.bf16.mxu0 %v6939_v5  ;;  %v310_v19 = vshll.u32 %v271_v14, 16  ;;  %v7235_v23 = vld [vmem:[%s7222_s16 + $0x10] sm:$0xf]  ;;  %v7238_v24 = vld [vmem:[%s7222_s16 + $0x14] sm:$0x1]  ;;  %v2187_v29 = vshrl.u32 %v5514_v20, 16 }
  0x17   : > { %v293_v21 = vrot.slane %v291_v15, 4  ;;  %v296_v22 = vrot.slane %v294_v16, 5  ;;  %v302_v26 = vrot.slane %v300_v17, 5  ;;  %v306_v27 = vrot.slane %v304_v18, 4  ;;  %v225_v35 = vld [vmem:[%s7222_s16 + $0xc] sm:$0xf] }
  0x18   : > { %6210 = vmatpush3.bf16.msra.mxu1 %v6938_v4  ;;  %v312_v28 = vrot.slane %v310_v19, 5  ;;  %v2190_v32 = vshll.u32 %v5514_v20, 16  ;;  %v2196_v33 = vshll.u32 %v7235_v23, 16  ;;  %v2200_v34 = vshrl.u32 %v7235_v23, 16  ;;  %v226_v42 = vld [vmem:[%s7222_s16 + $0x10] sm:$0xf] }
  0x19   : > { %6402 = vmatpush3.bf16.msra.mxu0 %v6939_v5  ;;  %6211 = vmatprep.subr.bf16.mxu1 %v6940_v6  ;;  %v297_v31 = vor.u32 %v296_v22, %v293_v21  ;;  %v307_v38 = vor.u32 %v306_v27, %v302_v26  ;;  %v2189_v39 = vrot.slane %v2187_v29, 4  ;;  %v2206_v40 = vshll.u32 %v7238_v24, 16  ;;  %v272_v55 = vld [vmem:[%s7222_s16 + $0x14] sm:$0x1]  ;;  %v5517_v57 = vld [vmem:[%s7222_s16 + $0x18] sm:$0xf] }
  0x1a   : > { %6403 = vmatprep.subr.bf16.mxu0 %v6941_v7  ;;  %v2960_v41 = vrot.slane %v7238_v24, 5  ;;  %v2192_v44 = vrot.slane %v2190_v32, 5  ;;  %v2198_v45 = vrot.slane %v2196_v33, 5  ;;  %v2202_v46 = vrot.slane %v2200_v34, 4  ;;  %v7271_v62 = vld [vmem:[%s7222_s16 + $0x1c] sm:$0xf] }
  0x1b   : > { %v298_v43 = vrot.slane %v297_v31, 4  ;;  %v308_v47 = vrot.slane %v307_v38, 4  ;;  %v2208_v48 = vrot.slane %v2206_v40, 5  ;;  %v315_v49 = vshrl.u32 %v225_v35, 16  ;;  %v6950_v3 = vld [vmem:[%s9031_s1] sm:$0xff]  }
  0x1c   : > { %6212 = vmatpush3.bf16.msra.mxu1 %v6940_v6  ;;  %v318_v50 = vshll.u32 %v225_v35, 16  ;;  %v2193_v53 = vor.u32 %v2192_v44, %v2189_v39  ;;  %v2203_v54 = vor.u32 %v2202_v46, %v2198_v45  ;;  %v324_v56 = vshll.u32 %v226_v42, 16  ;;  %v7279_v4 = vld [vmem:[%s9031_s1 + $0x140] sm:$0xff]   ;;  %v227_v21 = vld [vmem:[%s7222_s16 + $0x18] sm:$0xf]  ;;  %v6953_v46 = vld [vmem:[%s9031_s1 + $0x8] sm:$0xff]  }
  0x1d   : > { %6404 = vmatpush3.bf16.msra.mxu0 %v6941_v7  ;;  %6213 = vmatprep.subr.bf16.mxu1 %v6942_v8  ;;  %v303_v52 = vsel %vm7254_vm2, %v298_v43, %v302_v26  ;;  %v313_v58 = vsel %vm7254_vm2, %v308_v47, %v312_v28  ;;  %v317_v59 = vrot.slane %v315_v49, 4  ;;  %v328_v61 = vshrl.u32 %v226_v42, 16  ;;  %v228_v28 = vld [vmem:[%s7222_s16 + $0x1c] sm:$0xf]  ;;  %v273_v33 = vld [vmem:[%s7222_s16 + $0x20] sm:$0x1] }
  0x1e   : > { %6405 = vmatprep.subr.bf16.mxu0 %v6943_v9  ;;  %v320_v60 = vrot.slane %v318_v50, 5  ;;  %v5370_v63 = vcombine.low %v303_v52, %v313_v58  ;;  %v2194_v0 = vrot.slane %v2193_v53, 4  ;;  %v2204_v1 = vrot.slane %v2203_v54, 4  ;;  %v5520_v39 = vld [vmem:[%s7222_s16 + $0x24] sm:$0xf] }
  0x1f   : > { %v326_v2 = vrot.slane %v324_v56, 5  ;;  %v330_v6 = vrot.slane %v328_v61, 4  ;;  %v334_v7 = vshll.u32 %v272_v55, 16  ;;  %v2214_v12 = vshll.u32 %v5517_v57, 16  ;;  %v229_v52 = vld [vmem:[%s7222_s16 + $0x24] sm:$0xf] }
  0x20   : > { %6214 = vmatpush3.bf16.msra.mxu1 %v6942_v8  ;;  %v321_v5 = vor.u32 %v320_v60, %v317_v59  ;;  %v7282_v8 = vld [vmem:[%s7222_s16 + $0x20] sm:$0x1]  ;;  %6221 = vmatprep.mubr.bf16.mxu1 %v5370_v63  ;;  %v2220_v19 = vshll.u32 %v7271_v62, 16  ;;  %v2224_v20 = vshrl.u32 %v7271_v62, 16  ;;  %v2964_v27 = vrot.slane %v7271_v62, 5  ;;  %v6952_v63 = vld [vmem:[%s9031_s1 + $0x148] sm:$0xff]  }
  0x21   : > { %6406 = vmatpush3.bf16.msra.mxu0 %v6943_v9  ;;  %6215 = vmatprep.subr.bf16.mxu1 %v6944_v10  ;;  %v2199_v9 = vsel %vm7254_vm2, %v2194_v0, %v2198_v45  ;;  %v331_v15 = vor.u32 %v330_v6, %v326_v2  ;;  %v336_v16 = vrot.slane %v334_v7, 5  ;;  %v2216_v18 = vrot.slane %v2214_v12, 5  ;;  %v7307_v45 = vld [vmem:[%s7222_s16 + $0x28] sm:$0xf] }
  0x22   : > { %6407 = vmatprep.subr.bf16.mxu0 %v6945_v11  ;;  %v322_v14 = vrot.slane %v321_v5, 4  ;;  %v2230_v26 = vshll.u32 %v7282_v8, 16  ;;  %v2226_v31 = vrot.slane %v2224_v20, 4  ;;  %v2967_v32 = vrot.slane %v7282_v8, 5  ;;  %v230_v5 = vld [vmem:[%s7222_s16 + $0x28] sm:$0xf] }
  0x23   : > { %v339_v38 = vshrl.u32 %v227_v21, 16  ;;  %v342_v44 = vshll.u32 %v227_v21, 16  ;;  %v352_v49 = vshrl.u32 %v228_v28, 16  ;;  %v358_v50 = vshll.u32 %v273_v33, 16  ;;  %v7338_v33 = vld [vmem:[%s7222_s16 + $0x34] sm:$0xf] }
  0x24   : > { %6216 = vmatpush3.bf16.msra.mxu1 %v6944_v10  ;;  %v2209_v10 = vsel %vm7254_vm2, %v2204_v1, %v2208_v48  ;;  %v327_v22 = vsel %vm7254_vm2, %v322_v14, %v326_v2  ;;  %v2232_v35 = vrot.slane %v2230_v26, 5  ;;  %v348_v48 = vshll.u32 %v228_v28, 16 }
  0x25   : > { %6408 = vmatpush3.bf16.msra.mxu0 %v6945_v11  ;;  %6217 = vmatprep.subr.bf16.mxu1 %v6946_v25  ;;  %v2211_v11 = vshrl.u32 %v5517_v57, 16  ;;  %v5562_v13 = vcombine.low %v2199_v9, %v2209_v10  ;;  %v341_v47 = vrot.slane %v339_v38, 4  ;;  %v344_v55 = vrot.slane %v342_v44, 5 }
  0x26   : > { %6409 = vmatprep.subr.bf16.mxu0 %v6947_v30  ;;  %v2235_v56 = vshrl.u32 %v5520_v39, 16  ;;  %v350_v57 = vrot.slane %v348_v48, 5  ;;  %v354_v58 = vrot.slane %v352_v49, 4  ;;  %v360_v59 = vrot.slane %v358_v50, 5  ;;  %v6955_v48 = vld [vmem:[%s9031_s1 + $0x158] sm:$0xff]  }
  0x27   : > { %v2213_v17 = vrot.slane %v2211_v11, 4  ;;  %6413 = vmatprep.mubr.bf16.mxu0 %v5562_v13  ;;  %v2238_v60 = vshll.u32 %v5520_v39, 16  ;;  %v345_v0 = vor.u32 %v344_v55, %v341_v47  ;;  %v2244_v2 = vshll.u32 %v7307_v45, 16  ;;  %v274_v11 = vld [vmem:[%s7222_s16 + $0x2c] sm:$0x1] }
  0x28   : > { %6218 = vmatpush3.bf16.msra.mxu1 %v6946_v25  ;;  %v332_v25 = vrot.slane %v331_v15, 4  ;;  %v2237_v1 = vrot.slane %v2235_v56, 4  ;;  %v355_v7 = vor.u32 %v354_v58, %v350_v57  ;;  %v2248_v10 = vshrl.u32 %v7307_v45, 16 }
  0x29   : > { %6410 = vmatpush3.bf16.msra.mxu0 %v6947_v30  ;;  %6219 = vmatprep.subr.bf16.mxu1 %v6948_v36  ;;  %v2217_v29 = vor.u32 %v2216_v18, %v2213_v17  ;;  %v2222_v30 = vrot.slane %v2220_v19, 5  ;;  %v2240_v9 = vrot.slane %v2238_v60, 5  ;;  %v346_v12 = vrot.slane %v345_v0, 4  ;;  %v6962_v60 = vld [vmem:[%s9031_s1 + $0x20] sm:$0xff]  }
  0x2a   : > { %6411 = vmatprep.subr.bf16.mxu0 %v6949_v51  ;;  %v337_v34 = vsel %vm7254_vm2, %v332_v25, %v336_v16  ;;  %v2246_v13 = vrot.slane %v2244_v2, 5  ;;  %v363_v15 = vshrl.u32 %v229_v52, 16  ;;  %v5523_v16 = vld [vmem:[%s7222_s16 + $0x30] sm:$0xf]  ;;  %v356_v17 = vrot.slane %v355_v7, 4 }
  0x2b   : > { %v5371_v40 = vcombine.low %v327_v22, %v337_v34  ;;  %v2218_v42 = vrot.slane %v2217_v29, 4  ;;  %v2227_v43 = vor.u32 %v2226_v31, %v2222_v30  ;;  %v2241_v18 = vor.u32 %v2240_v9, %v2237_v1  ;;  %v6959_v34 = vld [vmem:[%s9031_s1 + $0x18] sm:$0xff]  }
  0x2c   : > { %6220 = vmatpush3.bf16.msra.mxu1 %v6948_v36  ;;  %v7303_v36 = vrot.slane %v2964_v27, 4  ;;  %v2250_v19 = vrot.slane %v2248_v10, 4  ;;  %v366_v20 = vshll.u32 %v229_v52, 16  ;;  %v351_v21 = vsel %vm7254_vm2, %v346_v12, %v350_v57  ;;  %v275_v2 = vld [vmem:[%s7222_s16 + $0x38] sm:$0x1] }
  0x2d   : > { %6412 = vmatpush3.bf16.msra.mxu0 %v6949_v51  ;;  %6253 = vmatprep.subr.bf16.mxu1 %v6950_v3  ;;  %v7313_v51 = vld [vmem:[%s7222_s16 + $0x2c] sm:$0x1]  ;;  %v2223_v53 = vsel %vm7254_vm2, %v2218_v42, %v2222_v30  ;;  %v2228_v54 = vrot.slane %v2227_v43, 4  ;;  %v365_v25 = vrot.slane %v363_v15, 4  ;;  %v372_v26 = vshll.u32 %v230_v5, 16 }
  0x2e   : > { %6445 = vmatprep.subr.bf16.mxu0 %v7279_v4  ;;  %v2254_v14 = vshll.u32 %v7313_v51, 16  ;;  %v361_v28 = vsel %vm7254_vm2, %v356_v17, %v360_v59  ;;  %v2242_v29 = vrot.slane %v2241_v18, 4  ;;  %v2251_v30 = vor.u32 %v2250_v19, %v2246_v13  ;;  %v232_v59 = vld [vmem:[%s7222_s16 + $0x34] sm:$0xf]  ;;  %v5526_v9 = vld [vmem:[%s7222_s16 + $0x3c] sm:$0xf] }
  0x2f   : > { %6222 = vmatmul.mubr.bf16.vlgmr.msra.gmra.mrb[0].mxu1 %v5371_v40  ;;  %v2233_v61 = vsel %vm7254_vm2, %v2228_v54, %v2232_v35  ;;  %v368_v31 = vrot.slane %v366_v20, 5  ;;  %v5372_v35 = vcombine.low %v351_v21, %v361_v28  ;;  %v374_v38 = vrot.slane %v372_v26, 5  ;;  %v231_v54 = vld [vmem:[%s7222_s16 + $0x30] sm:$0xf]  ;;  %v7372_v19 = vld [vmem:[%s7222_s16 + $0x40] sm:$0xf] }
  0x30   : > { %6254 = vmatpush3.bf16.msra.mxu1 %v6950_v3  ;;  %v6956_v3 = vld [vmem:[%s9031_s1 + $0x10] sm:$0xff]   ;;  %v5563_v6 = vcombine.low %v2223_v53, %v2233_v61  ;;  %v2256_v22 = vrot.slane %v2254_v14, 5  ;;  %v376_v39 = vshrl.u32 %v230_v5, 16  ;;  %v382_v40 = vshll.u32 %v274_v11, 16  ;;  %v6964_v14 = vld [vmem:[%s9031_s1 + $0x28] sm:$0xff]   ;;  %v6957_v20 = vld [vmem:[%s9031_s1 + $0x160] sm:$0xff]  }
  0x31   : > { %6255 = vmatprep.subr.bf16.mxu1 %v6953_v46  ;;  %v2247_v42 = vsel %vm7254_vm2, %v2242_v29, %v2246_v13  ;;  %v2252_v43 = vrot.slane %v2251_v30, 4  ;;  %v369_v44 = vor.u32 %v368_v31, %v365_v25  ;;  %v2259_v47 = vshrl.u32 %v5523_v16, 16  ;;  %6225 = vmatprep.mubr.bf16.mxu1 %v5372_v35  ;;  %v7380_v28 = vld [vmem:[%s7222_s16 + $0x44] sm:$0x1]  ;;  %v6966_v35 = vld [vmem:[%s9031_s1 + $0x30] sm:$0xff]  }
  0x32   : > { %6414 = vmatmul.mubr.bf16.vlgmr.msra.gmra.mrb[0].mxu0 %v5563_v6  ;;  %v378_v49 = vrot.slane %v376_v39, 4  ;;  %v384_v50 = vrot.slane %v382_v40, 5  ;;  %v2262_v52 = vshll.u32 %v5523_v16, 16  ;;  %v2268_v53 = vshll.u32 %v7338_v33, 16 }
  0x33   : > { %6446 = vmatpush3.bf16.msra.mxu0 %v7279_v4  ;;  %v6954_v4 = vld [vmem:[%s9031_s1 + $0x150] sm:$0xff]   ;;  %v2257_v55 = vsel %vm7254_vm2, %v2252_v43, %v2256_v22  ;;  %v370_v56 = vrot.slane %v369_v44, 4  ;;  %v2261_v57 = vrot.slane %v2259_v47, 4  ;;  %v2272_v58 = vshrl.u32 %v7338_v33, 16 }
  0x34   : > { %6256 = vmatpush3.bf16.msra.mxu1 %v6953_v46  ;;  %6447 = vmatprep.subr.bf16.mxu0 %v6952_v63  ;;  %v7349_v46 = vld [vmem:[%s7222_s16 + $0x38] sm:$0x1]  ;;  %v5564_v61 = vcombine.low %v2247_v42, %v2257_v55  ;;  %v2264_v0 = vrot.slane %v2262_v52, 5  ;;  %v2270_v1 = vrot.slane %v2268_v53, 5  ;;  %v387_v7 = vshrl.u32 %v231_v54, 16 }
  0x35   : > { %6257 = vmatprep.subr.bf16.mxu1 %v6956_v3  ;;  %v375_v5 = vsel %vm7254_vm2, %v370_v56, %v374_v38  ;;  %v2278_v6 = vshll.u32 %v7349_v46, 16  ;;  %v390_v12 = vshll.u32 %v231_v54, 16  ;;  %v396_v13 = vshll.u32 %v232_v59, 16  ;;  %v234_v55 = vld [vmem:[%s7222_s16 + $0x40] sm:$0xf] }
  0x36   : > { %6417 = vmatprep.mubr.bf16.mxu0 %v5564_v61  ;;  %v2265_v11 = vor.u32 %v2264_v0, %v2261_v57  ;;  %v389_v17 = vrot.slane %v387_v7, 4  ;;  %v400_v18 = vshrl.u32 %v232_v59, 16  ;;  %v2283_v40 = vshrl.u32 %v5526_v9, 16 }
  0x37   : > { %6448 = vmatpush3.bf16.msra.mxu0 %v6952_v63  ;;  %v379_v63 = vor.u32 %v378_v49, %v374_v38  ;;  %v2280_v16 = vrot.slane %v2278_v6, 5  ;;  %v392_v25 = vrot.slane %v390_v12, 5  ;;  %v398_v26 = vrot.slane %v396_v13, 5 }
  0x38   : > { %6258 = vmatpush3.bf16.msra.mxu1 %v6956_v3  ;;  %6449 = vmatprep.subr.bf16.mxu0 %v6954_v4  ;;  %v2274_v3 = vrot.slane %v2272_v58, 4  ;;  %v2266_v22 = vrot.slane %v2265_v11, 4  ;;  %v402_v31 = vrot.slane %v400_v18, 4  ;;  %v2286_v42 = vshll.u32 %v5526_v9, 16  ;;  %v5529_v9 = vld [vmem:[%s7222_s16 + $0x48] sm:$0xf] }
  0x39   : > { %6259 = vmatprep.subr.bf16.mxu1 %v6959_v34  ;;  %v380_v10 = vrot.slane %v379_v63, 4  ;;  %v393_v39 = vor.u32 %v392_v25, %v389_v17  ;;  %v2292_v49 = vshll.u32 %v7372_v19, 16  ;;  %v2285_v53 = vrot.slane %v2283_v40, 4  ;;  %v276_v63 = vld [vmem:[%s7222_s16 + $0x44] sm:$0x1] }
  0x3a   : > { %v2275_v15 = vor.u32 %v2274_v3, %v2270_v1  ;;  %v2271_v38 = vsel %vm7254_vm2, %v2266_v22, %v2270_v1  ;;  %v403_v44 = vor.u32 %v402_v31, %v398_v26  ;;  %v2288_v54 = vrot.slane %v2286_v42, 5  ;;  %v7413_v22 = vld [vmem:[%s7222_s16 + $0x50] sm:$0x1]  ;;  %v6961_v31 = vld [vmem:[%s9031_s1 + $0x178] sm:$0xff]  }
  0x3b   : > { %6450 = vmatpush3.bf16.msra.mxu0 %v6954_v4  ;;  %v385_v21 = vsel %vm7254_vm2, %v380_v10, %v384_v50  ;;  %v406_v4 = vshll.u32 %v275_v2, 16  ;;  %v394_v52 = vrot.slane %v393_v39, 4  ;;  %v2294_v57 = vrot.slane %v2292_v49, 5  ;;  %v6968_v2 = vld [vmem:[%s9031_s1 + $0x38] sm:$0xff]  }
  0x3c   : > { %6260 = vmatpush3.bf16.msra.mxu1 %v6959_v34  ;;  %6451 = vmatprep.subr.bf16.mxu0 %v6955_v48  ;;  %v5373_v29 = vcombine.low %v375_v5, %v385_v21  ;;  %v2276_v30 = vrot.slane %v2275_v15, 4  ;;  %v233_v34 = vld [vmem:[%s7222_s16 + $0x3c] sm:$0xf]  ;;  %v404_v56 = vrot.slane %v403_v44, 4  ;;  %v2296_v58 = vshrl.u32 %v7372_v19, 16  ;;  %v6960_v15 = vld [vmem:[%s9031_s1 + $0x170] sm:$0xff]  }
  0x3d   : > { %6261 = vmatprep.subr.bf16.mxu1 %v6962_v60  ;;  %v408_v47 = vrot.slane %v406_v4, 5  ;;  %v2302_v59 = vshll.u32 %v7380_v28, 16  ;;  %v2289_v61 = vor.u32 %v2288_v54, %v2285_v53  ;;  %v411_v0 = vshrl.u32 %v233_v34, 16  ;;  %v7424_v4 = vld [vmem:[%s9031_s1 + $0x80] sm:$0xff]   ;;  %v236_v53 = vld [vmem:[%s7222_s16 + $0x4c] sm:$0xf] }
  0x3e   : > { %6226 = vmatmul.mubr.bf16.gmra.mrb[4].mxu1 %v5373_v29  ;;  %v2281_v43 = vsel %vm7254_vm2, %v2276_v30, %v2280_v16  ;;  %v414_v1 = vshll.u32 %v233_v34, 16  ;;  %v2298_v3 = vrot.slane %v2296_v58, 4  ;;  %v420_v7 = vshll.u32 %v234_v55, 16  ;;  %v235_v30 = vld [vmem:[%s7222_s16 + $0x48] sm:$0xf] }
  0x3f   : > { %6452 = vmatpush3.bf16.msra.mxu0 %v6955_v48  ;;  %v5565_v50 = vcombine.low %v2271_v38, %v2281_v43  ;;  %v6958_v48 = vld [vmem:[%s9031_s1 + $0x168] sm:$0xff]   ;;  %v409_v5 = vsel %vm7254_vm2, %v404_v56, %v408_v47  ;;  %v2304_v6 = vrot.slane %v2302_v59, 5  ;;  %v2290_v11 = vrot.slane %v2289_v61, 4  ;;  %v277_v54 = vld [vmem:[%s7222_s16 + $0x50] sm:$0x1] }
  0x40   : > { %6262 = vmatpush3.bf16.msra.mxu1 %v6962_v60  ;;  %6453 = vmatprep.subr.bf16.mxu0 %v6957_v20  ;;  %v399_v60 = vsel %vm7254_vm2, %v394_v52, %v398_v26  ;;  %v413_v12 = vrot.slane %v411_v0, 4  ;;  %v416_v13 = vrot.slane %v414_v1, 5  ;;  %v2299_v16 = vor.u32 %v2298_v3, %v2294_v57  ;;  %v5532_v58 = vld [vmem:[%s7222_s16 + $0x54] sm:$0xf]  ;;  %v7438_v0 = vld [vmem:[%s7222_s16 + $0x58] sm:$0xf] }
  0x41   : > { %6263 = vmatprep.subr.bf16.mxu1 %v6964_v14  ;;  %6418 = vmatmul.mubr.bf16.gmra.mrb[4].mxu0 %v5565_v50  ;;  %v5374_v10 = vcombine.low %v399_v60, %v409_v5  ;;  %v422_v17 = vrot.slane %v420_v7, 5  ;;  %v424_v18 = vshrl.u32 %v234_v55, 16  ;;  %v430_v21 = vshll.u32 %v276_v63, 16 }
  0x42   : > { %v417_v25 = vor.u32 %v416_v13, %v413_v12  ;;  %v2307_v26 = vshrl.u32 %v5529_v9, 16  ;;  %v2310_v29 = vshll.u32 %v5529_v9, 16  ;;  %v2300_v34 = vrot.slane %v2299_v16, 4 }
  0x43   : > { %6454 = vmatpush3.bf16.msra.mxu0 %v6957_v20  ;;  %6229 = vmatprep.mubr.bf16.mxu1 %v5374_v10  ;;  %v2295_v20 = vsel %vm7254_vm2, %v2290_v11, %v2294_v57  ;;  %v432_v38 = vrot.slane %v430_v21, 5  ;;  %v2326_v52 = vshll.u32 %v7413_v22, 16  ;;  %v435_v61 = vshrl.u32 %v235_v30, 16 }
  0x44   : > { %6264 = vmatpush3.bf16.msra.mxu1 %v6964_v14  ;;  %v7407_v14 = vld [vmem:[%s7222_s16 + $0x4c] sm:$0xf]  ;;  %6455 = vmatprep.subr.bf16.mxu0 %v6958_v48  ;;  %v418_v40 = vrot.slane %v417_v25, 4  ;;  %v2309_v42 = vrot.slane %v2307_v26, 4  ;;  %v2312_v43 = vrot.slane %v2310_v29, 5  ;;  %v2305_v47 = vsel %vm7254_vm2, %v2300_v34, %v2304_v6  ;;  %v7443_v6 = vld [vmem:[%s9031_s1 + $0x180] sm:$0xff]  }
  0x45   : > { %6265 = vmatprep.subr.bf16.mxu1 %v6966_v35  ;;  %v2316_v39 = vshll.u32 %v7407_v14, 16  ;;  %v2320_v44 = vshrl.u32 %v7407_v14, 16  ;;  %v5566_v55 = vcombine.low %v2295_v20, %v2305_v47  ;;  %v2328_v60 = vrot.slane %v2326_v52, 5  ;;  %v7450_v20 = vld [vmem:[%s7222_s16 + $0x5c] sm:$0x1] }
  0x46   : > { %v2313_v56 = vor.u32 %v2312_v43, %v2309_v42  ;;  %v438_v63 = vshll.u32 %v235_v30, 16  ;;  %v448_v3 = vshrl.u32 %v236_v53, 16  ;;  %v437_v9 = vrot.slane %v435_v61, 4  ;;  %v238_v43 = vld [vmem:[%s7222_s16 + $0x58] sm:$0xf] }
  0x47   : > { %6456 = vmatpush3.bf16.msra.mxu0 %v6958_v48  ;;  %v2318_v50 = vrot.slane %v2316_v39, 5  ;;  %v423_v48 = vsel %vm7254_vm2, %v418_v40, %v422_v17  ;;  %v2322_v57 = vrot.slane %v2320_v44, 4  ;;  %6421 = vmatprep.mubr.bf16.mxu0 %v5566_v55  ;;  %v454_v11 = vshll.u32 %v277_v54, 16  ;;  %v5535_v52 = vld [vmem:[%s7222_s16 + $0x60] sm:$0xf] }
  0x48   : > { %6266 = vmatpush3.bf16.msra.mxu1 %v6966_v35  ;;  %v426_v35 = vrot.slane %v424_v18, 4  ;;  %6457 = vmatprep.subr.bf16.mxu0 %v6960_v15  ;;  %v2314_v1 = vrot.slane %v2313_v56, 4  ;;  %v440_v10 = vrot.slane %v438_v63, 5  ;;  %v450_v18 = vrot.slane %v448_v3, 4 }
  0x49   : > { %6267 = vmatprep.subr.bf16.mxu1 %v6968_v2  ;;  %v2323_v5 = vor.u32 %v2322_v57, %v2318_v50  ;;  %v456_v21 = vrot.slane %v454_v11, 5  ;;  %v2331_v25 = vshrl.u32 %v5532_v58, 16  ;;  %v2334_v29 = vshll.u32 %v5532_v58, 16 }
  0x4a   : > { %v427_v49 = vor.u32 %v426_v35, %v422_v17  ;;  %v2319_v13 = vsel %vm7254_vm2, %v2314_v1, %v2318_v50  ;;  %v441_v17 = vor.u32 %v440_v10, %v437_v9  ;;  %v2340_v30 = vshll.u32 %v7438_v0, 16  ;;  %v237_v35 = vld [vmem:[%s7222_s16 + $0x54] sm:$0xf]  ;;  %v278_v50 = vld [vmem:[%s7222_s16 + $0x5c] sm:$0x1] }
  0x4b   : > { %6458 = vmatpush3.bf16.msra.mxu0 %v6960_v15  ;;  %v2324_v15 = vrot.slane %v2323_v5, 4  ;;  %v2344_v34 = vshrl.u32 %v7438_v0, 16  ;;  %v2333_v42 = vrot.slane %v2331_v25, 4  ;;  %v459_v55 = vshrl.u32 %v237_v35, 16  ;;  %v7478_v25 = vld [vmem:[%s7222_s16 + $0x60] sm:$0xf] }
  0x4c   : > { %6268 = vmatpush3.bf16.msra.mxu1 %v6968_v2  ;;  %v428_v59 = vrot.slane %v427_v49, 4  ;;  %v444_v2 = vshll.u32 %v236_v53, 16  ;;  %6459 = vmatprep.subr.bf16.mxu0 %v6961_v31  ;;  %v442_v39 = vrot.slane %v441_v17, 4  ;;  %v2342_v44 = vrot.slane %v2340_v30, 5  ;;  %v7474_v17 = vld [vmem:[%s7222_s16 + $0x68] sm:$0x1] }
  0x4d   : > { %6301 = vmatprep.subr.bf16.mxu1 %v7424_v4  ;;  %v2329_v26 = vsel %vm7254_vm2, %v2324_v15, %v2328_v60  ;;  %v2346_v47 = vrot.slane %v2344_v34, 4  ;;  %v2350_v49 = vshll.u32 %v7450_v20, 16  ;;  %v7465_v60 = vld [vmem:[%s7222_s16 + $0x64] sm:$0xf]  ;;  %v461_v63 = vrot.slane %v459_v55, 4 }
  0x4e   : > { %v433_v7 = vsel %vm7254_vm2, %v428_v59, %v432_v38  ;;  %v446_v16 = vrot.slane %v444_v2, 5  ;;  %v5567_v38 = vcombine.low %v2319_v13, %v2329_v26  ;;  %v468_v59 = vshll.u32 %v238_v43, 16 }
  0x4f   : > { %v5375_v12 = vcombine.low %v423_v48, %v433_v7  ;;  %6460 = vmatpush3.bf16.msra.mxu0 %v6961_v31  ;;  %v2336_v31 = vrot.slane %v2334_v29, 5  ;;  %v462_v48 = vshll.u32 %v237_v35, 16  ;;  %v2347_v57 = vor.u32 %v2346_v47, %v2342_v44  ;;  %v7481_v35 = vld [vmem:[%s7222_s16 + $0x64] sm:$0xf] }
  0x50   : > { %6493 = vmatprep.subr.bf16.mxu0 %v7443_v6  ;;  %v451_v40 = vor.u32 %v450_v18, %v446_v16  ;;  %6422 = vmatmul.mubr.bf16.gmra.mrb[8].mxu0 %v5567_v38  ;;  %v447_v53 = vsel %vm7254_vm2, %v442_v39, %v446_v16  ;;  %v2352_v58 = vrot.slane %v2350_v49, 5  ;;  %v472_v5 = vshrl.u32 %v238_v43, 16  ;;  %v279_v43 = vld [vmem:[%s7222_s16 + $0x68] sm:$0x1] }
  0x51   : > { %6230 = vmatmul.mubr.bf16.gmra.mrb[8].mxu1 %v5375_v12  ;;  %v2337_v56 = vor.u32 %v2336_v31, %v2333_v42  ;;  %v464_v1 = vrot.slane %v462_v48, 5  ;;  %v2348_v7 = vrot.slane %v2347_v57, 4  ;;  %v470_v9 = vrot.slane %v468_v59, 5 }
  0x52   : > { %v452_v54 = vrot.slane %v451_v40, 4  ;;  %v474_v11 = vrot.slane %v472_v5, 4  ;;  %v478_v12 = vshll.u32 %v278_v50, 16  ;;  %v2355_v13 = vshrl.u32 %v5535_v52, 16  ;;  %v5586_v50 = vld [vmem:[%s7222_s16 + $0xc] sm:$0xe] }
  0x53   : > { %v2338_v3 = vrot.slane %v2337_v56, 4  ;;  %v465_v10 = vor.u32 %v464_v1, %v461_v63  ;;  %v2353_v16 = vsel %vm7254_vm2, %v2348_v7, %v2352_v58  ;;  %v2358_v18 = vshll.u32 %v5535_v52, 16  ;;  %v7496_v5 = vld [vmem:[%s7222_s16 + $0x6c] sm:$0xf] }
  0x54   : > { %v457_v61 = vsel %vm7254_vm2, %v452_v54, %v456_v21  ;;  %v2364_v21 = vshll.u32 %v7465_v60, 16  ;;  %v475_v30 = vor.u32 %v474_v11, %v470_v9  ;;  %v480_v34 = vrot.slane %v478_v12, 5 }
  0x55   : > { %v5376_v2 = vcombine.low %v447_v53, %v457_v61  ;;  %v2343_v15 = vsel %vm7254_vm2, %v2338_v3, %v2342_v44  ;;  %v466_v29 = vrot.slane %v465_v10, 4  ;;  %v2357_v38 = vrot.slane %v2355_v13, 4 }
  0x56   : > { %v5568_v26 = vcombine.low %v2343_v15, %v2353_v16  ;;  %v2360_v39 = vrot.slane %v2358_v18, 5  ;;  %v2366_v40 = vrot.slane %v2364_v21, 5  ;;  %v2368_v42 = vshrl.u32 %v7465_v60, 16  ;;  %v7508_v21 = vld [vmem:[%s7222_s16 + $0x70] sm:$0xf] }
  0x57   : > { %6233 = vmatprep.mubr.bf16.mxu1 %v5376_v2  ;;  %v471_v31 = vsel %vm7254_vm2, %v466_v29, %v470_v9  ;;  %v476_v44 = vrot.slane %v475_v30, 4  ;;  %v2374_v47 = vshll.u32 %v7474_v17, 16  ;;  %v483_v49 = vshrl.u32 %v7478_v25, 16  ;;  %v7052_v9 = vld [vmem:[%s7222_s16 + $0xb4] sm:$0xff]  }
  0x58   : > { %6425 = vmatprep.mubr.bf16.mxu0 %v5568_v26  ;;  %v2361_v52 = vor.u32 %v2360_v39, %v2357_v38  ;;  %v2370_v53 = vrot.slane %v2368_v42, 4  ;;  %v486_v54 = vshll.u32 %v7478_v25, 16  ;;  %v492_v55 = vshll.u32 %v7481_v35, 16 }
  0x59   : > { %v481_v48 = vsel %vm7254_vm2, %v476_v44, %v480_v34  ;;  %v2376_v56 = vrot.slane %v2374_v47, 5  ;;  %v485_v57 = vrot.slane %v483_v49, 4  ;;  %v496_v58 = vshrl.u32 %v7481_v35, 16  ;;  %v7519_v47 = vld [vmem:[%s7222_s16 + $0x78] sm:$0xf] }
  0x5a   : > { %v5377_v59 = vcombine.low %v471_v31, %v481_v48  ;;  %v2362_v61 = vrot.slane %v2361_v52, 4  ;;  %v2371_v63 = vor.u32 %v2370_v53, %v2366_v40  ;;  %v488_v1 = vrot.slane %v486_v54, 5  ;;  %v7530_v54 = vld [vmem:[%s7222_s16 + $0x7c] sm:$0xf] }
  0x5b   : > { %v494_v2 = vrot.slane %v492_v55, 5  ;;  %v498_v3 = vrot.slane %v496_v58, 4  ;;  %v502_v7 = vshll.u32 %v279_v43, 16  ;;  %v5602_v10 = vrot.slane %v5586_v50, 9  ;;  %v281_v58 = vld [vmem:[%s7222_s16 + $0x80] sm:$0x1] }
  0x5c   : > { %6234 = vmatmul.mubr.bf16.gmra.mrb[12].mxu1 %v5377_v59  ;;  %v2367_v11 = vsel %vm7254_vm2, %v2362_v61, %v2366_v40  ;;  %v2372_v12 = vrot.slane %v2371_v63, 4  ;;  %v489_v13 = vor.u32 %v488_v1, %v485_v57  ;;  %v2957_v15 = vrot.slane %v7235_v23, 5  ;;  %v280_v40 = vld [vmem:[%s7222_s16 + $0x74] sm:$0x1]  ;;  %v5587_v23 = vld [vmem:[%s7222_s16 + $0x18] sm:$0xe] }
  0x5d   : > { %v499_v16 = vor.u32 %v498_v3, %v494_v2  ;;  %v504_v18 = vrot.slane %v502_v7, 5  ;;  %v507_v26 = vshrl.u32 %v7496_v5, 16  ;;  %v510_v29 = vshll.u32 %v7496_v5, 16 }
  0x5e   : > { %v2377_v30 = vsel %vm7254_vm2, %v2372_v12, %v2376_v56  ;;  %v490_v34 = vrot.slane %v489_v13, 4  ;;  %v2958_v38 = vsel %vm7500_vm5, %v5602_v10, %v2957_v15  ;;  %v2959_v39 = vrot.slane %v2957_v15, 4  ;;  %v5588_v13 = vld [vmem:[%s7222_s16 + $0x24] sm:$0xe] }
  0x5f   : > { %v5569_v42 = vcombine.low %v2367_v11, %v2377_v30  ;;  %v500_v43 = vrot.slane %v499_v16, 4  ;;  %v509_v31 = vrot.slane %v507_v26, 4  ;;  %v512_v44 = vrot.slane %v510_v29, 5  ;;  %v7552_v16 = vld [vmem:[%s7222_s16 + $0x84] sm:$0xf]  ;;  %v6965_v29 = vld [vmem:[%s9031_s1 + $0x188] sm:$0xff]  }
  0x60   : > { %v495_v49 = vsel %vm7254_vm2, %v490_v34, %v494_v2  ;;  %v2961_v50 = vsel %vm7500_vm5, %v2959_v39, %v2960_v41  ;;  %v516_v52 = vshll.u32 %v7508_v21, 16  ;;  %v520_v53 = vshrl.u32 %v7508_v21, 16 }
  0x61   : > { %6426 = vmatmul.mubr.bf16.gmra.mrb[12].mxu0 %v5569_v42  ;;  %v505_v55 = vsel %vm7254_vm2, %v500_v43, %v504_v18  ;;  %v5618_v48 = vcombine.low %v2958_v38, %v2961_v50  ;;  %v513_v56 = vor.u32 %v512_v44, %v509_v31  ;;  %v526_v57 = vshll.u32 %v280_v40, 16  ;;  %v7560_v40 = vld [vmem:[%s7222_s16 + $0x88] sm:$0xf]  ;;  %v282_v31 = vld [vmem:[%s7222_s16 + $0x8c] sm:$0x1] }
  0x62   : > { %v5378_v59 = vcombine.low %v495_v49, %v505_v55  ;;  %v518_v24 = vrot.slane %v516_v52, 5  ;;  %v522_v61 = vrot.slane %v520_v53, 4  ;;  %v5603_v63 = vrot.slane %v5587_v23, 9 }
  0x63   : > { %6461 = vmatprep.mubr.bf16.mxu0 %v5618_v48  ;;  %v514_v41 = vrot.slane %v513_v56, 4  ;;  %v528_v1 = vrot.slane %v526_v57, 5  ;;  %v2968_v2 = vsel %vm7500_vm5, %v7303_v36, %v2967_v32  ;;  %v531_v3 = vshrl.u32 %v7519_v47, 16 }
  0x64   : > { %6237 = vmatprep.mubr.bf16.mxu1 %v5378_v59  ;;  %v523_v7 = vor.u32 %v522_v61, %v518_v24  ;;  %v2965_v10 = vsel %vm7500_vm5, %v5603_v63, %v2964_v27  ;;  %v534_v11 = vshll.u32 %v7519_v47, 16  ;;  %v540_v12 = vshll.u32 %v7530_v54, 16 }
  0x65   : > { %v519_v8 = vsel %vm7254_vm2, %v514_v41, %v518_v24  ;;  %v5619_v15 = vcombine.low %v2965_v10, %v2968_v2  ;;  %v533_v32 = vrot.slane %v531_v3, 4  ;;  %v544_v36 = vshrl.u32 %v7530_v54, 16  ;;  %v7581_v2 = vld [vmem:[%s7222_s16 + $0x90] sm:$0xf]  ;;  %v7584_v3 = vld [vmem:[%s7222_s16 + $0x94] sm:$0xf] }
  0x66   : > { %v524_v62 = vrot.slane %v523_v7, 4  ;;  %v536_v18 = vrot.slane %v534_v11, 5  ;;  %v542_v26 = vrot.slane %v540_v12, 5  ;;  %v550_v27 = vshll.u32 %v281_v58, 16 }
  0x67   : > { %v546_v30 = vrot.slane %v544_v36, 4  ;;  %v5604_v34 = vrot.slane %v5588_v13, 9  ;;  %v2971_v38 = vrot.slane %v7307_v45, 5  ;;  %v2974_v39 = vrot.slane %v7313_v51, 5  ;;  %v5589_v45 = vld [vmem:[%s7222_s16 + $0x30] sm:$0xe] }
  0x68   : > { %v529_v23 = vsel %vm7254_vm2, %v524_v62, %v528_v1  ;;  %v537_v42 = vor.u32 %v536_v18, %v533_v32  ;;  %v552_v43 = vrot.slane %v550_v27, 5  ;;  %v555_v44 = vshrl.u32 %v7552_v16, 16  ;;  %v283_v62 = vld [vmem:[%s7222_s16 + $0x98] sm:$0x1] }
  0x69   : > { %v5379_v49 = vcombine.low %v519_v8, %v529_v23  ;;  %6462 = vmatmul.mubr.bf16.vlgmr.msra.gmra.mrb[0].mxu0 %v5619_v15  ;;  %v547_v50 = vor.u32 %v546_v30, %v542_v26  ;;  %v2972_v52 = vsel %vm7500_vm5, %v5604_v34, %v2971_v38  ;;  %v2973_v53 = vrot.slane %v2971_v38, 4  ;;  %v6969_v30 = vld [vmem:[%s9031_s1 + $0x198] sm:$0xff]  }
  0x6a   : > { %6494 = vmatpush3.bf16.msra.mxu0 %v7443_v6  ;;  %v538_v51 = vrot.slane %v537_v42, 4  ;;  %v557_v55 = vrot.slane %v555_v44, 4  ;;  %v558_v48 = vshll.u32 %v7552_v16, 16  ;;  %v564_v56 = vshll.u32 %v7560_v40, 16  ;;  %v6967_v6 = vld [vmem:[%s9031_s1 + $0x190] sm:$0xff]  }
  0x6b   : > { %6238 = vmatmul.mubr.bf16.gmra.mrb[16].mxu1 %v5379_v49  ;;  %v548_v57 = vrot.slane %v547_v50, 4  ;;  %v2975_v58 = vsel %vm7500_vm5, %v2973_v53, %v2974_v39  ;;  %v568_v59 = vshrl.u32 %v7560_v40, 16  ;;  %v574_v24 = vshll.u32 %v282_v31, 16  ;;  %6495 = vmatprep.subr.bf16.mxu0 %v6965_v29  ;;  %v5590_v38 = vld [vmem:[%s7222_s16 + $0x3c] sm:$0xe] }
  0x6c   : > { %v543_v61 = vsel %vm7254_vm2, %v538_v51, %v542_v26  ;;  %v5620_v63 = vcombine.low %v2972_v52, %v2975_v58  ;;  %v560_v41 = vrot.slane %v558_v48, 5  ;;  %v566_v1 = vrot.slane %v564_v56, 5  ;;  %v7602_v31 = vld [vmem:[%s7222_s16 + $0x9c] sm:$0xf]  ;;  %v7611_v48 = vld [vmem:[%s7222_s16 + $0xa0] sm:$0xf] }
  0x6d   : > { %v553_v7 = vsel %vm7254_vm2, %v548_v57, %v552_v43  ;;  %v570_v10 = vrot.slane %v568_v59, 4  ;;  %v576_v11 = vrot.slane %v574_v24, 5  ;;  %v5605_v12 = vrot.slane %v5589_v45, 9  ;;  %v6973_v56 = vld [vmem:[%s9031_s1 + $0x1a0] sm:$0xff]  }
  0x6e   : > { %v5380_v13 = vcombine.low %v543_v61, %v553_v7  ;;  %6465 = vmatprep.mubr.bf16.mxu0 %v5620_v63  ;;  %v561_v8 = vor.u32 %v560_v41, %v557_v55  ;;  %v2978_v15 = vrot.slane %v7338_v33, 5  ;;  %v2981_v32 = vrot.slane %v7349_v46, 5  ;;  %6496 = vmatpush3.bf16.msra.mxu0 %v6965_v29  ;;  %v284_v61 = vld [vmem:[%s7222_s16 + $0xa4] sm:$0x1] }
  0x6f   : > { %v571_v36 = vor.u32 %v570_v10, %v566_v1  ;;  %v579_v18 = vshrl.u32 %v7581_v2, 16  ;;  %v582_v26 = vshll.u32 %v7581_v2, 16  ;;  %v588_v27 = vshll.u32 %v7584_v3, 16  ;;  %6497 = vmatprep.subr.bf16.mxu0 %v6967_v6 }
  0x70   : > { %6241 = vmatprep.mubr.bf16.mxu1 %v5380_v13  ;;  %v562_v34 = vrot.slane %v561_v8, 4  ;;  %v2979_v33 = vsel %vm7500_vm5, %v5605_v12, %v2978_v15  ;;  %v2980_v46 = vrot.slane %v2978_v15, 4  ;;  %v592_v29 = vshrl.u32 %v7584_v3, 16  ;;  %v5591_v15 = vld [vmem:[%s7222_s16 + $0x48] sm:$0xe] }
  0x71   : > { %v572_v39 = vrot.slane %v571_v36, 4  ;;  %v581_v23 = vrot.slane %v579_v18, 4  ;;  %v584_v42 = vrot.slane %v582_v26, 5  ;;  %v590_v43 = vrot.slane %v588_v27, 5  ;;  %v7636_v27 = vld [vmem:[%s7222_s16 + $0xa8] sm:$0xf] }
  0x72   : > { %v567_v44 = vsel %vm7254_vm2, %v562_v34, %v566_v1  ;;  %v2982_v49 = vsel %vm7500_vm5, %v2980_v46, %v2981_v32  ;;  %v594_v50 = vrot.slane %v592_v29, 4  ;;  %v598_v52 = vshll.u32 %v283_v62, 16  ;;  %6498 = vmatpush3.bf16.msra.mxu0 %v6967_v6  ;;  %v6977_v32 = vld [vmem:[%s9031_s1 + $0x1a8] sm:$0xff]  }
  0x73   : > { %v577_v53 = vsel %vm7254_vm2, %v572_v39, %v576_v11  ;;  %v5621_v45 = vcombine.low %v2979_v33, %v2982_v49  ;;  %v585_v51 = vor.u32 %v584_v42, %v581_v23  ;;  %v5606_v55 = vrot.slane %v5590_v38, 9  ;;  %6499 = vmatprep.subr.bf16.mxu0 %v6969_v30  ;;  %v7639_v29 = vld [vmem:[%s7222_s16 + $0xac] sm:$0xf] }
  0x74   : > { %v5381_v57 = vcombine.low %v567_v44, %v577_v53  ;;  %v595_v58 = vor.u32 %v594_v50, %v590_v43  ;;  %v600_v59 = vrot.slane %v598_v52, 5  ;;  %v2985_v24 = vrot.slane %v7372_v19, 5  ;;  %v5592_v53 = vld [vmem:[%s7222_s16 + $0x54] sm:$0xe] }
  0x75   : > { %6466 = vmatmul.mubr.bf16.gmra.mrb[4].mxu0 %v5621_v45  ;;  %v586_v6 = vrot.slane %v585_v51, 4  ;;  %v2988_v63 = vrot.slane %v7380_v28, 5  ;;  %v603_v41 = vshrl.u32 %v7602_v31, 16  ;;  %v606_v1 = vshll.u32 %v7602_v31, 16  ;;  %v6981_v45 = vld [vmem:[%s9031_s1 + $0x1b0] sm:$0xff]  }
  0x76   : > { %6242 = vmatmul.mubr.bf16.gmra.mrb[20].mxu1 %v5381_v57  ;;  %v596_v7 = vrot.slane %v595_v58, 4  ;;  %v2986_v10 = vsel %vm7500_vm5, %v5606_v55, %v2985_v24  ;;  %v2987_v11 = vrot.slane %v2985_v24, 4  ;;  %v612_v12 = vshll.u32 %v7611_v48, 16  ;;  %6500 = vmatpush3.bf16.msra.mxu0 %v6969_v30 }
  0x77   : > { %v591_v19 = vsel %vm7254_vm2, %v586_v6, %v590_v43  ;;  %v605_v13 = vrot.slane %v603_v41, 4  ;;  %v608_v28 = vrot.slane %v606_v1, 5  ;;  %v616_v8 = vshrl.u32 %v7611_v48, 16  ;;  %6501 = vmatprep.subr.bf16.mxu0 %v6973_v56  ;;  %v285_v43 = vld [vmem:[%s7222_s16 + $0xb0] sm:$0x1] }
  0x78   : > { %v601_v36 = vsel %vm7254_vm2, %v596_v7, %v600_v59  ;;  %v2989_v62 = vsel %vm7500_vm5, %v2987_v11, %v2988_v63  ;;  %v614_v18 = vrot.slane %v612_v12, 5  ;;  %v622_v26 = vshll.u32 %v284_v61, 16  ;;  %v7659_v41 = vld [vmem:[%s7222_s16 + $0xb4] sm:$0xf]  ;;  %v7664_v12 = vld [vmem:[%s7222_s16 + $0xb8] sm:$0xf] }
  0x79   : > { %v5382_v30 = vcombine.low %v591_v19, %v601_v36  ;;  %v5622_v34 = vcombine.low %v2986_v10, %v2989_v62  ;;  %v609_v33 = vor.u32 %v608_v28, %v605_v13  ;;  %v618_v46 = vrot.slane %v616_v8, 4  ;;  %v286_v19 = vld [vmem:[%s7222_s16 + $0xbc] sm:$0x1] }
  0x7a   : > { %v624_v38 = vrot.slane %v622_v26, 5  ;;  %v5607_v39 = vrot.slane %v5591_v15, 9  ;;  %v2992_v23 = vrot.slane %v7407_v14, 5  ;;  %v2995_v42 = vrot.slane %v7413_v22, 5  ;;  %6502 = vmatpush3.bf16.msra.mxu0 %v6973_v56  ;;  %v6985_v13 = vld [vmem:[%s9031_s1 + $0x1b8] sm:$0xff]  }
  0x7b   : > { %6245 = vmatprep.mubr.bf16.mxu1 %v5382_v30  ;;  %6469 = vmatprep.mubr.bf16.mxu0 %v5622_v34  ;;  %v610_v44 = vrot.slane %v609_v33, 4  ;;  %v619_v49 = vor.u32 %v618_v46, %v614_v18  ;;  %v627_v50 = vshrl.u32 %v7636_v27, 16  ;;  %v630_v52 = vshll.u32 %v7636_v27, 16  ;;  %v5593_v30 = vld [vmem:[%s7222_s16 + $0x60] sm:$0xe] }
  0x7c   : > { %v2993_v14 = vsel %vm7500_vm5, %v5607_v39, %v2992_v23  ;;  %v2994_v22 = vrot.slane %v2992_v23, 4  ;;  %v636_v51 = vshll.u32 %v7639_v29, 16  ;;  %v640_v55 = vshrl.u32 %v7639_v29, 16  ;;  %6503 = vmatprep.subr.bf16.mxu0 %v6977_v32  ;;  %v5539_v39 = vld [vmem:[%s7222_s16 + $0x70] sm:$0xf] }
  0x7d   : > { %v615_v56 = vsel %vm7254_vm2, %v610_v44, %v614_v18  ;;  %v620_v57 = vrot.slane %v619_v49, 4  ;;  %v629_v58 = vrot.slane %v627_v50, 4  ;;  %v632_v59 = vrot.slane %v630_v52, 5  ;;  %v7686_v44 = vld [vmem:[%s9031_s1 + $0x1c0] sm:$0xff]  }
  0x7e   : > { %v2996_v24 = vsel %vm7500_vm5, %v2994_v22, %v2995_v42  ;;  %v638_v61 = vrot.slane %v636_v51, 5  ;;  %v642_v6 = vrot.slane %v640_v55, 4  ;;  %v646_v63 = vshll.u32 %v285_v43, 16  ;;  %6504 = vmatpush3.bf16.msra.mxu0 %v6977_v32  ;;  %v5594_v43 = vld [vmem:[%s7222_s16 + $0x6c] sm:$0xe] }
  0x7f   : > { %v625_v1 = vsel %vm7254_vm2, %v620_v57, %v624_v38  ;;  %v5623_v7 = vcombine.low %v2993_v14, %v2996_v24  ;;  %v633_v10 = vor.u32 %v632_v59, %v629_v58  ;;  %v5608_v11 = vrot.slane %v5592_v53, 9  ;;  %6505 = vmatprep.subr.bf16.mxu0 %v6981_v45  ;;  %v5540_v55 = vld [vmem:[%s7222_s16 + $0x74] sm:$0x1]  ;;  %v5595_v24 = vld [vmem:[%s7222_s16 + $0x78] sm:$0xe] }
  0x80   : > { %v5383_v28 = vcombine.low %v615_v56, %v625_v1  ;;  %v643_v8 = vor.u32 %v642_v6, %v638_v61  ;;  %v648_v15 = vrot.slane %v646_v63, 5  ;;  %v2999_v32 = vrot.slane %v7438_v0, 5 }
  0x81   : > { %6470 = vmatmul.mubr.bf16.gmra.mrb[8].mxu0 %v5623_v7  ;;  %v634_v36 = vrot.slane %v633_v10, 4  ;;  %v3002_v62 = vrot.slane %v7450_v20, 5  ;;  %v651_v18 = vshrl.u32 %v7659_v41, 16  ;;  %v654_v26 = vshll.u32 %v7659_v41, 16 }
  0x82   : > { %6246 = vmatmul.mubr.bf16.gmra.mrb[24].mxu1 %v5383_v28  ;;  %v644_v34 = vrot.slane %v643_v8, 4  ;;  %v3000_v33 = vsel %vm7500_vm5, %v5608_v11, %v2999_v32  ;;  %v3001_v46 = vrot.slane %v2999_v32, 4  ;;  %v660_v38 = vshll.u32 %v7664_v12, 16  ;;  %6506 = vmatpush3.bf16.msra.mxu0 %v6981_v45  ;;  %v7699_v11 = vld [vmem:[%s7222_s16 + $0x7c] sm:$0xf] }
  0x83   : > { %v639_v0 = vsel %vm7254_vm2, %v634_v36, %v638_v61  ;;  %v653_v20 = vrot.slane %v651_v18, 4  ;;  %v656_v23 = vrot.slane %v654_v26, 5  ;;  %v664_v42 = vshrl.u32 %v7664_v12, 16  ;;  %6507 = vmatprep.subr.bf16.mxu0 %v6985_v13  ;;  %v7054_v36 = vld [vmem:[%s7222_s16] sm:$0xf] }
  0x84   : > { %v649_v49 = vsel %vm7254_vm2, %v644_v34, %v648_v15  ;;  %v3003_v50 = vsel %vm7500_vm5, %v3001_v46, %v3002_v62  ;;  %v662_v52 = vrot.slane %v660_v38, 5  ;;  %v670_v53 = vshll.u32 %v286_v19, 16  ;;  %v5545_v15 = vld [vmem:[%s7222_s16 + $0x88] sm:$0xf]  ;;  %v7714_v62 = vld [vmem:[%s7222_s16 + $0x4] sm:$0xf] }
  0x85   : > { %v5384_v45 = vcombine.low %v639_v0, %v649_v49  ;;  %v5624_v14 = vcombine.low %v3000_v33, %v3003_v50  ;;  %v657_v22 = vor.u32 %v656_v23, %v653_v20  ;;  %v666_v51 = vrot.slane %v664_v42, 4  ;;  %v5546_v26 = vld [vmem:[%s7222_s16 + $0x8c] sm:$0x1]  ;;  %v5549_v23 = vld [vmem:[%s7222_s16 + $0x98] sm:$0x1] }
  0x86   : > { %v672_v56 = vrot.slane %v670_v53, 5  ;;  %v5609_v57 = vrot.slane %v5593_v30, 9  ;;  %v3006_v58 = vrot.slane %v7465_v60, 5  ;;  %v3009_v59 = vrot.slane %v7474_v17, 5  ;;  %6508 = vmatpush3.bf16.msra.mxu0 %v6985_v13  ;;  %v7702_v17 = vld [vmem:[%s7222_s16 + $0x80] sm:$0x1] }
  0x87   : > { %6249 = vmatprep.mubr.bf16.mxu1 %v5384_v45  ;;  %6473 = vmatprep.mubr.bf16.mxu0 %v5624_v14  ;;  %v658_v61 = vrot.slane %v657_v22, 4  ;;  %v667_v6 = vor.u32 %v666_v51, %v662_v52  ;;  %v5610_v63 = vrot.slane %v5594_v43, 9  ;;  %v3013_v1 = vrot.slane %v5539_v39, 5  ;;  %v5596_v30 = vld [vmem:[%s7222_s16 + $0x84] sm:$0xe] }
  0x88   : > { %v3007_v7 = vsel %vm7500_vm5, %v5609_v57, %v3006_v58  ;;  %v3008_v10 = vrot.slane %v3006_v58, 4  ;;  %v3016_v60 = vrot.slane %v5540_v55, 5  ;;  %6541 = vmatprep.subr.bf16.mxu0 %v7686_v44  ;;  %v5394_v18 = vcombine.low %v7054_v36, %v7714_v62  ;;  %v5548_v39 = vld [vmem:[%s7222_s16 + $0x94] sm:$0xf]  ;;  %v5597_v42 = vld [vmem:[%s7222_s16 + $0x90] sm:$0xe] }
  0x89   : > { %v663_v19 = vsel %vm7254_vm2, %v658_v61, %v662_v52  ;;  %v668_v13 = vrot.slane %v667_v6, 4  ;;  %v3014_v28 = vsel %vm7500_vm5, %v5610_v63, %v3013_v1  ;;  %v3015_v8 = vrot.slane %v3013_v1, 4  ;;  %v5598_v50 = vld [vmem:[%s7222_s16 + $0x9c] sm:$0xe]  ;;  %v5551_v14 = vld [vmem:[%s7222_s16 + $0xa0] sm:$0xf] }
  0x8a   : > { %v3010_v32 = vsel %vm7500_vm5, %v3008_v10, %v3009_v59  ;;  %v5611_v38 = vrot.slane %v5595_v24, 9  ;;  %v3020_v43 = vrot.slane %v7699_v11, 5  ;;  %v3023_v49 = vrot.slane %v7702_v17, 5  ;;  %v5552_v22 = vld [vmem:[%s7222_s16 + $0xa4] sm:$0x1] }
  0x8b   : > { %v673_v34 = vsel %vm7254_vm2, %v668_v13, %v672_v56  ;;  %v5625_v33 = vcombine.low %v3007_v7, %v3010_v32  ;;  %v3017_v46 = vsel %vm7500_vm5, %v3015_v8, %v3016_v60  ;;  %v5612_v52 = vrot.slane %v5596_v30, 9  ;;  %v5554_v59 = vld [vmem:[%s7222_s16 + $0xac] sm:$0xf]  ;;  %v7738_v61 = vld [vmem:[%s7222_s16 + $0x10] sm:$0xf] }
  0x8c   : > { %v5385_v0 = vcombine.low %v663_v19, %v673_v34  ;;  %v5626_v20 = vcombine.low %v3014_v28, %v3017_v46  ;;  %v3027_v53 = vrot.slane %v5545_v15, 5  ;;  %v3030_v45 = vrot.slane %v5546_v26, 5  ;;  %v7056_v24 = vld [vmem:[%s7222_s16 + $0xc] sm:$0xf]  ;;  %v7058_v8 = vld [vmem:[%s7222_s16 + $0x18] sm:$0xf] }
  0x8d   : > { %6474 = vmatmul.mubr.bf16.gmra.mrb[12].mxu0 %v5625_v33  ;;  %v3021_v51 = vsel %vm7500_vm5, %v5611_v38, %v3020_v43  ;;  %v3022_v55 = vrot.slane %v3020_v43, 4  ;;  %v3034_v58 = vrot.slane %v5548_v39, 5  ;;  %v5395_v6 = vcombine.low %v7056_v24, %v7738_v61  ;;  %v6976_v19 = vld [vmem:[%s9031_s1 + $0x88] sm:$0xff]   ;;  %v7750_v15 = vld [vmem:[%s7222_s16 + $0x1c] sm:$0xf] }
  0x8e   : > { %6250 = vmatmul.mubr.bf16.gmra.mrb[28].mxu1 %v5385_v0  ;;  %6477 = vmatprep.mubr.bf16.mxu0 %v5626_v20  ;;  %v3028_v56 = vsel %vm7500_vm5, %v5612_v52, %v3027_v53  ;;  %v3029_v57 = vrot.slane %v3027_v53, 4  ;;  %v5613_v1 = vrot.slane %v5597_v42, 9  ;;  %v3037_v7 = vrot.slane %v5549_v23, 5  ;;  %v5555_v30 = vld [vmem:[%s7222_s16 + $0xb0] sm:$0x1] }
  0x8f   : > { %6269 = vmatprep.mubr.bf16.mxu1 %v5394_v18  ;;  %v3024_v63 = vsel %vm7500_vm5, %v3022_v55, %v3023_v49  ;;  %v3036_v13 = vrot.slane %v3034_v58, 4  ;;  %v5614_v28 = vrot.slane %v5598_v50, 9  ;;  %v5396_v32 = vcombine.low %v7058_v8, %v7750_v15  ;;  %v5599_v34 = vld [vmem:[%s7222_s16 + $0xa8] sm:$0xe]  ;;  %v5557_v33 = vld [vmem:[%s7222_s16 + $0xb8] sm:$0xf] }
  0x90   : > { %v5627_v10 = vcombine.low %v3021_v51, %v3024_v63  ;;  %v3031_v60 = vsel %vm7500_vm5, %v3029_v57, %v3030_v45  ;;  %v3041_v18 = vrot.slane %v5551_v14, 5  ;;  %v3044_v26 = vrot.slane %v5552_v22, 5  ;;  %v5558_v20 = vld [vmem:[%s7222_s16 + $0xbc] sm:$0x1]  ;;  %v5600_v23 = vld [vmem:[%s7222_s16 + $0xb4] sm:$0xe] }
  0x91   : > { %v5628_v36 = vcombine.low %v3028_v56, %v3031_v60  ;;  %v3048_v38 = vrot.slane %v5554_v59, 5  ;;  %v3035_v39 = vsel %vm7500_vm5, %v5613_v1, %v3034_v58  ;;  %v3038_v0 = vsel %vm7500_vm5, %v3036_v13, %v3037_v7  ;;  %v6980_v50 = vld [vmem:[%s9031_s1 + $0x90] sm:$0xff]   ;;  %v5560_v53 = vld [vmem:[%s7222_s16 + $0xc4] sm:$0xf]  ;;  %v7773_v51 = vld [vmem:[%s7222_s16 + $0x28] sm:$0xf] }
  0x92   : > { %v3043_v46 = vrot.slane %v3041_v18, 4  ;;  %v3042_v42 = vsel %vm7500_vm5, %v5614_v28, %v3041_v18  ;;  %v3055_v49 = vrot.slane %v5557_v33, 5  ;;  %v5615_v52 = vrot.slane %v5599_v34, 9  ;;  %v7060_v22 = vld [vmem:[%s7222_s16 + $0x24] sm:$0xf]  ;;  %v6984_v1 = vld [vmem:[%s9031_s1 + $0x98] sm:$0xff]  }
  0x93   : > { %v5629_v45 = vcombine.low %v3035_v39, %v3038_v0  ;;  %v3050_v14 = vrot.slane %v3048_v38, 4  ;;  %v5397_v55 = vcombine.low %v7060_v22, %v7773_v51  ;;  %v7062_v57 = vld [vmem:[%s7222_s16 + $0x30] sm:$0xf]  ;;  %v7778_v58 = vld [vmem:[%s7222_s16 + $0x34] sm:$0xf]  ;;  %v5616_v24 = vrot.slane %v5600_v23, 9 }
  0x94   : > { %v3045_v43 = vsel %vm7500_vm5, %v3043_v46, %v3044_v26  ;;  %v5398_v59 = vcombine.low %v7062_v57, %v7778_v58  ;;  %v3058_v63 = vrot.slane %v5558_v20, 5  ;;  %v5601_v7 = vld [vmem:[%s7222_s16 + $0xc0] sm:$0xe]  ;;  %v3049_v60 = vsel %vm7500_vm5, %v5615_v52, %v3048_v38  ;;  %v5561_v8 = vld [vmem:[%s7222_s16 + $0xc8] sm:$0x1]  ;;  %v6987_v22 = vld [vmem:[%s7222_s16 + $0x18] sm:$0xff]  }
  0x95   : > { %6478 = vmatmul.mubr.bf16.gmra.mrb[16].mxu0 %v5627_v10  ;;  %v5630_v56 = vcombine.low %v3042_v42, %v3045_v43  ;;  %v3062_v10 = vrot.slane %v5560_v53, 5  ;;  %v3056_v13 = vsel %vm7500_vm5, %v5616_v24, %v3055_v49  ;;  %v5617_v18 = vrot.slane %v5601_v7, 9  ;;  %v7064_v26 = vld [vmem:[%s7222_s16 + $0x3c] sm:$0xf]  ;;  %v7066_v39 = vld [vmem:[%s7222_s16 + $0x48] sm:$0xf] }
  0x96   : > { %6270 = vmatmul.mubr.bf16.vlgmr.msra.gmra.mrb[0].mxu1 %v5395_v6  ;;  %6481 = vmatprep.mubr.bf16.mxu0 %v5628_v36  ;;  %v3057_v6 = vrot.slane %v3055_v49, 4  ;;  %v3065_v38 = vrot.slane %v5561_v8, 5  ;;  %v7804_v0 = vld [vmem:[%s7222_s16 + $0x4c] sm:$0xf]  ;;  %v7001_v49 = vld [vmem:[%s9031_s1 + $0xb0] sm:$0xff]   ;;  %v2416_v52 = vshrl.u32 %v7699_v11, 16 }
  0x97   : > { %6302 = vmatpush3.bf16.msra.mxu1 %v7424_v4  ;;  %6273 = vmatprep.mubr.bf16.mxu1 %v5396_v32  ;;  %v3051_v4 = vrot.slane %v5555_v30, 5  ;;  %v6989_v32 = vld [vmem:[%s9031_s1 + $0xa0] sm:$0xff]   ;;  %v3064_v46 = vrot.slane %v3062_v10, 4  ;;  %v5400_v20 = vcombine.low %v7066_v39, %v7804_v0  ;;  %v6995_v23 = vld [vmem:[%s9031_s1 + $0xa8] sm:$0xff]   ;;  %v3063_v42 = vsel %vm7500_vm5, %v5617_v18, %v3062_v10  ;;  %v6993_v18 = vld [vmem:[%s7222_s16 + $0x30] sm:$0xff]  }
  0x98   : > { %6303 = vmatprep.subr.bf16.mxu1 %v6976_v19  ;;  %v3059_v28 = vsel %vm7500_vm5, %v3057_v6, %v3058_v63  ;;  %v7799_v30 = vld [vmem:[%s7222_s16 + $0x40] sm:$0xf]  ;;  %v7832_v57 = vrot.slane %v2416_v52, 4  ;;  %v6990_v6 = vld [vmem:[%s7222_s16 + $0x24] sm:$0xff]   ;;  %v1328_v7 = vrot.slane %v7738_v61, 5  ;;  %v2422_v8 = vshll.u32 %v7702_v17, 16 }
  0x99   : > { %v5399_v34 = vcombine.low %v7064_v26, %v7799_v30  ;;  %v5632_v33 = vcombine.low %v3056_v13, %v3059_v28  ;;  %v3066_v43 = vsel %vm7500_vm5, %v3064_v46, %v3065_v38  ;;  %v1268_v63 = vld [vmem:[%s7222_s16] sm:$0xe]  ;;  %v1269_v10 = vld [vmem:[%s7222_s16 + $0xc] sm:$0xe]  ;;  %v1335_v13 = vrot.slane %v7750_v15, 5 }
  0x9a   : > { %v5633_v53 = vcombine.low %v3063_v42, %v3066_v43  ;;  %v1271_v61 = vld [vmem:[%s7222_s16 + $0x24] sm:$0xe]  ;;  %v5405_v15 = vcombine.low %v7552_v16, %v7560_v40  ;;  %v5406_v26 = vcombine.low %v7581_v2, %v7584_v3  ;;  %v5418_v17 = vrot.slane %v1268_v63, 9  ;;  %v7072_v38 = vld [vmem:[%s7222_s16 + $0x20] sm:$0x1]  ;;  %v7002_v2 = vld [vmem:[%s7222_s16 + $0x54] sm:$0xff]  }
  0x9b   : > { %6304 = vmatpush3.bf16.msra.mxu1 %v6976_v19  ;;  %v3052_v19 = vsel %vm7500_vm5, %v3050_v14, %v3051_v4  ;;  %v7821_v14 = vld [vmem:[%s7222_s16 + $0x58] sm:$0xf]  ;;  %v1337_v46 = vrot.slane %v1335_v13, 4  ;;  %v1338_v39 = vrot.slane %v7072_v38, 5  ;;  %v7073_v43 = vld [vmem:[%s7222_s16 + $0x2c] sm:$0x1] }
  0x9c   : > { %6305 = vmatprep.subr.bf16.mxu1 %v6980_v50  ;;  %v5631_v36 = vcombine.low %v3049_v60, %v3052_v19  ;;  %v7847_v60 = vld [vmem:[%s9031_s1 + $0xc0] sm:$0xff]   ;;  %v1270_v19 = vld [vmem:[%s7222_s16 + $0x18] sm:$0xe]  ;;  %v7076_v38 = vld [vmem:[%s7222_s16 + $0x50] sm:$0x1]  ;;  %v1370_v16 = vrot.slane %v7821_v14, 5 }
  0x9d   : > { %6482 = vmatmul.mubr.bf16.gmra.mrb[20].mxu0 %v5629_v45  ;;  %v7068_v45 = vld [vmem:[%s7222_s16 + $0x54] sm:$0xf]  ;;  %v7970_v40 = vld [vmem:[%s7222_s16 + $0x64] sm:$0xf] }
  0x9e   : > { %6274 = vmatmul.mubr.bf16.gmra.mrb[4].mxu1 %v5397_v55  ;;  %6485 = vmatprep.mubr.bf16.mxu0 %v5630_v56  ;;  %v5401_v4 = vcombine.low %v7068_v45, %v7821_v14  ;;  %v5402_v55 = vcombine.low %v7478_v25, %v7481_v35  ;;  %v7007_v56 = vld [vmem:[%s9031_s1 + $0xb8] sm:$0xff]   ;;  %v7071_v25 = vld [vmem:[%s7222_s16 + $0x14] sm:$0x1]  ;;  %v7005_v3 = vld [vmem:[%s7222_s16 + $0x60] sm:$0xff]  }
  0x9f   : > { %6277 = vmatprep.mubr.bf16.mxu1 %v5398_v59  ;;  %6306 = vmatpush3.bf16.msra.mxu1 %v6980_v50  ;;  %v2412_v50 = vshll.u32 %v7699_v11, 16  ;;  %v7835_v59 = vld [vmem:[%s7222_s16 + $0x8] sm:$0x1]  ;;  %v1331_v35 = vrot.slane %v7071_v25, 5 }
  0xa0   : > { %6307 = vmatprep.subr.bf16.mxu1 %v6984_v1  ;;  %v1324_v24 = vrot.slane %v7835_v59, 5 }
  0xa1   : > { %v7830_v11 = vrot.slane %v2412_v50, 5 }
  0xa3   : > { %6308 = vmatpush3.bf16.msra.mxu1 %v6984_v1  ;;  %v1321_v1 = vrot.slane %v7714_v62, 5  ;;  %v5403_v62 = vcombine.low %v7496_v5, %v7508_v21  ;;  %v5419_v21 = vrot.slane %v1269_v10, 9  ;;  %v5698_v10 = vld [vmem:[%s7222_s16 + $0x18] sm:$0xf] }
  0xa4   : > { %6309 = vmatprep.subr.bf16.mxu1 %v6989_v32 }
  0xa5   : > { %6486 = vmatmul.mubr.bf16.gmra.mrb[24].mxu0 %v5631_v36  ;;  %v5404_v36 = vcombine.low %v7519_v47, %v7530_v54  ;;  %v1323_v5 = vrot.slane %v1321_v1, 4  ;;  %v6997_v47 = vld [vmem:[%s9031_s1 + $0x1c8] sm:$0xff]   ;;  %v5420_v54 = vrot.slane %v1270_v19, 9  ;;  %v7890_v59 = vsel %vm7500_vm5, %v5418_v17, %v1321_v1  ;;  %v5699_v19 = vld [vmem:[%s7222_s16 + $0x1c] sm:$0xf] }
  0xa6   : > { %6278 = vmatmul.mubr.bf16.gmra.mrb[8].mxu1 %v5399_v34  ;;  %6489 = vmatprep.mubr.bf16.mxu0 %v5632_v33  ;;  %v1349_v34 = vrot.slane %v7778_v58, 5  ;;  %v1330_v33 = vrot.slane %v1328_v7, 4  ;;  %v5421_v58 = vrot.slane %v1271_v61, 9  ;;  %v1363_v1 = vrot.slane %v7804_v0, 5  ;;  %v6999_v0 = vld [vmem:[%s7222_s16 + $0x48] sm:$0xff]  }
  0xa7   : > { %6281 = vmatprep.mubr.bf16.mxu1 %v5400_v20  ;;  %6310 = vmatpush3.bf16.msra.mxu1 %v6989_v32  ;;  %v1342_v32 = vrot.slane %v7773_v51, 5  ;;  %v1272_v51 = vld [vmem:[%s7222_s16 + $0x30] sm:$0xe]  ;;  %v5407_v20 = vcombine.low %v7602_v31, %v7611_v48  ;;  %v7898_v25 = vsel %vm7500_vm5, %v1323_v5, %v1324_v24  ;;  %v7906_v63 = vsel %vm7500_vm5, %v5420_v54, %v1335_v13  ;;  %v1274_v13 = vld [vmem:[%s7222_s16 + $0x48] sm:$0xe] }
  0xa8   : > { %6311 = vmatprep.subr.bf16.mxu1 %v6995_v23  ;;  %v5422_v50 = vrot.slane %v1272_v51, 9  ;;  %v1351_v52 = vrot.slane %v1349_v34, 4  ;;  %v3823_v5 = vshrl.u32 %v5698_v10, 16  ;;  %v3836_v51 = vshrl.u32 %v5699_v19, 16  ;;  %v7008_v48 = vld [vmem:[%s7222_s16 + $0x6c] sm:$0xff]  }
  0xa9   : > { %v1344_v42 = vrot.slane %v1342_v32, 4  ;;  %v7918_v24 = vsel %vm7500_vm5, %v5421_v58, %v1342_v32  ;;  %v7075_v32 = vld [vmem:[%s7222_s16 + $0x44] sm:$0x1]  ;;  %v5424_v54 = vrot.slane %v1274_v13, 9  ;;  %v5702_v13 = vld [vmem:[%s7222_s16 + $0x28] sm:$0xf] }
  0xaa   : > { %v7928_v61 = vsel %vm7500_vm5, %v5422_v50, %v1349_v34  ;;  %v1359_v17 = vrot.slane %v7075_v32, 5  ;;  %v5700_v50 = vld [vmem:[%s7222_s16 + $0x20] sm:$0x1]  ;;  %v1276_v32 = vld [vmem:[%s7222_s16 + $0x60] sm:$0xe] }
  0xab   : > { %6312 = vmatpush3.bf16.msra.mxu1 %v6995_v23  ;;  %v5408_v23 = vcombine.low %v7636_v27, %v7639_v29 }
  0xac   : > { %6313 = vmatprep.subr.bf16.mxu1 %v7001_v49 }
  0xad   : > { %6490 = vmatmul.mubr.bf16.gmra.mrb[28].mxu0 %v5633_v53  ;;  %v7074_v53 = vld [vmem:[%s7222_s16 + $0x38] sm:$0x1] }
  0xae   : > { %6282 = vmatmul.mubr.bf16.gmra.mrb[12].mxu1 %v5401_v4  ;;  %6509 = vmatprep.mubr.bf16.mxu0 %v6987_v22  ;;  %v1352_v45 = vrot.slane %v7074_v53, 5  ;;  %v1273_v4 = vld [vmem:[%s7222_s16 + $0x3c] sm:$0xe]  ;;  %v1356_v22 = vrot.slane %v7799_v30, 5  ;;  %v7894_v30 = vsel %vm7500_vm5, %v5419_v21, %v1328_v7  ;;  %v3826_v21 = vshll.u32 %v5698_v10, 16  ;;  %v7013_v53 = vld [vmem:[%s9031_s1 + $0x1e0] sm:$0xff]  }
  0xaf   : > { %6285 = vmatprep.mubr.bf16.mxu1 %v5402_v55  ;;  %6314 = vmatpush3.bf16.msra.mxu1 %v7001_v49  ;;  %v1345_v49 = vrot.slane %v7073_v43, 5  ;;  %v7881_v55 = vrot.slane %v2422_v8, 5  ;;  %v6996_v7 = vld [vmem:[%s7222_s16 + $0x3c] sm:$0xff]   ;;  %v7914_v8 = vsel %vm7500_vm5, %v1337_v46, %v1338_v39  ;;  %v1365_v46 = vrot.slane %v1363_v1, 4  ;;  %v5704_v43 = vld [vmem:[%s7222_s16 + $0x30] sm:$0xf] }
  0xb0   : > { %6315 = vmatprep.subr.bf16.mxu1 %v7007_v56  ;;  %v1366_v39 = vrot.slane %v7076_v38, 5  ;;  %v3825_v10 = vrot.slane %v3823_v5, 4 }
  0xb1   : > { %9052 = vst [vmem:[#allocation2_spill] sm:$0xff] %v7881_v55 }
  0xb3   : > { %6316 = vmatpush3.bf16.msra.mxu1 %v7007_v56  ;;  %v7003_v56 = vld [vmem:[%s9031_s1 + $0x1d0] sm:$0xff]  }
  0xb4   : > { %6349 = vmatprep.subr.bf16.mxu1 %v7847_v60 }
  0xb5   : > { %6510 = vmatmul.mubr.bf16.vlgmr.msra.gmra.mrb[0].mxu0 %v6990_v6  ;;  %v7902_v6 = vsel %vm7500_vm5, %v1330_v33, %v1331_v35  ;;  %v7922_v35 = vsel %vm7500_vm5, %v1344_v42, %v1345_v49  ;;  %v3832_v33 = vshll.u32 %v5699_v19, 16  ;;  %v3828_v19 = vrot.slane %v3826_v21, 5  ;;  %v1277_v21 = vld [vmem:[%s7222_s16 + $0x6c] sm:$0xe] }
  0xb6   : > { %6286 = vmatmul.mubr.bf16.gmra.mrb[16].mxu1 %v5403_v62  ;;  %6542 = vmatpush3.bf16.msra.mxu0 %v7686_v44  ;;  %v5423_v62 = vrot.slane %v1273_v4, 9  ;;  %v5427_v58 = vrot.slane %v1277_v21, 9 }
  0xb7   : > { %6289 = vmatprep.mubr.bf16.mxu1 %v5404_v36  ;;  %6513 = vmatprep.mubr.bf16.mxu0 %v6993_v18  ;;  %v7932_v36 = vsel %vm7500_vm5, %v1351_v52, %v1352_v45  ;;  %v1358_v18 = vrot.slane %v1356_v22, 4  ;;  %v5701_v52 = vld [vmem:[%s7222_s16 + $0x24] sm:$0xf]  ;;  %v3860_v45 = vshrl.u32 %v5702_v13, 16 }
  0xb8   : > { %6543 = vmatprep.subr.bf16.mxu0 %v6997_v47  ;;  %v7949_v49 = vsel %vm7500_vm5, %v5423_v62, %v1356_v22  ;;  %v7966_v22 = vld [vmem:[%s7222_s16 + $0x54] sm:$0xe]  ;;  %v3838_v62 = vrot.slane %v3836_v51, 4  ;;  %v3847_v38 = vshrl.u32 %v5701_v52, 16  ;;  %v3850_v28 = vshll.u32 %v5701_v52, 16 }
  0xb9   : > { %v7963_v4 = vsel %vm7500_vm5, %v1358_v18, %v1359_v17  ;;  %v3842_v17 = vshll.u32 %v5700_v50, 16  ;;  %v5425_v5 = vrot.slane %v7966_v22, 9  ;;  %v7017_v50 = vld [vmem:[%s9031_s1 + $0x1e8] sm:$0xff]   ;;  %v1372_v52 = vrot.slane %v1370_v16, 4 }
  0xba   : > { %6544 = vmatpush3.bf16.msra.mxu0 %v6997_v47  ;;  %v7009_v47 = vld [vmem:[%s9031_s1 + $0x1d8] sm:$0xff]   ;;  %v3829_v22 = vor.u32 %v3828_v19, %v3825_v10  ;;  %v3849_v34 = vrot.slane %v3847_v38, 4  ;;  %v3852_v44 = vrot.slane %v3850_v28, 5  ;;  %v7081_v10 = vld [vmem:[%s7222_s16 + $0x74] sm:$0x1]  ;;  %v3862_v28 = vrot.slane %v3860_v45, 4 }
  0xbb   : > { %6545 = vmatprep.subr.bf16.mxu0 %v7003_v56  ;;  %v8004_v42 = vrot.slane %v3842_v17, 5  ;;  %v1387_v19 = vrot.slane %v7081_v10, 5  ;;  %v3871_v38 = vshrl.u32 %v5704_v43, 16  ;;  %v8029_v27 = vsel %vm7500_vm5, %v5425_v5, %v1370_v16 }
  0xbc   : > { %v3830_v21 = vrot.slane %v3829_v22, 4 }
  0xbd   : > { %6514 = vmatmul.mubr.bf16.gmra.mrb[4].mxu0 %v6996_v7  ;;  %v7976_v7 = vrot.slane %v3832_v33, 5  ;;  %v7079_v33 = vld [vmem:[%s7222_s16 + $0x70] sm:$0xf] }
  0xbe   : > { %6290 = vmatmul.mubr.bf16.gmra.mrb[20].mxu1 %v5405_v15  ;;  %6517 = vmatprep.mubr.bf16.mxu0 %v6999_v0  ;;  %v1377_v15 = vrot.slane %v7970_v40, 5  ;;  %v7078_v0 = vld [vmem:[%s7222_s16 + $0x5c] sm:$0x1]  ;;  %v1384_v51 = vrot.slane %v7079_v33, 5 }
  0xbf   : > { %6293 = vmatprep.mubr.bf16.mxu1 %v5406_v26  ;;  %6546 = vmatpush3.bf16.msra.mxu0 %v7003_v56  ;;  %v1373_v18 = vrot.slane %v7078_v0, 5  ;;  %v7985_v26 = vsel %vm7500_vm5, %v5424_v54, %v1363_v1  ;;  %v7989_v56 = vsel %vm7500_vm5, %v1365_v46, %v1366_v39  ;;  %v7080_v1 = vld [vmem:[%s7222_s16 + $0x68] sm:$0x1]  ;;  %v3856_v0 = vshll.u32 %v5702_v13, 16  ;;  %v7025_v40 = vld [vmem:[%s9031_s1 + $0x1f8] sm:$0xff]  }
  0xc0   : > { %6547 = vmatprep.subr.bf16.mxu0 %v7009_v47  ;;  %v1380_v54 = vrot.slane %v7080_v1, 5  ;;  %v5426_v46 = vrot.slane %v1276_v32, 9  ;;  %v1379_v39 = vrot.slane %v1377_v15, 4  ;;  %v3839_v33 = vor.u32 %v3838_v62, %v7976_v7  ;;  %v5705_v1 = vld [vmem:[%s7222_s16 + $0x34] sm:$0xf] }
  0xc1   : > { %v1386_v32 = vrot.slane %v1384_v51, 4  ;;  %v5703_v62 = vld [vmem:[%s7222_s16 + $0x2c] sm:$0x1]  ;;  %v8016_v17 = vrot.slane %v3856_v0, 5  ;;  %v3880_v13 = vshll.u32 %v5705_v1, 16  ;;  %v3884_v31 = vshrl.u32 %v5705_v1, 16 }
  0xc2   : > { %v3840_v10 = vrot.slane %v3839_v33, 4  ;;  %v8033_v29 = vsel %vm7500_vm5, %v1372_v52, %v1373_v18  ;;  %v8040_v45 = vsel %vm7500_vm5, %v5426_v46, %v1377_v15  ;;  %v8044_v14 = vsel %vm7500_vm5, %v1379_v39, %v1380_v54  ;;  %v1278_v18 = vld [vmem:[%s7222_s16 + $0x78] sm:$0xe] }
  0xc3   : > { %6548 = vmatpush3.bf16.msra.mxu0 %v7009_v47  ;;  %v8048_v16 = vsel %vm7500_vm5, %v5427_v58, %v1384_v51  ;;  %v8058_v15 = vsel %vm7500_vm5, %v1386_v32, %v1387_v19  ;;  %v3863_v5 = vor.u32 %v3862_v28, %v8016_v17  ;;  %v3873_v52 = vrot.slane %v3871_v38, 4  ;;  %v5707_v58 = vld [vmem:[%s7222_s16 + $0x3c] sm:$0xf]  ;;  %v5708_v51 = vld [vmem:[%s7222_s16 + $0x40] sm:$0xf] }
  0xc4   : > { %6549 = vmatprep.subr.bf16.mxu0 %v7013_v53  ;;  %v3835_v0 = vsel %vm7254_vm2, %v3830_v21, %v7976_v7  ;;  %v3845_v46 = vsel %vm7254_vm2, %v3840_v10, %v8004_v42  ;;  %v8069_v39 = vrot.slane %v3880_v13, 5  ;;  %v3886_v22 = vrot.slane %v3884_v31, 4  ;;  %v7083_v19 = vld [vmem:[%s7222_s16 + $0x80] sm:$0x1]  ;;  %v8228_v47 = vld [vmem:[%s7222_s16 + $0x68] sm:$0x1] }
  0xc5   : > { %6518 = vmatmul.mubr.bf16.gmra.mrb[8].mxu0 %v7002_v2  ;;  %v3874_v2 = vshll.u32 %v5704_v43, 16  ;;  %v3866_v43 = vshll.u32 %v5703_v62, 16  ;;  %v5428_v32 = vrot.slane %v1278_v18, 9  ;;  %v1279_v62 = vld [vmem:[%s7222_s16 + $0x84] sm:$0xe]  ;;  %v3895_v28 = vshrl.u32 %v5707_v58, 16 }
  0xc6   : > { %6294 = vmatmul.mubr.bf16.gmra.mrb[24].mxu1 %v5407_v20  ;;  %6521 = vmatprep.mubr.bf16.mxu0 %v7005_v3  ;;  %v7021_v20 = vld [vmem:[%s9031_s1 + $0x1f0] sm:$0xff]   ;;  %v7082_v3 = vld [vmem:[%s7222_s16 + $0x7c] sm:$0xf]  ;;  %v3898_v7 = vshll.u32 %v5707_v58, 16  ;;  %v3904_v38 = vshll.u32 %v5708_v51, 16  ;;  %v9053_v42 = vcombine.low %v7659_v41, %v7664_v12  ;;  %v8080_v13 = vrot.slane %v3863_v5, 4 }
  0xc7   : > { %6297 = vmatprep.mubr.bf16.mxu1 %v5408_v23  ;;  %6550 = vmatpush3.bf16.msra.mxu0 %v7013_v53  ;;  %v3853_v23 = vor.u32 %v3852_v44, %v3849_v34  ;;  %v7010_v53 = vld [vmem:[%s7222_s16 + $0x78] sm:$0xff]   ;;  %v1391_v44 = vrot.slane %v7082_v3, 5  ;;  %v3876_v54 = vrot.slane %v3874_v2, 5  ;;  %v8073_v1 = vrot.slane %v3866_v43, 5  ;;  %v8085_v21 = vld [vmem:[%s9031_s1 + $0x200] sm:$0xff]   ;;  %9061 = vst [vmem:[#allocation5_spill] sm:$0xff] %v8228_v47 }
  0xc8   : > { %6551 = vmatprep.subr.bf16.mxu0 %v7017_v50  ;;  %v5706_v34 = vld [vmem:[%s7222_s16 + $0x38] sm:$0x1]  ;;  %v3908_v2 = vshrl.u32 %v5708_v51, 16  ;;  %v7012_v43 = vld [vmem:[%s7222_s16 + $0x84] sm:$0xff]   ;;  %v3887_v12 = vor.u32 %v3886_v22, %v8069_v39  ;;  %v3900_v58 = vrot.slane %v3898_v7, 5  ;;  %v8107_v51 = vrot.slane %v3904_v38, 5 }
  0xc9   : > { %v8071_v33 = vrot.slane %v3853_v23, 4  ;;  %v1393_v10 = vrot.slane %v1391_v44, 4  ;;  %v3877_v31 = vor.u32 %v3876_v54, %v3873_v52  ;;  %v9054_v23 = vcombine.low %v7890_v59, %v7898_v25  ;;  %v7084_v18 = vld [vmem:[%s7222_s16 + $0x88] sm:$0xf]  ;;  %v5709_v5 = vld [vmem:[%s7222_s16 + $0x44] sm:$0x1] }
  0xca   : > { %v1398_v3 = vrot.slane %v7084_v18, 5  ;;  %v8098_v59 = vcombine.low %v3835_v0, %v3845_v46  ;;  %v5710_v52 = vld [vmem:[%s7222_s16 + $0x48] sm:$0xf]  ;;  %v3897_v54 = vrot.slane %v3895_v28, 4  ;;  %v3910_v22 = vrot.slane %v3908_v2, 4 }
  0xcb   : > { %6552 = vmatpush3.bf16.msra.mxu0 %v7017_v50  ;;  %v1394_v50 = vrot.slane %v7083_v19, 5  ;;  %v7014_v19 = vld [vmem:[%s7222_s16 + $0x90] sm:$0xff]   ;;  %v3859_v0 = vsel %vm7254_vm2, %v8071_v33, %v8016_v17  ;;  %v3878_v46 = vrot.slane %v3877_v31, 4  ;;  %v3869_v28 = vsel %vm7254_vm2, %v8080_v13, %v8073_v1  ;;  %v8129_v33 = vld [vmem:[%s7222_s16 + $0x58] sm:$0xf]  ;;  %v7015_v31 = vld [vmem:[%s9031_s1 + $0xc8] sm:$0xff]  }
  0xcc   : > { %6553 = vmatprep.subr.bf16.mxu0 %v7021_v20  ;;  %v3888_v38 = vrot.slane %v3887_v12, 4  ;;  %v1400_v2 = vrot.slane %v1398_v3, 4  ;;  %v5713_v17 = vld [vmem:[%s7222_s16 + $0x54] sm:$0xf]  ;;  %v3914_v1 = vshll.u32 %v5709_v5, 16  ;;  %v3919_v13 = vshrl.u32 %v5710_v52, 16 }
  0xcd   : > { %6522 = vmatmul.mubr.bf16.gmra.mrb[12].mxu0 %v7008_v48  ;;  %v3890_v48 = vshll.u32 %v5706_v34, 16  ;;  %v8125_v7 = vsel %vm7500_vm5, %v1393_v10, %v1394_v50  ;;  %v3922_v50 = vshll.u32 %v5710_v52, 16  ;;  %v3901_v10 = vor.u32 %v3900_v58, %v3897_v54  ;;  %v7016_v54 = vld [vmem:[%s7222_s16 + $0x9c] sm:$0xff]   ;;  %v7090_v41 = vld [vmem:[%s7222_s16 + $0xac] sm:$0xf] }
  0xce   : > { %6298 = vmatmul.mubr.bf16.gmra.mrb[28].mxu1 %v9053_v42  ;;  %6525 = vmatprep.mubr.bf16.mxu0 %v7010_v53  ;;  %v5429_v53 = vrot.slane %v1279_v62, 9  ;;  %v7085_v42 = vld [vmem:[%s7222_s16 + $0x8c] sm:$0x1]  ;;  %v3952_v5 = vshll.u32 %v8129_v33, 16  ;;  %v9056_v52 = vcombine.low %v7906_v63, %v7914_v8  ;;  %v8165_v63 = vld [vmem:[%s7222_s16 + $0x50] sm:$0x1] }
  0xcf   : > { %6317 = vmatprep.mubr.bf16.mxu1 %v9054_v23  ;;  %6554 = vmatpush3.bf16.msra.mxu0 %v7021_v20  ;;  %v8104_v20 = vsel %vm7500_vm5, %v5428_v32, %v1391_v44  ;;  %v3892_v62 = vrot.slane %v3890_v48, 5  ;;  %v1401_v23 = vrot.slane %v7085_v42, 5  ;;  %v1280_v44 = vld [vmem:[%s7222_s16 + $0x90] sm:$0xe]  ;;  %v8117_v32 = vld [vmem:[%s7222_s16 + $0x4c] sm:$0xf]  ;;  %v3911_v48 = vor.u32 %v3910_v22, %v8107_v51 }
  0xd0   : > { %6555 = vmatprep.subr.bf16.mxu0 %v7025_v40  ;;  %v3928_v12 = vshll.u32 %v8117_v32, 16  ;;  %v3932_v18 = vshrl.u32 %v8117_v32, 16  ;;  %v9055_v42 = vcombine.low %v7894_v30, %v7902_v6  ;;  %v7019_v30 = vld [vmem:[%s9031_s1 + $0xd0] sm:$0xff]   ;;  %v3883_v6 = vsel %vm7254_vm2, %v3878_v46, %v8069_v39  ;;  %v7018_v8 = vld [vmem:[%s7222_s16 + $0xa8] sm:$0xff]   ;;  %v8172_v39 = vld [vmem:[%s7222_s16 + $0x5c] sm:$0x1] }
  0xd1   : > { %v3893_v58 = vsel %vm7254_vm2, %v3888_v38, %v3892_v62  ;;  %v5430_v22 = vrot.slane %v1280_v44, 9  ;;  %v3924_v25 = vrot.slane %v3922_v50, 5  ;;  %9057 = vst [vmem:[#allocation3_spill] sm:$0xff] %v8172_v39  ;;  %v3902_v46 = vrot.slane %v3901_v10, 4 }
  0xd2   : > { %v3912_v62 = vrot.slane %v3911_v48, 4  ;;  %v8174_v38 = vrot.slane %v3928_v12, 5  ;;  %v8176_v34 = vrot.slane %v3952_v5, 5  ;;  %v8181_v50 = vcombine.low %v3859_v0, %v3869_v28  ;;  %v5716_v28 = vld [vmem:[%s7222_s16 + $0x60] sm:$0xf] }
  0xd3   : > { %6556 = vmatpush3.bf16.msra.mxu0 %v7025_v40  ;;  %v8137_v40 = vsel %vm7500_vm5, %v5429_v53, %v1398_v3  ;;  %v3943_v53 = vshrl.u32 %v5713_v17, 16  ;;  %v3946_v3 = vshll.u32 %v5713_v17, 16  ;;  %v7086_v17 = vld [vmem:[%s7222_s16 + $0x94] sm:$0xf]  ;;  %v8185_v48 = vcombine.low %v3883_v6, %v3893_v58 }
  0xd4   : > { %6589 = vmatprep.subr.bf16.mxu0 %v8085_v21  ;;  %v3938_v0 = vshll.u32 %v8165_v63, 16  ;;  %v3907_v6 = vsel %vm7254_vm2, %v3902_v46, %v8107_v51  ;;  %v9060_v46 = vcombine.low %v7928_v61, %v7932_v36 }
  0xd5   : > { %6526 = vmatmul.mubr.bf16.gmra.mrb[16].mxu0 %v7012_v43  ;;  %v3956_v43 = vshrl.u32 %v8129_v33, 16  ;;  %v3945_v44 = vrot.slane %v3943_v53, 4  ;;  %v7087_v53 = vld [vmem:[%s7222_s16 + $0x98] sm:$0x1] }
  0xd6   : > { %6318 = vmatmul.mubr.bf16.vlgmr.msra.gmra.mrb[0].mxu1 %v9055_v42  ;;  %6529 = vmatprep.mubr.bf16.mxu0 %v7014_v19  ;;  %v8168_v19 = vrot.slane %v3914_v1, 5  ;;  %v1405_v42 = vrot.slane %v7086_v17, 5  ;;  %v7088_v17 = vld [vmem:[%s7222_s16 + $0xa0] sm:$0xf]  ;;  %v3940_v36 = vrot.slane %v3938_v0, 5 }
  0xd7   : > { %6350 = vmatpush3.bf16.msra.mxu1 %v7847_v60  ;;  %6321 = vmatprep.mubr.bf16.mxu1 %v9056_v52  ;;  %v8162_v60 = vsel %vm7500_vm5, %v1400_v2, %v1401_v23  ;;  %v3921_v52 = vrot.slane %v3919_v13, 4  ;;  %v3934_v23 = vrot.slane %v3932_v18, 4  ;;  %v3948_v2 = vrot.slane %v3946_v3, 5  ;;  %v7023_v13 = vld [vmem:[%s9031_s1 + $0xd8] sm:$0xff]  }
  0xd8   : > { %6351 = vmatprep.subr.bf16.mxu1 %v7015_v31  ;;  %v3958_v1 = vrot.slane %v3956_v43, 4  ;;  %v1281_v18 = vld [vmem:[%s7222_s16 + $0x9c] sm:$0xe]  ;;  %v1408_v3 = vrot.slane %v7087_v53, 5  ;;  %v8198_v43 = vld [vmem:[%s7222_s16 + $0x64] sm:$0xf] }
  0xd9   : > { %v3925_v5 = vor.u32 %v3924_v25, %v3921_v52  ;;  %9058 = vst [vmem:[#allocation4_spill] sm:$0xff] %v8198_v43  ;;  %v3935_v58 = vor.u32 %v3934_v23, %v8174_v38  ;;  %v1412_v12 = vrot.slane %v7088_v17, 5  ;;  %v9059_v25 = vcombine.low %v7918_v24, %v7922_v35  ;;  %v7020_v23 = vld [vmem:[%s7222_s16 + $0xb4] sm:$0xff]   ;;  %v7026_v24 = vld [vmem:[%s9031_s1 + $0xe0] sm:$0xff]   ;;  %v5719_v17 = vld [vmem:[%s7222_s16 + $0x6c] sm:$0xf] }
  0xda   : > { %v1407_v52 = vrot.slane %v1405_v42, 4  ;;  %v3949_v53 = vor.u32 %v3948_v2, %v3945_v44  ;;  %v3959_v51 = vor.u32 %v3958_v1, %v8176_v34  ;;  %v3967_v35 = vshrl.u32 %v5716_v28, 16  ;;  %v7089_v2 = vld [vmem:[%s7222_s16 + $0xa4] sm:$0x1] }
  0xdb   : > { %6352 = vmatpush3.bf16.msra.mxu1 %v7015_v31  ;;  %v8192_v31 = vsel %vm7500_vm5, %v5430_v22, %v1405_v42  ;;  %v3962_v22 = vshll.u32 %v8172_v39, 16  ;;  %v3980_v42 = vshrl.u32 %v8198_v43, 16  ;;  %v3926_v61 = vrot.slane %v3925_v5, 4  ;;  %v8367_v39 = vld [vmem:[%s7222_s16 + $0x98] sm:$0x1] }
  0xdc   : > { %6353 = vmatprep.subr.bf16.mxu1 %v7019_v30  ;;  %v5431_v44 = vrot.slane %v1281_v18, 9  ;;  %v1415_v1 = vrot.slane %v7089_v2, 5  ;;  %v3950_v5 = vrot.slane %v3949_v53, 4  ;;  %v3960_v18 = vrot.slane %v3959_v51, 4  ;;  %9074 = vst [vmem:[#allocation14_spill] sm:$0xff] %v8367_v39 }
  0xdd   : > { %6530 = vmatmul.mubr.bf16.gmra.mrb[20].mxu0 %v7016_v54  ;;  %v3917_v54 = vsel %vm7254_vm2, %v3912_v62, %v8168_v19  ;;  %v3976_v19 = vshll.u32 %v8198_v43, 16  ;;  %v7022_v62 = vld [vmem:[%s7222_s16 + $0xc0] sm:$0xff]   ;;  %v3964_v10 = vrot.slane %v3962_v22, 5  ;;  %v8234_v43 = vsel %vm7500_vm5, %v1407_v52, %v1408_v3 }
  0xde   : > { %6322 = vmatmul.mubr.bf16.gmra.mrb[4].mxu1 %v9059_v25  ;;  %6533 = vmatprep.mubr.bf16.mxu0 %v7018_v8  ;;  %v3970_v8 = vshll.u32 %v5716_v28, 16  ;;  %v3936_v25 = vrot.slane %v3935_v58, 4  ;;  %v1419_v28 = vrot.slane %v7090_v41, 5  ;;  %v8230_v55 = vcombine.low %v3907_v6, %v3917_v54  ;;  %v7028_v41 = vld [vmem:[%s9031_s1 + $0xe8] sm:$0xff]  }
  0xdf   : > { %6325 = vmatprep.mubr.bf16.mxu1 %v9060_v46  ;;  %6354 = vmatpush3.bf16.msra.mxu1 %v7019_v30  ;;  %v1282_v30 = vld [vmem:[%s7222_s16 + $0xa8] sm:$0xe]  ;;  %v1414_v46 = vrot.slane %v1412_v12, 4  ;;  %v3969_v0 = vrot.slane %v3967_v35, 4  ;;  %v8236_v58 = vrot.slane %v3976_v19, 5  ;;  %v3982_v22 = vrot.slane %v3980_v42, 4 }
  0xe0   : > { %6355 = vmatprep.subr.bf16.mxu1 %v7023_v13  ;;  %v3972_v2 = vrot.slane %v3970_v8, 5  ;;  %v3931_v3 = vsel %vm7254_vm2, %v3926_v61, %v8174_v38  ;;  %v8246_v6 = vsel %vm7500_vm5, %v5431_v44, %v1412_v12  ;;  %v3991_v54 = vshrl.u32 %v5719_v17, 16  ;;  %v7091_v38 = vld [vmem:[%s7222_s16 + $0xb0] sm:$0x1]  ;;  %v1283_v19 = vld [vmem:[%s7222_s16 + $0xb4] sm:$0xe] }
  0xe1   : > { %v3994_v52 = vshll.u32 %v5719_v17, 16  ;;  %v3941_v53 = vsel %vm7254_vm2, %v3936_v25, %v3940_v36  ;;  %v8255_v51 = vsel %vm7500_vm5, %v1414_v46, %v1415_v1  ;;  %v5432_v35 = vrot.slane %v1282_v30, 9  ;;  %v8277_v30 = vld [vmem:[%s7222_s16 + $0x74] sm:$0x1]  ;;  %v7092_v25 = vld [vmem:[%s7222_s16 + $0xb8] sm:$0xf] }
  0xe2   : > { %v1422_v8 = vrot.slane %v7091_v38, 5  ;;  %v9063_v12 = vcombine.low %v7949_v49, %v7963_v4  ;;  %v3955_v42 = vsel %vm7254_vm2, %v3950_v5, %v8176_v34  ;;  %v3965_v61 = vsel %vm7254_vm2, %v3960_v18, %v3964_v10  ;;  %v7024_v4 = vld [vmem:[%s7222_s16 + $0xcc] sm:$0xff]   ;;  %9065 = vst [vmem:[#allocation7_spill] sm:$0xff] %v8277_v30  ;;  %v5725_v38 = vld [vmem:[%s7222_s16 + $0x84] sm:$0xf] }
  0xe3   : > { %6356 = vmatpush3.bf16.msra.mxu1 %v7023_v13  ;;  %v8249_v13 = vld [vmem:[%s7222_s16 + $0x70] sm:$0xf]  ;;  %v1421_v36 = vrot.slane %v1419_v28, 4  ;;  %v3986_v44 = vshll.u32 %v8228_v47, 16  ;;  %v9064_v49 = vcombine.low %v7985_v26, %v7989_v56  ;;  %v3983_v1 = vor.u32 %v3982_v22, %v8236_v58  ;;  %v8294_v22 = vld [vmem:[%s7222_s16 + $0x7c] sm:$0xf] }
  0xe4   : > { %6357 = vmatprep.subr.bf16.mxu1 %v7026_v24  ;;  %9062 = vst [vmem:[#allocation6_spill] sm:$0xff] %v8249_v13  ;;  %v4000_v34 = vshll.u32 %v8249_v13, 16  ;;  %v4004_v10 = vshrl.u32 %v8249_v13, 16  ;;  %v5433_v17 = vrot.slane %v1283_v19, 9  ;;  %v1426_v46 = vrot.slane %v7092_v25, 5  ;;  %9066 = vst [vmem:[#allocation8_spill] sm:$0xff] %v8294_v22 }
  0xe5   : > { %6534 = vmatmul.mubr.bf16.gmra.mrb[24].mxu0 %v7020_v23  ;;  %v7030_v23 = vld [vmem:[%s9031_s1 + $0xf0] sm:$0xff]   ;;  %v3993_v26 = vrot.slane %v3991_v54, 4  ;;  %v3996_v56 = vrot.slane %v3994_v52, 5  ;;  %v8285_v18 = vcombine.low %v3931_v3, %v3941_v53  ;;  %v8297_v19 = vcombine.low %v3955_v42, %v3965_v61  ;;  %v7093_v3 = vld [vmem:[%s7222_s16 + $0xbc] sm:$0x1] }
  0xe6   : > { %6326 = vmatmul.mubr.bf16.gmra.mrb[8].mxu1 %v9063_v12  ;;  %6537 = vmatprep.mubr.bf16.mxu0 %v7022_v62  ;;  %v3973_v62 = vor.u32 %v3972_v2, %v3969_v0  ;;  %v8291_v2 = vsel %vm7500_vm5, %v5432_v35, %v1419_v28  ;;  %v8301_v54 = vsel %vm7500_vm5, %v1421_v36, %v1422_v8  ;;  %v8303_v52 = vrot.slane %v3986_v44, 5  ;;  %v7032_v12 = vld [vmem:[%s9031_s1 + $0xf8] sm:$0xff]   ;;  %v8310_v28 = vld [vmem:[%s7222_s16 + $0x88] sm:$0xf] }
  0xe7   : > { %6329 = vmatprep.mubr.bf16.mxu1 %v9064_v49  ;;  %6358 = vmatpush3.bf16.msra.mxu1 %v7026_v24  ;;  %v5722_v24 = vld [vmem:[%s7222_s16 + $0x78] sm:$0xf]  ;;  %v1429_v53 = vrot.slane %v7093_v3, 5  ;;  %9067 = vst [vmem:[#allocation9_spill] sm:$0xff] %v8310_v28  ;;  %v8314_v42 = vrot.slane %v3983_v1, 4  ;;  %v8316_v61 = vrot.slane %v4000_v34, 5  ;;  %v8320_v36 = vsel %vm7500_vm5, %v5433_v17, %v1426_v46 }
  0xe8   : > { %6359 = vmatprep.subr.bf16.mxu1 %v7028_v41  ;;  %v8312_v35 = vrot.slane %v3973_v62, 4  ;;  %v4006_v8 = vrot.slane %v4004_v10, 4  ;;  %v1428_v44 = vrot.slane %v1426_v46, 4  ;;  %v3997_v49 = vor.u32 %v3996_v56, %v3993_v26  ;;  %v5728_v3 = vld [vmem:[%s7222_s16 + $0x90] sm:$0xf] }
  0xe9   : > { %v4010_v25 = vshll.u32 %v8277_v30, 16  ;;  %v4018_v0 = vshll.u32 %v5722_v24, 16  ;;  %v4024_v62 = vshll.u32 %v8294_v22, 16  ;;  %v4028_v1 = vshrl.u32 %v8294_v22, 16  ;;  %v8327_v34 = vld [vmem:[%s7222_s16 + $0x94] sm:$0xf] }
  0xea   : > { %9068 = vst [vmem:[#allocation10_spill] sm:$0xff] %v8327_v34  ;;  %v9069_v10 = vcombine.low %v8029_v27, %v8033_v29  ;;  %v4039_v17 = vshrl.u32 %v5725_v38, 16  ;;  %v4042_v46 = vshll.u32 %v5725_v38, 16  ;;  %v4052_v26 = vshrl.u32 %v8310_v28, 16  ;;  %v5731_v38 = vld [vmem:[%s7222_s16 + $0x9c] sm:$0xf] }
  0xeb   : > { %6360 = vmatpush3.bf16.msra.mxu1 %v7028_v41  ;;  %v4015_v41 = vshrl.u32 %v5722_v24, 16  ;;  %v9070_v56 = vcombine.low %v8040_v45, %v8044_v14  ;;  %v4007_v29 = vor.u32 %v4006_v8, %v8316_v61  ;;  %v4066_v24 = vshll.u32 %v5728_v3, 16  ;;  %v8349_v45 = vld [vmem:[%s7222_s16 + $0x80] sm:$0x1] }
  0xec   : > { %6361 = vmatprep.subr.bf16.mxu1 %v7030_v23  ;;  %v8346_v5 = vrot.slane %v4010_v25, 5  ;;  %9071 = vst [vmem:[#allocation11_spill] sm:$0xff] %v8349_v45  ;;  %v4072_v14 = vshll.u32 %v8327_v34, 16  ;;  %v4020_v27 = vrot.slane %v4018_v0, 5  ;;  %v4030_v8 = vrot.slane %v4028_v1, 4 }
  0xed   : > { %6538 = vmatmul.mubr.bf16.gmra.mrb[28].mxu0 %v7024_v4  ;;  %v4048_v4 = vshll.u32 %v8310_v28, 16  ;;  %v8353_v28 = vrot.slane %v4024_v62, 5  ;;  %v8359_v22 = vld [vmem:[%s7222_s16 + $0xa0] sm:$0xf]  ;;  %v4041_v25 = vrot.slane %v4039_v17, 4  ;;  %v4044_v30 = vrot.slane %v4042_v46, 5 }
  0xee   : > { %6330 = vmatmul.mubr.bf16.gmra.mrb[12].mxu1 %v9069_v10  ;;  %6557 = vmatprep.mubr.bf16.mxu0 %v8098_v59  ;;  %v4063_v59 = vshrl.u32 %v5728_v3, 16  ;;  %v8344_v10 = vrot.slane %v3997_v49, 4  ;;  %v8356_v3 = vld [vmem:[%s7222_s16 + $0x8c] sm:$0x1]  ;;  %9073 = vst [vmem:[#allocation13_spill] sm:$0xff] %v8359_v22  ;;  %v4054_v47 = vrot.slane %v4052_v26, 4  ;;  %v8376_v62 = vsel %vm7500_vm5, %v1428_v44, %v1429_v53 }
  0xef   : > { %6333 = vmatprep.mubr.bf16.mxu1 %v9070_v56  ;;  %6362 = vmatpush3.bf16.msra.mxu1 %v7030_v23  ;;  %v4076_v23 = vshrl.u32 %v8327_v34, 16  ;;  %v4017_v56 = vrot.slane %v4015_v41, 4  ;;  %9072 = vst [vmem:[#allocation12_spill] sm:$0xff] %v8356_v3  ;;  %v7029_v49 = vld [vmem:[%s9031_s1 + $0x208] sm:$0xff]   ;;  %v8364_v13 = vrot.slane %v4048_v4, 5  ;;  %v4068_v34 = vrot.slane %v4066_v24, 5 }
  0xf0   : > { %6363 = vmatprep.subr.bf16.mxu1 %v7032_v12  ;;  %v5734_v41 = vld [vmem:[%s7222_s16 + $0xa8] sm:$0xf]  ;;  %v4065_v1 = vrot.slane %v4063_v59, 4  ;;  %v8381_v17 = vld [vmem:[%s9031_s1 + $0x100] sm:$0xff]   ;;  %v8384_v46 = vrot.slane %v4072_v14, 5  ;;  %v4087_v26 = vshrl.u32 %v5731_v38, 16  ;;  %v9076_v24 = vcombine.low %v8048_v16, %v8058_v15 }
  0xf1   : > { %9075 = vst [vmem:[#allocation15_spill] sm:$0xff] %v8381_v17  ;;  %v4078_v4 = vrot.slane %v4076_v23, 4  ;;  %v4090_v0 = vshll.u32 %v5731_v38, 16  ;;  %v8387_v53 = vrot.slane %v4007_v29, 4  ;;  %v4096_v44 = vshll.u32 %v8359_v22, 16  ;;  %v7031_v16 = vld [vmem:[%s9031_s1 + $0x210] sm:$0xff]  }
  0xf2   : > { %v4100_v59 = vshrl.u32 %v8359_v22, 16  ;;  %v4021_v14 = vor.u32 %v4020_v27, %v4017_v56  ;;  %v4031_v38 = vor.u32 %v4030_v8, %v8353_v28  ;;  %v4045_v23 = vor.u32 %v4044_v30, %v4041_v25  ;;  %v8399_v29 = vld [vmem:[%s7222_s16 + $0xac] sm:$0xf]  ;;  %v8412_v25 = vld [vmem:[%s7222_s16 + $0xa4] sm:$0x1] }
  0xf3   : > { %6364 = vmatpush3.bf16.msra.mxu1 %v7032_v12  ;;  %v4034_v12 = vshll.u32 %v8349_v45, 16  ;;  %9077 = vst [vmem:[#allocation16_spill] sm:$0xff] %v8399_v29  ;;  %v4055_v15 = vor.u32 %v4054_v47, %v8364_v13  ;;  %v4111_v27 = vshrl.u32 %v5734_v41, 16  ;;  %v4114_v30 = vshll.u32 %v5734_v41, 16 }
  0xf4   : > { %6637 = vmatprep.subr.bf16.mxu1 %v8381_v17  ;;  %v9078_v17 = vcombine.low %v8104_v20, %v8125_v7  ;;  %v4069_v56 = vor.u32 %v4068_v34, %v4065_v1  ;;  %v4079_v8 = vor.u32 %v4078_v4, %v8384_v46  ;;  %v4089_v20 = vrot.slane %v4087_v26, 4 }
  0xf5   : > { %6558 = vmatmul.mubr.bf16.vlgmr.msra.gmra.mrb[0].mxu0 %v8181_v50  ;;  %v4058_v50 = vshll.u32 %v8356_v3, 16  ;;  %v4092_v7 = vrot.slane %v4090_v0, 5  ;;  %v4124_v22 = vshrl.u32 %v8399_v29, 16  ;;  %v4022_v47 = vrot.slane %v4021_v14, 4  ;;  %v7033_v0 = vld [vmem:[%s9031_s1 + $0x218] sm:$0xff]  }
  0xf6   : > { %6334 = vmatmul.mubr.bf16.gmra.mrb[16].mxu1 %v9076_v24  ;;  %6590 = vmatpush3.bf16.msra.mxu0 %v8085_v21  ;;  %v4082_v21 = vshll.u32 %v8367_v39, 16  ;;  %v4120_v24 = vshll.u32 %v8399_v29, 16  ;;  %v4032_v39 = vrot.slane %v4031_v38, 4  ;;  %v4036_v3 = vrot.slane %v4034_v12, 5 }
  0xf7   : > { %6337 = vmatprep.mubr.bf16.mxu1 %v9078_v17  ;;  %6561 = vmatprep.mubr.bf16.mxu0 %v8185_v48  ;;  %v8414_v17 = vrot.slane %v4096_v44, 5  ;;  %v4102_v48 = vrot.slane %v4100_v59, 4  ;;  %v4060_v41 = vrot.slane %v4058_v50, 5  ;;  %v4046_v34 = vrot.slane %v4045_v23, 4 }
  0xf8   : > { %6591 = vmatprep.subr.bf16.mxu0 %v7029_v49  ;;  %v4056_v1 = vrot.slane %v4055_v15, 4  ;;  %v4113_v4 = vrot.slane %v4111_v27, 4  ;;  %v4116_v45 = vrot.slane %v4114_v30, 5  ;;  %v4070_v26 = vrot.slane %v4069_v56, 4  ;;  %v8480_v27 = vld [vmem:[%s7222_s16 + $0xbc] sm:$0x1] }
  0xf9   : > { %v4084_v44 = vrot.slane %v4082_v21, 5  ;;  %v4093_v59 = vor.u32 %v4092_v7, %v4089_v20  ;;  %v4106_v29 = vshll.u32 %v8412_v25, 16  ;;  %v4103_v12 = vor.u32 %v4102_v48, %v8414_v17  ;;  %v8447_v21 = vld [vmem:[%s7222_s16 + $0xb0] sm:$0x1] }
  0xfa   : > { %6592 = vmatpush3.bf16.msra.mxu0 %v7029_v49  ;;  %v4080_v49 = vrot.slane %v4079_v8, 4  ;;  %v8424_v14 = vrot.slane %v4120_v24, 5  ;;  %v4126_v38 = vrot.slane %v4124_v22, 4  ;;  %v9079_v23 = vor.u32 %v7832_v57, %v7830_v11 }
  0xfb   : > { %6593 = vmatprep.subr.bf16.mxu0 %v7031_v16  ;;  %v9080_v15 = vcombine.low %v8137_v40, %v8162_v60  ;;  %v4013_v22 = vsel %vm7254_vm2, %v8387_v53, %v8346_v5  ;;  %v4027_v57 = vsel %vm7254_vm2, %v4022_v47, %v8353_v28  ;;  %v9081_v40 = vcombine.low %v8192_v31, %v8234_v43  ;;  %v7036_v31 = vld [vmem:[%s9031_s1 + $0x220] sm:$0xff]  }
  0xfc   : > { %v8429_v50 = vrot.slane %v9079_v23, 4  ;;  %v4037_v60 = vsel %vm7254_vm2, %v4032_v39, %v4036_v3  ;;  %v4117_v5 = vor.u32 %v4116_v45, %v4113_v4  ;;  %v4061_v28 = vsel %vm7254_vm2, %v4056_v1, %v4060_v41  ;;  %v5774_v41 = vld [vmem:[%s7222_s16 + $0x48] sm:$0xe] }
  0xfd   : > { %6562 = vmatmul.mubr.bf16.gmra.mrb[4].mxu0 %v8230_v55  ;;  %v4003_v55 = vsel %vm7254_vm2, %v8344_v10, %v8316_v61  ;;  %v5737_v61 = vld [vmem:[%s7222_s16 + $0xb4] sm:$0xf]  ;;  %v8459_v10 = vld [vmem:[%s7222_s16 + $0xb8] sm:$0xf]  ;;  %v4075_v39 = vsel %vm7254_vm2, %v4070_v26, %v8384_v46  ;;  %v8469_v43 = vrot.slane %v4093_v59, 4  ;;  %v8471_v3 = vrot.slane %v4106_v29, 5 }
  0xfe   : > { %6338 = vmatmul.mubr.bf16.gmra.mrb[20].mxu1 %v9080_v15  ;;  %6565 = vmatprep.mubr.bf16.mxu0 %v8285_v18  ;;  %v4051_v18 = vsel %vm7254_vm2, %v4046_v34, %v8364_v13  ;;  %v4085_v13 = vsel %vm7254_vm2, %v4080_v49, %v4084_v44  ;;  %v8475_v45 = vrot.slane %v4103_v12, 4  ;;  %v4127_v53 = vor.u32 %v4126_v38, %v8424_v14  ;;  %v5775_v26 = vld [vmem:[%s7222_s16 + $0x54] sm:$0xe] }
  0xff   : > { %6341 = vmatprep.mubr.bf16.mxu1 %v9081_v40  ;;  %6594 = vmatpush3.bf16.msra.mxu0 %v7031_v16  ;;  %v4130_v16 = vshll.u32 %v8447_v21, 16  ;;  %v9082_v46 = vsel %vm7254_vm2, %v8314_v42, %v8303_v52  ;;  %v9083_v29 = vsel %vm7254_vm2, %v8312_v35, %v8236_v58  ;;  %v4135_v56 = vshrl.u32 %v5737_v61, 16 }
 0x100   : > { %6595 = vmatprep.subr.bf16.mxu0 %v7033_v0  ;;  %v5752_v30 = vcombine.low %v9083_v29, %v9082_v46  ;;  %v4138_v8 = vshll.u32 %v5737_v61, 16  ;;  %v4144_v20 = vshll.u32 %v8459_v10, 16  ;;  %v5448_v7 = vcombine.low %v8291_v2, %v8301_v54  ;;  %v7039_v2 = vld [vmem:[%s9031_s1 + $0x228] sm:$0xff]   ;;  %v5740_v54 = vld [vmem:[%s7222_s16 + $0xc0] sm:$0xf]  ;;  %v9087_v29 = vld [vmem:[#allocation5_spill] sm:$0xff] }
 0x101   : > { %v5449_v48 = vcombine.low %v8320_v36, %v8376_v62  ;;  %v5753_v24 = vcombine.low %v4003_v55, %v4013_v22  ;;  %v8497_v52 = vrot.slane %v4117_v5, 4  ;;  %v5754_v42 = vcombine.low %v4027_v57, %v4037_v60 }
 0x102   : > { %v8499_v58 = vcombine.low %v4051_v18, %v4061_v28  ;;  %v8501_v35 = vcombine.low %v4075_v39, %v4085_v13  ;;  %v4099_v47 = vsel %vm7254_vm2, %v8469_v43, %v8414_v17  ;;  %v4109_v34 = vsel %vm7254_vm2, %v8475_v45, %v8471_v3  ;;  %v5777_v28 = vld [vmem:[%s7222_s16 + $0x6c] sm:$0xe] }
 0x103   : > { %6596 = vmatpush3.bf16.msra.mxu0 %v7033_v0  ;;  %v8517_v1 = vrot.slane %v4127_v53, 4  ;;  %v8519_v4 = vrot.slane %v4130_v16, 5  ;;  %v4148_v0 = vshrl.u32 %v8459_v10, 16  ;;  %v9084_v44 = vcombine.low %v8246_v6, %v8255_v51  ;;  %v7042_v6 = vld [vmem:[%s9031_s1 + $0x230] sm:$0xff]   ;;  %v8541_v51 = vld [vmem:[%s7222_s16 + $0xc4] sm:$0xf] }
 0x104   : > { %6597 = vmatprep.subr.bf16.mxu0 %v7036_v31  ;;  %v8526_v59 = vrot.slane %v4135_v56, 4  ;;  %v8530_v49 = vrot.slane %v4144_v20, 5  ;;  %v4154_v12 = vshll.u32 %v8480_v27, 16  ;;  %v4123_v38 = vsel %vm7254_vm2, %v8497_v52, %v8424_v14  ;;  %v5776_v14 = vld [vmem:[%s7222_s16 + $0x60] sm:$0xe]  ;;  %v9085_v39 = vld [vmem:[#allocation3_spill] sm:$0xff] }
 0x105   : > { %6566 = vmatmul.mubr.bf16.gmra.mrb[8].mxu0 %v8297_v19  ;;  %v8528_v19 = vrot.slane %v4138_v8, 5  ;;  %v4159_v23 = vshrl.u32 %v5740_v54, 16  ;;  %v5790_v15 = vrot.slane %v5774_v41, 9  ;;  %v4621_v55 = vrot.slane %v8117_v32, 5  ;;  %v7034_v13 = vld [vmem:[%s7222_s16 + $0xc] sm:$0xff]   ;;  %v7045_v56 = vld [vmem:[%s9031_s1 + $0x238] sm:$0xff]  }
 0x106   : > { %6342 = vmatmul.mubr.bf16.gmra.mrb[24].mxu1 %v9084_v44  ;;  %6569 = vmatprep.mubr.bf16.mxu0 %v5752_v30  ;;  %v4162_v22 = vshll.u32 %v5740_v54, 16  ;;  %v4624_v57 = vrot.slane %v8165_v63, 5  ;;  %v5791_v40 = vrot.slane %v5775_v26, 9  ;;  %v4628_v60 = vrot.slane %v8129_v33, 5  ;;  %v9086_v16 = vld [vmem:[#allocation4_spill] sm:$0xff]  ;;  %v9088_v52 = vld [vmem:[#allocation6_spill] sm:$0xff] }
 0x107   : > { %6345 = vmatprep.mubr.bf16.mxu1 %v5448_v7  ;;  %6598 = vmatpush3.bf16.msra.mxu0 %v7036_v31  ;;  %v4133_v18 = vsel %vm7254_vm2, %v8517_v1, %v8519_v4  ;;  %v8551_v5 = vrot.slane %v4148_v0, 4  ;;  %v8555_v61 = vsel %vm7500_vm5, %v5790_v15, %v4621_v55  ;;  %v4623_v32 = vrot.slane %v4621_v55, 4  ;;  %v9089_v4 = vld [vmem:[#allocation7_spill] sm:$0xff] }
 0x108   : > { %6599 = vmatprep.subr.bf16.mxu0 %v7039_v2  ;;  %v4168_v31 = vshll.u32 %v8541_v51, 16  ;;  %v8561_v63 = vsel %vm7500_vm5, %v5791_v40, %v4628_v60  ;;  %v4630_v33 = vrot.slane %v4628_v60, 4  ;;  %v4631_v3 = vrot.slane %v9085_v39, 5  ;;  %v8592_v26 = vld [vmem:[%s7222_s16 + $0xc8] sm:$0x1]  ;;  %v7035_v40 = vld [vmem:[%s7222_s16 + $0x18] sm:$0xff]  }
 0x109   : > { %v8567_v45 = vsel %vm7500_vm5, %v4623_v32, %v4624_v57  ;;  %v5792_v53 = vrot.slane %v5776_v14, 9  ;;  %v4635_v46 = vrot.slane %v9086_v16, 5  ;;  %v4638_v30 = vrot.slane %v9087_v29, 5  ;;  %v7037_v39 = vld [vmem:[%s7222_s16 + $0x24] sm:$0xff]  }
 0x10a   : > { %v5806_v8 = vcombine.low %v8555_v61, %v8567_v45  ;;  %v8578_v20 = vsel %vm7500_vm5, %v4630_v33, %v4631_v3  ;;  %v5793_v7 = vrot.slane %v5777_v28, 9  ;;  %v4645_v0 = vrot.slane %v9089_v4, 5  ;;  %v9091_v28 = vld [vmem:[#allocation11_spill] sm:$0xff]  ;;  %v5547_v61 = vld [vmem:[%s7222_s16 + $0x90] sm:$0xf] }
 0x10b   : > { %6600 = vmatpush3.bf16.msra.mxu0 %v7039_v2  ;;  %v4642_v2 = vrot.slane %v9088_v52, 5  ;;  %v5807_v54 = vcombine.low %v8561_v63, %v8578_v20  ;;  %v8585_v41 = vsel %vm7500_vm5, %v5792_v53, %v4635_v46  ;;  %v4637_v1 = vrot.slane %v4635_v46, 4  ;;  %v9092_v53 = vld [vmem:[#allocation2_spill] sm:$0xff]  ;;  %v7051_v45 = vld [vmem:[%s7222_s16 + $0xa8] sm:$0xff]  }
 0x10c   : > { %6601 = vmatprep.subr.bf16.mxu0 %v7042_v6  ;;  %v8594_v44 = vrot.slane %v4159_v23, 4  ;;  %v8607_v36 = vcombine.low %v4099_v47, %v4109_v34  ;;  %v4141_v62 = vor.u32 %v8528_v19, %v8526_v59  ;;  %v5778_v23 = vld [vmem:[%s7222_s16 + $0x78] sm:$0xe]  ;;  %v8619_v57 = vrot.slane %v4154_v12, 5  ;;  %v5743_v12 = vld [vmem:[%s7222_s16 + $0xcc] sm:$0xf] }
 0x10d   : > { %6570 = vmatmul.mubr.bf16.gmra.mrb[12].mxu0 %v5753_v24  ;;  %v8596_v24 = vrot.slane %v4162_v22, 5  ;;  %v8600_v15 = vsel %vm7500_vm5, %v5793_v7, %v4642_v2  ;;  %v4644_v55 = vrot.slane %v4642_v2, 4  ;;  %v8617_v22 = vcombine.low %v4123_v38, %v4133_v18  ;;  %v5541_v47 = vld [vmem:[%s7222_s16 + $0x78] sm:$0xf]  ;;  %v9090_v18 = vld [vmem:[#allocation8_spill] sm:$0xff] }
 0x10e   : > { %6346 = vmatmul.mubr.bf16.gmra.mrb[28].mxu1 %v5449_v48  ;;  %6573 = vmatprep.mubr.bf16.mxu0 %v5754_v42  ;;  %v4172_v48 = vshrl.u32 %v8541_v51, 16  ;;  %v8614_v42 = vsel %vm7500_vm5, %v4637_v1, %v4638_v30  ;;  %v4151_v34 = vor.u32 %v8551_v5, %v8530_v49  ;;  %v8630_v59 = vrot.slane %v4168_v31, 5  ;;  %v8644_v31 = vld [vmem:[%s7222_s16 + $0xd0] sm:$0xf]  ;;  %v9093_v1 = vld [vmem:[#allocation9_spill] sm:$0xff] }
 0x10f   : > { %6365 = vmatprep.mubr.bf16.mxu1 %v7034_v13  ;;  %6602 = vmatpush3.bf16.msra.mxu0 %v7042_v6  ;;  %v5808_v17 = vcombine.low %v8585_v41, %v8614_v42  ;;  %v8625_v43 = vsel %vm7500_vm5, %v4644_v55, %v4645_v0  ;;  %v4178_v19 = vshll.u32 %v8592_v26, 16  ;;  %v5779_v6 = vld [vmem:[%s7222_s16 + $0x84] sm:$0xe]  ;;  %v4165_v60 = vor.u32 %v8596_v24, %v8594_v44  ;;  %v9094_v24 = vld [vmem:[#allocation12_spill] sm:$0xff]  ;;  %v7115_v63 = vld [vmem:[%s7222_s16 + $0x8c] sm:$0x1] }
 0x110   : > { %6603 = vmatprep.subr.bf16.mxu0 %v7045_v56  ;;  %v5809_v38 = vcombine.low %v8600_v15, %v8625_v43  ;;  %v5794_v14 = vrot.slane %v5778_v23, 9  ;;  %v4649_v32 = vrot.slane %v9090_v18, 5  ;;  %v4652_v33 = vrot.slane %v9091_v28, 5 }
 0x111   : > { %v4174_v5 = vrot.slane %v4172_v48, 4  ;;  %v2403_v3 = vshrl.u32 %v5541_v47, 16  ;;  %v2406_v13 = vshll.u32 %v5541_v47, 16  ;;  %v2425_v16 = vsel %vm7254_vm2, %v8429_v50, %v9092_v53 }
 0x112   : > { %v4183_v46 = vshrl.u32 %v5743_v12, 16  ;;  %v8652_v29 = vsel %vm7500_vm5, %v5794_v14, %v4649_v32  ;;  %v4651_v30 = vrot.slane %v4649_v32, 4  ;;  %v5795_v7 = vrot.slane %v5779_v6, 9  ;;  %v7095_v6 = vld [vmem:[%s9031_s1 + $0x108] sm:$0xff]  }
 0x113   : > { %6604 = vmatpush3.bf16.msra.mxu0 %v7045_v56  ;;  %v4186_v52 = vshll.u32 %v5743_v12, 16  ;;  %v2405_v2 = vrot.slane %v2403_v3, 4  ;;  %v2408_v56 = vrot.slane %v2406_v13, 5  ;;  %v4656_v4 = vrot.slane %v9093_v1, 5  ;;  %v5780_v12 = vld [vmem:[%s7222_s16 + $0x90] sm:$0xe] }
 0x114   : > { %v4192_v50 = vshll.u32 %v8644_v31, 16  ;;  %v4196_v0 = vshrl.u32 %v8644_v31, 16  ;;  %v8661_v44 = vsel %vm7500_vm5, %v4651_v30, %v4652_v33  ;;  %v4659_v55 = vrot.slane %v9094_v24, 5  ;;  %v7038_v3 = vld [vmem:[%s7222_s16 + $0x30] sm:$0xff]  }
 0x115   : > { %6574 = vmatmul.mubr.bf16.gmra.mrb[16].mxu0 %v8499_v58  ;;  %v9095_v58 = vld [vmem:[#allocation15_spill] sm:$0xff]  ;;  %v4175_v48 = vor.u32 %v4174_v5, %v8630_v59  ;;  %v2409_v23 = vor.u32 %v2408_v56, %v2405_v2  ;;  %v4658_v47 = vrot.slane %v4656_v4, 4  ;;  %v4152_v14 = vrot.slane %v4151_v34, 4  ;;  %v8682_v13 = vld [vmem:[%s7222_s16 + $0xd4] sm:$0x1]  ;;  %v9096_v2 = vld [vmem:[#allocation10_spill] sm:$0xff] }
 0x116   : > { %6366 = vmatmul.mubr.bf16.vlgmr.msra.gmra.mrb[0].mxu1 %v7035_v40  ;;  %6577 = vmatprep.mubr.bf16.mxu0 %v8501_v35  ;;  %v5810_v35 = vcombine.low %v8652_v29, %v8661_v44  ;;  %v4142_v40 = vrot.slane %v4141_v62, 4  ;;  %v4180_v18 = vrot.slane %v4178_v19, 5  ;;  %v8674_v32 = vsel %vm7500_vm5, %v5795_v7, %v4656_v4  ;;  %v7040_v19 = vld [vmem:[%s7222_s16 + $0x3c] sm:$0xff]   ;;  %v7096_v1 = vld [vmem:[%s9031_s1 + $0x110] sm:$0xff]  }
 0x117   : > { %6645 = vmatpush3.bf16.msra.mxu1 %v9095_v58  ;;  %6369 = vmatprep.mubr.bf16.mxu1 %v7037_v39  ;;  %v4185_v28 = vrot.slane %v4183_v46, 4  ;;  %v4188_v33 = vrot.slane %v4186_v52, 5  ;;  %v2410_v39 = vrot.slane %v2409_v23, 4  ;;  %v8678_v5 = vsel %vm7500_vm5, %v4658_v47, %v4659_v55  ;;  %v7097_v47 = vld [vmem:[%s7222_s16 + $0x1c] sm:$0xf] }
 0x118   : > { %6638 = vmatprep.subr.bf16.mxu1 %v7095_v6  ;;  %v8684_v53 = vrot.slane %v4192_v50, 5  ;;  %v4198_v30 = vrot.slane %v4196_v0, 4  ;;  %v5811_v62 = vcombine.low %v8674_v32, %v8678_v5  ;;  %v5796_v34 = vrot.slane %v5780_v12, 9 }
 0x119   : > { %v4166_v7 = vrot.slane %v4165_v60, 4  ;;  %v4176_v46 = vrot.slane %v4175_v48, 4  ;;  %v2415_v52 = vsel %vm7254_vm2, %v2410_v39, %v7830_v11  ;;  %v4663_v56 = vrot.slane %v9096_v2, 5  ;;  %v9097_v11 = vld [vmem:[#allocation14_spill] sm:$0xff]  ;;  %v7041_v39 = vld [vmem:[%s7222_s16 + $0x48] sm:$0xff]  }
 0x11a   : > { %v4147_v4 = vsel %vm7254_vm2, %v4142_v40, %v8530_v49  ;;  %v4157_v60 = vsel %vm7254_vm2, %v4152_v14, %v8619_v57  ;;  %v8702_v50 = vcombine.low %v2415_v52, %v2425_v16  ;;  %v4666_v0 = vrot.slane %v9097_v11, 5  ;;  %v5770_v57 = vld [vmem:[%s7222_s16 + $0x18] sm:$0xe]  ;;  %v5781_v16 = vld [vmem:[%s7222_s16 + $0x9c] sm:$0xe] }
 0x11b   : > { %6646 = vmatpush3.bf16.msra.mxu1 %v7095_v6  ;;  %v4189_v24 = vor.u32 %v4188_v33, %v4185_v28  ;;  %v4202_v55 = vshll.u32 %v8682_v13, 16  ;;  %v8709_v58 = vsel %vm7500_vm5, %v5796_v34, %v4663_v56  ;;  %v4665_v48 = vrot.slane %v4663_v56, 4  ;;  %v7098_v40 = vld [vmem:[%s9031_s1 + $0x118] sm:$0xff]   ;;  %v7099_v2 = vld [vmem:[%s7222_s16 + $0x20] sm:$0x1] }
 0x11c   : > { %6639 = vmatprep.subr.bf16.mxu1 %v7096_v1  ;;  %v4199_v49 = vor.u32 %v4198_v30, %v8684_v53  ;;  %v4181_v23 = vsel %vm7254_vm2, %v4176_v46, %v4180_v18  ;;  %v4593_v12 = vrot.slane %v7097_v47, 5  ;;  %v5759_v6 = vcombine.low %v4147_v4, %v4157_v60  ;;  %v9098_v34 = vld [vmem:[#allocation13_spill] sm:$0xff]  ;;  %v5782_v11 = vld [vmem:[%s7222_s16 + $0xa8] sm:$0xe] }
 0x11d   : > { %6578 = vmatmul.mubr.bf16.gmra.mrb[20].mxu0 %v8607_v36  ;;  %v4171_v36 = vsel %vm7254_vm2, %v4166_v7, %v8630_v59  ;;  %v4190_v14 = vrot.slane %v4189_v24, 4  ;;  %v4204_v28 = vrot.slane %v4202_v55, 5  ;;  %v5786_v18 = vrot.slane %v5770_v57, 9  ;;  %v7043_v46 = vld [vmem:[%s7222_s16 + $0x54] sm:$0xff]   ;;  %v5771_v55 = vld [vmem:[%s7222_s16 + $0x24] sm:$0xe] }
 0x11e   : > { %6370 = vmatmul.mubr.bf16.gmra.mrb[4].mxu1 %v7038_v3  ;;  %6581 = vmatprep.mubr.bf16.mxu0 %v8617_v22  ;;  %v8723_v22 = vsel %vm7500_vm5, %v4665_v48, %v4666_v0  ;;  %v5797_v33 = vrot.slane %v5781_v16, 9  ;;  %v5760_v3 = vcombine.low %v4171_v36, %v4181_v23  ;;  %v4200_v30 = vrot.slane %v4199_v49, 4  ;;  %v7101_v48 = vld [vmem:[%s7222_s16 + $0x28] sm:$0xf]  ;;  %v7102_v36 = vld [vmem:[%s7222_s16 + $0x34] sm:$0xf] }
 0x11f   : > { %6373 = vmatprep.mubr.bf16.mxu1 %v7040_v19  ;;  %6647 = vmatpush3.bf16.msra.mxu1 %v7096_v1  ;;  %v5812_v59 = vcombine.low %v8709_v58, %v8723_v22  ;;  %v4670_v19 = vrot.slane %v9098_v34, 5  ;;  %v4673_v7 = vrot.slane %v8412_v25, 5  ;;  %v4595_v52 = vrot.slane %v4593_v12, 4  ;;  %v7100_v1 = vld [vmem:[%s9031_s1 + $0x120] sm:$0xff]  }
 0x120   : > { %6640 = vmatprep.subr.bf16.mxu1 %v7098_v40  ;;  %v4596_v56 = vrot.slane %v7099_v2, 5  ;;  %v4594_v25 = vsel %vm7500_vm5, %v5786_v18, %v4593_v12  ;;  %v4195_v0 = vsel %vm7254_vm2, %v4190_v14, %v8684_v53  ;;  %v4205_v24 = vsel %vm7254_vm2, %v4200_v30, %v4204_v28  ;;  %v5772_v12 = vld [vmem:[%s7222_s16 + $0x30] sm:$0xe]  ;;  %v7044_v30 = vld [vmem:[%s7222_s16 + $0x60] sm:$0xff]  }
 0x121   : > { %v8740_v4 = vsel %vm7500_vm5, %v5797_v33, %v4670_v19  ;;  %v4672_v60 = vrot.slane %v4670_v19, 4  ;;  %v4600_v49 = vrot.slane %v7101_v48, 5  ;;  %v4607_v23 = vrot.slane %v7102_v36, 5  ;;  %v7104_v33 = vld [vmem:[%s7222_s16 + $0x2c] sm:$0x1] }
 0x122   : > { %v4597_v16 = vsel %vm7500_vm5, %v4595_v52, %v4596_v56  ;;  %v5798_v47 = vrot.slane %v5782_v11, 9  ;;  %v5761_v28 = vcombine.low %v4195_v0, %v4205_v24  ;;  %v5787_v18 = vrot.slane %v5771_v55, 9  ;;  %v7046_v52 = vld [vmem:[%s7222_s16 + $0x6c] sm:$0xff]   ;;  %v5783_v11 = vld [vmem:[%s7222_s16 + $0xb4] sm:$0xe] }
 0x123   : > { %6648 = vmatpush3.bf16.msra.mxu1 %v7098_v40  ;;  %v8754_v57 = vsel %vm7500_vm5, %v4672_v60, %v4673_v7  ;;  %v9099_v40 = vld [vmem:[#allocation16_spill] sm:$0xff]  ;;  %v5802_v34 = vcombine.low %v4594_v25, %v4597_v16  ;;  %v4602_v19 = vrot.slane %v4600_v49, 4  ;;  %v5788_v2 = vrot.slane %v5772_v12, 9  ;;  %v5773_v0 = vld [vmem:[%s7222_s16 + $0x3c] sm:$0xe] }
 0x124   : > { %6641 = vmatprep.subr.bf16.mxu1 %v7100_v1  ;;  %v5813_v53 = vcombine.low %v8740_v4, %v8754_v57  ;;  %v4677_v14 = vrot.slane %v9099_v40, 5  ;;  %v4609_v56 = vrot.slane %v4607_v23, 4  ;;  %v7106_v24 = vld [vmem:[%s7222_s16 + $0x40] sm:$0xf]  ;;  %v4601_v48 = vsel %vm7500_vm5, %v5787_v18, %v4600_v49  ;;  %v7108_v18 = vld [vmem:[%s7222_s16 + $0x44] sm:$0x1] }
 0x125   : > { %6582 = vmatmul.mubr.bf16.gmra.mrb[24].mxu0 %v5759_v6  ;;  %v7103_v6 = vld [vmem:[%s9031_s1 + $0x128] sm:$0xff]   ;;  %v4614_v55 = vrot.slane %v7106_v24, 5  ;;  %v4684_v12 = vrot.slane %v8459_v10, 5  ;;  %v4608_v49 = vsel %vm7500_vm5, %v5788_v2, %v4607_v23  ;;  %v7109_v10 = vld [vmem:[%s9031_s1 + $0x138] sm:$0xff]   ;;  %v5784_v23 = vld [vmem:[%s7222_s16 + $0xc0] sm:$0xe] }
 0x126   : > { %6374 = vmatmul.mubr.bf16.gmra.mrb[8].mxu1 %v7041_v39  ;;  %6585 = vmatprep.mubr.bf16.mxu0 %v5760_v3  ;;  %v4603_v39 = vrot.slane %v7104_v33, 5  ;;  %v4680_v3 = vrot.slane %v8447_v21, 5  ;;  %v8771_v7 = vsel %vm7500_vm5, %v5798_v47, %v4677_v14  ;;  %v7107_v21 = vld [vmem:[%s9031_s1 + $0x130] sm:$0xff]   ;;  %v5799_v47 = vrot.slane %v5783_v11, 9 }
 0x127   : > { %6377 = vmatprep.mubr.bf16.mxu1 %v7043_v46  ;;  %6649 = vmatpush3.bf16.msra.mxu1 %v7100_v1  ;;  %v4679_v46 = vrot.slane %v4677_v14, 4  ;;  %v7105_v1 = vld [vmem:[%s7222_s16 + $0x38] sm:$0x1]  ;;  %v5789_v14 = vrot.slane %v5773_v0, 9  ;;  %v4617_v33 = vrot.slane %v7108_v18, 5  ;;  %v4691_v11 = vrot.slane %v8541_v51, 5 }
 0x128   : > { %6642 = vmatprep.subr.bf16.mxu1 %v7103_v6  ;;  %v4610_v60 = vrot.slane %v7105_v1, 5  ;;  %v4604_v36 = vsel %vm7500_vm5, %v4602_v19, %v4603_v39  ;;  %v4686_v39 = vrot.slane %v4684_v12, 4  ;;  %v5538_v19 = vld [vmem:[%s7222_s16 + $0x6c] sm:$0xf]  ;;  %v7049_v18 = vld [vmem:[%s7222_s16 + $0x90] sm:$0xff]   ;;  %v2446_v20 = vshll.u32 %v7115_v63, 16 }
 0x129   : > { %v8783_v25 = vsel %vm7500_vm5, %v4679_v46, %v4680_v3  ;;  %v5803_v3 = vcombine.low %v4601_v48, %v4604_v36  ;;  %v4615_v1 = vsel %vm7500_vm5, %v5789_v14, %v4614_v55  ;;  %v2379_v0 = vshrl.u32 %v5538_v19, 16  ;;  %v5785_v51 = vld [vmem:[%s7222_s16 + $0xcc] sm:$0xe] }
 0x12a   : > { %v5814_v16 = vcombine.low %v8771_v7, %v8783_v25  ;;  %v4611_v40 = vsel %vm7500_vm5, %v4609_v56, %v4610_v60  ;;  %v5800_v56 = vrot.slane %v5784_v23, 9  ;;  %v2382_v24 = vshll.u32 %v5538_v19, 16 }
 0x12b   : > { %6650 = vmatpush3.bf16.msra.mxu1 %v7103_v6  ;;  %v4687_v6 = vrot.slane %v8480_v27, 5  ;;  %v8803_v27 = vsel %vm7500_vm5, %v5799_v47, %v4684_v12  ;;  %v4694_v36 = vrot.slane %v8592_v26, 5  ;;  %v4693_v12 = vrot.slane %v4691_v11, 4 }
 0x12c   : > { %6643 = vmatprep.subr.bf16.mxu1 %v7107_v21  ;;  %v2384_v26 = vrot.slane %v2382_v24, 5  ;;  %v4701_v23 = vrot.slane %v8682_v13, 5 }
 0x12d   : > { %6586 = vmatmul.mubr.bf16.gmra.mrb[28].mxu0 %v5761_v28  ;;  %v4616_v28 = vrot.slane %v4614_v55, 4  ;;  %v8810_v46 = vsel %vm7500_vm5, %v4686_v39, %v4687_v6  ;;  %v8824_v55 = vsel %vm7500_vm5, %v5800_v56, %v4691_v11  ;;  %v4698_v39 = vrot.slane %v8644_v31, 5  ;;  %v7111_v56 = vld [vmem:[%s7222_s16 + $0x74] sm:$0x1] }
 0x12e   : > { %6378 = vmatmul.mubr.bf16.gmra.mrb[12].mxu1 %v7044_v30  ;;  %6605 = vmatprep.mubr.bf16.mxu0 %v5802_v34  ;;  %v7047_v30 = vld [vmem:[%s7222_s16 + $0x78] sm:$0xff]   ;;  %v5804_v34 = vcombine.low %v4608_v49, %v4611_v40  ;;  %v5815_v2 = vcombine.low %v8803_v27, %v8810_v46  ;;  %v8829_v49 = vsel %vm7500_vm5, %v4693_v12, %v4694_v36  ;;  %v2381_v40 = vrot.slane %v2379_v0, 4  ;;  %v7112_v0 = vld [vmem:[%s7222_s16 + $0x88] sm:$0xf] }
 0x12f   : > { %6381 = vmatprep.mubr.bf16.mxu1 %v7046_v52  ;;  %6651 = vmatpush3.bf16.msra.mxu1 %v7107_v21  ;;  %v7048_v52 = vld [vmem:[%s7222_s16 + $0x84] sm:$0xff]   ;;  %v4618_v60 = vsel %vm7500_vm5, %v4616_v28, %v4617_v33  ;;  %v7110_v21 = vld [vmem:[%s7222_s16 + $0x70] sm:$0xf]  ;;  %v5816_v28 = vcombine.low %v8824_v55, %v8829_v49  ;;  %v4700_v19 = vrot.slane %v4698_v39, 4  ;;  %v2436_v24 = vshll.u32 %v7112_v0, 16 }
 0x130   : > { %6644 = vmatprep.subr.bf16.mxu1 %v7109_v10  ;;  %v2388_v48 = vshll.u32 %v7110_v21, 16  ;;  %v2392_v47 = vshrl.u32 %v7110_v21, 16  ;;  %v5805_v6 = vcombine.low %v4615_v1, %v4618_v60  ;;  %v2398_v1 = vshll.u32 %v7111_v56, 16 }
 0x131   : > { %v8851_v11 = vsel %vm7500_vm5, %v4700_v19, %v4701_v23  ;;  %v2440_v21 = vshrl.u32 %v7112_v0, 16  ;;  %v7114_v19 = vld [vmem:[%s7222_s16 + $0xa0] sm:$0xf] }
 0x132   : > { %v8831_v14 = vrot.slane %v2388_v48, 5  ;;  %v2394_v33 = vrot.slane %v2392_v47, 4  ;;  %v2488_v56 = vshrl.u32 %v7114_v19, 16 }
 0x133   : > { %6652 = vmatpush3.bf16.msra.mxu1 %v7109_v10  ;;  %v5801_v10 = vrot.slane %v5785_v51, 9 }
 0x134   : > { %v2395_v31 = vor.u32 %v2394_v33, %v8831_v14  ;;  %v2454_v33 = vshll.u32 %v5547_v61, 16 }
 0x135   : > { %6606 = vmatmul.mubr.bf16.vlgmr.msra.gmra.mrb[0].mxu0 %v5803_v3  ;;  %v7050_v3 = vld [vmem:[%s7222_s16 + $0x9c] sm:$0xff]  }
 0x136   : > { %6382 = vmatmul.mubr.bf16.gmra.mrb[16].mxu1 %v7047_v30  ;;  %6609 = vmatprep.mubr.bf16.mxu0 %v5804_v34  ;;  %v5544_v30 = vld [vmem:[%s7222_s16 + $0x84] sm:$0xf]  ;;  %v8842_v34 = vsel %vm7500_vm5, %v5801_v10, %v4698_v39  ;;  %v2396_v47 = vrot.slane %v2395_v31, 4  ;;  %v7113_v10 = vld [vmem:[%s7222_s16 + $0x94] sm:$0xf]  ;;  %v2456_v0 = vrot.slane %v2454_v33, 5 }
 0x137   : > { %6385 = vmatprep.mubr.bf16.mxu1 %v7048_v52  ;;  %v2385_v52 = vor.u32 %v2384_v26, %v2381_v40  ;;  %v2427_v13 = vshrl.u32 %v5544_v30, 16  ;;  %v2430_v60 = vshll.u32 %v5544_v30, 16  ;;  %v5817_v48 = vcombine.low %v8842_v34, %v8851_v11 }
 0x138   : > { %v8860_v40 = vrot.slane %v2436_v24, 5  ;;  %v2442_v26 = vrot.slane %v2440_v21, 4  ;;  %v2460_v39 = vshll.u32 %v7113_v10, 16  ;;  %v2464_v23 = vshrl.u32 %v7113_v10, 16  ;;  %v7117_v10 = vld [vmem:[%s7222_s16 + $0xa4] sm:$0x1] }
 0x139   : > { %v2386_v36 = vrot.slane %v2385_v52, 4  ;;  %v2429_v12 = vrot.slane %v2427_v13, 4  ;;  %v2432_v51 = vrot.slane %v2430_v60, 5  ;;  %v2484_v52 = vshll.u32 %v7114_v19, 16  ;;  %v7118_v19 = vld [vmem:[%s7222_s16 + $0xac] sm:$0xf] }
 0x13a   : > { %v2443_v13 = vor.u32 %v2442_v26, %v8860_v40  ;;  %v8877_v41 = vrot.slane %v2460_v39, 5  ;;  %v2466_v42 = vrot.slane %v2464_v23, 4  ;;  %v2490_v21 = vrot.slane %v2488_v56, 4  ;;  %v5556_v23 = vld [vmem:[%s7222_s16 + $0xb4] sm:$0xf] }
 0x13b   : > { %v2494_v39 = vshll.u32 %v7117_v10, 16  ;;  %v2512_v15 = vshrl.u32 %v7118_v19, 16  ;;  %v2526_v63 = vshll.u32 %v5556_v23, 16 }
 0x13c   : > { %v2467_v26 = vor.u32 %v2466_v42, %v8877_v41 }
 0x13d   : > { %6610 = vmatmul.mubr.bf16.gmra.mrb[4].mxu0 %v5805_v6  ;;  %v5550_v6 = vld [vmem:[%s7222_s16 + $0x9c] sm:$0xf] }
 0x13e   : > { %6386 = vmatmul.mubr.bf16.gmra.mrb[20].mxu1 %v7049_v18  ;;  %6613 = vmatprep.mubr.bf16.mxu0 %v5806_v8  ;;  %v2400_v8 = vrot.slane %v2398_v1, 5  ;;  %v2451_v18 = vshrl.u32 %v5547_v61, 16  ;;  %v2478_v30 = vshll.u32 %v5550_v6, 16  ;;  %v2391_v1 = vsel %vm7254_vm2, %v2386_v36, %v8831_v14  ;;  %v7053_v61 = vld [vmem:[%s7222_s16 + $0xc0] sm:$0xff]  }
 0x13f   : > { %6389 = vmatprep.mubr.bf16.mxu1 %v7050_v3  ;;  %v2475_v3 = vshrl.u32 %v5550_v6, 16  ;;  %v8879_v14 = vrot.slane %v2484_v52, 5  ;;  %v2508_v52 = vshll.u32 %v7118_v19, 16 }
 0x140   : > { %v2401_v31 = vsel %vm7254_vm2, %v2396_v47, %v2400_v8  ;;  %v2453_v60 = vrot.slane %v2451_v18, 4  ;;  %v2480_v24 = vrot.slane %v2478_v30, 5  ;;  %v2448_v8 = vrot.slane %v2446_v20, 5  ;;  %v7119_v20 = vld [vmem:[%s7222_s16 + $0xb8] sm:$0xf] }
 0x141   : > { %v2444_v47 = vrot.slane %v2443_v13, 4  ;;  %v2491_v33 = vor.u32 %v2490_v21, %v8879_v14  ;;  %v2532_v29 = vshll.u32 %v7119_v20, 16  ;;  %v2536_v44 = vshrl.u32 %v7119_v20, 16 }
 0x143   : > { %v2492_v13 = vrot.slane %v2491_v33, 4 }
 0x145   : > { %6614 = vmatmul.mubr.bf16.gmra.mrb[8].mxu0 %v5807_v54  ;;  %v2433_v54 = vor.u32 %v2432_v51, %v2429_v12  ;;  %v2457_v12 = vor.u32 %v2456_v0, %v2453_v60  ;;  %v7116_v51 = vld [vmem:[%s7222_s16 + $0x98] sm:$0x1]  ;;  %v2496_v60 = vrot.slane %v2494_v39, 5 }
 0x146   : > { %6390 = vmatmul.mubr.bf16.gmra.mrb[24].mxu1 %v7051_v45  ;;  %6617 = vmatprep.mubr.bf16.mxu0 %v5808_v17  ;;  %v2477_v17 = vrot.slane %v2475_v3, 4  ;;  %v5570_v45 = vcombine.low %v2391_v1, %v2401_v31  ;;  %v2470_v6 = vshll.u32 %v7116_v51, 16  ;;  %v2523_v31 = vshrl.u32 %v5556_v23, 16 }
 0x147   : > { %6393 = vmatprep.mubr.bf16.mxu1 %v7052_v9  ;;  %v2434_v36 = vrot.slane %v2433_v54, 4  ;;  %v5553_v9 = vld [vmem:[%s7222_s16 + $0xa8] sm:$0xf]  ;;  %v2458_v56 = vrot.slane %v2457_v12, 4  ;;  %v2497_v32 = vsel %vm7254_vm2, %v2492_v13, %v2496_v60 }
 0x148   : > { %v2481_v18 = vor.u32 %v2480_v24, %v2477_v17  ;;  %v2499_v3 = vshrl.u32 %v5553_v9, 16  ;;  %v2502_v30 = vshll.u32 %v5553_v9, 16  ;;  %v2472_v1 = vrot.slane %v2470_v6, 5 }
 0x149   : > { %v2439_v43 = vsel %vm7254_vm2, %v2434_v36, %v8860_v40  ;;  %v2510_v17 = vrot.slane %v2508_v52, 5  ;;  %v2514_v24 = vrot.slane %v2512_v15, 4  ;;  %v2525_v21 = vrot.slane %v2523_v31, 4  ;;  %v5559_v36 = vld [vmem:[%s7222_s16 + $0xc0] sm:$0xf] }
 0x14a   : > { %v2482_v54 = vrot.slane %v2481_v18, 4  ;;  %v2501_v0 = vrot.slane %v2499_v3, 4  ;;  %v2504_v42 = vrot.slane %v2502_v30, 5  ;;  %v2547_v9 = vshrl.u32 %v5559_v36, 16  ;;  %v7121_v18 = vld [vmem:[%s7222_s16 + $0xc4] sm:$0xf] }
 0x14b   : > { %v2556_v33 = vshll.u32 %v7121_v18, 16 }
 0x14c   : > { %v2487_v51 = vsel %vm7254_vm2, %v2482_v54, %v8879_v14  ;;  %v2505_v5 = vor.u32 %v2504_v42, %v2501_v0  ;;  %v2560_v14 = vshrl.u32 %v7121_v18, 16  ;;  %v2549_v19 = vrot.slane %v2547_v9, 4 }
 0x14d   : > { %6618 = vmatmul.mubr.bf16.gmra.mrb[12].mxu0 %v5809_v38  ;;  %v2449_v38 = vsel %vm7254_vm2, %v2444_v47, %v2448_v8  ;;  %v2538_v8 = vrot.slane %v2536_v44, 4  ;;  %v2463_v47 = vsel %vm7254_vm2, %v2458_v56, %v8877_v41  ;;  %v7120_v41 = vld [vmem:[%s7222_s16 + $0xb0] sm:$0x1]  ;;  %v5574_v58 = vcombine.low %v2487_v51, %v2497_v32  ;;  %v7123_v44 = vld [vmem:[%s7222_s16 + $0xc8] sm:$0x1] }
 0x14e   : > { %6394 = vmatmul.mubr.bf16.gmra.mrb[28].mxu1 %v7053_v61  ;;  %6621 = vmatprep.mubr.bf16.mxu0 %v5810_v35  ;;  %v2468_v35 = vrot.slane %v2467_v26, 4  ;;  %v5572_v40 = vcombine.low %v2439_v43, %v2449_v38  ;;  %v2528_v61 = vrot.slane %v2526_v63, 5  ;;  %v2518_v6 = vshll.u32 %v7120_v41, 16 }
 0x14f   : > { %6429 = vmatprep.mubr.bf16.mxu1 %v5570_v45  ;;  %v2534_v45 = vrot.slane %v2532_v29, 5  ;;  %v2550_v26 = vshll.u32 %v5559_v36, 16  ;;  %v2506_v22 = vrot.slane %v2505_v5, 4  ;;  %v2558_v15 = vrot.slane %v2556_v33, 5 }
 0x150   : > { %v2473_v12 = vsel %vm7254_vm2, %v2468_v35, %v2472_v1  ;;  %v2529_v10 = vor.u32 %v2528_v61, %v2525_v21  ;;  %v2520_v30 = vrot.slane %v2518_v6, 5  ;;  %v2562_v43 = vrot.slane %v2560_v14, 4 }
 0x151   : > { %v2539_v39 = vor.u32 %v2538_v8, %v2534_v45  ;;  %v5573_v3 = vcombine.low %v2463_v47, %v2473_v12  ;;  %v2552_v52 = vrot.slane %v2550_v26, 5  ;;  %v2511_v31 = vsel %vm7254_vm2, %v2506_v22, %v2510_v17  ;;  %v8961_v8 = vld [vmem:[%s9032_s2] ss:$0 sm:$0xff] }
 0x152   : > { %v2530_v38 = vrot.slane %v2529_v10, 4  ;;  %v2563_v29 = vor.u32 %v2562_v43, %v2558_v15  ;;  %v2566_v35 = vshll.u32 %v7123_v44, 16 }
 0x153   : > { %v2540_v56 = vrot.slane %v2539_v39, 4  ;;  %v2553_v20 = vor.u32 %v2552_v52, %v2549_v19 }
 0x154   : > { %v2535_v4 = vsel %vm7254_vm2, %v2530_v38, %v2534_v45  ;;  %v2568_v54 = vrot.slane %v2566_v35, 5 }
 0x155   : > { %6622 = vmatmul.mubr.bf16.gmra.mrb[16].mxu0 %v5811_v62  ;;  %v2515_v62 = vor.u32 %v2514_v24, %v2510_v17  ;;  %v2554_v25 = vrot.slane %v2553_v20, 4 }
 0x156   : > { %6430 = vmatmul.mubr.bf16.vlgmr.msra.gmra.mrb[16].mxu1 %v8702_v50  ;;  %6625 = vmatprep.mubr.bf16.mxu0 %v5812_v59  ;;  %v7122_v50 = vld [vmem:[%s7222_s16 + $0xbc] sm:$0x1] }
 0x157   : > { %6433 = vmatprep.mubr.bf16.mxu1 %v5572_v40  ;;  %v2542_v23 = vshll.u32 %v7122_v50, 16  ;;  %v2516_v59 = vrot.slane %v2515_v62, 4  ;;  %v2559_v13 = vsel %vm7254_vm2, %v2554_v25, %v2558_v15 }
 0x159   : > { %v2544_v1 = vrot.slane %v2542_v23, 5  ;;  %v2521_v63 = vsel %vm7254_vm2, %v2516_v59, %v2520_v30 }
 0x15b   : > { %v2545_v57 = vsel %vm7254_vm2, %v2540_v56, %v2544_v1 }
 0x15c   : > { %v5576_v7 = vcombine.low %v2535_v4, %v2545_v57 }
 0x15d   : > { %6626 = vmatmul.mubr.bf16.gmra.mrb[20].mxu0 %v5813_v53  ;;  %v5575_v53 = vcombine.low %v2511_v31, %v2521_v63 }
 0x15e   : > { %6434 = vmatmul.mubr.bf16.gmra.mrb[20].mxu1 %v5573_v3  ;;  %6629 = vmatprep.mubr.bf16.mxu0 %v5814_v16  ;;  %v2564_v16 = vrot.slane %v2563_v29, 4 }
 0x15f   : > { %6437 = vmatprep.mubr.bf16.mxu1 %v5574_v58 }
 0x160   : > { %v2569_v60 = vsel %vm7254_vm2, %v2564_v16, %v2568_v54 }
 0x161   : > { %v5577_v0 = vcombine.low %v2559_v13, %v2569_v60 }
 0x165   : > { %6630 = vmatmul.mubr.bf16.gmra.mrb[24].mxu0 %v5815_v2 }
 0x166   : > { %6438 = vmatmul.mubr.bf16.gmra.mrb[24].mxu1 %v5575_v53  ;;  %6633 = vmatprep.mubr.bf16.mxu0 %v5816_v28 }
 0x167   : > { %6441 = vmatprep.mubr.bf16.mxu1 %v5576_v7 }
 0x16d   : > { %6634 = vmatmul.mubr.bf16.gmra.mrb[28].mxu0 %v5817_v48 }
 0x16e   : > { %6442 = vmatmul.mubr.bf16.gmra.mrb[28].mxu1 %v5577_v0 }
 0x1e9   : > { %v6367_v27 = vpop.f32.mrb[0].mxu1 }
 0x1ea   : > { %v1979_v46 = vpop.f32.mrb[1].mxu1 }
 0x1eb   : > { %v6368_v2 = vpop.f32.mrb[2].mxu1 }
 0x1ec   : > { %v1982_v42 = vpop.f32.mrb[3].mxu1 }
 0x1f1   : > { %v6371_v17 = vpop.f32.mrb[4].mxu1 }
 0x1f2   : > { %v1995_v55 = vpop.f32.mrb[5].mxu1 }
 0x1f3   : > { %v6372_v49 = vpop.f32.mrb[6].mxu1 }
 0x1f4   : > { %v1998_v28 = vpop.f32.mrb[7].mxu1 }
 0x1f9   : > { %v6375_v24 = vpop.f32.mrb[8].mxu1 }
 0x1fa   : > { %v2011_v40 = vpop.f32.mrb[9].mxu1 }
 0x1fb   : > { %v6376_v21 = vpop.f32.mrb[10].mxu1 }
 0x1fc   : > { %v2014_v61 = vpop.f32.mrb[11].mxu1 }
 0x201   : > { %v8950_v37 = vpop.f32.mrb[12].mxu1 }
 0x202   : > { %v8952_v45 = vpop.f32.mrb[13].mxu1 }
 0x203   : > { %v8954_v34 = vpop.f32.mrb[14].mxu1 }
 0x204   : > { %v8956_v11 = vpop.f32.mrb[15].mxu1 }
 0x208   : > { %v6607_v48 = vpop.f32.mrb[0].mxu0 }
 0x209   : > { %v6653_v36 = vadd.f32 %v6607_v48, %v6367_v27  ;;  %v4865_v47 = vpop.f32.mrb[1].mxu0 }
 0x20a   : > { %v6654_v12 = vadd.f32 %v4865_v47, %v1979_v46  ;;  %v6608_v51 = vpop.f32.mrb[2].mxu0 }
 0x20b   : > { %v5033_v32 = vadd.f32 %v6653_v36, %v8961_v8  ;;  %v6655_v5 = vadd.f32 %v6608_v51, %v6368_v2  ;;  %v4868_v62 = vpop.f32.mrb[3].mxu0 }
 0x20c   : > { %v5031_v41 = vadd.f32 %v6654_v12, %v8961_v8  ;;  %v6656_v6 = vadd.f32 %v4868_v62, %v1982_v42 }
 0x20d   : > { %v5034_v9 = vadd.f32 %v6655_v5, %v8961_v8  ;;  %v5065_v18 = vmax.f32 %v5033_v32, 0.0 }
 0x20e   : > { %v5032_v26 = vadd.f32 %v6656_v6, %v8961_v8  ;;  %v5063_v14 = vmax.f32 %v5031_v41, 0.0 }
 0x20f   : > { %v5066_v33 = vmax.f32 %v5034_v9, 0.0 }
 0x210   : > { %v5064_v10 = vmax.f32 %v5032_v26, 0.0  ;;  %v6611_v39 = vpop.f32.mrb[4].mxu0 }
 0x211   : > { %v5902_v50 = vpack.c.bf16 %v5066_v33, %v5065_v18  ;;  %v6657_v23 = vadd.f32 %v6611_v39, %v6371_v17  ;;  %v4881_v3 = vpop.f32.mrb[5].mxu0 }
 0x212   : > { %v5897_v58 = vpack.c.bf16 %v5064_v10, %v5063_v14  ;;  %v6658_v22 = vadd.f32 %v4881_v3, %v1995_v55  ;;  %v6612_v59 = vpop.f32.mrb[6].mxu0 }
 0x213   : > { %5974 = vst [vmem:[%s8971_s29 + $0x8] sm:$0xff] %v5902_v50   ;;  %v5037_v30 = vadd.f32 %v6657_v23, %v8961_v8  ;;  %v6659_v19 = vadd.f32 %v6612_v59, %v6372_v49  ;;  %v4884_v52 = vpop.f32.mrb[7].mxu0 }
 0x214   : > { %5898 = vst [vmem:[%s8971_s29] sm:$0xff] %v5897_v58   ;;  %v5035_v15 = vadd.f32 %v6658_v22, %v8961_v8  ;;  %v6660_v43 = vadd.f32 %v4884_v52, %v1998_v28 }
 0x215   : > { %v5038_v38 = vadd.f32 %v6659_v19, %v8961_v8  ;;  %v5069_v1 = vmax.f32 %v5037_v30, 0.0 }
 0x216   : > { %v5036_v56 = vadd.f32 %v6660_v43, %v8961_v8  ;;  %v5067_v63 = vmax.f32 %v5035_v15, 0.0 }
 0x217   : > { %v5070_v31 = vmax.f32 %v5038_v38, 0.0 }
 0x218   : > { %v5068_v20 = vmax.f32 %v5036_v56, 0.0  ;;  %v6615_v29 = vpop.f32.mrb[8].mxu0 }
 0x219   : > { %v5912_v44 = vpack.c.bf16 %v5070_v31, %v5069_v1  ;;  %v6661_v35 = vadd.f32 %v6615_v29, %v6375_v24  ;;  %v4897_v4 = vpop.f32.mrb[9].mxu0 }
 0x21a   : > { %v5907_v57 = vpack.c.bf16 %v5068_v20, %v5067_v63  ;;  %v6662_v53 = vadd.f32 %v4897_v4, %v2011_v40  ;;  %v6616_v7 = vpop.f32.mrb[10].mxu0 }
 0x21b   : > { %5976 = vst [vmem:[%s8971_s29 + $0x18] sm:$0xff] %v5912_v44   ;;  %v5041_v25 = vadd.f32 %v6661_v35, %v8961_v8  ;;  %v6663_v16 = vadd.f32 %v6616_v7, %v6376_v21  ;;  %v4900_v54 = vpop.f32.mrb[11].mxu0 }
 0x21c   : > { %5975 = vst [vmem:[%s8971_s29 + $0x10] sm:$0xff] %v5907_v57   ;;  %v5039_v13 = vadd.f32 %v6662_v53, %v8961_v8  ;;  %v6664_v60 = vadd.f32 %v4900_v54, %v2014_v61 }
 0x21d   : > { %v5042_v0 = vadd.f32 %v6663_v16, %v8961_v8  ;;  %v5073_v46 = vmax.f32 %v5041_v25, 0.0 }
 0x21e   : > { %v5040_v27 = vadd.f32 %v6664_v60, %v8961_v8  ;;  %v5071_v42 = vmax.f32 %v5039_v13, 0.0 }
 0x21f   : > { %v5074_v2 = vmax.f32 %v5042_v0, 0.0 }
 0x220   : > { %v5072_v17 = vmax.f32 %v5040_v27, 0.0  ;;  %v6619_v55 = vpop.f32.mrb[12].mxu0 }
 0x221   : > { %v5922_v49 = vpack.c.bf16 %v5074_v2, %v5073_v46  ;;  %v6665_v28 = vadd.f32 %v6619_v55, %v8950_v37  ;;  %v4913_v24 = vpop.f32.mrb[13].mxu0 }
 0x222   : > { %v5917_v40 = vpack.c.bf16 %v5072_v17, %v5071_v42  ;;  %v6666_v21 = vadd.f32 %v4913_v24, %v8952_v45  ;;  %v6620_v48 = vpop.f32.mrb[14].mxu0 }
 0x223   : > { %5978 = vst [vmem:[%s8971_s29 + $0x28] sm:$0xff] %v5922_v49   ;;  %v5045_v61 = vadd.f32 %v6665_v28, %v8961_v8  ;;  %v6667_v36 = vadd.f32 %v6620_v48, %v8954_v34  ;;  %v4916_v47 = vpop.f32.mrb[15].mxu0 }
 0x224   : > { %5977 = vst [vmem:[%s8971_s29 + $0x20] sm:$0xff] %v5917_v40   ;;  %v5043_v12 = vadd.f32 %v6666_v21, %v8961_v8  ;;  %v6668_v51 = vadd.f32 %v4916_v47, %v8956_v11 }
 0x225   : > { %v5046_v32 = vadd.f32 %v6667_v36, %v8961_v8  ;;  %v5077_v5 = vmax.f32 %v5045_v61, 0.0 }
 0x226   : > { %v5044_v37 = vadd.f32 %v6668_v51, %v8961_v8  ;;  %v5075_v62 = vmax.f32 %v5043_v12, 0.0 }
 0x227   : > { %v5078_v45 = vmax.f32 %v5046_v32, 0.0 }
 0x228   : > { %v5076_v41 = vmax.f32 %v5044_v37, 0.0  ;;  %v6623_v6 = vpop.f32.mrb[16].mxu0 }
 0x229   : > { %v5932_v9 = vpack.c.bf16 %v5078_v45, %v5077_v5  ;;  %v6431_v26 = vpop.f32.mrb[16].mxu1  ;;  %v4929_v34 = vpop.f32.mrb[17].mxu0 }
 0x22a   : > { %v5927_v18 = vpack.c.bf16 %v5076_v41, %v5075_v62  ;;  %v6669_v33 = vadd.f32 %v6623_v6, %v6431_v26  ;;  %v2796_v14 = vpop.f32.mrb[17].mxu1  ;;  %v6624_v10 = vpop.f32.mrb[18].mxu0 }
 0x22b   : > { %5980 = vst [vmem:[%s8971_s29 + $0x38] sm:$0xff] %v5932_v9   ;;  %v6670_v39 = vadd.f32 %v4929_v34, %v2796_v14  ;;  %v6432_v11 = vpop.f32.mrb[18].mxu1  ;;  %v4932_v50 = vpop.f32.mrb[19].mxu0 }
 0x22c   : > { %5979 = vst [vmem:[%s8971_s29 + $0x30] sm:$0xff] %v5927_v18   ;;  %v5049_v23 = vadd.f32 %v6669_v33, %v8961_v8  ;;  %v6671_v3 = vadd.f32 %v6624_v10, %v6432_v11  ;;  %v2799_v58 = vpop.f32.mrb[19].mxu1 }
 0x22d   : > { %v5047_v22 = vadd.f32 %v6670_v39, %v8961_v8  ;;  %v6672_v59 = vadd.f32 %v4932_v50, %v2799_v58 }
 0x22e   : > { %v5050_v30 = vadd.f32 %v6671_v3, %v8961_v8  ;;  %v5081_v52 = vmax.f32 %v5049_v23, 0.0 }
 0x22f   : > { %v5048_v19 = vadd.f32 %v6672_v59, %v8961_v8  ;;  %v5079_v38 = vmax.f32 %v5047_v22, 0.0 }
 0x230   : > { %v5082_v15 = vmax.f32 %v5050_v30, 0.0  ;;  %v6627_v43 = vpop.f32.mrb[20].mxu0 }
 0x231   : > { %v5080_v56 = vmax.f32 %v5048_v19, 0.0  ;;  %v6435_v1 = vpop.f32.mrb[20].mxu1  ;;  %v4945_v31 = vpop.f32.mrb[21].mxu0 }
 0x232   : > { %v5942_v63 = vpack.c.bf16 %v5082_v15, %v5081_v52  ;;  %v6673_v20 = vadd.f32 %v6627_v43, %v6435_v1  ;;  %v2812_v29 = vpop.f32.mrb[21].mxu1  ;;  %v6628_v44 = vpop.f32.mrb[22].mxu0 }
 0x233   : > { %v5937_v35 = vpack.c.bf16 %v5080_v56, %v5079_v38  ;;  %v6674_v4 = vadd.f32 %v4945_v31, %v2812_v29  ;;  %v6436_v57 = vpop.f32.mrb[22].mxu1  ;;  %v4948_v53 = vpop.f32.mrb[23].mxu0 }
 0x234   : > { %5982 = vst [vmem:[%s8971_s29 + $0x48] sm:$0xff] %v5942_v63   ;;  %v5053_v7 = vadd.f32 %v6673_v20, %v8961_v8  ;;  %v6675_v25 = vadd.f32 %v6628_v44, %v6436_v57  ;;  %v2815_v16 = vpop.f32.mrb[23].mxu1 }
 0x235   : > { %5981 = vst [vmem:[%s8971_s29 + $0x40] sm:$0xff] %v5937_v35   ;;  %v5051_v54 = vadd.f32 %v6674_v4, %v8961_v8  ;;  %v6676_v13 = vadd.f32 %v4948_v53, %v2815_v16 }
 0x236   : > { %v5054_v60 = vadd.f32 %v6675_v25, %v8961_v8  ;;  %v5085_v27 = vmax.f32 %v5053_v7, 0.0 }
 0x237   : > { %v5052_v0 = vadd.f32 %v6676_v13, %v8961_v8  ;;  %v5083_v42 = vmax.f32 %v5051_v54, 0.0 }
 0x238   : > { %v5086_v46 = vmax.f32 %v5054_v60, 0.0  ;;  %v6631_v2 = vpop.f32.mrb[24].mxu0 }
 0x239   : > { %v5084_v17 = vmax.f32 %v5052_v0, 0.0  ;;  %v6439_v55 = vpop.f32.mrb[24].mxu1  ;;  %v4961_v49 = vpop.f32.mrb[25].mxu0 }
 0x23a   : > { %v5952_v28 = vpack.c.bf16 %v5086_v46, %v5085_v27  ;;  %v6677_v24 = vadd.f32 %v6631_v2, %v6439_v55  ;;  %v2828_v40 = vpop.f32.mrb[25].mxu1  ;;  %v6632_v21 = vpop.f32.mrb[26].mxu0 }
 0x23b   : > { %v5947_v48 = vpack.c.bf16 %v5084_v17, %v5083_v42  ;;  %v6678_v61 = vadd.f32 %v4961_v49, %v2828_v40  ;;  %v6440_v36 = vpop.f32.mrb[26].mxu1  ;;  %v4964_v47 = vpop.f32.mrb[27].mxu0 }
 0x23c   : > { %5984 = vst [vmem:[%s8971_s29 + $0x58] sm:$0xff] %v5952_v28   ;;  %v5057_v12 = vadd.f32 %v6677_v24, %v8961_v8  ;;  %v6679_v51 = vadd.f32 %v6632_v21, %v6440_v36  ;;  %v2831_v32 = vpop.f32.mrb[27].mxu1 }
 0x23d   : > { %5983 = vst [vmem:[%s8971_s29 + $0x50] sm:$0xff] %v5947_v48   ;;  %v5055_v37 = vadd.f32 %v6678_v61, %v8961_v8  ;;  %v6680_v5 = vadd.f32 %v4964_v47, %v2831_v32 }
 0x23e   : > { %v5058_v45 = vadd.f32 %v6679_v51, %v8961_v8  ;;  %v5089_v41 = vmax.f32 %v5057_v12, 0.0 }
 0x23f   : > { %v5056_v62 = vadd.f32 %v6680_v5, %v8961_v8  ;;  %v5087_v26 = vmax.f32 %v5055_v37, 0.0 }
 0x240   : > { %v5090_v6 = vmax.f32 %v5058_v45, 0.0  ;;  %v6635_v9 = vpop.f32.mrb[28].mxu0 }
 0x241   : > { %v5088_v34 = vmax.f32 %v5056_v62, 0.0  ;;  %v6443_v18 = vpop.f32.mrb[28].mxu1  ;;  %v4977_v33 = vpop.f32.mrb[29].mxu0 }
 0x242   : > { %v5962_v14 = vpack.c.bf16 %v5090_v6, %v5089_v41  ;;  %v6681_v10 = vadd.f32 %v6635_v9, %v6443_v18  ;;  %v2844_v39 = vpop.f32.mrb[29].mxu1  ;;  %v6636_v11 = vpop.f32.mrb[30].mxu0 }
 0x243   : > { %v5957_v50 = vpack.c.bf16 %v5088_v34, %v5087_v26  ;;  %v6682_v23 = vadd.f32 %v4977_v33, %v2844_v39  ;;  %v6444_v3 = vpop.f32.mrb[30].mxu1  ;;  %v4980_v58 = vpop.f32.mrb[31].mxu0 }
 0x244   : > { %5986 = vst [vmem:[%s8971_s29 + $0x68] sm:$0xff] %v5962_v14   ;;  %v5061_v22 = vadd.f32 %v6681_v10, %v8961_v8  ;;  %v6683_v59 = vadd.f32 %v6636_v11, %v6444_v3  ;;  %v2847_v30 = vpop.f32.mrb[31].mxu1 }
 0x245   : > { %5985 = vst [vmem:[%s8971_s29 + $0x60] sm:$0xff] %v5957_v50   ;;  %v5059_v19 = vadd.f32 %v6682_v23, %v8961_v8  ;;  %v6684_v52 = vadd.f32 %v4980_v58, %v2847_v30 }
 0x246   : > { %v5062_v15 = vadd.f32 %v6683_v59, %v8961_v8  ;;  %v5093_v38 = vmax.f32 %v5061_v22, 0.0 }
 0x247   : > { %v5060_v43 = vadd.f32 %v6684_v52, %v8961_v8  ;;  %v5091_v1 = vmax.f32 %v5059_v19, 0.0 }
 0x248   : > { %v5094_v56 = vmax.f32 %v5062_v15, 0.0 }
 0x249   : > { %v5092_v31 = vmax.f32 %v5060_v43, 0.0 }
 0x24a   : > { %v5972_v63 = vpack.c.bf16 %v5094_v56, %v5093_v38 }
 0x24b   : > { %v5967_v20 = vpack.c.bf16 %v5092_v31, %v5091_v1 }
 0x24c   : > { %5988 = vst [vmem:[%s8971_s29 + $0x78] sm:$0xff] %v5972_v63  }
 0x24d   : > { %5987 = vst [vmem:[%s8971_s29 + $0x70] sm:$0xff] %v5967_v20  }
 0x24e PF: > { %s13_s14 = sadd.s32 1, %s7146_s14   ;;  %s9100_s12 = smov %s7142_s13 }
 0x24f   : > { %p10_p5 = scmp.ge.s32.totalorder %s13_s14, 4   ;;  %s9101_s13 = smov %s9103_s15 }
 0x251   :  { %12 = sbr.rel (!%p10_p5) target bundleno = 2 (0x2), region = 70 }

// kernel: _lambda_.15
= control target key start
LH: loop header
LB: loop body
LE: loop exit
PB: predicated region body
PF: predicated region fallthrough
CT: control target
= control target key end

     0   :  { %s2926_s1 = inlined_call_operand.vmem [shape: bf16[1152,128], index: 1, kind: input, shape index: {}]   ;;  %s2927_s0 = inlined_call_operand.vmem [shape: bf16[128,1152], index: 0, kind: input, shape index: {}]   ;;  %s2928_s2 = inlined_call_operand.vmem [shape: f32[1,128], index: 2, kind: input, shape index: {}]   ;;  %s2929_s3 = inlined_call_operand.vmem [shape: bf16[128,128], index: 3, kind: output, shape index: {}]  }
   0x1   :  { %v2175_v0 = vld [vmem:[%s2926_s1 + $0x40] sm:$0xff]   ;;  %v2179_v4 = vld [vmem:[%s2926_s1 + $0x48] sm:$0xff]   ;;  %v2183_v8 = vld [vmem:[%s2926_s1 + $0x50] sm:$0xff]  }
   0x2   :  { %v2176_v1 = vld [vmem:[%s2926_s1 + $0xc0] sm:$0xff]   ;;  %1855 = vmatprep.subr.bf16.mxu0 %v2175_v0  ;;  %v2180_v5 = vld [vmem:[%s2926_s1 + $0xc8] sm:$0xff]   ;;  %v2184_v9 = vld [vmem:[%s2926_s1 + $0xd0] sm:$0xff]  }
   0x3   :  { %v2177_v2 = vld [vmem:[%s2926_s1] sm:$0xff]   ;;  %1919 = vmatprep.subr.bf16.mxu1 %v2176_v1  ;;  %v2181_v6 = vld [vmem:[%s2926_s1 + $0x8] sm:$0xff]   ;;  %v2185_v10 = vld [vmem:[%s2926_s1 + $0x10] sm:$0xff]  }
   0x4   :  { %v2178_v3 = vld [vmem:[%s2926_s1 + $0x80] sm:$0xff]   ;;  %1856 = vmatpush3.bf16.msra.mxu0 %v2177_v2  ;;  %v2182_v7 = vld [vmem:[%s2926_s1 + $0x88] sm:$0xff]   ;;  %v2186_v11 = vld [vmem:[%s2926_s1 + $0x90] sm:$0xff]  }
   0x5   :  { %1920 = vmatpush3.bf16.msra.mxu1 %v2178_v3  ;;  %1857 = vmatprep.subr.bf16.mxu0 %v2179_v4  ;;  %v2187_v12 = vld [vmem:[%s2926_s1 + $0x58] sm:$0xff]   ;;  %v2191_v16 = vld [vmem:[%s2926_s1 + $0x60] sm:$0xff]   ;;  %v2195_v20 = vld [vmem:[%s2926_s1 + $0x68] sm:$0xff]  }
   0x6   :  { %1921 = vmatprep.subr.bf16.mxu1 %v2180_v5  ;;  %v2188_v13 = vld [vmem:[%s2926_s1 + $0xd8] sm:$0xff]   ;;  %v2192_v17 = vld [vmem:[%s2926_s1 + $0xe0] sm:$0xff]   ;;  %v2196_v21 = vld [vmem:[%s2926_s1 + $0xe8] sm:$0xff]  }
   0x7   :  { %v2189_v14 = vld [vmem:[%s2926_s1 + $0x18] sm:$0xff]   ;;  %v2193_v18 = vld [vmem:[%s2926_s1 + $0x20] sm:$0xff]   ;;  %v2197_v22 = vld [vmem:[%s2926_s1 + $0x28] sm:$0xff]  }
   0x8   :  { %1858 = vmatpush3.bf16.msra.mxu0 %v2181_v6  ;;  %v2190_v15 = vld [vmem:[%s2926_s1 + $0x98] sm:$0xff]   ;;  %v2194_v19 = vld [vmem:[%s2926_s1 + $0xa0] sm:$0xff]   ;;  %v2198_v23 = vld [vmem:[%s2926_s1 + $0xa8] sm:$0xff]  }
   0x9   :  { %1922 = vmatpush3.bf16.msra.mxu1 %v2182_v7  ;;  %1859 = vmatprep.subr.bf16.mxu0 %v2183_v8  ;;  %v2199_v24 = vld [vmem:[%s2926_s1 + $0x70] sm:$0xff]   ;;  %v2203_v28 = vld [vmem:[%s2926_s1 + $0x78] sm:$0xff]   ;;  %v2207_v32 = vld [vmem:[%s2927_s0] ss:$36 sps:$4 sm:$0xff]  }
   0xa   :  { %1923 = vmatprep.subr.bf16.mxu1 %v2184_v9  ;;  %v2200_v25 = vld [vmem:[%s2926_s1 + $0xf0] sm:$0xff]   ;;  %v2204_v29 = vld [vmem:[%s2926_s1 + $0xf8] sm:$0xff]   ;;  %v2209_v33 = vld [vmem:[%s2927_s0 + $0x4] ss:$36 sps:$4 sm:$0xff]  }
   0xb   :  { %v2201_v26 = vld [vmem:[%s2926_s1 + $0x30] sm:$0xff]   ;;  %v2205_v30 = vld [vmem:[%s2926_s1 + $0x38] sm:$0xff]   ;;  %v2210_v34 = vld [vmem:[%s2927_s0 + $0x8] ss:$36 sps:$4 sm:$0xff]   ;;  %1078 = vmatprep.mubr.bf16.mxu0 %v2209_v33 }
   0xc   :  { %1860 = vmatpush3.bf16.msra.mxu0 %v2185_v10  ;;  %v2202_v27 = vld [vmem:[%s2926_s1 + $0xb0] sm:$0xff]   ;;  %v2206_v31 = vld [vmem:[%s2926_s1 + $0xb8] sm:$0xff]   ;;  %v2213_v36 = vld [vmem:[%s2926_s1 + $0x140] sm:$0xff]  }
   0xd   :  { %1924 = vmatpush3.bf16.msra.mxu1 %v2186_v11  ;;  %1861 = vmatprep.subr.bf16.mxu0 %v2187_v12  ;;  %v2212_v35 = vld [vmem:[%s2927_s0 + $0xc] ss:$36 sps:$4 sm:$0xff]   ;;  %v2214_v37 = vld [vmem:[%s2926_s1 + $0x1c0] sm:$0xff]   ;;  %v2219_v41 = vld [vmem:[%s2927_s0 + $0x54] ss:$36 sps:$4 sm:$0xff]  }
   0xe   :  { %1925 = vmatprep.subr.bf16.mxu1 %v2188_v13  ;;  %1175 = vmatprep.mubr.bf16.mxu1 %v2212_v35  ;;  %v2215_v38 = vld [vmem:[%s2926_s1 + $0x100] sm:$0xff]   ;;  %v2217_v40 = vld [vmem:[%s2927_s0 + $0x4c] ss:$36 sps:$4 sm:$0xff]   ;;  %v2227_v48 = vld [vmem:[%s2927_s0 + $0x94] ss:$36 sps:$4 sm:$0xff]  }
   0xf   :  { %v2216_v39 = vld [vmem:[%s2926_s1 + $0x180] sm:$0xff]   ;;  %v2221_v42 = vld [vmem:[%s2927_s0 + $0x48] ss:$36 sps:$4 sm:$0xff]   ;;  %v2222_v43 = vld [vmem:[%s2927_s0 + $0x50] ss:$36 sps:$4 sm:$0xff]  }
  0x10   :  { %1862 = vmatpush3.bf16.msra.mxu0 %v2189_v14  ;;  %v2223_v44 = vld [vmem:[%s2926_s1 + $0x148] sm:$0xff]   ;;  %v2229_v49 = vld [vmem:[%s2927_s0 + $0x9c] ss:$36 sps:$4 sm:$0xff]   ;;  %v2231_v50 = vld [vmem:[%s2927_s0 + $0x90] ss:$36 sps:$4 sm:$0xff]  }
  0x11   :  { %1926 = vmatpush3.bf16.msra.mxu1 %v2190_v15  ;;  %1863 = vmatprep.subr.bf16.mxu0 %v2191_v16  ;;  %v2224_v45 = vld [vmem:[%s2926_s1 + $0x1c8] sm:$0xff]   ;;  %v2232_v51 = vld [vmem:[%s2927_s0 + $0x98] ss:$36 sps:$4 sm:$0xff]   ;;  %v2233_v52 = vld [vmem:[%s2926_s1 + $0x150] sm:$0xff]  }
  0x12   :  { %1927 = vmatprep.subr.bf16.mxu1 %v2192_v17  ;;  %v2225_v46 = vld [vmem:[%s2926_s1 + $0x108] sm:$0xff]   ;;  %v2234_v53 = vld [vmem:[%s2926_s1 + $0x1d0] sm:$0xff]   ;;  %v2237_v56 = vld [vmem:[%s2927_s0 + $0xdc] ss:$36 sps:$4 sm:$0xff]  }
  0x13   :  { %v2226_v47 = vld [vmem:[%s2926_s1 + $0x188] sm:$0xff]   ;;  %v2235_v54 = vld [vmem:[%s2926_s1 + $0x110] sm:$0xff]   ;;  %v2241_v58 = vld [vmem:[%s2927_s0 + $0xd8] ss:$36 sps:$4 sm:$0xff]  }
  0x14   :  { %1864 = vmatpush3.bf16.msra.mxu0 %v2193_v18  ;;  %v2236_v55 = vld [vmem:[%s2926_s1 + $0x190] sm:$0xff]   ;;  %v2239_v57 = vld [vmem:[%s2927_s0 + $0xe4] ss:$36 sps:$4 sm:$0xff]   ;;  %v2243_v60 = vld [vmem:[%s2926_s1 + $0x158] sm:$0xff]  }
  0x15   :  { %1928 = vmatpush3.bf16.msra.mxu1 %v2194_v19  ;;  %1865 = vmatprep.subr.bf16.mxu0 %v2195_v20  ;;  %v2242_v59 = vld [vmem:[%s2927_s0 + $0xe0] ss:$36 sps:$4 sm:$0xff]   ;;  %v2244_v61 = vld [vmem:[%s2926_s1 + $0x1d8] sm:$0xff]   ;;  %v2249_v1 = vld [vmem:[%s2927_s0 + $0x12c] ss:$36 sps:$4 sm:$0xff]  }
  0x16   :  { %1929 = vmatprep.subr.bf16.mxu1 %v2196_v21  ;;  %v2245_v62 = vld [vmem:[%s2926_s1 + $0x118] sm:$0xff]   ;;  %v2247_v0 = vld [vmem:[%s2927_s0 + $0x124] ss:$36 sps:$4 sm:$0xff]   ;;  %v2257_v8 = vld [vmem:[%s2927_s0 + $0x16c] ss:$36 sps:$4 sm:$0xff]  }
  0x17   :  { %v2246_v63 = vld [vmem:[%s2926_s1 + $0x198] sm:$0xff]   ;;  %v2251_v2 = vld [vmem:[%s2927_s0 + $0x120] ss:$36 sps:$4 sm:$0xff]   ;;  %v2252_v4 = vld [vmem:[%s2927_s0 + $0x128] ss:$36 sps:$4 sm:$0xff]  }
  0x18   :  { %1866 = vmatpush3.bf16.msra.mxu0 %v2197_v22  ;;  %v2253_v3 = vld [vmem:[%s2926_s1 + $0x160] sm:$0xff]   ;;  %v2259_v9 = vld [vmem:[%s2927_s0 + $0x174] ss:$36 sps:$4 sm:$0xff]   ;;  %v2263_v10 = vld [vmem:[%s2926_s1 + $0x168] sm:$0xff]  }
  0x19   :  { %1930 = vmatpush3.bf16.msra.mxu1 %v2198_v23  ;;  %1867 = vmatprep.subr.bf16.mxu0 %v2199_v24  ;;  %v2254_v5 = vld [vmem:[%s2926_s1 + $0x1e0] sm:$0xff]   ;;  %v2264_v11 = vld [vmem:[%s2926_s1 + $0x1e8] sm:$0xff]   ;;  %v2262_v15 = vld [vmem:[%s2927_s0 + $0x170] ss:$36 sps:$4 sm:$0xff]  }
  0x1a   :  { %1931 = vmatprep.subr.bf16.mxu1 %v2200_v25  ;;  %v2255_v6 = vld [vmem:[%s2926_s1 + $0x120] sm:$0xff]   ;;  %v2261_v12 = vld [vmem:[%s2927_s0 + $0x168] ss:$36 sps:$4 sm:$0xff]   ;;  %v2267_v16 = vld [vmem:[%s2927_s0 + $0x1b4] ss:$36 sps:$4 sm:$0xff]  }
  0x1b   :  { %v2256_v7 = vld [vmem:[%s2926_s1 + $0x1a0] sm:$0xff]   ;;  %v2265_v13 = vld [vmem:[%s2926_s1 + $0x128] sm:$0xff]   ;;  %v2273_v18 = vld [vmem:[%s2926_s1 + $0x170] sm:$0xff]  }
  0x1c   :  { %1868 = vmatpush3.bf16.msra.mxu0 %v2201_v26  ;;  %v2266_v14 = vld [vmem:[%s2926_s1 + $0x1a8] sm:$0xff]   ;;  %v2269_v17 = vld [vmem:[%s2927_s0 + $0x1bc] ss:$36 sps:$4 sm:$0xff]   ;;  %v2274_v19 = vld [vmem:[%s2926_s1 + $0x1f0] sm:$0xff]  }
  0x1d   :  { %1932 = vmatpush3.bf16.msra.mxu1 %v2202_v27  ;;  %1869 = vmatprep.subr.bf16.mxu0 %v2203_v28  ;;  %v2275_v20 = vld [vmem:[%s2926_s1 + $0x130] sm:$0xff]   ;;  %v2272_v23 = vld [vmem:[%s2927_s0 + $0x1b8] ss:$36 sps:$4 sm:$0xff]   ;;  %v2279_v25 = vld [vmem:[%s2927_s0 + $0x204] ss:$36 sps:$4 sm:$0xff]  }
  0x1e   :  { %1933 = vmatprep.subr.bf16.mxu1 %v2204_v29  ;;  %v2276_v21 = vld [vmem:[%s2926_s1 + $0x1b0] sm:$0xff]   ;;  %v2277_v24 = vld [vmem:[%s2927_s0 + $0x1fc] ss:$36 sps:$4 sm:$0xff]  }
  0x1f   :  { %v2271_v22 = vld [vmem:[%s2927_s0 + $0x1b0] ss:$36 sps:$4 sm:$0xff]   ;;  %v2283_v26 = vld [vmem:[%s2926_s1 + $0x178] sm:$0xff]  }
  0x20   :  { %1870 = vmatpush3.bf16.msra.mxu0 %v2205_v30  ;;  %v2284_v27 = vld [vmem:[%s2926_s1 + $0x1f8] sm:$0xff]   ;;  %v2287_v35 = vld [vmem:[%s2927_s0 + $0x10] ss:$36 sps:$4 sm:$0xff]  }
  0x21   :  { %1934 = vmatpush3.bf16.msra.mxu1 %v2206_v31  ;;  %1983 = vmatprep.subr.bf16.mxu0 %v2213_v36  ;;  %v2285_v28 = vld [vmem:[%s2926_s1 + $0x138] sm:$0xff]   ;;  %v2282_v31 = vld [vmem:[%s2927_s0 + $0x200] ss:$36 sps:$4 sm:$0xff]  }
  0x22   :  { %2047 = vmatprep.subr.bf16.mxu1 %v2214_v37  ;;  %v2286_v29 = vld [vmem:[%s2926_s1 + $0x1b8] sm:$0xff]  }
  0x23   :  { %1079 = vmatmul.mubr.bf16.vlgmr.msra.gmra.mrb[0].mxu0 %v2207_v32  ;;  %v2281_v30 = vld [vmem:[%s2927_s0 + $0x1f8] ss:$36 sps:$4 sm:$0xff]   ;;  %v2293_v32 = vld [vmem:[%s2926_s1 + $0x200] sm:$0xff]  }
  0x24   :  { %1176 = vmatmul.mubr.bf16.vlgmr.msra.gmra.mrb[0].mxu1 %v2210_v34  ;;  %1984 = vmatpush3.bf16.msra.mxu0 %v2215_v38  ;;  %v2289_v33 = vld [vmem:[%s2927_s0 + $0x14] ss:$36 sps:$4 sm:$0xff]   ;;  %v2292_v34 = vld [vmem:[%s2927_s0 + $0x1c] ss:$36 sps:$4 sm:$0xff]   ;;  %v2296_v38 = vld [vmem:[%s2927_s0 + $0x64] ss:$36 sps:$4 sm:$0xff]  }
  0x25   :  { %2048 = vmatpush3.bf16.msra.mxu1 %v2216_v39  ;;  %1086 = vmatprep.mubr.bf16.mxu0 %v2217_v40  ;;  %v2290_v36 = vld [vmem:[%s2927_s0 + $0x18] ss:$36 sps:$4 sm:$0xff]   ;;  %v2300_v39 = vld [vmem:[%s2926_s1 + $0x208] sm:$0xff]   ;;  %v2307_v40 = vld [vmem:[%s2926_s1 + $0x210] sm:$0xff]  }
  0x26   :  { %1183 = vmatprep.mubr.bf16.mxu1 %v2219_v41  ;;  %1985 = vmatprep.subr.bf16.mxu0 %v2223_v44  ;;  %v2294_v37 = vld [vmem:[%s2927_s0 + $0x5c] ss:$36 sps:$4 sm:$0xff]   ;;  %v2303_v44 = vld [vmem:[%s2927_s0 + $0xac] ss:$36 sps:$4 sm:$0xff]  }
  0x27   :  { %2049 = vmatprep.subr.bf16.mxu1 %v2224_v45  ;;  %v2298_v41 = vld [vmem:[%s2927_s0 + $0x58] ss:$36 sps:$4 sm:$0xff]  }
  0x28   :  { %1986 = vmatpush3.bf16.msra.mxu0 %v2225_v46  ;;  %v2314_v45 = vld [vmem:[%s2926_s1 + $0x218] sm:$0xff]   ;;  %v2321_v46 = vld [vmem:[%s2926_s1 + $0x220] sm:$0xff]  }
  0x29   :  { %2050 = vmatpush3.bf16.msra.mxu1 %v2226_v47  ;;  %1987 = vmatprep.subr.bf16.mxu0 %v2233_v52  ;;  %v2305_v47 = vld [vmem:[%s2927_s0 + $0xa0] ss:$36 sps:$4 sm:$0xff]   ;;  %v2312_v52 = vld [vmem:[%s2927_s0 + $0xe8] ss:$36 sps:$4 sm:$0xff]  }
  0x2a   :  { %2051 = vmatprep.subr.bf16.mxu1 %v2234_v53  ;;  %v2335_v53 = vld [vmem:[%s2926_s1 + $0x230] sm:$0xff]  }
  0x2b   :  { %1087 = vmatmul.mubr.bf16.gmra.mrb[4].mxu0 %v2221_v42  ;;  %v2299_v42 = vld [vmem:[%s2927_s0 + $0x60] ss:$36 sps:$4 sm:$0xff]  }
  0x2c   :  { %1184 = vmatmul.mubr.bf16.gmra.mrb[4].mxu1 %v2222_v43  ;;  %1094 = vmatprep.mubr.bf16.mxu0 %v2227_v48  ;;  %v2301_v43 = vld [vmem:[%s2927_s0 + $0xa4] ss:$36 sps:$4 sm:$0xff]  }
  0x2d   :  { %1191 = vmatprep.mubr.bf16.mxu1 %v2229_v49  ;;  %1988 = vmatpush3.bf16.msra.mxu0 %v2235_v54  ;;  %v2306_v48 = vld [vmem:[%s2927_s0 + $0xa8] ss:$36 sps:$4 sm:$0xff]   ;;  %v2313_v54 = vld [vmem:[%s2927_s0 + $0xf0] ss:$36 sps:$4 sm:$0xff]  }
  0x2e   :  { %2052 = vmatpush3.bf16.msra.mxu1 %v2236_v55  ;;  %1989 = vmatprep.subr.bf16.mxu0 %v2243_v60  ;;  %v2308_v49 = vld [vmem:[%s2927_s0 + $0xec] ss:$36 sps:$4 sm:$0xff]   ;;  %v2315_v55 = vld [vmem:[%s2927_s0 + $0x134] ss:$36 sps:$4 sm:$0xff]   ;;  %v2322_v60 = vld [vmem:[%s2927_s0 + $0x17c] ss:$36 sps:$4 sm:$0xff]  }
  0x2f   :  { %2053 = vmatprep.subr.bf16.mxu1 %v2244_v61  ;;  %v2324_v61 = vld [vmem:[%s2927_s0 + $0x184] ss:$36 sps:$4 sm:$0xff]  }
  0x31   :  { %1990 = vmatpush3.bf16.msra.mxu0 %v2245_v62  ;;  %v2326_v62 = vld [vmem:[%s2927_s0 + $0x178] ss:$36 sps:$4 sm:$0xff]  }
  0x32   :  { %2054 = vmatpush3.bf16.msra.mxu1 %v2246_v63  ;;  %1991 = vmatprep.subr.bf16.mxu0 %v2253_v3  ;;  %v2327_v63 = vld [vmem:[%s2927_s0 + $0x180] ss:$36 sps:$4 sm:$0xff]   ;;  %v2334_v3 = vld [vmem:[%s2927_s0 + $0x1c8] ss:$36 sps:$4 sm:$0xff]  }
  0x33   :  { %1095 = vmatmul.mubr.bf16.gmra.mrb[8].mxu0 %v2231_v50  ;;  %2055 = vmatprep.subr.bf16.mxu1 %v2254_v5  ;;  %v2310_v50 = vld [vmem:[%s2927_s0 + $0xf4] ss:$36 sps:$4 sm:$0xff]  }
  0x34   :  { %1192 = vmatmul.mubr.bf16.gmra.mrb[8].mxu1 %v2232_v51  ;;  %1102 = vmatprep.mubr.bf16.mxu0 %v2237_v56  ;;  %v2328_v51 = vld [vmem:[%s2926_s1 + $0x228] sm:$0xff]   ;;  %v2317_v56 = vld [vmem:[%s2927_s0 + $0x13c] ss:$36 sps:$4 sm:$0xff]   ;;  %v2338_v5 = vld [vmem:[%s2927_s0 + $0x214] ss:$36 sps:$4 sm:$0xff]  }
  0x35   :  { %1199 = vmatprep.mubr.bf16.mxu1 %v2239_v57  ;;  %1992 = vmatpush3.bf16.msra.mxu0 %v2255_v6  ;;  %v2342_v57 = vld [vmem:[%s2926_s1 + $0x238] sm:$0xff]   ;;  %v2340_v6 = vld [vmem:[%s2927_s0 + $0x208] ss:$36 sps:$4 sm:$0xff]  }
  0x36   :  { %2056 = vmatpush3.bf16.msra.mxu1 %v2256_v7  ;;  %1993 = vmatprep.subr.bf16.mxu0 %v2263_v10  ;;  %v2341_v7 = vld [vmem:[%s2927_s0 + $0x210] ss:$36 sps:$4 sm:$0xff]   ;;  %v2345_v10 = vld [vmem:[%s2927_s0 + $0x68] ss:$36 sps:$4 sm:$0xff]  }
  0x37   :  { %2057 = vmatprep.subr.bf16.mxu1 %v2264_v11  ;;  %v2346_v11 = vld [vmem:[%s2927_s0 + $0x188] ss:$36 sps:$4 sm:$0xff]  }
  0x39   :  { %1994 = vmatpush3.bf16.msra.mxu0 %v2265_v13  ;;  %v2348_v13 = vld [vmem:[%s2927_s0 + $0x1d0] ss:$36 sps:$4 sm:$0xff]  }
  0x3a   :  { %2058 = vmatpush3.bf16.msra.mxu1 %v2266_v14  ;;  %1995 = vmatprep.subr.bf16.mxu0 %v2273_v18  ;;  %v2349_v14 = vld [vmem:[%s2927_s0 + $0xf8] ss:$36 sps:$4 sm:$0xff]   ;;  %v2806_v18 = vld [vmem:[%s2928_s2] ss:$0 sm:$0xff] }
  0x3b   :  { %1103 = vmatmul.mubr.bf16.gmra.mrb[12].mxu0 %v2241_v58  ;;  %2059 = vmatprep.subr.bf16.mxu1 %v2274_v19  ;;  %v2319_v58 = vld [vmem:[%s2927_s0 + $0x130] ss:$36 sps:$4 sm:$0xff]  }
  0x3c   :  { %1200 = vmatmul.mubr.bf16.gmra.mrb[12].mxu1 %v2242_v59  ;;  %1110 = vmatprep.mubr.bf16.mxu0 %v2247_v0  ;;  %v2320_v59 = vld [vmem:[%s2927_s0 + $0x138] ss:$36 sps:$4 sm:$0xff]   ;;  %v2329_v0 = vld [vmem:[%s2927_s0 + $0x1c4] ss:$36 sps:$4 sm:$0xff]  }
  0x3d   :  { %1207 = vmatprep.mubr.bf16.mxu1 %v2249_v1  ;;  %1996 = vmatpush3.bf16.msra.mxu0 %v2275_v20  ;;  %v2331_v1 = vld [vmem:[%s2927_s0 + $0x1cc] ss:$36 sps:$4 sm:$0xff]  }
  0x3e   :  { %2060 = vmatpush3.bf16.msra.mxu1 %v2276_v21  ;;  %1997 = vmatprep.subr.bf16.mxu0 %v2283_v26 }
  0x3f   :  { %2061 = vmatprep.subr.bf16.mxu1 %v2284_v27 }
  0x41   :  { %1998 = vmatpush3.bf16.msra.mxu0 %v2285_v28 }
  0x42   :  { %2062 = vmatpush3.bf16.msra.mxu1 %v2286_v29  ;;  %2127 = vmatprep.subr.bf16.mxu0 %v2293_v32 }
  0x43   :  { %1111 = vmatmul.mubr.bf16.gmra.mrb[16].mxu0 %v2251_v2  ;;  %2159 = vmatprep.subr.bf16.mxu1 %v2293_v32  ;;  %v2333_v2 = vld [vmem:[%s2927_s0 + $0x1c0] ss:$36 sps:$4 sm:$0xff]  }
  0x44   :  { %1208 = vmatmul.mubr.bf16.gmra.mrb[16].mxu1 %v2252_v4  ;;  %1118 = vmatprep.mubr.bf16.mxu0 %v2257_v8  ;;  %v2336_v4 = vld [vmem:[%s2927_s0 + $0x20c] ss:$36 sps:$4 sm:$0xff]   ;;  %v2343_v8 = vld [vmem:[%s2927_s0 + $0x20] ss:$36 sps:$4 sm:$0xff]  }
  0x45   :  { %1215 = vmatprep.mubr.bf16.mxu1 %v2259_v9  ;;  %v2344_v9 = vld [vmem:[%s2927_s0 + $0x140] ss:$36 sps:$4 sm:$0xff]  }
  0x4b   :  { %1119 = vmatmul.mubr.bf16.gmra.mrb[20].mxu0 %v2261_v12  ;;  %v2347_v12 = vld [vmem:[%s2927_s0 + $0xb0] ss:$36 sps:$4 sm:$0xff]  }
  0x4c   :  { %1216 = vmatmul.mubr.bf16.gmra.mrb[20].mxu1 %v2262_v15  ;;  %1126 = vmatprep.mubr.bf16.mxu0 %v2267_v16  ;;  %v2350_v15 = vld [vmem:[%s2927_s0 + $0x218] ss:$36 sps:$4 sm:$0xff]  }
  0x4d   :  { %1223 = vmatprep.mubr.bf16.mxu1 %v2269_v17 }
  0x53   :  { %1127 = vmatmul.mubr.bf16.gmra.mrb[24].mxu0 %v2271_v22 }
  0x54   :  { %1224 = vmatmul.mubr.bf16.gmra.mrb[24].mxu1 %v2272_v23  ;;  %1134 = vmatprep.mubr.bf16.mxu0 %v2277_v24 }
  0x55   :  { %1231 = vmatprep.mubr.bf16.mxu1 %v2279_v25 }
  0x5b   :  { %1135 = vmatmul.mubr.bf16.gmra.mrb[28].mxu0 %v2281_v30 }
  0x5c   :  { %1232 = vmatmul.mubr.bf16.gmra.mrb[28].mxu1 %v2282_v31  ;;  %1272 = vmatprep.mubr.bf16.mxu0 %v2289_v33 }
  0x5d   :  { %1369 = vmatprep.mubr.bf16.mxu1 %v2292_v34 }
  0x63   :  { %1273 = vmatmul.mubr.bf16.vlgmr.msra.gmra.mrb[32].mxu0 %v2287_v35 }
  0x64   :  { %1370 = vmatmul.mubr.bf16.vlgmr.msra.gmra.mrb[32].mxu1 %v2290_v36  ;;  %2128 = vmatpush3.bf16.msra.mxu0 %v2293_v32 }
  0x65   :  { %2167 = vmatpush3.bf16.msra.mxu1 %v2293_v32  ;;  %1280 = vmatprep.mubr.bf16.mxu0 %v2294_v37 }
  0x66   :  { %1377 = vmatprep.mubr.bf16.mxu1 %v2296_v38  ;;  %2129 = vmatprep.subr.bf16.mxu0 %v2300_v39 }
  0x67   :  { %2160 = vmatprep.subr.bf16.mxu1 %v2300_v39 }
  0x68   :  { %2130 = vmatpush3.bf16.msra.mxu0 %v2300_v39 }
  0x69   :  { %2168 = vmatpush3.bf16.msra.mxu1 %v2300_v39  ;;  %2131 = vmatprep.subr.bf16.mxu0 %v2307_v40 }
  0x6a   :  { %2161 = vmatprep.subr.bf16.mxu1 %v2307_v40 }
  0x6b   :  { %1281 = vmatmul.mubr.bf16.gmra.mrb[36].mxu0 %v2298_v41 }
  0x6c   :  { %1378 = vmatmul.mubr.bf16.gmra.mrb[36].mxu1 %v2299_v42  ;;  %1288 = vmatprep.mubr.bf16.mxu0 %v2301_v43 }
  0x6d   :  { %1385 = vmatprep.mubr.bf16.mxu1 %v2303_v44  ;;  %2132 = vmatpush3.bf16.msra.mxu0 %v2307_v40 }
  0x6e   :  { %2169 = vmatpush3.bf16.msra.mxu1 %v2307_v40  ;;  %2133 = vmatprep.subr.bf16.mxu0 %v2314_v45 }
  0x6f   :  { %2162 = vmatprep.subr.bf16.mxu1 %v2314_v45 }
  0x71   :  { %2134 = vmatpush3.bf16.msra.mxu0 %v2314_v45 }
  0x72   :  { %2170 = vmatpush3.bf16.msra.mxu1 %v2314_v45  ;;  %2135 = vmatprep.subr.bf16.mxu0 %v2321_v46 }
  0x73   :  { %1289 = vmatmul.mubr.bf16.gmra.mrb[40].mxu0 %v2305_v47  ;;  %2163 = vmatprep.subr.bf16.mxu1 %v2321_v46 }
  0x74   :  { %1386 = vmatmul.mubr.bf16.gmra.mrb[40].mxu1 %v2306_v48  ;;  %1296 = vmatprep.mubr.bf16.mxu0 %v2308_v49 }
  0x75   :  { %1393 = vmatprep.mubr.bf16.mxu1 %v2310_v50  ;;  %2136 = vmatpush3.bf16.msra.mxu0 %v2321_v46 }
  0x76   :  { %2171 = vmatpush3.bf16.msra.mxu1 %v2321_v46  ;;  %2137 = vmatprep.subr.bf16.mxu0 %v2328_v51 }
  0x77   :  { %2164 = vmatprep.subr.bf16.mxu1 %v2328_v51 }
  0x79   :  { %2138 = vmatpush3.bf16.msra.mxu0 %v2328_v51 }
  0x7a   :  { %2172 = vmatpush3.bf16.msra.mxu1 %v2328_v51  ;;  %2139 = vmatprep.subr.bf16.mxu0 %v2335_v53 }
  0x7b   :  { %1297 = vmatmul.mubr.bf16.gmra.mrb[44].mxu0 %v2312_v52  ;;  %2165 = vmatprep.subr.bf16.mxu1 %v2335_v53 }
  0x7c   :  { %1394 = vmatmul.mubr.bf16.gmra.mrb[44].mxu1 %v2313_v54  ;;  %1304 = vmatprep.mubr.bf16.mxu0 %v2315_v55 }
  0x7d   :  { %1401 = vmatprep.mubr.bf16.mxu1 %v2317_v56  ;;  %2140 = vmatpush3.bf16.msra.mxu0 %v2335_v53 }
  0x7e   :  { %2173 = vmatpush3.bf16.msra.mxu1 %v2335_v53  ;;  %2141 = vmatprep.subr.bf16.mxu0 %v2342_v57 }
  0x7f   :  { %2166 = vmatprep.subr.bf16.mxu1 %v2342_v57 }
  0x81   :  { %2142 = vmatpush3.bf16.msra.mxu0 %v2342_v57 }
  0x82   :  { %2174 = vmatpush3.bf16.msra.mxu1 %v2342_v57 }
  0x83   :  { %1305 = vmatmul.mubr.bf16.gmra.mrb[48].mxu0 %v2319_v58 }
  0x84   :  { %1402 = vmatmul.mubr.bf16.gmra.mrb[48].mxu1 %v2320_v59  ;;  %1312 = vmatprep.mubr.bf16.mxu0 %v2322_v60 }
  0x85   :  { %1409 = vmatprep.mubr.bf16.mxu1 %v2324_v61 }
  0x8b   :  { %1313 = vmatmul.mubr.bf16.gmra.mrb[52].mxu0 %v2326_v62 }
  0x8c   :  { %1410 = vmatmul.mubr.bf16.gmra.mrb[52].mxu1 %v2327_v63  ;;  %1320 = vmatprep.mubr.bf16.mxu0 %v2329_v0 }
  0x8d   :  { %1417 = vmatprep.mubr.bf16.mxu1 %v2331_v1 }
  0x93   :  { %1321 = vmatmul.mubr.bf16.gmra.mrb[56].mxu0 %v2333_v2 }
  0x94   :  { %1418 = vmatmul.mubr.bf16.gmra.mrb[56].mxu1 %v2334_v3  ;;  %1328 = vmatprep.mubr.bf16.mxu0 %v2336_v4 }
  0x95   :  { %1425 = vmatprep.mubr.bf16.mxu1 %v2338_v5 }
  0x9b   :  { %1329 = vmatmul.mubr.bf16.gmra.mrb[60].mxu0 %v2340_v6 }
  0x9c   :  { %1426 = vmatmul.mubr.bf16.gmra.mrb[60].mxu1 %v2341_v7  ;;  %2143 = vmatprep.mubr.bf16.mxu0 %v2343_v8 }
  0x9d   :  { %2151 = vmatprep.mubr.bf16.mxu1 %v2344_v9 }
  0xa3   :  { %2144 = vmatmul.mubr.bf16.vlgmr.msra.gmra.mrb[64].mxu0 %v2345_v10 }
  0xa4   :  { %2152 = vmatmul.mubr.bf16.vlgmr.msra.gmra.mrb[64].mxu1 %v2346_v11  ;;  %2147 = vmatprep.mubr.bf16.mxu0 %v2347_v12 }
  0xa5   :  { %2155 = vmatprep.mubr.bf16.mxu1 %v2348_v13 }
  0xab   :  { %2148 = vmatmul.mubr.bf16.gmra.mrb[68].mxu0 %v2349_v14 }
  0xac   :  { %2156 = vmatmul.mubr.bf16.gmra.mrb[68].mxu1 %v2350_v15 }
  0xf6   :  { %v1871_v16 = vpop.f32.mrb[0].mxu0 }
  0xf7   :  { %v1935_v17 = vpop.f32.mrb[0].mxu1  ;;  %v1872_v19 = vpop.f32.mrb[1].mxu0 }
  0xf8   :  { %v1873_v20 = vadd.f32 %v1872_v19, %v1871_v16  ;;  %v1936_v21 = vpop.f32.mrb[1].mxu1  ;;  %v1874_v22 = vpop.f32.mrb[2].mxu0 }
  0xf9   :  { %v1937_v23 = vadd.f32 %v1936_v21, %v1935_v17  ;;  %v1938_v24 = vpop.f32.mrb[2].mxu1  ;;  %v1875_v25 = vpop.f32.mrb[3].mxu0 }
  0xfa   :  { %v1081_v26 = vadd.f32 %v1873_v20, %v2806_v18  ;;  %v1876_v27 = vadd.f32 %v1875_v25, %v1874_v22  ;;  %v1939_v28 = vpop.f32.mrb[3].mxu1 }
  0xfb   :  { %v1940_v29 = vadd.f32 %v1939_v28, %v1938_v24 }
  0xfc   :  { %v2809_v30 = vadd.f32 %v1937_v23, %v1081_v26  ;;  %v1084_v31 = vadd.f32 %v1876_v27, %v2806_v18 }
  0xfe   :  { %v2812_v32 = vadd.f32 %v1940_v29, %v1084_v31  ;;  %v1877_v33 = vpop.f32.mrb[4].mxu0 }
  0xff   :  { %v1941_v34 = vpop.f32.mrb[4].mxu1  ;;  %v1878_v35 = vpop.f32.mrb[5].mxu0 }
 0x100   :  { %v1879_v36 = vadd.f32 %v1878_v35, %v1877_v33  ;;  %v1942_v37 = vpop.f32.mrb[5].mxu1  ;;  %v1880_v38 = vpop.f32.mrb[6].mxu0 }
 0x101   :  { %v1943_v39 = vadd.f32 %v1942_v37, %v1941_v34  ;;  %v1944_v40 = vpop.f32.mrb[6].mxu1  ;;  %v1881_v41 = vpop.f32.mrb[7].mxu0 }
 0x102   :  { %v1089_v42 = vadd.f32 %v1879_v36, %v2806_v18  ;;  %v1882_v43 = vadd.f32 %v1881_v41, %v1880_v38  ;;  %v1945_v44 = vpop.f32.mrb[7].mxu1 }
 0x103   :  { %v1946_v45 = vadd.f32 %v1945_v44, %v1944_v40 }
 0x104   :  { %v2815_v46 = vadd.f32 %v1943_v39, %v1089_v42  ;;  %v1092_v47 = vadd.f32 %v1882_v43, %v2806_v18 }
 0x106   :  { %v2818_v48 = vadd.f32 %v1946_v45, %v1092_v47  ;;  %v1883_v49 = vpop.f32.mrb[8].mxu0 }
 0x107   :  { %v1947_v50 = vpop.f32.mrb[8].mxu1  ;;  %v1884_v51 = vpop.f32.mrb[9].mxu0 }
 0x108   :  { %v1885_v52 = vadd.f32 %v1884_v51, %v1883_v49  ;;  %v1948_v53 = vpop.f32.mrb[9].mxu1  ;;  %v1886_v54 = vpop.f32.mrb[10].mxu0 }
 0x109   :  { %v1949_v55 = vadd.f32 %v1948_v53, %v1947_v50  ;;  %v1950_v56 = vpop.f32.mrb[10].mxu1  ;;  %v1887_v57 = vpop.f32.mrb[11].mxu0 }
 0x10a   :  { %v1097_v58 = vadd.f32 %v1885_v52, %v2806_v18  ;;  %v1888_v59 = vadd.f32 %v1887_v57, %v1886_v54  ;;  %v1951_v60 = vpop.f32.mrb[11].mxu1 }
 0x10b   :  { %v1952_v61 = vadd.f32 %v1951_v60, %v1950_v56 }
 0x10c   :  { %v2821_v62 = vadd.f32 %v1949_v55, %v1097_v58  ;;  %v1100_v63 = vadd.f32 %v1888_v59, %v2806_v18 }
 0x10e   :  { %v2824_v0 = vadd.f32 %v1952_v61, %v1100_v63  ;;  %v1889_v1 = vpop.f32.mrb[12].mxu0 }
 0x10f   :  { %v1953_v2 = vpop.f32.mrb[12].mxu1  ;;  %v1890_v3 = vpop.f32.mrb[13].mxu0 }
 0x110   :  { %v1891_v4 = vadd.f32 %v1890_v3, %v1889_v1  ;;  %v1954_v5 = vpop.f32.mrb[13].mxu1  ;;  %v1892_v6 = vpop.f32.mrb[14].mxu0 }
 0x111   :  { %v1955_v7 = vadd.f32 %v1954_v5, %v1953_v2  ;;  %v1956_v8 = vpop.f32.mrb[14].mxu1  ;;  %v1893_v9 = vpop.f32.mrb[15].mxu0 }
 0x112   :  { %v1105_v10 = vadd.f32 %v1891_v4, %v2806_v18  ;;  %v1894_v11 = vadd.f32 %v1893_v9, %v1892_v6  ;;  %v1957_v12 = vpop.f32.mrb[15].mxu1 }
 0x113   :  { %v1958_v13 = vadd.f32 %v1957_v12, %v1956_v8 }
 0x114   :  { %v2827_v14 = vadd.f32 %v1955_v7, %v1105_v10  ;;  %v1108_v15 = vadd.f32 %v1894_v11, %v2806_v18 }
 0x116   :  { %v2830_v16 = vadd.f32 %v1958_v13, %v1108_v15  ;;  %v1895_v17 = vpop.f32.mrb[16].mxu0 }
 0x117   :  { %v1959_v19 = vpop.f32.mrb[16].mxu1  ;;  %v1896_v20 = vpop.f32.mrb[17].mxu0 }
 0x118   :  { %v1897_v21 = vadd.f32 %v1896_v20, %v1895_v17  ;;  %v1960_v22 = vpop.f32.mrb[17].mxu1  ;;  %v1898_v23 = vpop.f32.mrb[18].mxu0 }
 0x119   :  { %v1961_v24 = vadd.f32 %v1960_v22, %v1959_v19  ;;  %v1962_v25 = vpop.f32.mrb[18].mxu1  ;;  %v1899_v26 = vpop.f32.mrb[19].mxu0 }
 0x11a   :  { %v1113_v27 = vadd.f32 %v1897_v21, %v2806_v18  ;;  %v1900_v28 = vadd.f32 %v1899_v26, %v1898_v23  ;;  %v1963_v29 = vpop.f32.mrb[19].mxu1 }
 0x11b   :  { %v1964_v31 = vadd.f32 %v1963_v29, %v1962_v25 }
 0x11c   :  { %v2833_v33 = vadd.f32 %v1961_v24, %v1113_v27  ;;  %v1116_v34 = vadd.f32 %v1900_v28, %v2806_v18 }
 0x11e   :  { %v2836_v35 = vadd.f32 %v1964_v31, %v1116_v34  ;;  %v1901_v36 = vpop.f32.mrb[20].mxu0 }
 0x11f   :  { %v1965_v37 = vpop.f32.mrb[20].mxu1  ;;  %v1902_v38 = vpop.f32.mrb[21].mxu0 }
 0x120   :  { %v1903_v39 = vadd.f32 %v1902_v38, %v1901_v36  ;;  %v1966_v40 = vpop.f32.mrb[21].mxu1  ;;  %v1904_v41 = vpop.f32.mrb[22].mxu0 }
 0x121   :  { %v1967_v42 = vadd.f32 %v1966_v40, %v1965_v37  ;;  %v1968_v43 = vpop.f32.mrb[22].mxu1  ;;  %v1905_v44 = vpop.f32.mrb[23].mxu0 }
 0x122   :  { %v1121_v45 = vadd.f32 %v1903_v39, %v2806_v18  ;;  %v1906_v47 = vadd.f32 %v1905_v44, %v1904_v41  ;;  %v1969_v49 = vpop.f32.mrb[23].mxu1 }
 0x123   :  { %v1970_v50 = vadd.f32 %v1969_v49, %v1968_v43 }
 0x124   :  { %v2839_v51 = vadd.f32 %v1967_v42, %v1121_v45  ;;  %v1124_v52 = vadd.f32 %v1906_v47, %v2806_v18 }
 0x126   :  { %v2842_v53 = vadd.f32 %v1970_v50, %v1124_v52  ;;  %v1907_v54 = vpop.f32.mrb[24].mxu0 }
 0x127   :  { %v1971_v55 = vpop.f32.mrb[24].mxu1  ;;  %v1908_v56 = vpop.f32.mrb[25].mxu0 }
 0x128   :  { %v1909_v57 = vadd.f32 %v1908_v56, %v1907_v54  ;;  %v1972_v58 = vpop.f32.mrb[25].mxu1  ;;  %v1910_v59 = vpop.f32.mrb[26].mxu0 }
 0x129   :  { %v1973_v60 = vadd.f32 %v1972_v58, %v1971_v55  ;;  %v1974_v61 = vpop.f32.mrb[26].mxu1  ;;  %v1911_v63 = vpop.f32.mrb[27].mxu0 }
 0x12a   :  { %v1129_v1 = vadd.f32 %v1909_v57, %v2806_v18  ;;  %v1912_v2 = vadd.f32 %v1911_v63, %v1910_v59  ;;  %v1975_v3 = vpop.f32.mrb[27].mxu1 }
 0x12b   :  { %v1976_v4 = vadd.f32 %v1975_v3, %v1974_v61 }
 0x12c   :  { %v2845_v5 = vadd.f32 %v1973_v60, %v1129_v1  ;;  %v1132_v6 = vadd.f32 %v1912_v2, %v2806_v18 }
 0x12e   :  { %v2848_v7 = vadd.f32 %v1976_v4, %v1132_v6  ;;  %v1913_v8 = vpop.f32.mrb[28].mxu0 }
 0x12f   :  { %v1977_v9 = vpop.f32.mrb[28].mxu1  ;;  %v1914_v10 = vpop.f32.mrb[29].mxu0 }
 0x130   :  { %v1915_v11 = vadd.f32 %v1914_v10, %v1913_v8  ;;  %v1978_v12 = vpop.f32.mrb[29].mxu1  ;;  %v1916_v13 = vpop.f32.mrb[30].mxu0 }
 0x131   :  { %v1979_v15 = vadd.f32 %v1978_v12, %v1977_v9  ;;  %v1980_v17 = vpop.f32.mrb[30].mxu1  ;;  %v1917_v19 = vpop.f32.mrb[31].mxu0 }
 0x132   :  { %v1137_v20 = vadd.f32 %v1915_v11, %v2806_v18  ;;  %v1918_v21 = vadd.f32 %v1917_v19, %v1916_v13  ;;  %v1981_v22 = vpop.f32.mrb[31].mxu1 }
 0x133   :  { %v1982_v23 = vadd.f32 %v1981_v22, %v1980_v17 }
 0x134   :  { %v2851_v24 = vadd.f32 %v1979_v15, %v1137_v20  ;;  %v1140_v25 = vadd.f32 %v1918_v21, %v2806_v18 }
 0x136   :  { %v2854_v26 = vadd.f32 %v1982_v23, %v1140_v25  ;;  %v1999_v27 = vpop.f32.mrb[32].mxu0 }
 0x137   :  { %v2063_v28 = vpop.f32.mrb[32].mxu1  ;;  %v2000_v29 = vpop.f32.mrb[33].mxu0 }
 0x138   :  { %v2001_v31 = vadd.f32 %v2000_v29, %v1999_v27  ;;  %v2064_v34 = vpop.f32.mrb[33].mxu1  ;;  %v2002_v36 = vpop.f32.mrb[34].mxu0 }
 0x139   :  { %v2065_v37 = vadd.f32 %v2064_v34, %v2063_v28  ;;  %v2066_v38 = vpop.f32.mrb[34].mxu1  ;;  %v2003_v39 = vpop.f32.mrb[35].mxu0 }
 0x13a   :  { %v1275_v40 = vadd.f32 %v2001_v31, %v2809_v30  ;;  %v2004_v41 = vadd.f32 %v2003_v39, %v2002_v36  ;;  %v2067_v42 = vpop.f32.mrb[35].mxu1 }
 0x13b   :  { %v2068_v43 = vadd.f32 %v2067_v42, %v2066_v38 }
 0x13c   :  { %v1278_v44 = vadd.f32 %v2004_v41, %v2812_v32  ;;  %v2858_v45 = vadd.f32 %v2065_v37, %v1275_v40 }
 0x13e   :  { %v2005_v18 = vpop.f32.mrb[36].mxu0  ;;  %v2860_v47 = vadd.f32 %v2068_v43, %v1278_v44 }
 0x13f   :  { %v2069_v49 = vpop.f32.mrb[36].mxu1  ;;  %v2006_v50 = vpop.f32.mrb[37].mxu0 }
 0x140   :  { %v2007_v52 = vadd.f32 %v2006_v50, %v2005_v18  ;;  %v2070_v54 = vpop.f32.mrb[37].mxu1  ;;  %v2008_v55 = vpop.f32.mrb[38].mxu0 }
 0x141   :  { %v2071_v56 = vadd.f32 %v2070_v54, %v2069_v49  ;;  %v2072_v57 = vpop.f32.mrb[38].mxu1  ;;  %v2009_v58 = vpop.f32.mrb[39].mxu0 }
 0x142   :  { %v1283_v30 = vadd.f32 %v2007_v52, %v2815_v46  ;;  %v2010_v59 = vadd.f32 %v2009_v58, %v2008_v55  ;;  %v2073_v60 = vpop.f32.mrb[39].mxu1 }
 0x143   :  { %v2074_v61 = vadd.f32 %v2073_v60, %v2072_v57 }
 0x144   :  { %v1286_v32 = vadd.f32 %v2010_v59, %v2818_v48  ;;  %v2864_v63 = vadd.f32 %v2071_v56, %v1283_v30 }
 0x146   :  { %v2011_v1 = vpop.f32.mrb[40].mxu0  ;;  %v2866_v2 = vadd.f32 %v2074_v61, %v1286_v32 }
 0x147   :  { %v2075_v3 = vpop.f32.mrb[40].mxu1  ;;  %v2012_v4 = vpop.f32.mrb[41].mxu0 }
 0x148   :  { %v2013_v6 = vadd.f32 %v2012_v4, %v2011_v1  ;;  %v2076_v8 = vpop.f32.mrb[41].mxu1  ;;  %v2014_v9 = vpop.f32.mrb[42].mxu0 }
 0x149   :  { %v2077_v10 = vadd.f32 %v2076_v8, %v2075_v3  ;;  %v2078_v11 = vpop.f32.mrb[42].mxu1  ;;  %v2015_v12 = vpop.f32.mrb[43].mxu0 }
 0x14a   :  { %v1291_v46 = vadd.f32 %v2013_v6, %v2821_v62  ;;  %v2016_v13 = vadd.f32 %v2015_v12, %v2014_v9  ;;  %v2079_v15 = vpop.f32.mrb[43].mxu1 }
 0x14b   :  { %v2080_v17 = vadd.f32 %v2079_v15, %v2078_v11 }
 0x14c   :  { %v1294_v48 = vadd.f32 %v2016_v13, %v2824_v0  ;;  %v2870_v19 = vadd.f32 %v2077_v10, %v1291_v46 }
 0x14e   :  { %v2017_v20 = vpop.f32.mrb[44].mxu0  ;;  %v2872_v21 = vadd.f32 %v2080_v17, %v1294_v48 }
 0x14f   :  { %v2081_v22 = vpop.f32.mrb[44].mxu1  ;;  %v2018_v23 = vpop.f32.mrb[45].mxu0 }
 0x150   :  { %v2019_v25 = vadd.f32 %v2018_v23, %v2017_v20  ;;  %v2082_v27 = vpop.f32.mrb[45].mxu1  ;;  %v2020_v28 = vpop.f32.mrb[46].mxu0 }
 0x151   :  { %v2083_v29 = vadd.f32 %v2082_v27, %v2081_v22  ;;  %v2084_v31 = vpop.f32.mrb[46].mxu1  ;;  %v2021_v34 = vpop.f32.mrb[47].mxu0 }
 0x152   :  { %v1299_v62 = vadd.f32 %v2019_v25, %v2827_v14  ;;  %v2022_v36 = vadd.f32 %v2021_v34, %v2020_v28  ;;  %v2085_v37 = vpop.f32.mrb[47].mxu1 }
 0x153   :  { %v2086_v38 = vadd.f32 %v2085_v37, %v2084_v31 }
 0x154   :  { %v1302_v0 = vadd.f32 %v2022_v36, %v2830_v16  ;;  %v2876_v39 = vadd.f32 %v2083_v29, %v1299_v62 }
 0x156   :  { %v2023_v40 = vpop.f32.mrb[48].mxu0  ;;  %v2878_v41 = vadd.f32 %v2086_v38, %v1302_v0 }
 0x157   :  { %v2087_v42 = vpop.f32.mrb[48].mxu1  ;;  %v2024_v43 = vpop.f32.mrb[49].mxu0 }
 0x158   :  { %v2025_v44 = vadd.f32 %v2024_v43, %v2023_v40  ;;  %v2088_v18 = vpop.f32.mrb[49].mxu1  ;;  %v2026_v49 = vpop.f32.mrb[50].mxu0 }
 0x159   :  { %v2089_v50 = vadd.f32 %v2088_v18, %v2087_v42  ;;  %v2090_v52 = vpop.f32.mrb[50].mxu1  ;;  %v2027_v54 = vpop.f32.mrb[51].mxu0 }
 0x15a   :  { %v1307_v14 = vadd.f32 %v2025_v44, %v2833_v33  ;;  %v2028_v55 = vadd.f32 %v2027_v54, %v2026_v49  ;;  %v2091_v56 = vpop.f32.mrb[51].mxu1 }
 0x15b   :  { %v2092_v57 = vadd.f32 %v2091_v56, %v2090_v52 }
 0x15c   :  { %v1310_v16 = vadd.f32 %v2028_v55, %v2836_v35  ;;  %v1404_v58 = vadd.f32 %v2089_v50, %v1307_v14 }
 0x15e   :  { %v2029_v30 = vpop.f32.mrb[52].mxu0  ;;  %v2882_v59 = vadd.f32 %v2092_v57, %v1310_v16 }
 0x15f   :  { %v2093_v60 = vpop.f32.mrb[52].mxu1  ;;  %v2030_v61 = vpop.f32.mrb[53].mxu0 }
 0x160   :  { %v2031_v32 = vadd.f32 %v2030_v61, %v2029_v30  ;;  %v2094_v1 = vpop.f32.mrb[53].mxu1  ;;  %v2032_v3 = vpop.f32.mrb[54].mxu0 }
 0x161   :  { %v2095_v4 = vadd.f32 %v2094_v1, %v2093_v60  ;;  %v2096_v6 = vpop.f32.mrb[54].mxu1  ;;  %v2033_v8 = vpop.f32.mrb[55].mxu0 }
 0x162   :  { %v1315_v9 = vadd.f32 %v2031_v32, %v2839_v51  ;;  %v2034_v33 = vadd.f32 %v2033_v8, %v2032_v3  ;;  %v2097_v10 = vpop.f32.mrb[55].mxu1 }
 0x163   :  { %v2098_v11 = vadd.f32 %v2097_v10, %v2096_v6 }
 0x164   :  { %v1318_v12 = vadd.f32 %v2034_v33, %v2842_v53  ;;  %v1412_v35 = vadd.f32 %v2095_v4, %v1315_v9 }
 0x166   :  { %v2035_v46 = vpop.f32.mrb[56].mxu0  ;;  %v1415_v13 = vadd.f32 %v2098_v11, %v1318_v12 }
 0x167   :  { %v2099_v15 = vpop.f32.mrb[56].mxu1  ;;  %v2036_v17 = vpop.f32.mrb[57].mxu0 }
 0x168   :  { %v2037_v48 = vadd.f32 %v2036_v17, %v2035_v46  ;;  %v2100_v20 = vpop.f32.mrb[57].mxu1  ;;  %v2038_v22 = vpop.f32.mrb[58].mxu0 }
 0x169   :  { %v2101_v23 = vadd.f32 %v2100_v20, %v2099_v15  ;;  %v2102_v25 = vpop.f32.mrb[58].mxu1  ;;  %v2039_v27 = vpop.f32.mrb[59].mxu0 }
 0x16a   :  { %v1323_v28 = vadd.f32 %v2037_v48, %v2845_v5  ;;  %v2040_v29 = vadd.f32 %v2039_v27, %v2038_v22  ;;  %v2103_v51 = vpop.f32.mrb[59].mxu1 }
 0x16b   :  { %v2104_v31 = vadd.f32 %v2103_v51, %v2102_v25 }
 0x16c   :  { %v1326_v34 = vadd.f32 %v2040_v29, %v2848_v7  ;;  %v1420_v62 = vadd.f32 %v2101_v23, %v1323_v28 }
 0x16e   :  { %v2041_v53 = vpop.f32.mrb[60].mxu0  ;;  %v2888_v36 = vadd.f32 %v2104_v31, %v1326_v34 }
 0x16f   :  { %v2105_v37 = vpop.f32.mrb[60].mxu1  ;;  %v2042_v38 = vpop.f32.mrb[61].mxu0 }
 0x170   :  { %v2043_v0 = vadd.f32 %v2042_v38, %v2041_v53  ;;  %v2106_v40 = vpop.f32.mrb[61].mxu1  ;;  %v2044_v42 = vpop.f32.mrb[62].mxu0 }
 0x171   :  { %v2107_v43 = vadd.f32 %v2106_v40, %v2105_v37  ;;  %v2108_v44 = vpop.f32.mrb[62].mxu1  ;;  %v2045_v18 = vpop.f32.mrb[63].mxu0 }
 0x172   :  { %v1331_v49 = vadd.f32 %v2043_v0, %v2851_v24  ;;  %v2046_v5 = vadd.f32 %v2045_v18, %v2044_v42  ;;  %v2109_v50 = vpop.f32.mrb[63].mxu1 }
 0x173   :  { %v2110_v52 = vadd.f32 %v2109_v50, %v2108_v44 }
 0x174   :  { %v1334_v54 = vadd.f32 %v2046_v5, %v2854_v26  ;;  %v1428_v7 = vadd.f32 %v2107_v43, %v1331_v49 }
 0x176   :  { %v2145_v14 = vpop.f32.mrb[64].mxu0  ;;  %v1431_v55 = vadd.f32 %v2110_v52, %v1334_v54 }
 0x177   :  { %v1477_v56 = vadd.f32 %v2145_v14, %v2864_v63  ;;  %v2153_v57 = vpop.f32.mrb[64].mxu1  ;;  %v1468_v16 = vpop.f32.mrb[65].mxu0 }
 0x178   :  { %v1509_v30 = vadd.f32 %v2153_v57, %v1412_v35  ;;  %v1469_v60 = vadd.f32 %v1468_v16, %v2858_v45  ;;  %v1500_v61 = vpop.f32.mrb[65].mxu1  ;;  %v2146_v32 = vpop.f32.mrb[66].mxu0 }
 0x179   :  { %v1501_v1 = vadd.f32 %v1500_v61, %v1404_v58  ;;  %v1480_v24 = vadd.f32 %v2146_v32, %v2866_v2  ;;  %v2154_v3 = vpop.f32.mrb[66].mxu1  ;;  %v1471_v4 = vpop.f32.mrb[67].mxu0  ;;  %v1533_v9 = vmax.f32 %v1477_v56, 0.0 }
 0x17a   :  { %v1512_v6 = vadd.f32 %v2154_v3, %v1415_v13  ;;  %v1472_v26 = vadd.f32 %v1471_v4, %v2860_v47  ;;  %v1503_v8 = vpop.f32.mrb[67].mxu1  ;;  %v1541_v10 = vmax.f32 %v1509_v30, 0.0  ;;  %v1531_v11 = vmax.f32 %v1469_v60, 0.0 }
 0x17b   :  { %v1534_v33 = vmax.f32 %v1480_v24, 0.0  ;;  %v1504_v63 = vadd.f32 %v1503_v8, %v2882_v59  ;;  %v1539_v45 = vmax.f32 %v1501_v1, 0.0 }
 0x17c   :  { %v1542_v12 = vmax.f32 %v1512_v6, 0.0  ;;  %v1532_v35 = vmax.f32 %v1472_v26, 0.0 }
 0x17d   :  { %v1816_v46 = vpack.c.bf16 %v1534_v33, %v1533_v9  ;;  %v1540_v15 = vmax.f32 %v1504_v63, 0.0 }
 0x17e   :  { %v1836_v58 = vpack.c.bf16 %v1542_v12, %v1541_v10  ;;  %v1811_v17 = vpack.c.bf16 %v1532_v35, %v1531_v11  ;;  %v2149_v2 = vpop.f32.mrb[68].mxu0 }
 0x17f   :  { %1848 = vst [vmem:[%s2929_s3 + $0x8] sm:$0xff] %v1816_v46   ;;  %v1831_v47 = vpack.c.bf16 %v1540_v15, %v1539_v45  ;;  %v1493_v13 = vadd.f32 %v2149_v2, %v2876_v39  ;;  %v2157_v48 = vpop.f32.mrb[68].mxu1  ;;  %v1484_v20 = vpop.f32.mrb[69].mxu0 }
 0x180   :  { %1852 = vst [vmem:[%s2929_s3 + $0x28] sm:$0xff] %v1836_v58   ;;  %1812 = vst [vmem:[%s2929_s3] sm:$0xff] %v1811_v17   ;;  %v1525_v59 = vadd.f32 %v2157_v48, %v1428_v7  ;;  %v1485_v22 = vadd.f32 %v1484_v20, %v2870_v19  ;;  %v1516_v23 = vpop.f32.mrb[69].mxu1  ;;  %v2150_v25 = vpop.f32.mrb[70].mxu0 }
 0x181   :  { %1851 = vst [vmem:[%s2929_s3 + $0x20] sm:$0xff] %v1831_v47   ;;  %v1517_v39 = vadd.f32 %v1516_v23, %v1420_v62  ;;  %v1496_v27 = vadd.f32 %v2150_v25, %v2878_v41  ;;  %v2158_v28 = vpop.f32.mrb[70].mxu1  ;;  %v1487_v29 = vpop.f32.mrb[71].mxu0  ;;  %v1537_v53 = vmax.f32 %v1493_v13, 0.0 }
 0x182   :  { %v1528_v51 = vadd.f32 %v2158_v28, %v1431_v55  ;;  %v1488_v31 = vadd.f32 %v1487_v29, %v2872_v21  ;;  %v1519_v34 = vpop.f32.mrb[71].mxu1  ;;  %v1545_v19 = vmax.f32 %v1525_v59, 0.0  ;;  %v1535_v0 = vmax.f32 %v1485_v22, 0.0 }
 0x183   :  { %v1538_v37 = vmax.f32 %v1496_v27, 0.0  ;;  %v1520_v38 = vadd.f32 %v1519_v34, %v2888_v36  ;;  %v1543_v43 = vmax.f32 %v1517_v39, 0.0 }
 0x184   :  { %v1546_v40 = vmax.f32 %v1528_v51, 0.0  ;;  %v1536_v42 = vmax.f32 %v1488_v31, 0.0 }
 0x185   :  { %v1826_v44 = vpack.c.bf16 %v1538_v37, %v1537_v53  ;;  %v1544_v18 = vmax.f32 %v1520_v38, 0.0 }
 0x186   :  { %v1846_v62 = vpack.c.bf16 %v1546_v40, %v1545_v19  ;;  %v1821_v49 = vpack.c.bf16 %v1536_v42, %v1535_v0 }
 0x187   :  { %1850 = vst [vmem:[%s2929_s3 + $0x18] sm:$0xff] %v1826_v44   ;;  %v1841_v41 = vpack.c.bf16 %v1544_v18, %v1543_v43 }
 0x188   :  { %1854 = vst [vmem:[%s2929_s3 + $0x38] sm:$0xff] %v1846_v62   ;;  %1849 = vst [vmem:[%s2929_s3 + $0x10] sm:$0xff] %v1821_v49  }
 0x189   :  { %1853 = vst [vmem:[%s2929_s3 + $0x30] sm:$0xff] %v1841_v41  }

// kernel: _lambda_.18
= control target key start
LH: loop header
LB: loop body
LE: loop exit
PB: predicated region body
PF: predicated region fallthrough
CT: control target
= control target key end

     0   :  { %s3158_s12 = smov 0   ;;  %s3160_s13 = smov 0   ;;  %s3746_s0 = inlined_call_operand.vmem [shape: bf16[2,10,10,128], index: 0, kind: input, shape index: {}]   ;;  %s3747_s1 = inlined_call_operand.vmem [shape: bf16[1152,128], index: 1, kind: input, shape index: {}]   ;;  %s3748_s2 = inlined_call_operand.vmem [shape: f32[1,128], index: 2, kind: input, shape index: {}]   ;;  %s3749_s3 = inlined_call_operand.vmem [shape: bf16[2,64,128], index: 3, kind: output, shape index: {}]  }
   0x1   :  { %s3162_s14 = smov 0  }
   0x2 LB: > { %s25_s15 = sadd.s32 1, %s3132_s13  ;;  %p2358_p0 = scmp.ge.s32.totalorder %s3136_s14, 1  ;;  %s3136_s14 = sphi %s3162_s14, %s13_s14   ;;  %s3132_s13 = sphi %s3160_s13, %s3755_s13   ;;  %s3128_s12 = sphi %s3158_s12, %s3754_s12  }
   0x3   : > { %p27_p1 = scmp.ge.s32.totalorder %s25_s15, 2  ;;  %p168_p2 = scmp.lt.s32.totalorder %s3136_s14, 3 }
   0x5   : > { %s3757_s15 = smov (%p27_p1, %s25_s15), 0  ;;  %p169_p3 = pnand %p2358_p0, %p168_p2 }
   0x6   : > { %v3030_v0 = vld [vmem:[%s3747_s1 + $0x40] sm:$0xff] (!%p169_p3)   ;;  %p202_p4 = scmp.lt.s32.totalorder (!%p169_p3), %s3128_s12, 1  ;;  %v3032_v2 = vld [vmem:[%s3747_s1 + $0x48] sm:$0xff] (!%p169_p3)   ;;  %v3034_v4 = vld [vmem:[%s3747_s1 + $0x50] sm:$0xff] (!%p169_p3)   ;;  %vm255_vm0 = vsmask.f32 (!%p169_p3), 3328 }
   0x7   : > { %172 = sbr.rel (%p169_p3) target bundleno = 397 (0x18d), region = 32  ;;  %v3031_v1 = vld [vmem:[%s3747_s1 + $0x100] sm:$0xff] (!%p169_p3)   ;;  %2709 = vmatprep.subr.bf16.mxu1 (!%p169_p3), %v3030_v0  ;;  %v3033_v3 = vld [vmem:[%s3747_s1 + $0x108] sm:$0xff] (!%p169_p3)   ;;  %v3035_v5 = vld [vmem:[%s3747_s1 + $0x110] sm:$0xff] (!%p169_p3)   ;;  %vm256_vm1 = vsmask.f32 (!%p169_p3), 7440 }
   0x8   : > { %2805 = vmatprep.subr.bf16.mxu0 (!%p169_p3), %v3031_v1  ;;  %2710 = vmatpush3.bf16.msra.mxu1 (!%p169_p3), %v3030_v0  ;;  %v3036_v6 = vld [vmem:[%s3747_s1 + $0x58] sm:$0xff] (!%p169_p3)   ;;  %v3038_v8 = vld [vmem:[%s3747_s1 + $0x60] sm:$0xff] (!%p169_p3)   ;;  %v3040_v10 = vld [vmem:[%s3747_s1 + $0x68] sm:$0xff] (!%p169_p3)   ;;  %vm676_vm3 = vcmask (!%p169_p3), 1042432   ;;  %vm677_vm4 = vcmask (!%p169_p3), 1046532  }
   0x9   : > { %2806 = vmatpush3.bf16.msra.mxu0 (!%p169_p3), %v3031_v1  ;;  %2711 = vmatprep.subr.bf16.mxu1 (!%p169_p3), %v3032_v2  ;;  %v3037_v7 = vld [vmem:[%s3747_s1 + $0x118] sm:$0xff] (!%p169_p3)   ;;  %v3039_v9 = vld [vmem:[%s3747_s1 + $0x120] sm:$0xff] (!%p169_p3)   ;;  %v3041_v14 = vld [vmem:[%s3747_s1 + $0x128] sm:$0xff] (!%p169_p3)  }
   0xa   : > { %2807 = vmatprep.subr.bf16.mxu0 (!%p169_p3), %v3033_v3  ;;  %v3042_v22 = vld [vmem:[%s3747_s1 + $0x70] sm:$0xff] (!%p169_p3)   ;;  %v3044_v37 = vld [vmem:[%s3747_s1 + $0x78] sm:$0xff] (!%p169_p3)   ;;  %vm3257_vm2 = vmor (!%p169_p3), %vm255_vm0, %vm256_vm1 }
   0xb   : > { %v3043_v23 = vld [vmem:[%s3747_s1 + $0x130] sm:$0xff] (!%p169_p3)   ;;  %v3045_v47 = vld [vmem:[%s3747_s1 + $0x138] sm:$0xff] (!%p169_p3)   ;;  %v3046_v63 = vld [vmem:[%s3747_s1] sm:$0xff] (!%p169_p3)  }
   0xc   : > { %2712 = vmatpush3.bf16.msra.mxu1 (!%p169_p3), %v3032_v2  ;;  %v3289_v1 = vld [vmem:[%s3747_s1 + $0x140] sm:$0xff] (!%p169_p3)   ;;  %vm3431_vm5 = vmor (!%p169_p3), %vm676_vm3, %vm677_vm4 }
   0xd   : > { %2808 = vmatpush3.bf16.msra.mxu0 (!%p169_p3), %v3033_v3  ;;  %2713 = vmatprep.subr.bf16.mxu1 (!%p169_p3), %v3034_v4  ;;  %v3110_v38 = vld [vmem:[%s3747_s1 + $0x220] sm:$0xff] (!%p169_p3)  }
   0xe   : > { %s3759_s12 = smov (!%p202_p4, %s3128_s12), 1  ;;  %2809 = vmatprep.subr.bf16.mxu0 %v3035_v5 }
   0xf   : > { %s3005_s5 = smul.u32 80, %s3759_s12 }
  0x10   : > { %2714 = vmatpush3.bf16.msra.mxu1 %v3034_v4 }
  0x11   : > { %2810 = vmatpush3.bf16.msra.mxu0 %v3035_v5  ;;  %2715 = vmatprep.subr.bf16.mxu1 %v3036_v6  ;;  %s3212_s16 = scalar_lea.vmem %s3746_s0, %s3005_s5  ;;  %s2569_s5 = sshll.u32 %s3759_s12, 5 }
  0x12   : > { %2811 = vmatprep.subr.bf16.mxu0 %v3037_v7  ;;  %v3218_v11 = vld [vmem:[%s3212_s16] sm:$0xf]  ;;  %v3221_v12 = vld [vmem:[%s3212_s16 + $0x8] sm:$0xf]  ;;  %v3224_v13 = vld [vmem:[%s3212_s16 + $0x4] sm:$0x1]  ;;  %s221_s8 = scalar_lea.vmem %s3749_s3, %s2569_s5 }
  0x13   : > { %v3230_v15 = vld [vmem:[%s3212_s16 + $0xc] sm:$0x1]  ;;  %v259_v16 = vshrl.u32 %v3218_v11, 16  ;;  %v262_v17 = vshll.u32 %v3218_v11, 16  ;;  %v268_v18 = vshll.u32 %v3224_v13, 16  ;;  %v273_v19 = vshrl.u32 %v3221_v12, 16 }
  0x14   : > { %2716 = vmatpush3.bf16.msra.mxu1 %v3036_v6  ;;  %v276_v20 = vshll.u32 %v3221_v12, 16  ;;  %v282_v21 = vshll.u32 %v3230_v15, 16  ;;  %v2426_v30 = vld [vmem:[%s3212_s16 + $0x8] sm:$0xf]  ;;  %v3246_v31 = vld [vmem:[%s3212_s16 + $0xc] sm:$0x1] }
  0x15   : > { %2812 = vmatpush3.bf16.msra.mxu0 %v3037_v7  ;;  %2717 = vmatprep.subr.bf16.mxu1 %v3038_v8  ;;  %v261_v24 = vrot.slane %v259_v16, 4  ;;  %v264_v25 = vrot.slane %v262_v17, 5  ;;  %v270_v26 = vrot.slane %v268_v18, 5  ;;  %v275_v27 = vrot.slane %v273_v19, 4  ;;  %v2428_v33 = vld [vmem:[%s3212_s16 + $0x10] sm:$0xf] }
  0x16   : > { %2813 = vmatprep.subr.bf16.mxu0 %v3039_v9  ;;  %v278_v28 = vrot.slane %v276_v20, 5  ;;  %v284_v29 = vrot.slane %v282_v21, 5  ;;  %v3250_v34 = vld [vmem:[%s3212_s16 + $0x14] sm:$0x1]  ;;  %v1051_v35 = vshrl.u32 %v2426_v30, 16  ;;  %v1054_v36 = vshll.u32 %v2426_v30, 16 }
  0x17   : > { %v265_v32 = vor.u32 %v264_v25, %v261_v24  ;;  %v1060_v40 = vshll.u32 %v3246_v31, 16  ;;  %v1065_v41 = vshrl.u32 %v2428_v33, 16  ;;  %v1068_v42 = vshll.u32 %v2428_v33, 16  ;;  %v3267_v51 = vld [vmem:[%s3212_s16 + $0x10] sm:$0xf] }
  0x18   : > { %2718 = vmatpush3.bf16.msra.mxu1 %v3038_v8  ;;  %v279_v39 = vor.u32 %v278_v28, %v275_v27  ;;  %v1053_v44 = vrot.slane %v1051_v35, 4  ;;  %v1056_v45 = vrot.slane %v1054_v36, 5  ;;  %v1074_v46 = vshll.u32 %v3250_v34, 16  ;;  %v3272_v55 = vld [vmem:[%s3212_s16 + $0x18] sm:$0xf] }
  0x19   : > { %2814 = vmatpush3.bf16.msra.mxu0 %v3039_v9  ;;  %2719 = vmatprep.subr.bf16.mxu1 %v3040_v10  ;;  %v266_v43 = vrot.slane %v265_v32, 4  ;;  %v1067_v49 = vrot.slane %v1065_v41, 4  ;;  %v1070_v50 = vrot.slane %v1068_v42, 5  ;;  %v1062_v54 = vrot.slane %v1060_v40, 5  ;;  %v3275_v56 = vld [vmem:[%s3212_s16 + $0x14] sm:$0x1] }
  0x1a   : > { %2815 = vmatprep.subr.bf16.mxu0 %v3041_v14  ;;  %v280_v48 = vrot.slane %v279_v39, 4  ;;  %v1057_v53 = vor.u32 %v1056_v45, %v1053_v44  ;;  %v1076_v59 = vrot.slane %v1074_v46, 5  ;;  %v3280_v60 = vld [vmem:[%s3212_s16 + $0x1c] sm:$0x1]  ;;  %v287_v61 = vshrl.u32 %v3267_v51, 16 }
  0x1b   : > { %v271_v52 = vsel %vm3257_vm2, %v266_v43, %v270_v26  ;;  %v1071_v58 = vor.u32 %v1070_v50, %v1067_v49  ;;  %v290_v2 = vshll.u32 %v3267_v51, 16  ;;  %v296_v3 = vshll.u32 %v3275_v56, 16  ;;  %v2430_v8 = vld [vmem:[%s3212_s16 + $0x18] sm:$0xf]  ;;  %v3300_v16 = vld [vmem:[%s3212_s16 + $0x1c] sm:$0x1] }
  0x1c   : > { %2720 = vmatpush3.bf16.msra.mxu1 %v3040_v10  ;;  %v285_v57 = vsel %vm3257_vm2, %v280_v48, %v284_v29  ;;  %v1058_v0 = vrot.slane %v1057_v53, 4  ;;  %v289_v5 = vrot.slane %v287_v61, 4  ;;  %v301_v6 = vshrl.u32 %v3272_v55, 16  ;;  %v2432_v17 = vld [vmem:[%s3212_s16 + $0x20] sm:$0xf]  ;;  %v3048_v43 = vld [vmem:[%s3747_s1 + $0x8] sm:$0xff]  }
  0x1d   : > { %2816 = vmatpush3.bf16.msra.mxu0 %v3041_v14  ;;  %2721 = vmatprep.subr.bf16.mxu1 %v3042_v22  ;;  %v2362_v62 = vcombine.low %v271_v52, %v285_v57  ;;  %v1072_v4 = vrot.slane %v1071_v58, 4  ;;  %v304_v7 = vshll.u32 %v3272_v55, 16  ;;  %v292_v10 = vrot.slane %v290_v2, 5  ;;  %v3306_v21 = vld [vmem:[%s3212_s16 + $0x24] sm:$0x1] }
  0x1e   : > { %2817 = vmatprep.subr.bf16.mxu0 %v3043_v23  ;;  %v1063_v9 = vsel %vm3257_vm2, %v1058_v0, %v1062_v54  ;;  %v310_v14 = vshll.u32 %v3280_v60, 16  ;;  %v303_v19 = vrot.slane %v301_v6, 4  ;;  %v298_v24 = vrot.slane %v296_v3, 5  ;;  %v3049_v54 = vld [vmem:[%s3747_s1 + $0x148] sm:$0xff]   ;;  %v3336_v0 = vld [vmem:[%s3212_s16 + $0x24] sm:$0x1] }
  0x1f   : > { %2725 = vmatprep.mubr.bf16.mxu1 %v2362_v62  ;;  %v1077_v18 = vsel %vm3257_vm2, %v1072_v4, %v1076_v59  ;;  %v306_v20 = vrot.slane %v304_v7, 5  ;;  %v1079_v27 = vshrl.u32 %v2430_v8, 16  ;;  %v1082_v28 = vshll.u32 %v2430_v8, 16  ;;  %v3050_v59 = vld [vmem:[%s3747_s1 + $0x10] sm:$0xff]   ;;  %v3330_v62 = vld [vmem:[%s3212_s16 + $0x20] sm:$0xf] }
  0x20   : > { %2722 = vmatpush3.bf16.msra.mxu1 %v3042_v22  ;;  %v2442_v22 = vcombine.low %v1063_v9, %v1077_v18  ;;  %v312_v25 = vrot.slane %v310_v14, 5  ;;  %v1088_v29 = vshll.u32 %v3300_v16, 16  ;;  %v1093_v32 = vshrl.u32 %v2432_v17, 16  ;;  %v3339_v2 = vld [vmem:[%s3212_s16 + $0x2c] sm:$0x1]  ;;  %v3051_v9 = vld [vmem:[%s3747_s1 + $0x150] sm:$0xff]  }
  0x21   : > { %2818 = vmatpush3.bf16.msra.mxu0 %v3043_v23  ;;  %2723 = vmatprep.subr.bf16.mxu1 %v3044_v37  ;;  %v293_v23 = vor.u32 %v292_v10, %v289_v5  ;;  %v307_v26 = vor.u32 %v306_v20, %v303_v19  ;;  %v1096_v33 = vshll.u32 %v2432_v17, 16  ;;  %v1102_v35 = vshll.u32 %v3306_v21, 16  ;;  %v3052_v10 = vld [vmem:[%s3747_s1 + $0x18] sm:$0xff]  }
  0x22   : > { %2819 = vmatprep.subr.bf16.mxu0 %v3045_v47  ;;  %2821 = vmatprep.mubr.bf16.mxu0 %v2442_v22  ;;  %v1084_v39 = vrot.slane %v1082_v28, 5  ;;  %v1095_v41 = vrot.slane %v1093_v32, 4  ;;  %v1090_v46 = vrot.slane %v1088_v29, 5  ;;  %v1341_v57 = vrot.slane %v3246_v31, 5  ;;  %v3053_v29 = vld [vmem:[%s3747_s1 + $0x158] sm:$0xff]  }
  0x23   : > { %v294_v30 = vrot.slane %v293_v23, 4  ;;  %v308_v36 = vrot.slane %v307_v26, 4  ;;  %v1098_v42 = vrot.slane %v1096_v33, 5  ;;  %v315_v3 = vshrl.u32 %v3330_v62, 16  ;;  %v2434_v23 = vld [vmem:[%s3212_s16 + $0x28] sm:$0xf] }
  0x24   : > { %2724 = vmatpush3.bf16.msra.mxu1 %v3044_v37  ;;  %v1081_v37 = vrot.slane %v1079_v27, 4  ;;  %v318_v4 = vshll.u32 %v3330_v62, 16  ;;  %v324_v5 = vshll.u32 %v3336_v0, 16  ;;  %v338_v8 = vshll.u32 %v3339_v2, 16  ;;  %v3360_v26 = vld [vmem:[%s3212_s16 + $0x34] sm:$0x1] }
  0x25   : > { %2820 = vmatpush3.bf16.msra.mxu0 %v3045_v47  ;;  %2733 = vmatprep.subr.bf16.mxu1 %v3046_v63  ;;  %v299_v40 = vsel %vm3257_vm2, %v294_v30, %v298_v24  ;;  %v313_v44 = vsel %vm3257_vm2, %v308_v36, %v312_v25  ;;  %v1104_v47 = vrot.slane %v1102_v35, 5  ;;  %v1099_v49 = vor.u32 %v1098_v42, %v1095_v41  ;;  %v3356_v24 = vld [vmem:[%s3212_s16 + $0x2c] sm:$0x1]  ;;  %v2436_v25 = vld [vmem:[%s3212_s16 + $0x30] sm:$0xf]  ;;  %v3054_v30 = vld [vmem:[%s3747_s1 + $0x20] sm:$0xff]  }
  0x26   : > { %2829 = vmatprep.subr.bf16.mxu0 %v3289_v1  ;;  %v1085_v45 = vor.u32 %v1084_v39, %v1081_v37  ;;  %v2363_v48 = vcombine.low %v299_v40, %v313_v44  ;;  %v317_v14 = vrot.slane %v315_v3, 4  ;;  %v320_v17 = vrot.slane %v318_v4, 5 }
  0x27   : > { %v1100_v52 = vrot.slane %v1099_v49, 4  ;;  %v326_v18 = vrot.slane %v324_v5, 5  ;;  %v340_v22 = vrot.slane %v338_v8, 5  ;;  %v1107_v27 = vshrl.u32 %v2434_v23, 16  ;;  %v2438_v5 = vld [vmem:[%s3212_s16 + $0x38] sm:$0xf] }
  0x28   : > { %v1086_v50 = vrot.slane %v1085_v45, 4  ;;  %2726 = vmatmul.mubr.bf16.vlgmr.msra.gmra.mrb[0].mxu1 %v2363_v48  ;;  %v1110_v28 = vshll.u32 %v2434_v23, 16  ;;  %v1116_v33 = vshll.u32 %v3356_v24, 16  ;;  %v1121_v35 = vshrl.u32 %v2436_v25, 16 }
  0x29   : > { %2734 = vmatpush3.bf16.msra.mxu1 %v3046_v63  ;;  %v1105_v58 = vsel %vm3257_vm2, %v1100_v52, %v1104_v47  ;;  %v3333_v63 = vld [vmem:[%s3212_s16 + $0x28] sm:$0xf]  ;;  %v1124_v36 = vshll.u32 %v2436_v25, 16  ;;  %v1109_v39 = vrot.slane %v1107_v27, 4  ;;  %v1130_v41 = vshll.u32 %v3360_v26, 16 }
  0x2a   : > { %v1091_v53 = vsel %vm3257_vm2, %v1086_v50, %v1090_v46  ;;  %2735 = vmatprep.subr.bf16.mxu1 %v3048_v43  ;;  %v329_v6 = vshrl.u32 %v3333_v63, 16  ;;  %v332_v7 = vshll.u32 %v3333_v63, 16  ;;  %v1112_v40 = vrot.slane %v1110_v28, 5  ;;  %v3371_v46 = vld [vmem:[%s3212_s16 + $0x30] sm:$0xf] }
  0x2b   : > { %v2443_v61 = vcombine.low %v1091_v53, %v1105_v58  ;;  %v1123_v44 = vrot.slane %v1121_v35, 4  ;;  %v1126_v45 = vrot.slane %v1124_v36, 5  ;;  %v1132_v49 = vrot.slane %v1130_v41, 5  ;;  %v3376_v50 = vld [vmem:[%s3212_s16 + $0x38] sm:$0xf] }
  0x2c   : > { %v331_v19 = vrot.slane %v329_v6, 4  ;;  %v334_v20 = vrot.slane %v332_v7, 5  ;;  %v1113_v48 = vor.u32 %v1112_v40, %v1109_v39  ;;  %v3379_v52 = vld [vmem:[%s3212_s16 + $0x34] sm:$0x1]  ;;  %v343_v53 = vshrl.u32 %v3371_v46, 16  ;;  %v3056_v6 = vld [vmem:[%s3747_s1 + $0x28] sm:$0xff]  }
  0x2d   : > { %2822 = vmatmul.mubr.bf16.vlgmr.msra.gmra.mrb[0].mxu0 %v2443_v61  ;;  %2736 = vmatpush3.bf16.msra.mxu1 %v3048_v43  ;;  %v1118_v43 = vrot.slane %v1116_v33, 5  ;;  %v3388_v61 = vld [vmem:[%s3212_s16 + $0x3c] sm:$0x1]  ;;  %v346_v3 = vshll.u32 %v3371_v46, 16  ;;  %v352_v4 = vshll.u32 %v3379_v52, 16  ;;  %v1135_v28 = vshrl.u32 %v2438_v5, 16 }
  0x2e   : > { %2830 = vmatpush3.bf16.msra.mxu0 %v3289_v1  ;;  %2737 = vmatprep.subr.bf16.mxu1 %v3050_v59  ;;  %v321_v1 = vor.u32 %v320_v17, %v317_v14  ;;  %v335_v32 = vor.u32 %v334_v20, %v331_v19  ;;  %v1114_v8 = vrot.slane %v1113_v48, 4  ;;  %v357_v14 = vshrl.u32 %v3376_v50, 16  ;;  %v3398_v17 = vld [vmem:[%s3212_s16 + $0x3c] sm:$0x1]  ;;  %v3406_v27 = vld [vmem:[%s3212_s16 + $0x44] sm:$0x1] }
  0x2f   : > { %2831 = vmatprep.subr.bf16.mxu0 %v3049_v54  ;;  %v348_v19 = vrot.slane %v346_v3, 5  ;;  %v354_v20 = vrot.slane %v352_v4, 5  ;;  %v366_v25 = vshll.u32 %v3388_v61, 16  ;;  %v1138_v36 = vshll.u32 %v2438_v5, 16 }
  0x30   : > { %v322_v37 = vrot.slane %v321_v1, 4  ;;  %v336_v42 = vrot.slane %v335_v32, 4  ;;  %v1119_v23 = vsel %vm3257_vm2, %v1114_v8, %v1118_v43  ;;  %v359_v1 = vrot.slane %v357_v14, 4 }
  0x31   : > { %2738 = vmatpush3.bf16.msra.mxu1 %v3050_v59  ;;  %v1127_v59 = vor.u32 %v1126_v45, %v1123_v44  ;;  %v368_v40 = vrot.slane %v366_v25, 5  ;;  %v1137_v41 = vrot.slane %v1135_v28, 4  ;;  %v1140_v45 = vrot.slane %v1138_v36, 5  ;;  %v2456_v25 = vld [vmem:[%s3212_s16 + $0x18] sm:$0xe] }
  0x32   : > { %2832 = vmatpush3.bf16.msra.mxu0 %v3049_v54  ;;  %2739 = vmatprep.subr.bf16.mxu1 %v3052_v10  ;;  %v327_v47 = vsel %vm3257_vm2, %v322_v37, %v326_v18  ;;  %v3055_v54 = vld [vmem:[%s3747_s1 + $0x160] sm:$0xff]   ;;  %v341_v58 = vsel %vm3257_vm2, %v336_v42, %v340_v22  ;;  %v360_v22 = vshll.u32 %v3376_v50, 16  ;;  %v3058_v37 = vld [vmem:[%s3747_s1 + $0x30] sm:$0xff]   ;;  %v1144_v42 = vshll.u32 %v3398_v17, 16  ;;  %v3061_v28 = vld [vmem:[%s3747_s1 + $0x178] sm:$0xff]  }
  0x33   : > { %2833 = vmatprep.subr.bf16.mxu0 %v3051_v9  ;;  %v2364_v7 = vcombine.low %v327_v47, %v341_v58  ;;  %v1128_v18 = vrot.slane %v1127_v59, 4  ;;  %v1345_v47 = vrot.slane %v3250_v34, 5  ;;  %v1349_v48 = vrot.slane %v3300_v16, 5  ;;  %v3059_v58 = vld [vmem:[%s3747_s1 + $0x170] sm:$0xff]  }
  0x34   : > { %v362_v35 = vrot.slane %v360_v22, 5  ;;  %v1141_v4 = vor.u32 %v1140_v45, %v1137_v41  ;;  %v1146_v34 = vrot.slane %v1144_v42, 5  ;;  %v1353_v22 = vrot.slane %v3306_v21, 5  ;;  %v3064_v41 = vld [vmem:[%s3747_s1 + $0x180] sm:$0xff]  }
  0x35   : > { %2740 = vmatpush3.bf16.msra.mxu1 %v3052_v10  ;;  %v345_v10 = vrot.slane %v343_v53, 4  ;;  %2729 = vmatprep.mubr.bf16.mxu1 %v2364_v7  ;;  %v1133_v32 = vsel %vm3257_vm2, %v1128_v18, %v1132_v49  ;;  %v1158_v53 = vshll.u32 %v3406_v27, 16  ;;  %v2454_v7 = vld [vmem:[%s3212_s16 + $0x8] sm:$0xe]  ;;  %v2464_v36 = vrot.slane %v2456_v25, 9 }
  0x36   : > { %2834 = vmatpush3.bf16.msra.mxu0 %v3051_v9  ;;  %2741 = vmatprep.subr.bf16.mxu1 %v3054_v30  ;;  %v2440_v9 = vld [vmem:[%s3212_s16 + $0x40] sm:$0xf]  ;;  %v2444_v39 = vcombine.low %v1119_v23, %v1133_v32  ;;  %v363_v44 = vor.u32 %v362_v35, %v359_v1  ;;  %v2462_v14 = vrot.slane %v2454_v7, 9  ;;  %v1142_v18 = vrot.slane %v1141_v4, 4 }
  0x37   : > { %2835 = vmatprep.subr.bf16.mxu0 %v3053_v29  ;;  %v349_v33 = vor.u32 %v348_v19, %v345_v10  ;;  %v1152_v49 = vshll.u32 %v2440_v9, 16  ;;  %v2455_v10 = vld [vmem:[%s3212_s16 + $0x10] sm:$0xe]  ;;  %v2374_v19 = vcombine.low %v3218_v11, %v3221_v12  ;;  %v1160_v1 = vrot.slane %v1158_v53, 5  ;;  %v2457_v12 = vld [vmem:[%s3212_s16 + $0x20] sm:$0xe] }
  0x38   : > { %2825 = vmatprep.mubr.bf16.mxu0 %v2444_v39  ;;  %v364_v3 = vrot.slane %v363_v44, 4  ;;  %v1342_v32 = vsel %vm3431_vm5, %v2462_v14, %v1341_v57  ;;  %v1147_v21 = vsel %vm3257_vm2, %v1142_v18, %v1146_v34  ;;  %v3063_v35 = vld [vmem:[%s3747_s1 + $0x80] sm:$0xff]   ;;  %v1350_v42 = vsel %vm3431_vm5, %v2464_v36, %v1349_v48  ;;  %v3068_v44 = vld [vmem:[%s3747_s1 + $0x90] sm:$0xff]  }
  0x39   : > { %2742 = vmatpush3.bf16.msra.mxu1 %v3054_v30  ;;  %v3057_v30 = vld [vmem:[%s3747_s1 + $0x168] sm:$0xff]   ;;  %v350_v43 = vrot.slane %v349_v33, 4  ;;  %v1154_v16 = vrot.slane %v1152_v49, 5  ;;  %v1357_v45 = vrot.slane %v3356_v24, 5  ;;  %v1365_v53 = vrot.slane %v3398_v17, 5  ;;  %v3072_v18 = vld [vmem:[%s3747_s1 + $0xa0] sm:$0xff]  }
  0x3a   : > { %2836 = vmatpush3.bf16.msra.mxu0 %v3053_v29  ;;  %2743 = vmatprep.subr.bf16.mxu1 %v3056_v6  ;;  %v1149_v29 = vshrl.u32 %v2440_v9, 16  ;;  %v1369_v24 = vrot.slane %v3406_v27, 5  ;;  %v685_v34 = vrot.slane %v3230_v15, 5  ;;  %v689_v17 = vrot.slane %v3275_v56, 5  ;;  %v653_v15 = vld [vmem:[%s3212_s16 + $0x8] sm:$0xe] }
  0x3b   : > { %2837 = vmatprep.subr.bf16.mxu0 %v3055_v54  ;;  %v355_v59 = vsel %vm3257_vm2, %v350_v43, %v354_v20  ;;  %v2463_v20 = vrot.slane %v2455_v10, 9  ;;  %v3066_v43 = vld [vmem:[%s3747_s1 + $0x88] sm:$0xff]   ;;  %v3069_v10 = vld [vmem:[%s3747_s1 + $0x190] sm:$0xff]   ;;  %v2387_v14 = vrot.slane %v653_v15, 9  ;;  %v697_v36 = vrot.slane %v3336_v0, 5  ;;  %v3082_v0 = vld [vmem:[%s3747_s1 + $0xc0] sm:$0xff]  }
  0x3c   : > { %v1151_v5 = vrot.slane %v1149_v29, 4  ;;  %v1361_v29 = vrot.slane %v3360_v26, 5  ;;  %v2377_v26 = vcombine.low %v3371_v46, %v3376_v50  ;;  %v3070_v46 = vld [vmem:[%s3747_s1 + $0x98] sm:$0xff]   ;;  %v3087_v15 = vld [vmem:[%s3747_s1 + $0x1c8] sm:$0xff]  }
  0x3d   : > { %2744 = vmatpush3.bf16.msra.mxu1 %v3056_v6  ;;  %v3060_v6 = vld [vmem:[%s3747_s1 + $0x38] sm:$0xff]   ;;  %v1346_v11 = vsel %vm3431_vm5, %v2463_v20, %v1345_v47 }
  0x3e   : > { %2838 = vmatpush3.bf16.msra.mxu0 %v3055_v54  ;;  %2745 = vmatprep.subr.bf16.mxu1 %v3058_v37  ;;  %v369_v54 = vsel %vm3257_vm2, %v364_v3, %v368_v40  ;;  %v1155_v23 = vor.u32 %v1154_v16, %v1151_v5  ;;  %v2470_v57 = vcombine.low %v1342_v32, %v1346_v11  ;;  %v652_v16 = vld [vmem:[%s3212_s16] sm:$0xe]  ;;  %v3071_v20 = vld [vmem:[%s3747_s1 + $0x198] sm:$0xff]  }
  0x3f   : > { %2839 = vmatprep.subr.bf16.mxu0 %v3057_v30  ;;  %v2365_v9 = vcombine.low %v355_v59, %v369_v54  ;;  %v2375_v40 = vcombine.low %v3267_v51, %v3272_v55  ;;  %v2376_v51 = vcombine.low %v3330_v62, %v3333_v63  ;;  %v681_v55 = vrot.slane %v3224_v13, 5  ;;  %v3067_v62 = vld [vmem:[%s3747_s1 + $0x188] sm:$0xff]   ;;  %v2459_v63 = vld [vmem:[%s3212_s16 + $0x30] sm:$0xe]  ;;  %v2461_v59 = vld [vmem:[%s3212_s16 + $0x40] sm:$0xe] }
  0x40   : > { %v1156_v33 = vrot.slane %v1155_v23, 4  ;;  %v2458_v13 = vld [vmem:[%s3212_s16 + $0x28] sm:$0xe]  ;;  %v2467_v49 = vrot.slane %v2459_v63, 9  ;;  %v2469_v7 = vrot.slane %v2461_v59, 9  ;;  %v2386_v56 = vrot.slane %v652_v16, 9 }
  0x41   : > { %2746 = vmatpush3.bf16.msra.mxu1 %v3058_v37  ;;  %v2465_v37 = vrot.slane %v2457_v12, 9  ;;  %v2466_v48 = vrot.slane %v2458_v13, 9  ;;  %v693_v54 = vrot.slane %v3280_v60, 5  ;;  %v654_v23 = vld [vmem:[%s3212_s16 + $0x10] sm:$0xe] }
  0x42   : > { %2840 = vmatpush3.bf16.msra.mxu0 %v3057_v30  ;;  %2730 = vmatmul.mubr.bf16.gmra.mrb[4].mxu1 %v2365_v9  ;;  %v1161_v31 = vsel %vm3257_vm2, %v1156_v33, %v1160_v1  ;;  %v1362_v4 = vsel %vm3431_vm5, %v2467_v49, %v1361_v29  ;;  %v686_v9 = vsel %vm3431_vm5, %v2387_v14, %v685_v34  ;;  %v655_v60 = vld [vmem:[%s3212_s16 + $0x18] sm:$0xe]  ;;  %v2388_v25 = vrot.slane %v654_v23, 9  ;;  %v3074_v33 = vld [vmem:[%s3747_s1 + $0xa8] sm:$0xff]  }
  0x43   : > { %2841 = vmatprep.subr.bf16.mxu0 %v3059_v58  ;;  %2747 = vmatprep.subr.bf16.mxu1 %v3060_v6  ;;  %v2445_v39 = vcombine.low %v1147_v21, %v1161_v31  ;;  %v1354_v30 = vsel %vm3431_vm5, %v2465_v37, %v1353_v22  ;;  %v1358_v3 = vsel %vm3431_vm5, %v2466_v48, %v1357_v45  ;;  %v3083_v32 = vld [vmem:[%s3212_s16 + $0x10] ss:$8 sps:$4 sm:$0xff]   ;;  %v705_v29 = vrot.slane %v3379_v52, 5  ;;  %v3086_v49 = vld [vmem:[%s3747_s1 + $0xc8] sm:$0xff]  }
  0x44   : > { %2749 = vmatprep.mubr.bf16.mxu1 %v2374_v19  ;;  %v2471_v47 = vcombine.low %v1350_v42, %v1354_v30  ;;  %v2472_v27 = vcombine.low %v1358_v3, %v1362_v4  ;;  %v682_v19 = vsel %vm3431_vm5, %v2386_v56, %v681_v55  ;;  %v690_v11 = vsel %vm3431_vm5, %v2388_v25, %v689_v17  ;;  %v3077_v31 = vld [vmem:[%s3747_s1 + $0xb0] sm:$0xff]   ;;  %v3080_v37 = vld [vmem:[%s3747_s1 + $0xb8] sm:$0xff]   ;;  %v2508_v25 = vld [vmem:[%s3212_s16 + $0x28] sm:$0xf] }
  0x45   : > { %2748 = vmatpush3.bf16.msra.mxu1 %v3060_v6  ;;  %2826 = vmatmul.mubr.bf16.gmra.mrb[4].mxu0 %v2445_v39  ;;  %v1370_v6 = vsel %vm3431_vm5, %v2469_v7, %v1369_v24  ;;  %v2394_v1 = vcombine.low %v682_v19, %v686_v9  ;;  %v656_v39 = vld [vmem:[%s3212_s16 + $0x20] sm:$0xe]  ;;  %v3081_v45 = vld [vmem:[%s3747_s1 + $0x1b8] sm:$0xff]   ;;  %v3570_v24 = vld [vmem:[%s3212_s16 + $0x14] sm:$0x1] }
  0x46   : > { %2842 = vmatpush3.bf16.msra.mxu0 %v3059_v58  ;;  %2757 = vmatprep.subr.bf16.mxu1 %v3063_v35  ;;  %v2460_v58 = vld [vmem:[%s3212_s16 + $0x38] sm:$0xe]  ;;  %v2390_v42 = vrot.slane %v656_v39, 9  ;;  %v1720_v59 = vshll.u32 %v3570_v24, 16  ;;  %v3085_v7 = vld [vmem:[%s3212_s16 + $0x20] ss:$8 sps:$4 sm:$0xff]  }
  0x47   : > { %2843 = vmatprep.subr.bf16.mxu0 %v3061_v28  ;;  %2845 = vmatprep.mubr.bf16.mxu0 %v2470_v57  ;;  %v2468_v5 = vrot.slane %v2460_v58, 9  ;;  %v3075_v57 = vld [vmem:[%s3747_s1 + $0x1a8] sm:$0xff]   ;;  %v2504_v52 = vld [vmem:[%s3212_s16 + $0x18] sm:$0xf]  ;;  %v3089_v9 = vld [vmem:[%s3747_s1 + $0x1d0] sm:$0xff]  }
  0x48   : > { %v1725_v3 = vshrl.u32 %v2504_v52, 16  ;;  %v1728_v4 = vshll.u32 %v2504_v52, 16  ;;  %v3096_v56 = vld [vmem:[%s3212_s16 + $0x30] ss:$8 sps:$4 sm:$0xff]   ;;  %v3095_v52 = vld [vmem:[%s3747_s1 + $0x1e8] sm:$0xff]  }
  0x49   : > { %v1366_v50 = vsel %vm3431_vm5, %v2468_v5, %v1365_v53  ;;  %v2502_v53 = vld [vmem:[%s3212_s16 + $0x10] sm:$0xf]  ;;  %v3090_v23 = vld [vmem:[%s3747_s1 + $0xd8] sm:$0xff]  }
  0x4a   : > { %2844 = vmatpush3.bf16.msra.mxu0 %v3061_v28  ;;  %2750 = vmatmul.mubr.bf16.vlgmr.msra.gmra.mrb[0].mxu1 %v2375_v40  ;;  %v2473_v22 = vcombine.low %v1366_v50, %v1370_v6  ;;  %v2389_v28 = vrot.slane %v655_v60, 9  ;;  %v657_v40 = vld [vmem:[%s3212_s16 + $0x28] sm:$0xe]  ;;  %v1714_v58 = vshll.u32 %v2502_v53, 16  ;;  %v1727_v50 = vrot.slane %v1725_v3, 4 }
  0x4b   : > { %2853 = vmatprep.subr.bf16.mxu0 %v3064_v41  ;;  %2758 = vmatpush3.bf16.msra.mxu1 %v3063_v35  ;;  %v3073_v35 = vld [vmem:[%s3747_s1 + $0x1a0] sm:$0xff]   ;;  %v2391_v30 = vrot.slane %v657_v40, 9  ;;  %v1730_v6 = vrot.slane %v1728_v4, 5 }
  0x4c   : > { %2759 = vmatprep.subr.bf16.mxu1 %v3066_v43  ;;  %2753 = vmatprep.mubr.bf16.mxu1 %v2376_v51  ;;  %v694_v12 = vsel %vm3431_vm5, %v2389_v28, %v693_v54  ;;  %v658_v51 = vld [vmem:[%s3212_s16 + $0x30] sm:$0xe]  ;;  %v1716_v16 = vrot.slane %v1714_v58, 5  ;;  %v1722_v54 = vrot.slane %v1720_v59, 5 }
  0x4d   : > { %2846 = vmatmul.mubr.bf16.vlgmr.msra.gmra.mrb[0].mxu0 %v2471_v47  ;;  %v2395_v21 = vcombine.low %v690_v11, %v694_v12  ;;  %v709_v47 = vrot.slane %v3388_v61, 5  ;;  %v2392_v63 = vrot.slane %v658_v51, 9  ;;  %v3574_v61 = vld [vmem:[%s3212_s16 + $0x1c] sm:$0x1]  ;;  %v3098_v11 = vld [vmem:[%s3212_s16 + $0x40] ss:$8 sps:$4 sm:$0xff]  }
  0x4e   : > { %2854 = vmatpush3.bf16.msra.mxu0 %v3064_v41  ;;  %2849 = vmatprep.mubr.bf16.mxu0 %v2472_v27  ;;  %v701_v41 = vrot.slane %v3339_v2, 5  ;;  %v698_v2 = vsel %vm3431_vm5, %v2390_v42, %v697_v36  ;;  %v1734_v5 = vshll.u32 %v3574_v61, 16  ;;  %v2510_v12 = vld [vmem:[%s3212_s16 + $0x30] sm:$0xf]  ;;  %v1756_v36 = vshll.u32 %v2508_v25, 16 }
  0x4f   : > { %2760 = vmatpush3.bf16.msra.mxu1 %v3066_v43  ;;  %2855 = vmatprep.subr.bf16.mxu0 %v3067_v62  ;;  %v3078_v43 = vld [vmem:[%s3747_s1 + $0x1b0] sm:$0xff]   ;;  %v706_v34 = vsel %vm3431_vm5, %v2392_v63, %v705_v29  ;;  %v1767_v40 = vshrl.u32 %v2510_v12, 16  ;;  %v3619_v51 = vld [vmem:[%s3212_s16 + $0x24] sm:$0x1] }
  0x50   : > { %2761 = vmatprep.subr.bf16.mxu1 %v3068_v44  ;;  %v702_v55 = vsel %vm3431_vm5, %v2391_v30, %v701_v41  ;;  %v1736_v19 = vrot.slane %v1734_v5, 5  ;;  %v1770_v41 = vshll.u32 %v2510_v12, 16  ;;  %v1758_v29 = vrot.slane %v1756_v36, 5  ;;  %v2516_v5 = vld [vmem:[%s3212_s16 + $0x48] sm:$0xf]  ;;  %v3101_v12 = vld [vmem:[%s3747_s1 + $0x1f8] sm:$0xff]  }
  0x51   : > { %v2396_v13 = vcombine.low %v698_v2, %v702_v55  ;;  %v3622_v2 = vld [vmem:[%s3212_s16 + $0x2c] sm:$0x1]  ;;  %v1748_v58 = vshll.u32 %v3619_v51, 16 }
  0x52   : > { %2754 = vmatmul.mubr.bf16.gmra.mrb[4].mxu1 %v2377_v26  ;;  %2856 = vmatpush3.bf16.msra.mxu0 %v3067_v62  ;;  %v3084_v62 = vld [vmem:[%s3747_s1 + $0x1c0] sm:$0xff]   ;;  %v1711_v26 = vshrl.u32 %v2502_v53, 16  ;;  %v1772_v63 = vrot.slane %v1770_v41, 5  ;;  %v1762_v59 = vshll.u32 %v3622_v2, 16 }
  0x53   : > { %2762 = vmatpush3.bf16.msra.mxu1 %v3068_v44  ;;  %2857 = vmatprep.subr.bf16.mxu0 %v3069_v10  ;;  %v659_v44 = vld [vmem:[%s3212_s16 + $0x38] sm:$0xe]  ;;  %v2514_v53 = vld [vmem:[%s3212_s16 + $0x40] sm:$0xf] }
  0x54   : > { %2763 = vmatprep.subr.bf16.mxu1 %v3070_v46  ;;  %2773 = vmatprep.mubr.bf16.mxu1 %v2394_v1  ;;  %v2393_v48 = vrot.slane %v659_v44, 9  ;;  %v1713_v27 = vrot.slane %v1711_v26, 4  ;;  %v2506_v1 = vld [vmem:[%s3212_s16 + $0x20] sm:$0xf]  ;;  %v3097_v26 = vld [vmem:[%s3747_s1 + $0xf0] sm:$0xff]  }
  0x55   : > { %2850 = vmatmul.mubr.bf16.gmra.mrb[4].mxu0 %v2473_v22 }
  0x56   : > { %2858 = vmatpush3.bf16.msra.mxu0 %v3069_v10  ;;  %2869 = vmatprep.mubr.bf16.mxu0 %v3083_v32  ;;  %v710_v17 = vsel %vm3431_vm5, %v2393_v48, %v709_v47  ;;  %v1717_v10 = vor.u32 %v1716_v16, %v1713_v27  ;;  %v3625_v47 = vld [vmem:[%s3212_s16 + $0x34] sm:$0x1]  ;;  %v1798_v27 = vshll.u32 %v2514_v53, 16 }
  0x57   : > { %2764 = vmatpush3.bf16.msra.mxu1 %v3070_v46  ;;  %2859 = vmatprep.subr.bf16.mxu0 %v3071_v20  ;;  %v3088_v46 = vld [vmem:[%s3747_s1 + $0xd0] sm:$0xff]   ;;  %v2397_v14 = vcombine.low %v706_v34, %v710_v17  ;;  %v1776_v3 = vshll.u32 %v3625_v47, 16  ;;  %v1795_v17 = vshrl.u32 %v2514_v53, 16  ;;  %v2531_v53 = vld [vmem:[%s3212_s16 + $0x18] sm:$0xe] }
  0x58   : > { %2765 = vmatprep.subr.bf16.mxu1 %v3072_v18  ;;  %v1718_v22 = vrot.slane %v1717_v10, 4 }
  0x5a   : > { %2860 = vmatpush3.bf16.msra.mxu0 %v3071_v20  ;;  %v3102_v20 = vld [vmem:[%s3212_s16 + $0x8] ss:$8 sps:$4 sm:$0xff]   ;;  %v1723_v28 = vsel %vm3257_vm2, %v1718_v22, %v1722_v54 }
  0x5b   : > { %2766 = vmatpush3.bf16.msra.mxu1 %v3072_v18  ;;  %2861 = vmatprep.subr.bf16.mxu0 %v3073_v35  ;;  %v1731_v18 = vor.u32 %v1730_v6, %v1727_v50  ;;  %v1809_v50 = vshrl.u32 %v2516_v5, 16  ;;  %v1812_v6 = vshll.u32 %v2516_v5, 16  ;;  %v2539_v5 = vrot.slane %v2531_v53, 9 }
  0x5c   : > { %2767 = vmatprep.subr.bf16.mxu1 %v3074_v33 }
  0x5d   : > { %v1732_v60 = vrot.slane %v1731_v18, 4  ;;  %v1764_v18 = vrot.slane %v1762_v59, 5  ;;  %v3107_v59 = vld [vmem:[%s3212_s16 + $0x38] ss:$8 sps:$4 sm:$0xff]  }
  0x5e   : > { %2862 = vmatpush3.bf16.msra.mxu0 %v3073_v35  ;;  %v1739_v35 = vshrl.u32 %v2506_v1, 16 }
  0x5f   : > { %2768 = vmatpush3.bf16.msra.mxu1 %v3074_v33  ;;  %2863 = vmatprep.subr.bf16.mxu0 %v3075_v57  ;;  %v1737_v32 = vsel %vm3257_vm2, %v1732_v60, %v1736_v19  ;;  %v3092_v33 = vld [vmem:[%s3747_s1 + $0xe0] sm:$0xff]   ;;  %v3652_v60 = vld [vmem:[%s3212_s16 + $0x4c] sm:$0x1] }
  0x60   : > { %2769 = vmatprep.subr.bf16.mxu1 %v3077_v31  ;;  %v2518_v39 = vcombine.low %v1723_v28, %v1737_v32  ;;  %v1741_v55 = vrot.slane %v1739_v35, 4  ;;  %v1811_v28 = vrot.slane %v1809_v50, 4  ;;  %v1814_v32 = vrot.slane %v1812_v6, 5  ;;  %v3103_v35 = vld [vmem:[%s3212_s16 + $0x18] ss:$8 sps:$4 sm:$0xff]   ;;  %v3111_v6 = vld [vmem:[%s3747_s1 + $0x228] sm:$0xff]  }
  0x62   : > { %2864 = vmatpush3.bf16.msra.mxu0 %v3075_v57  ;;  %v1753_v57 = vshrl.u32 %v2508_v25, 16  ;;  %v1800_v25 = vrot.slane %v1798_v27, 5 }
  0x63   : > { %2770 = vmatpush3.bf16.msra.mxu1 %v3077_v31  ;;  %2865 = vmatprep.subr.bf16.mxu0 %v3078_v43  ;;  %v1742_v31 = vshll.u32 %v2506_v1, 16  ;;  %v1797_v1 = vrot.slane %v1795_v17, 4 }
  0x64   : > { %2771 = vmatprep.subr.bf16.mxu1 %v3080_v37 }
  0x65   : > { %v1744_v44 = vrot.slane %v1742_v31, 5 }
  0x66   : > { %2866 = vmatpush3.bf16.msra.mxu0 %v3078_v43  ;;  %v3093_v43 = vld [vmem:[%s3747_s1 + $0x1e0] sm:$0xff]  }
  0x67   : > { %2772 = vmatpush3.bf16.msra.mxu1 %v3080_v37  ;;  %2867 = vmatprep.subr.bf16.mxu0 %v3081_v45  ;;  %v3091_v37 = vld [vmem:[%s3747_s1 + $0x1d8] sm:$0xff]  }
  0x68   : > { %2781 = vmatprep.subr.bf16.mxu1 %v3082_v0 }
  0x6a   : > { %2774 = vmatmul.mubr.bf16.vlgmr.msra.gmra.mrb[0].mxu1 %v2395_v21  ;;  %2868 = vmatpush3.bf16.msra.mxu0 %v3081_v45  ;;  %v2512_v21 = vld [vmem:[%s3212_s16 + $0x38] sm:$0xf]  ;;  %v1755_v45 = vrot.slane %v1753_v57, 4 }
  0x6b   : > { %2782 = vmatpush3.bf16.msra.mxu1 %v3082_v0  ;;  %2777 = vmatprep.mubr.bf16.mxu1 %v2396_v13  ;;  %v1781_v42 = vshrl.u32 %v2512_v21, 16  ;;  %v1784_v30 = vshll.u32 %v2512_v21, 16  ;;  %v3094_v0 = vld [vmem:[%s3747_s1 + $0xe8] sm:$0xff]   ;;  %v1769_v13 = vrot.slane %v1767_v40, 4  ;;  %v2534_v21 = vld [vmem:[%s3212_s16 + $0x30] sm:$0xe] }
  0x6c   : > { %2783 = vmatprep.subr.bf16.mxu1 %v3086_v49  ;;  %2877 = vmatprep.subr.bf16.mxu0 %v3084_v62  ;;  %v1759_v34 = vor.u32 %v1758_v29, %v1755_v45 }
  0x6d   : > { %2870 = vmatmul.mubr.bf16.vlgmr.msra.gmra.mrb[0].mxu0 %v3085_v7  ;;  %v1783_v48 = vrot.slane %v1781_v42, 4  ;;  %v1745_v7 = vor.u32 %v1744_v44, %v1741_v55  ;;  %v1773_v16 = vor.u32 %v1772_v63, %v1769_v13  ;;  %v1801_v42 = vor.u32 %v1800_v25, %v1797_v1 }
  0x6e   : > { %2878 = vmatpush3.bf16.msra.mxu0 %v3084_v62  ;;  %2873 = vmatprep.mubr.bf16.mxu0 %v3096_v56  ;;  %v3628_v62 = vld [vmem:[%s3212_s16 + $0x3c] sm:$0x1]  ;;  %v3099_v56 = vld [vmem:[%s3747_s1 + $0x1f0] sm:$0xff]   ;;  %v1760_v54 = vrot.slane %v1759_v34, 4  ;;  %v2017_v55 = vrot.slane %v3625_v47, 5  ;;  %v2009_v25 = vrot.slane %v3619_v51, 5 }
  0x6f   : > { %2784 = vmatpush3.bf16.msra.mxu1 %v3086_v49  ;;  %2879 = vmatprep.subr.bf16.mxu0 %v3087_v15  ;;  %v1786_v49 = vrot.slane %v1784_v30, 5  ;;  %v1790_v4 = vshll.u32 %v3628_v62, 16  ;;  %v1746_v10 = vrot.slane %v1745_v7, 4  ;;  %v1774_v19 = vrot.slane %v1773_v16, 4  ;;  %v3109_v16 = vld [vmem:[%s3747_s1 + $0x218] sm:$0xff]  }
  0x70   : > { %2785 = vmatprep.subr.bf16.mxu1 %v3088_v46  ;;  %v1765_v57 = vsel %vm3257_vm2, %v1760_v54, %v1764_v18  ;;  %v1815_v30 = vor.u32 %v1814_v32, %v1811_v28  ;;  %v2021_v45 = vrot.slane %v3628_v62, 5  ;;  %v2005_v7 = vrot.slane %v3574_v61, 5 }
  0x71   : > { %v2029_v54 = vrot.slane %v3652_v60, 5  ;;  %v2013_v32 = vrot.slane %v3622_v2, 5 }
  0x72   : > { %2778 = vmatmul.mubr.bf16.gmra.mrb[4].mxu1 %v2397_v14  ;;  %2880 = vmatpush3.bf16.msra.mxu0 %v3087_v15  ;;  %v3100_v15 = vld [vmem:[%s3747_s1 + $0xf8] sm:$0xff]   ;;  %v1750_v14 = vrot.slane %v1748_v58, 5  ;;  %v3108_v58 = vld [vmem:[%s3747_s1 + $0x210] sm:$0xff]   ;;  %v2006_v61 = vsel %vm3431_vm5, %v2539_v5, %v2005_v7 }
  0x73   : > { %2786 = vmatpush3.bf16.msra.mxu1 %v3088_v46  ;;  %2797 = vmatprep.mubr.bf16.mxu1 %v3102_v20  ;;  %v1787_v46 = vor.u32 %v1786_v49, %v1783_v48  ;;  %v1778_v20 = vrot.slane %v1776_v3, 5  ;;  %v2530_v49 = vld [vmem:[%s3212_s16 + $0x10] sm:$0xe] }
  0x74   : > { %2787 = vmatprep.subr.bf16.mxu1 %v3090_v23  ;;  %2881 = vmatprep.subr.bf16.mxu0 %v3089_v9  ;;  %v1751_v31 = vsel %vm3257_vm2, %v1746_v10, %v1750_v14  ;;  %v2538_v3 = vrot.slane %v2530_v49, 9  ;;  %v2537_v10 = vld [vmem:[%s3212_s16 + $0x48] sm:$0xe] }
  0x75   : > { %2874 = vmatmul.mubr.bf16.gmra.mrb[4].mxu0 %v3098_v11  ;;  %v1788_v22 = vrot.slane %v1787_v46, 4  ;;  %v3104_v11 = vld [vmem:[%s3747_s1 + $0x200] sm:$0xff]   ;;  %v1779_v40 = vsel %vm3257_vm2, %v1774_v19, %v1778_v20  ;;  %v2519_v29 = vcombine.low %v1751_v31, %v1765_v57  ;;  %v2545_v19 = vrot.slane %v2537_v10, 9  ;;  %v3113_v20 = vld [vmem:[%s3747_s1 + $0x238] sm:$0xff]  }
  0x76   : > { %2882 = vmatpush3.bf16.msra.mxu0 %v3089_v9  ;;  %2893 = vmatprep.mubr.bf16.mxu0 %v2518_v39  ;;  %v1792_v9 = vrot.slane %v1790_v4, 5  ;;  %v3106_v39 = vld [vmem:[%s3212_s16 + $0x28] ss:$8 sps:$4 sm:$0xff]   ;;  %v2001_v4 = vrot.slane %v3570_v24, 5 }
  0x77   : > { %2788 = vmatpush3.bf16.msra.mxu1 %v3090_v23  ;;  %2883 = vmatprep.subr.bf16.mxu0 %v3091_v37  ;;  %v3649_v23 = vld [vmem:[%s3212_s16 + $0x44] sm:$0x1] }
  0x78   : > { %2789 = vmatprep.subr.bf16.mxu1 %v3092_v33  ;;  %v1804_v36 = vshll.u32 %v3649_v23, 16  ;;  %v1793_v41 = vsel %vm3257_vm2, %v1788_v22, %v1792_v9  ;;  %v2002_v24 = vsel %vm3431_vm5, %v2538_v3, %v2001_v4  ;;  %v2025_v14 = vrot.slane %v3649_v23, 5  ;;  %v2532_v22 = vld [vmem:[%s3212_s16 + $0x20] sm:$0xe]  ;;  %v2533_v9 = vld [vmem:[%s3212_s16 + $0x28] sm:$0xe] }
  0x79   : > { %v2520_v13 = vcombine.low %v1779_v40, %v1793_v41  ;;  %v2546_v50 = vcombine.low %v2002_v24, %v2006_v61  ;;  %v2030_v23 = vsel %vm3431_vm5, %v2545_v19, %v2029_v54  ;;  %v2541_v28 = vrot.slane %v2533_v9, 9 }
  0x7a   : > { %2884 = vmatpush3.bf16.msra.mxu0 %v3091_v37  ;;  %v1818_v37 = vshll.u32 %v3652_v60, 16  ;;  %v1806_v63 = vrot.slane %v1804_v36, 5  ;;  %v2540_v60 = vrot.slane %v2532_v22, 9 }
  0x7b   : > { %2790 = vmatpush3.bf16.msra.mxu1 %v3092_v33  ;;  %2885 = vmatprep.subr.bf16.mxu0 %v3093_v43  ;;  %v2535_v33 = vld [vmem:[%s3212_s16 + $0x38] sm:$0xe] }
  0x7c   : > { %2791 = vmatprep.subr.bf16.mxu1 %v3094_v0  ;;  %v2543_v44 = vrot.slane %v2535_v33, 9  ;;  %v1820_v48 = vrot.slane %v1818_v37, 5 }
  0x7e   : > { %2886 = vmatpush3.bf16.msra.mxu0 %v3093_v43  ;;  %v3105_v43 = vld [vmem:[%s3747_s1 + $0x208] sm:$0xff]   ;;  %v2022_v62 = vsel %vm3431_vm5, %v2543_v44, %v2021_v45  ;;  %v2558_v44 = vld [vmem:[%s3748_s2] ss:$0 sm:$0xff] }
  0x7f   : > { %2792 = vmatpush3.bf16.msra.mxu1 %v3094_v0  ;;  %2887 = vmatprep.subr.bf16.mxu0 %v3095_v52  ;;  %v2542_v0 = vrot.slane %v2534_v21, 9  ;;  %v2014_v21 = vsel %vm3431_vm5, %v2541_v28, %v2013_v32 }
  0x80   : > { %2793 = vmatprep.subr.bf16.mxu1 %v3097_v26 }
  0x81   : > { %v2018_v47 = vsel %vm3431_vm5, %v2542_v0, %v2017_v55 }
  0x82   : > { %2888 = vmatpush3.bf16.msra.mxu0 %v3095_v52  ;;  %v1802_v52 = vrot.slane %v1801_v42, 4  ;;  %v2548_v34 = vcombine.low %v2018_v47, %v2022_v62 }
  0x83   : > { %2794 = vmatpush3.bf16.msra.mxu1 %v3097_v26  ;;  %2889 = vmatprep.subr.bf16.mxu0 %v3099_v56  ;;  %v1816_v26 = vrot.slane %v1815_v30, 4 }
  0x84   : > { %2795 = vmatprep.subr.bf16.mxu1 %v3100_v15  ;;  %v1807_v17 = vsel %vm3257_vm2, %v1802_v52, %v1806_v63 }
  0x85   : > { %v1821_v27 = vsel %vm3257_vm2, %v1816_v26, %v1820_v48 }
  0x86   : > { %2890 = vmatpush3.bf16.msra.mxu0 %v3099_v56  ;;  %v2521_v46 = vcombine.low %v1807_v17, %v1821_v27  ;;  %v2536_v56 = vld [vmem:[%s3212_s16 + $0x40] sm:$0xe] }
  0x87   : > { %2796 = vmatpush3.bf16.msra.mxu1 %v3100_v15  ;;  %2891 = vmatprep.subr.bf16.mxu0 %v3101_v12  ;;  %v3112_v15 = vld [vmem:[%s3747_s1 + $0x230] sm:$0xff]   ;;  %v2544_v18 = vrot.slane %v2536_v56, 9 }
  0x88   : > { %2925 = vmatprep.subr.bf16.mxu1 %v3104_v11 }
  0x89   : > { %v2026_v1 = vsel %vm3431_vm5, %v2544_v18, %v2025_v14 }
  0x8a   : > { %2798 = vmatmul.mubr.bf16.vlgmr.msra.gmra.mrb[0].mxu1 %v3103_v35  ;;  %2892 = vmatpush3.bf16.msra.mxu0 %v3101_v12  ;;  %v2010_v12 = vsel %vm3431_vm5, %v2540_v60, %v2009_v25 }
  0x8b   : > { %2933 = vmatpush3.bf16.msra.mxu1 %v3104_v11  ;;  %2801 = vmatprep.mubr.bf16.mxu1 %v3106_v39  ;;  %v2547_v33 = vcombine.low %v2010_v12, %v2014_v21 }
  0x8c   : > { %2926 = vmatprep.subr.bf16.mxu1 %v3105_v43  ;;  %2901 = vmatprep.subr.bf16.mxu0 %v3104_v11 }
  0x8d   : > { %2894 = vmatmul.mubr.bf16.vlgmr.msra.gmra.mrb[0].mxu0 %v2519_v29 }
  0x8e   : > { %2902 = vmatpush3.bf16.msra.mxu0 %v3104_v11  ;;  %2897 = vmatprep.mubr.bf16.mxu0 %v2520_v13  ;;  %v2549_v11 = vcombine.low %v2026_v1, %v2030_v23 }
  0x8f   : > { %2934 = vmatpush3.bf16.msra.mxu1 %v3105_v43  ;;  %2903 = vmatprep.subr.bf16.mxu0 %v3105_v43 }
  0x90   : > { %2927 = vmatprep.subr.bf16.mxu1 %v3108_v58 }
  0x92   : > { %2802 = vmatmul.mubr.bf16.gmra.mrb[4].mxu1 %v3107_v59  ;;  %2904 = vmatpush3.bf16.msra.mxu0 %v3105_v43 }
  0x93   : > { %2935 = vmatpush3.bf16.msra.mxu1 %v3108_v58  ;;  %2921 = vmatprep.mubr.bf16.mxu1 %v2548_v34 }
  0x94   : > { %2928 = vmatprep.subr.bf16.mxu1 %v3109_v16  ;;  %2905 = vmatprep.subr.bf16.mxu0 %v3108_v58 }
  0x95   : > { %2898 = vmatmul.mubr.bf16.gmra.mrb[4].mxu0 %v2521_v46 }
  0x96   : > { %2906 = vmatpush3.bf16.msra.mxu0 %v3108_v58  ;;  %2917 = vmatprep.mubr.bf16.mxu0 %v2546_v50 }
  0x97   : > { %2936 = vmatpush3.bf16.msra.mxu1 %v3109_v16  ;;  %2907 = vmatprep.subr.bf16.mxu0 %v3109_v16 }
  0x98   : > { %2929 = vmatprep.subr.bf16.mxu1 %v3110_v38 }
  0x9a   : > { %2908 = vmatpush3.bf16.msra.mxu0 %v3109_v16 }
  0x9b   : > { %2937 = vmatpush3.bf16.msra.mxu1 %v3110_v38  ;;  %2909 = vmatprep.subr.bf16.mxu0 %v3110_v38 }
  0x9c   : > { %2930 = vmatprep.subr.bf16.mxu1 %v3111_v6 }
  0x9e   : > { %2910 = vmatpush3.bf16.msra.mxu0 %v3110_v38 }
  0x9f   : > { %2938 = vmatpush3.bf16.msra.mxu1 %v3111_v6  ;;  %2911 = vmatprep.subr.bf16.mxu0 %v3111_v6 }
  0xa0   : > { %2931 = vmatprep.subr.bf16.mxu1 %v3112_v15 }
  0xa2   : > { %2912 = vmatpush3.bf16.msra.mxu0 %v3111_v6 }
  0xa3   : > { %2939 = vmatpush3.bf16.msra.mxu1 %v3112_v15  ;;  %2913 = vmatprep.subr.bf16.mxu0 %v3112_v15 }
  0xa4   : > { %2932 = vmatprep.subr.bf16.mxu1 %v3113_v20 }
  0xa6   : > { %2914 = vmatpush3.bf16.msra.mxu0 %v3112_v15 }
  0xa7   : > { %2940 = vmatpush3.bf16.msra.mxu1 %v3113_v20  ;;  %2915 = vmatprep.subr.bf16.mxu0 %v3113_v20 }
  0xaa   : > { %2922 = vmatmul.mubr.bf16.vlgmr.msra.gmra.mrb[8].mxu1 %v2549_v11  ;;  %2916 = vmatpush3.bf16.msra.mxu0 %v3113_v20 }
  0xad   : > { %2918 = vmatmul.mubr.bf16.vlgmr.msra.gmra.mrb[0].mxu0 %v2547_v33 }
 0x15d   : > { %v2799_v35 = vpop.f32.mrb[0].mxu1 }
 0x15e   : > { %v995_v51 = vpop.f32.mrb[1].mxu1 }
 0x15f   : > { %v2800_v31 = vpop.f32.mrb[2].mxu1 }
 0x160   : > { %v998_v57 = vpop.f32.mrb[3].mxu1 }
 0x165   : > { %v2803_v2 = vpop.f32.mrb[4].mxu1 }
 0x166   : > { %v1011_v36 = vpop.f32.mrb[5].mxu1 }
 0x167   : > { %v2804_v37 = vpop.f32.mrb[6].mxu1 }
 0x168   : > { %v1014_v39 = vpop.f32.mrb[7].mxu1  ;;  %v2899_v40 = vpop.f32.mrb[4].mxu0 }
 0x169   : > { %v2945_v41 = vadd.f32 %v2899_v40, %v2803_v2  ;;  %v1952_v42 = vpop.f32.mrb[5].mxu0 }
 0x16a   : > { %v2947_v30 = vadd.f32 %v1952_v42, %v1011_v36  ;;  %v2900_v43 = vpop.f32.mrb[6].mxu0 }
 0x16b   : > { %v2949_v8 = vadd.f32 %v2900_v43, %v2804_v37  ;;  %v1955_v0 = vpop.f32.mrb[7].mxu0 }
 0x16c   : > { %v2951_v55 = vadd.f32 %v1955_v0, %v1014_v39 }
 0x17d   : > { %v2923_v45 = vpop.f32.mrb[8].mxu1 }
 0x17e   : > { %v2946_v29 = vadd.f32 %v2945_v41, %v2923_v45  ;;  %v2161_v13 = vpop.f32.mrb[9].mxu1 }
 0x17f   : > { %v2948_v63 = vadd.f32 %v2947_v30, %v2161_v13  ;;  %v2924_v48 = vpop.f32.mrb[10].mxu1 }
 0x180   : > { %v2197_v49 = vadd.f32 %v2946_v29, %v2558_v44  ;;  %v2950_v53 = vadd.f32 %v2949_v8, %v2924_v48  ;;  %v2164_v52 = vpop.f32.mrb[11].mxu1  ;;  %v2919_v62 = vpop.f32.mrb[0].mxu0 }
 0x181   : > { %v2195_v26 = vadd.f32 %v2948_v63, %v2558_v44  ;;  %v2952_v47 = vadd.f32 %v2951_v55, %v2164_v52  ;;  %v2941_v59 = vadd.f32 %v2919_v62, %v2799_v35  ;;  %v2145_v3 = vpop.f32.mrb[1].mxu0 }
 0x182   : > { %v2198_v58 = vadd.f32 %v2950_v53, %v2558_v44  ;;  %v2205_v5 = vmax.f32 %v2197_v49, 0.0  ;;  %v2942_v7 = vadd.f32 %v2145_v3, %v995_v51  ;;  %v2920_v34 = vpop.f32.mrb[2].mxu0 }
 0x183   : > { %v2196_v4 = vadd.f32 %v2952_v47, %v2558_v44  ;;  %v2193_v27 = vadd.f32 %v2941_v59, %v2558_v44  ;;  %v2203_v16 = vmax.f32 %v2195_v26, 0.0  ;;  %v2943_v24 = vadd.f32 %v2920_v34, %v2800_v31  ;;  %v2148_v61 = vpop.f32.mrb[3].mxu0 }
 0x184   : > { %v2206_v17 = vmax.f32 %v2198_v58, 0.0  ;;  %v2191_v38 = vadd.f32 %v2942_v7, %v2558_v44  ;;  %v2944_v6 = vadd.f32 %v2148_v61, %v998_v57 }
 0x185   : > { %v2204_v46 = vmax.f32 %v2196_v4, 0.0  ;;  %v2194_v15 = vadd.f32 %v2943_v24, %v2558_v44  ;;  %v2201_v14 = vmax.f32 %v2193_v27, 0.0 }
 0x186   : > { %v2596_v50 = vpack.c.bf16 %v2206_v17, %v2205_v5  ;;  %v2192_v10 = vadd.f32 %v2944_v6, %v2558_v44  ;;  %v2199_v18 = vmax.f32 %v2191_v38, 0.0 }
 0x187   : > { %v2591_v56 = vpack.c.bf16 %v2204_v46, %v2203_v16  ;;  %v2202_v54 = vmax.f32 %v2194_v15, 0.0 }
 0x188   : > { %2600 = vst [vmem:[%s221_s8 + $0x18] sm:$0xff] %v2596_v50   ;;  %v2200_v19 = vmax.f32 %v2192_v10, 0.0 }
 0x189   : > { %2599 = vst [vmem:[%s221_s8 + $0x10] sm:$0xff] %v2591_v56   ;;  %v2586_v20 = vpack.c.bf16 %v2202_v54, %v2201_v14 }
 0x18a   : > { %v2581_v22 = vpack.c.bf16 %v2200_v19, %v2199_v18 }
 0x18b   : > { %2598 = vst [vmem:[%s221_s8 + $0x8] sm:$0xff] %v2586_v20  }
 0x18c   : > { %2582 = vst [vmem:[%s221_s8] sm:$0xff] %v2581_v22  }
 0x18d PF: > { %s13_s14 = sadd.s32 1, %s3136_s14   ;;  %s3754_s12 = smov %s3132_s13 }
 0x18e   : > { %p10_p5 = scmp.ge.s32.totalorder %s13_s14, 4   ;;  %s3755_s13 = smov %s3757_s15 }
 0x190   :  { %12 = sbr.rel (!%p10_p5) target bundleno = 2 (0x2), region = 70 }

</bundles_post_ra>
